<compile_context>
chip_gen: v6e
topology: v6e:2x2x1
jax: 0.10.0
libtpu: 0.0.40
codegen_flags: <defaults>
</compile_context>

<pallas_src>
import math

import jax
import jax.numpy as jnp
from jax import lax
from jax.experimental import pallas as pl

# ----------------------------- configuration ------------------------------
IMG_SIZE = 32          # input image spatial size (PyTorch MedSAM uses 256)
EMBED_DIM = 32         # transformer / image-embedding channels
GRID = IMG_SIZE // 4   # image-embedding spatial size (8)
NUM_HEADS = 2
MLP_DIM = 64
NUM_MASK_TOKENS = 4    # num_multimask_outputs (3) + 1
T_REAL = 1 + NUM_MASK_TOKENS + 2   # iou token + mask tokens + 2 box corners = 7
T_PAD = 8                          # padded to one full sublane group


# ----------------------------- in-kernel helpers ---------------------------
def _mm(a, b):
    """MXU matmul: bf16 operands, f32 accumulation."""
    return jnp.dot(a.astype(jnp.bfloat16), b.astype(jnp.bfloat16),
                   preferred_element_type=jnp.float32)


def _gelu(x):
    # TODO(synk): PyTorch nn.GELU defaults to exact erf; the tanh approximation
    # is used here for a guaranteed EUP lowering (== jax.nn.gelu(approximate=True)).
    c = math.sqrt(2.0 / math.pi)
    return 0.5 * x * (1.0 + jnp.tanh(c * (x + 0.044715 * x * x * x)))


def _layer_norm(x, w, b, eps=1e-5):
    mu = jnp.mean(x, axis=-1, keepdims=True)
    xc = x - mu
    var = jnp.mean(xc * xc, axis=-1, keepdims=True)
    return xc * lax.rsqrt(var + eps) * w + b


def _softmax_lastdim(s):
    """Softmax over the last dim; denominator via approx EUP reciprocal."""
    s = s - jnp.max(s, axis=-1, keepdims=True)
    p = jnp.exp(s)
    return p * pl.reciprocal(jnp.sum(p, axis=-1, keepdims=True), approx=True)


def _mha(x_q, x_k, x_v, qkv_w, qkv_b, out_w, out_b, key_mask=None):
    """SAM-style multi-head attention on (B, Tq, E) / (B, Tk, E) operands.

    QKV / output projections fold batch into the matmul M dimension; per-head
    score/AV matmuls are batched over B and the output projection is
    accumulated per head (no lane-dim concat).  `key_mask` is an optional
    additive (1, 1, Tk) mask hiding padded key columns."""
    B, Tq, E = x_q.shape
    Tk = x_k.shape[1]
    d = qkv_w.shape[1] // 3
    dh = d // NUM_HEADS
    if (x_q is x_k) and (x_k is x_v):            # self-attention: fused QKV matmul
        qkv = (_mm(x_q.reshape(B * Tq, E), qkv_w) + qkv_b).reshape(B, Tq, 3 * d)
        q, k, v = qkv[..., :d], qkv[..., d:2 * d], qkv[..., 2 * d:]
    else:
        q = (_mm(x_q.reshape(B * Tq, E), qkv_w[:, :d]) + qkv_b[:, :d]).reshape(B, Tq, d)
        k = (_mm(x_k.reshape(B * Tk, E), qkv_w[:, d:2 * d]) + qkv_b[:, d:2 * d]).reshape(B, Tk, d)
        v = (_mm(x_v.reshape(B * Tk, E), qkv_w[:, 2 * d:]) + qkv_b[:, 2 * d:]).reshape(B, Tk, d)
    scale = 1.0 / math.sqrt(dh)
    out = None
    for h in range(NUM_HEADS):                   # static; proj accumulated, never concat'd
        sl = slice(h * dh, (h + 1) * dh)
        s = jnp.einsum('bqd,bkd->bqk',
                       q[..., sl].astype(jnp.bfloat16), k[..., sl].astype(jnp.bfloat16),
                       preferred_element_type=jnp.float32) * scale
        if key_mask is not None:
            s = s + key_mask
        p = _softmax_lastdim(s)                  # softmax kept in f32
        oh = jnp.einsum('bqk,bkd->bqd',
                        p.astype(jnp.bfloat16), v[..., sl].astype(jnp.bfloat16),
                        preferred_element_type=jnp.float32)
        proj = _mm(oh.reshape(B * Tq, dh), out_w[sl, :]).reshape(B, Tq, E)
        out = proj if out is None else out + proj
    return out + out_b


# ----------------------------- Pallas kernels ------------------------------
def _conv_relu_kernel(cols_ref, w_ref, b_ref, o_ref):
    """First strided conv as im2col matmul + bias + ReLU."""
    o_ref[...] = jnp.maximum(_mm(cols_ref[...], w_ref[...]) + b_ref[...], 0.0)


def _conv_neck_kernel(cols_ref, w_ref, b_ref, wn_ref, bn_ref, nme_ref, o_ref):
    """conv2 (3x3 s2) + ReLU fused with the 1x1 neck and the dense no-mask
    prompt embedding add:  src = image_embedding + dense_prompt."""
    h = jnp.maximum(_mm(cols_ref[...], w_ref[...]) + b_ref[...], 0.0)
    o_ref[...] = _mm(h, wn_ref[...]) + bn_ref[...] + nme_ref[...]


def _twoway_kernel(tokens_ref, src_ref, pe_ref, lnw_ref, lnb_ref,
                   sa_qkv_w, sa_qkv_b, sa_out_w, sa_out_b,
                   ct_qkv_w, ct_qkv_b, ct_out_w, ct_out_b,
                   mlp1_w, mlp1_b, mlp2_w, mlp2_b,
                   ci_qkv_w, ci_qkv_b, ci_out_w, ci_out_b,
                   fa_qkv_w, fa_qkv_b, fa_out_w, fa_out_b,
                   hs_ref, srco_ref):
    """Whole two-way transformer (1 block + final attn) fused in one kernel;
    batch is folded into the matmul M dim, activations never leave VMEM."""
    B, T, E = tokens_ref.shape

    point_emb = tokens_ref[...]                  # (B, T, E): padded queries / query_pe
    keys = src_ref[...]                          # (B, S, E)
    key_pe = pe_ref[...][None]                   # (1, S, E)
    lnw = lnw_ref[...]
    lnb = lnb_ref[...]
    sa = (sa_qkv_w[...], sa_qkv_b[...], sa_out_w[...], sa_out_b[...])
    ct = (ct_qkv_w[...], ct_qkv_b[...], ct_out_w[...], ct_out_b[...])
    ci = (ci_qkv_w[...], ci_qkv_b[...], ci_out_w[...], ci_out_b[...])
    fa = (fa_qkv_w[...], fa_qkv_b[...], fa_out_w[...], fa_out_b[...])
    w1 = mlp1_w[...]; b1 = mlp1_b[...]
    w2 = mlp2_w[...]; b2 = mlp2_b[...]

    # additive -inf mask hiding the padded token column wherever tokens are keys
    tok_mask = jnp.where(
        lax.broadcasted_iota(jnp.int32, (1, 1, T), 2) < T_REAL, 0.0, -1e30
    ).astype(jnp.float32)

    # ---- two-way block 0 (skip_first_layer_pe=True) ----
    queries = _mha(point_emb, point_emb, point_emb, *sa, key_mask=tok_mask)
    queries = _layer_norm(queries, lnw[0:1], lnb[0:1])

    k_img = keys + key_pe                        # reused by both cross-attentions
    q_tok = queries + point_emb
    queries = queries + _mha(q_tok, k_img, keys, *ct)     # token -> image cross-attn
    queries = _layer_norm(queries, lnw[1:2], lnb[1:2])

    hmid = jnp.maximum(_mm(queries.reshape(B * T, E), w1) + b1, 0.0)
    queries = queries + (_mm(hmid, w2) + b2).reshape(B, T, E)
    queries = _layer_norm(queries, lnw[2:3], lnb[2:3])

    q_tok = queries + point_emb
    keys = keys + _mha(k_img, q_tok, queries, *ci, key_mask=tok_mask)   # image -> token
    keys = _layer_norm(keys, lnw[3:4], lnb[3:4])

    # ---- final token-to-image attention ----
    q_tok = queries + point_emb
    k_img = keys + key_pe
    queries = queries + _mha(q_tok, k_img, keys, *fa)
    queries = _layer_norm(queries, lnw[4:5], lnb[4:5])

    hs_ref[...] = queries
    srco_ref[...] = keys


def _mask_head_kernel(srco_ref, mtok_ref,
                      up1w_ref, up1b_ref, lnw_ref, lnb_ref,
                      up2w_ref, up2b_ref,
                      hw1_ref, hb1_ref, hw2_ref, hb2_ref, hw3_ref, hb3_ref,
                      mavg_ref, ttile_ref, ssum_ref,
                      out_ref):
    """ConvT(2,2) -> LayerNorm2d -> GELU -> ConvT(2,2) -> GELU -> hyper product,
    in a nested-block channel-last layout (columns = (sub1, sub2, chan)).
    Batch folded into the matmul M dim; group statistics / tiling / segment
    sums use host-built bf16 constant matrices (no f32 MXU dots, no iota)."""
    B, S, E = srco_ref.shape

    # hyper-network MLP for mask token 0 only (multimask_output=False)
    h = jnp.maximum(_mm(mtok_ref[...], hw1_ref[...]) + hb1_ref[...], 0.0)
    h = jnp.maximum(_mm(h, hw2_ref[...]) + hb2_ref[...], 0.0)
    hyper = _mm(h, hw3_ref[...]) + hb3_ref[...]                    # (B, C2)
    hyper_t = _mm(hyper, ttile_ref[...])                           # (B, W2): tiled over groups

    x = srco_ref[...].reshape(B * S, E)                            # image tokens
    x1 = _mm(x, up1w_ref[...]) + up1b_ref[...]                     # (B*S, 32): (sub1, c1)
    m_avg = mavg_ref[...]
    mu = _mm(x1, m_avg)                                            # grouped mean (per pixel)
    xc = x1 - mu
    var = _mm(xc * xc, m_avg)
    x1 = (xc * lax.rsqrt(var + 1e-6)) * lnw_ref[...] + lnb_ref[...]   # LayerNorm2d
    x1 = _gelu(x1)
    x2 = _gelu(_mm(x1, up2w_ref[...]) + up2b_ref[...])             # (B*S, 64): (sub1, sub2, c2)
    prod = x2.reshape(B, S, -1) * hyper_t[:, None, :]              # hyper-in product
    out_ref[...] = _mm(prod.reshape(B * S, -1), ssum_ref[...]).reshape(B, S, -1)


# ----------------------------- JAX glue ------------------------------------
def _im2col_nhwc(x, k, stride, pad):
    B, H, W, C = x.shape
    xp = jnp.pad(x, ((0, 0), (pad, pad), (pad, pad), (0, 0)))
    Ho = (H + 2 * pad - k) // stride + 1
    Wo = (W + 2 * pad - k) // stride + 1
    patches = []
    for i in range(k):
        for j in range(k):
            patches.append(xp[:, i:i + stride * Ho:stride, j:j + stride * Wo:stride, :])
    cols = jnp.concatenate(patches, axis=-1)                      # (B, Ho, Wo, k*k*C)
    return cols.reshape(B * Ho * Wo, k * k * C), Ho, Wo


def _pe_encoding(gauss, coords):
    c = 2.0 * coords - 1.0
    proj = (2.0 * math.pi) * (c @ gauss)
    return jnp.concatenate([jnp.sin(proj), jnp.cos(proj)], axis=-1)


def _dense_pe(gauss):
    g = (jnp.arange(GRID, dtype=jnp.float32) + 0.5) / GRID
    yy, xx = jnp.meshgrid(g, g, indexing="ij")
    coords = jnp.stack([xx, yy], axis=-1)                         # (G, G, 2)
    return _pe_encoding(gauss, coords).reshape(GRID * GRID, EMBED_DIM)


# ----------------------------- MedSAM_Lite forward -------------------------
def medsam_lite_forward(params, image, box_np):
    B = image.shape[0]
    E = EMBED_DIM
    enc, pp, dec = params["enc"], params["prompt"], params["dec"]
    t = dec["transformer"]

    # ---- image encoder: two strided convs + 1x1 neck (2 fused Pallas kernels)
    # TODO(synk): at real MedSAM sizes move im2col in-kernel and fuse
    # conv1->conv2->neck so the intermediate activation never touches HBM.
    x = image.transpose(0, 2, 3, 1)                               # NCHW -> NHWC
    cols1, H1, W1 = _im2col_nhwc(x, 3, 2, 1)                      # (B*256, 27)
    h1 = pl.pallas_call(
        _conv_relu_kernel,
        out_shape=jax.ShapeDtypeStruct((cols1.shape[0], enc["c1_wmat"].shape[1]),
                                       jnp.float32),
    )(cols1, enc["c1_wmat"], enc["c1_b"])
    cols2, H2, W2 = _im2col_nhwc(h1.reshape(B, H1, W1, -1), 3, 2, 1)   # (B*64, 144)
    src = pl.pallas_call(
        _conv_neck_kernel,
        out_shape=jax.ShapeDtypeStruct((cols2.shape[0], E), jnp.float32),
    )(cols2, enc["c2_wmat"], enc["c2_b"], enc["neck_wmat"], enc["neck_b"],
      pp["no_mask_embed"])
    src = src.reshape(B, H2 * W2, E)            # keys = image embedding + dense prompt

    # ---- prompt encoder (tiny coord math kept in plain JAX glue)
    boxes = jnp.asarray(box_np, jnp.float32).reshape(-1, 2, 2) + 0.5
    coords = boxes / jnp.array([IMG_SIZE, IMG_SIZE], jnp.float32)
    sparse = _pe_encoding(pp["pe_gauss"], coords) + pp["box_emb"][None]   # (B, 2, E)
    image_pe = _dense_pe(pp["pe_gauss"])                                  # (64, E)

    out_tok = jnp.concatenate([dec["iou_token"], dec["mask_tokens"]], axis=0)   # (5, E)
    tokens = jnp.concatenate(
        [jnp.broadcast_to(out_tok[None], (B,) + out_tok.shape), sparse], axis=1)  # (B, 7, E)
    tokens = jnp.pad(tokens, ((0, 0), (0, T_PAD - T_REAL), (0, 0)))     # sublane-dense T=8

    # ---- fused two-way transformer (single Pallas kernel)
    # TODO(synk): on v7x add a batch-parallel grid axis to shard B across 2 TCs.
    sa, ct, ci, fa = t["self_attn"], t["cross_t2i"], t["cross_i2t"], t["final_attn"]
    hs, srco = pl.pallas_call(
        _twoway_kernel,
        out_shape=(jax.ShapeDtypeStruct(tokens.shape, jnp.float32),
                   jax.ShapeDtypeStruct(src.shape, jnp.float32)),
    )(tokens, src, image_pe, t["ln_w"], t["ln_b"],
      sa["qkv_w"], sa["qkv_b"], sa["out_w"], sa["out_b"],
      ct["qkv_w"], ct["qkv_b"], ct["out_w"], ct["out_b"],
      t["mlp1_w"], t["mlp1_b"], t["mlp2_w"], t["mlp2_b"],
      ci["qkv_w"], ci["qkv_b"], ci["out_w"], ci["out_b"],
      fa["qkv_w"], fa["qkv_b"], fa["out_w"], fa["out_b"])

    # ---- fused upscaling + hyper-MLP + mask product (single Pallas kernel)
    mask_tok0 = hs[:, 1, :]                     # mask token #0 (multimask_output=False)
    out_blk = pl.pallas_call(
        _mask_head_kernel,
        out_shape=jax.ShapeDtypeStruct((B, GRID * GRID, 16), jnp.float32),
    )(srco, mask_tok0,
      dec["up1_wmat"], dec["up1_b"], dec["ln_up_w"], dec["ln_up_b"],
      dec["up2_wblk"], dec["up2_b"],
      dec["hyper0_w1"], dec["hyper0_b1"], dec["hyper0_w2"], dec["hyper0_b2"],
      dec["hyper0_w3"], dec["hyper0_b3"],
      dec["m_avg"], dec["t_tile"], dec["s_sum"])

    # nested-block order (i, j, d1, d2) -> spatial (4i+2*di1+di2, 4j+2*dj1+dj2)
    m = out_blk.reshape(B, GRID, GRID, 2, 2, 2, 2).transpose(0, 1, 3, 5, 2, 4, 6)
    low_res_masks = m.reshape(B, 1, IMG_SIZE, IMG_SIZE)
    return low_res_masks
    # TODO(synk): postprocess_masks (bilinear F.interpolate resize) is not part of
    # forward() and is left unimplemented.


# ----------------------------- deterministic params ------------------------
def _randn(key, shape, scale=0.02):
    return scale * jax.random.normal(key, shape, jnp.float32)


def init_params(key):
    keys = iter(jax.random.split(key, 64))
    nk = lambda: next(keys)
    E = EMBED_DIM
    bf16 = jnp.bfloat16
    zeros2 = lambda n: jnp.zeros((1, n), jnp.float32)

    def attn_params(internal):
        return dict(qkv_w=_randn(nk(), (E, 3 * internal)).astype(bf16),  # packed [Wq|Wk|Wv]
                    qkv_b=zeros2(3 * internal),
                    out_w=_randn(nk(), (internal, E)).astype(bf16),
                    out_b=zeros2(E))

    # encoder conv weights (generated in PyTorch layout, packed to matmul form, bf16)
    c1_w = _randn(nk(), (16, 3, 3, 3))
    c2_w = _randn(nk(), (32, 16, 3, 3))
    neck_w = _randn(nk(), (E, 32, 1, 1))
    enc = dict(
        c1_wmat=c1_w.transpose(2, 3, 1, 0).reshape(27, 16).astype(bf16), c1_b=zeros2(16),
        c2_wmat=c2_w.transpose(2, 3, 1, 0).reshape(144, 32).astype(bf16), c2_b=zeros2(32),
        neck_wmat=neck_w.reshape(E, 32).T.astype(bf16), neck_b=zeros2(E),
    )

    prompt = dict(
        pe_gauss=jax.random.normal(nk(), (2, E // 2), jnp.float32),
        box_emb=_randn(nk(), (2, E), 1.0),
        no_mask_embed=_randn(nk(), (1, E), 1.0),
    )

    transformer = dict(
        self_attn=attn_params(E),
        cross_t2i=attn_params(E // 2),
        cross_i2t=attn_params(E // 2),
        final_attn=attn_params(E // 2),
        mlp1_w=_randn(nk(), (E, MLP_DIM)).astype(bf16), mlp1_b=zeros2(MLP_DIM),
        mlp2_w=_randn(nk(), (MLP_DIM, E)).astype(bf16), mlp2_b=zeros2(E),
        ln_w=jnp.ones((5, E), jnp.float32),     # norm1..norm4, norm_final
        ln_b=jnp.zeros((5, E), jnp.float32),
    )

    # mask-decoder upscaling path, packed into the nested-block matmul layout
    up1_w = _randn(nk(), (E, E // 4, 2, 2))       # ConvTranspose2d(E, E//4, 2, 2)
    up1_b = jnp.zeros((E // 4,), jnp.float32)
    up2_w = _randn(nk(), (E // 4, E // 8, 2, 2))  # ConvTranspose2d(E//4, E//8, 2, 2)
    up2_b = jnp.zeros((E // 8,), jnp.float32)
    w2_mat = up2_w.transpose(0, 2, 3, 1).reshape(E // 4, 4 * (E // 8))

    # host-built constant matrices for the mask head (grouped mean / hyper tiling /
    # per-group channel sum), stored bf16 so they take the fast MXU path
    W1 = 4 * (E // 4)            # 32 columns of first upscale: (sub1, c1)
    W2 = 16 * (E // 8)           # 64 columns of second upscale: (sub1, sub2, c2)
    C2 = E // 8                  # 4 output channels of second upscale
    G = E // 4                   # 8 channels per LayerNorm2d group
    col1 = jnp.arange(W1)
    m_avg = ((col1[:, None] // G) == (col1[None, :] // G)).astype(jnp.float32) / G
    t_tile = (jnp.arange(C2)[:, None] == (jnp.arange(W2)[None, :] % C2)).astype(jnp.float32)
    s_sum = ((jnp.arange(W2)[:, None] // C2)
             == jnp.arange(W2 // C2)[None, :]).astype(jnp.float32)

    dec = dict(
        iou_token=_randn(nk(), (1, E), 1.0),
        mask_tokens=_randn(nk(), (NUM_MASK_TOKENS, E), 1.0),
        transformer=transformer,
        up1_wmat=up1_w.transpose(0, 2, 3, 1).reshape(E, W1).astype(bf16),
        up1_b=jnp.tile(up1_b, 4).reshape(1, -1),
        ln_up_w=jnp.tile(jnp.ones((E // 4,), jnp.float32), 4).reshape(1, -1),
        ln_up_b=jnp.tile(jnp.zeros((E // 4,), jnp.float32), 4).reshape(1, -1),
        up2_wblk=jnp.kron(jnp.eye(4, dtype=jnp.float32), w2_mat).astype(bf16),
        up2_b=jnp.tile(up2_b, 16).reshape(1, -1),
        hyper0_w1=_randn(nk(), (E, E)).astype(bf16), hyper0_b1=zeros2(E),
        hyper0_w2=_randn(nk(), (E, E)).astype(bf16), hyper0_b2=zeros2(E),
        hyper0_w3=_randn(nk(), (E, E // 8)).astype(bf16), hyper0_b3=zeros2(E // 8),
        m_avg=m_avg.astype(bf16), t_tile=t_tile.astype(bf16), s_sum=s_sum.astype(bf16),
    )
    # NOTE: hyper MLPs 1-3 and the IoU-prediction head are intentionally omitted:
    # with multimask_output=False their results are never used by forward().
    return dict(enc=enc, prompt=prompt, dec=dec)


# ----------------------------- main ----------------------------------------
if __name__ == "__main__":
    key = jax.random.PRNGKey(0)
    pkey, ikey = jax.random.split(key)
    params = init_params(pkey)

    B = 2
    image = jax.random.normal(ikey, (B, 3, IMG_SIZE, IMG_SIZE), jnp.float32)
    box_np = jnp.array([[4.0, 6.0, 20.0, 24.0],
                        [2.0, 3.0, 28.0, 30.0]], dtype=jnp.float32)

    fwd = jax.jit(medsam_lite_forward)
    low_res_masks = jax.block_until_ready(fwd(params, image, box_np))

    assert low_res_masks.shape == (B, 1, IMG_SIZE, IMG_SIZE), low_res_masks.shape
    assert low_res_masks.dtype == jnp.float32
    assert bool(jnp.all(jnp.isfinite(low_res_masks)))
    print("KERNEL_OK")
</pallas_src>

<mosaic_0001>
module attributes {stable_mosaic.version = 11 : i64} {
  func.func @_conv_relu_kernel(%arg0: memref<512x27xf32, #tpu.memory_space<vmem>>, %arg1: memref<27x16xbf16, #tpu.memory_space<vmem>>, %arg2: memref<1x16xf32, #tpu.memory_space<vmem>>, %arg3: memref<512x16xf32, #tpu.memory_space<vmem>>) attributes {dimension_semantics = [], scalar_prefetch = 0 : i64, scratch_operands = 0 : i64, tpu.core_type = #tpu.core_type<tc>} {
    %c0 = arith.constant 0 : index
    %c0_0 = arith.constant 0 : index
    %0 = vector.load %arg0[%c0, %c0_0] : memref<512x27xf32, #tpu.memory_space<vmem>>, vector<512x27xf32>
    %c0_1 = arith.constant 0 : index
    %c0_2 = arith.constant 0 : index
    %1 = vector.load %arg1[%c0_1, %c0_2] : memref<27x16xbf16, #tpu.memory_space<vmem>>, vector<27x16xbf16>
    %2 = arith.truncf %0 : vector<512x27xf32> to vector<512x27xbf16>
    %cst = arith.constant dense<0.000000e+00> : vector<512x16xf32>
    %3 = tpu.matmul %2, %1, %cst {dimension_numbers = #tpu.dot_dimension_numbers<[1], [0], [0], [1], [0, 0, 1, 1], [], []>} : vector<512x27xbf16>, vector<27x16xbf16>, vector<512x16xf32> -> vector<512x16xf32>
    %c0_3 = arith.constant 0 : index
    %c0_4 = arith.constant 0 : index
    %4 = vector.load %arg2[%c0_3, %c0_4] : memref<1x16xf32, #tpu.memory_space<vmem>>, vector<1x16xf32>
    %5 = vector.broadcast %4 : vector<1x16xf32> to vector<512x16xf32>
    %6 = arith.addf %3, %5 : vector<512x16xf32>
    %cst_5 = arith.constant 0.000000e+00 : f32
    %7 = vector.broadcast %cst_5 : f32 to vector<512x16xf32>
    %8 = arith.maximumf %6, %7 : vector<512x16xf32>
    %c0_6 = arith.constant 0 : index
    %c0_7 = arith.constant 0 : index
    %9 = vector.load %arg3[%c0_6, %c0_7] : memref<512x16xf32, #tpu.memory_space<vmem>>, vector<512x16xf32>
    tpu.vector_store %arg3[%c0_6, %c0_7], %8 {strides = array<i32>} : memref<512x16xf32, #tpu.memory_space<vmem>>, vector<512x16xf32>,
    return
  }
}

module attributes {stable_mosaic.version = 11 : i64} {
  func.func @_conv_neck_kernel(%arg0: memref<128x144xf32, #tpu.memory_space<vmem>>, %arg1: memref<144x32xbf16, #tpu.memory_space<vmem>>, %arg2: memref<1x32xf32, #tpu.memory_space<vmem>>, %arg3: memref<32x32xbf16, #tpu.memory_space<vmem>>, %arg4: memref<1x32xf32, #tpu.memory_space<vmem>>, %arg5: memref<1x32xf32, #tpu.memory_space<vmem>>, %arg6: memref<128x32xf32, #tpu.memory_space<vmem>>) attributes {dimension_semantics = [], scalar_prefetch = 0 : i64, scratch_operands = 0 : i64, tpu.core_type = #tpu.core_type<tc>} {
    %c0 = arith.constant 0 : index
    %c0_0 = arith.constant 0 : index
    %0 = vector.load %arg0[%c0, %c0_0] : memref<128x144xf32, #tpu.memory_space<vmem>>, vector<128x144xf32>
    %c0_1 = arith.constant 0 : index
    %c0_2 = arith.constant 0 : index
    %1 = vector.load %arg1[%c0_1, %c0_2] : memref<144x32xbf16, #tpu.memory_space<vmem>>, vector<144x32xbf16>
    %2 = arith.truncf %0 : vector<128x144xf32> to vector<128x144xbf16>
    %cst = arith.constant dense<0.000000e+00> : vector<128x32xf32>
    %3 = tpu.matmul %2, %1, %cst {dimension_numbers = #tpu.dot_dimension_numbers<[1], [0], [0], [1], [0, 0, 1, 1], [], []>} : vector<128x144xbf16>, vector<144x32xbf16>, vector<128x32xf32> -> vector<128x32xf32>
    %c0_3 = arith.constant 0 : index
    %c0_4 = arith.constant 0 : index
    %4 = vector.load %arg2[%c0_3, %c0_4] : memref<1x32xf32, #tpu.memory_space<vmem>>, vector<1x32xf32>
    %5 = vector.broadcast %4 : vector<1x32xf32> to vector<128x32xf32>
    %6 = arith.addf %3, %5 : vector<128x32xf32>
    %cst_5 = arith.constant 0.000000e+00 : f32
    %7 = vector.broadcast %cst_5 : f32 to vector<128x32xf32>
    %8 = arith.maximumf %6, %7 : vector<128x32xf32>
    %c0_6 = arith.constant 0 : index
    %c0_7 = arith.constant 0 : index
    %9 = vector.load %arg3[%c0_6, %c0_7] : memref<32x32xbf16, #tpu.memory_space<vmem>>, vector<32x32xbf16>
    %10 = arith.truncf %8 : vector<128x32xf32> to vector<128x32xbf16>
    %cst_8 = arith.constant dense<0.000000e+00> : vector<128x32xf32>
    %11 = tpu.matmul %10, %9, %cst_8 {dimension_numbers = #tpu.dot_dimension_numbers<[1], [0], [0], [1], [0, 0, 1, 1], [], []>} : vector<128x32xbf16>, vector<32x32xbf16>, vector<128x32xf32> -> vector<128x32xf32>
    %c0_9 = arith.constant 0 : index
    %c0_10 = arith.constant 0 : index
    %12 = vector.load %arg4[%c0_9, %c0_10] : memref<1x32xf32, #tpu.memory_space<vmem>>, vector<1x32xf32>
    %13 = vector.broadcast %12 : vector<1x32xf32> to vector<128x32xf32>
    %14 = arith.addf %11, %13 : vector<128x32xf32>
    %c0_11 = arith.constant 0 : index
    %c0_12 = arith.constant 0 : index
    %15 = vector.load %arg5[%c0_11, %c0_12] : memref<1x32xf32, #tpu.memory_space<vmem>>, vector<1x32xf32>
    %16 = vector.broadcast %15 : vector<1x32xf32> to vector<128x32xf32>
    %17 = arith.addf %14, %16 : vector<128x32xf32>
    %c0_13 = arith.constant 0 : index
    %c0_14 = arith.constant 0 : index
    %18 = vector.load %arg6[%c0_13, %c0_14] : memref<128x32xf32, #tpu.memory_space<vmem>>, vector<128x32xf32>
    tpu.vector_store %arg6[%c0_13, %c0_14], %17 {strides = array<i32>} : memref<128x32xf32, #tpu.memory_space<vmem>>, vector<128x32xf32>,
    return
  }
}

module attributes {stable_mosaic.version = 11 : i64} {
  func.func @_twoway_kernel(%arg0: memref<2x8x32xf32, #tpu.memory_space<vmem>>, %arg1: memref<2x64x32xf32, #tpu.memory_space<vmem>>, %arg2: memref<64x32xf32, #tpu.memory_space<vmem>>, %arg3: memref<5x32xf32, #tpu.memory_space<vmem>>, %arg4: memref<5x32xf32, #tpu.memory_space<vmem>>, %arg5: memref<32x96xbf16, #tpu.memory_space<vmem>>, %arg6: memref<1x96xf32, #tpu.memory_space<vmem>>, %arg7: memref<32x32xbf16, #tpu.memory_space<vmem>>, %arg8: memref<1x32xf32, #tpu.memory_space<vmem>>, %arg9: memref<32x48xbf16, #tpu.memory_space<vmem>>, %arg10: memref<1x48xf32, #tpu.memory_space<vmem>>, %arg11: memref<16x32xbf16, #tpu.memory_space<vmem>>, %arg12: memref<1x32xf32, #tpu.memory_space<vmem>>, %arg13: memref<32x64xbf16, #tpu.memory_space<vmem>>, %arg14: memref<1x64xf32, #tpu.memory_space<vmem>>, %arg15: memref<64x32xbf16, #tpu.memory_space<vmem>>, %arg16: memref<1x32xf32, #tpu.memory_space<vmem>>, %arg17: memref<32x48xbf16, #tpu.memory_space<vmem>>, %arg18: memref<1x48xf32, #tpu.memory_space<vmem>>, %arg19: memref<16x32xbf16, #tpu.memory_space<vmem>>, %arg20: memref<1x32xf32, #tpu.memory_space<vmem>>, %arg21: memref<32x48xbf16, #tpu.memory_space<vmem>>, %arg22: memref<1x48xf32, #tpu.memory_space<vmem>>, %arg23: memref<16x32xbf16, #tpu.memory_space<vmem>>, %arg24: memref<1x32xf32, #tpu.memory_space<vmem>>, %arg25: memref<2x8x32xf32, #tpu.memory_space<vmem>>, %arg26: memref<2x64x32xf32, #tpu.memory_space<vmem>>) attributes {dimension_semantics = [], scalar_prefetch = 0 : i64, scratch_operands = 0 : i64, tpu.core_type = #tpu.core_type<tc>} {
    %c0 = arith.constant 0 : index
    %c0_0 = arith.constant 0 : index
    %c0_1 = arith.constant 0 : index
    %0 = vector.load %arg0[%c0, %c0_0, %c0_1] : memref<2x8x32xf32, #tpu.memory_space<vmem>>, vector<2x8x32xf32>
    %c0_2 = arith.constant 0 : index
    %c0_3 = arith.constant 0 : index
    %c0_4 = arith.constant 0 : index
    %1 = vector.load %arg1[%c0_2, %c0_3, %c0_4] : memref<2x64x32xf32, #tpu.memory_space<vmem>>, vector<2x64x32xf32>
    %c0_5 = arith.constant 0 : index
    %c0_6 = arith.constant 0 : index
    %2 = vector.load %arg2[%c0_5, %c0_6] : memref<64x32xf32, #tpu.memory_space<vmem>>, vector<64x32xf32>
    %3 = vector.shape_cast %2 : vector<64x32xf32> to vector<1x64x32xf32>
    %c0_7 = arith.constant 0 : index
    %c0_8 = arith.constant 0 : index
    %4 = vector.load %arg3[%c0_7, %c0_8] : memref<5x32xf32, #tpu.memory_space<vmem>>, vector<5x32xf32>
    %c0_9 = arith.constant 0 : index
    %c0_10 = arith.constant 0 : index
    %5 = vector.load %arg4[%c0_9, %c0_10] : memref<5x32xf32, #tpu.memory_space<vmem>>, vector<5x32xf32>
    %c0_11 = arith.constant 0 : index
    %c0_12 = arith.constant 0 : index
    %6 = vector.load %arg5[%c0_11, %c0_12] : memref<32x96xbf16, #tpu.memory_space<vmem>>, vector<32x96xbf16>
    %c0_13 = arith.constant 0 : index
    %c0_14 = arith.constant 0 : index
    %7 = vector.load %arg6[%c0_13, %c0_14] : memref<1x96xf32, #tpu.memory_space<vmem>>, vector<1x96xf32>
    %c0_15 = arith.constant 0 : index
    %c0_16 = arith.constant 0 : index
    %8 = vector.load %arg7[%c0_15, %c0_16] : memref<32x32xbf16, #tpu.memory_space<vmem>>, vector<32x32xbf16>
    %c0_17 = arith.constant 0 : index
    %c0_18 = arith.constant 0 : index
    %9 = vector.load %arg8[%c0_17, %c0_18] : memref<1x32xf32, #tpu.memory_space<vmem>>, vector<1x32xf32>
    %c0_19 = arith.constant 0 : index
    %c0_20 = arith.constant 0 : index
    %10 = vector.load %arg9[%c0_19, %c0_20] : memref<32x48xbf16, #tpu.memory_space<vmem>>, vector<32x48xbf16>
    %c0_21 = arith.constant 0 : index
    %c0_22 = arith.constant 0 : index
    %11 = vector.load %arg10[%c0_21, %c0_22] : memref<1x48xf32, #tpu.memory_space<vmem>>, vector<1x48xf32>
    %c0_23 = arith.constant 0 : index
    %c0_24 = arith.constant 0 : index
    %12 = vector.load %arg11[%c0_23, %c0_24] : memref<16x32xbf16, #tpu.memory_space<vmem>>, vector<16x32xbf16>
    %c0_25 = arith.constant 0 : index
    %c0_26 = arith.constant 0 : index
    %13 = vector.load %arg12[%c0_25, %c0_26] : memref<1x32xf32, #tpu.memory_space<vmem>>, vector<1x32xf32>
    %c0_27 = arith.constant 0 : index
    %c0_28 = arith.constant 0 : index
    %14 = vector.load %arg17[%c0_27, %c0_28] : memref<32x48xbf16, #tpu.memory_space<vmem>>, vector<32x48xbf16>
    %c0_29 = arith.constant 0 : index
    %c0_30 = arith.constant 0 : index
    %15 = vector.load %arg18[%c0_29, %c0_30] : memref<1x48xf32, #tpu.memory_space<vmem>>, vector<1x48xf32>
    %c0_31 = arith.constant 0 : index
    %c0_32 = arith.constant 0 : index
    %16 = vector.load %arg19[%c0_31, %c0_32] : memref<16x32xbf16, #tpu.memory_space<vmem>>, vector<16x32xbf16>
    %c0_33 = arith.constant 0 : index
    %c0_34 = arith.constant 0 : index
    %17 = vector.load %arg20[%c0_33, %c0_34] : memref<1x32xf32, #tpu.memory_space<vmem>>, vector<1x32xf32>
    %c0_35 = arith.constant 0 : index
    %c0_36 = arith.constant 0 : index
    %18 = vector.load %arg21[%c0_35, %c0_36] : memref<32x48xbf16, #tpu.memory_space<vmem>>, vector<32x48xbf16>
    %c0_37 = arith.constant 0 : index
    %c0_38 = arith.constant 0 : index
    %19 = vector.load %arg22[%c0_37, %c0_38] : memref<1x48xf32, #tpu.memory_space<vmem>>, vector<1x48xf32>
    %c0_39 = arith.constant 0 : index
    %c0_40 = arith.constant 0 : index
    %20 = vector.load %arg23[%c0_39, %c0_40] : memref<16x32xbf16, #tpu.memory_space<vmem>>, vector<16x32xbf16>
    %c0_41 = arith.constant 0 : index
    %c0_42 = arith.constant 0 : index
    %21 = vector.load %arg24[%c0_41, %c0_42] : memref<1x32xf32, #tpu.memory_space<vmem>>, vector<1x32xf32>
    %c0_43 = arith.constant 0 : index
    %c0_44 = arith.constant 0 : index
    %22 = vector.load %arg13[%c0_43, %c0_44] : memref<32x64xbf16, #tpu.memory_space<vmem>>, vector<32x64xbf16>
    %c0_45 = arith.constant 0 : index
    %c0_46 = arith.constant 0 : index
    %23 = vector.load %arg14[%c0_45, %c0_46] : memref<1x64xf32, #tpu.memory_space<vmem>>, vector<1x64xf32>
    %c0_47 = arith.constant 0 : index
    %c0_48 = arith.constant 0 : index
    %24 = vector.load %arg15[%c0_47, %c0_48] : memref<64x32xbf16, #tpu.memory_space<vmem>>, vector<64x32xbf16>
    %c0_49 = arith.constant 0 : index
    %c0_50 = arith.constant 0 : index
    %25 = vector.load %arg16[%c0_49, %c0_50] : memref<1x32xf32, #tpu.memory_space<vmem>>, vector<1x32xf32>
    %26 = tpu.iota {dimensions = array<i32: 2>} : vector<1x1x8xi32>
    %c7_i32 = arith.constant 7 : i32
    %27 = vector.broadcast %c7_i32 : i32 to vector<1x1x8xi32>
    %28 = arith.cmpi slt, %26, %27 : vector<1x1x8xi32>
    %cst = arith.constant 0.000000e+00 : f32
    %cst_51 = arith.constant -1.000000e+30 : f32
    %29 = vector.broadcast %cst : f32 to vector<1x1x8xf32>
    %30 = vector.broadcast %cst_51 : f32 to vector<1x1x8xf32>
    %31 = arith.select %28, %29, %30 : vector<1x1x8xi1>, vector<1x1x8xf32>
    %32 = vector.shape_cast %0 : vector<2x8x32xf32> to vector<16x32xf32>
    %33 = arith.truncf %32 : vector<16x32xf32> to vector<16x32xbf16>
    %cst_52 = arith.constant dense<0.000000e+00> : vector<16x96xf32>
    %34 = tpu.matmul %33, %6, %cst_52 {dimension_numbers = #tpu.dot_dimension_numbers<[1], [0], [0], [1], [0, 0, 1, 1], [], []>} : vector<16x32xbf16>, vector<32x96xbf16>, vector<16x96xf32> -> vector<16x96xf32>
    %35 = vector.broadcast %7 : vector<1x96xf32> to vector<16x96xf32>
    %36 = arith.addf %34, %35 : vector<16x96xf32>
    %37 = vector.shape_cast %36 : vector<16x96xf32> to vector<2x8x96xf32>
    %38 = vector.extract_strided_slice %37 {offsets = [0, 0, 0], sizes = [2, 8, 32], strides = [1, 1, 1]} : vector<2x8x96xf32> to vector<2x8x32xf32>
    %39 = vector.extract_strided_slice %37 {offsets = [0, 0, 32], sizes = [2, 8, 32], strides = [1, 1, 1]} : vector<2x8x96xf32> to vector<2x8x32xf32>
    %40 = vector.extract_strided_slice %37 {offsets = [0, 0, 64], sizes = [2, 8, 32], strides = [1, 1, 1]} : vector<2x8x96xf32> to vector<2x8x32xf32>
    %41 = vector.extract_strided_slice %38 {offsets = [0, 0, 0], sizes = [2, 8, 16], strides = [1, 1, 1]} : vector<2x8x32xf32> to vector<2x8x16xf32>
    %42 = arith.truncf %41 : vector<2x8x16xf32> to vector<2x8x16xbf16>
    %43 = vector.extract_strided_slice %39 {offsets = [0, 0, 0], sizes = [2, 8, 16], strides = [1, 1, 1]} : vector<2x8x32xf32> to vector<2x8x16xf32>
    %44 = arith.truncf %43 : vector<2x8x16xf32> to vector<2x8x16xbf16>
    "tpu.trace_start"() <{level = 10 : i32, message = "bqd,bkd->bqk"}> : () -> ()
    %cst_53 = arith.constant dense<0.000000e+00> : vector<2x8x8xf32>
    %45 = tpu.matmul %42, %44, %cst_53 {dimension_numbers = #tpu.dot_dimension_numbers<[2], [2], [1], [1], [0, 0, 0, 1, 1, 1], [0], [0]>} : vector<2x8x16xbf16>, vector<2x8x16xbf16>, vector<2x8x8xf32> -> vector<2x8x8xf32>
    "tpu.trace_stop"() : () -> ()
    %cst_54 = arith.constant 2.500000e-01 : f32
    %46 = vector.broadcast %cst_54 : f32 to vector<2x8x8xf32>
    %47 = arith.mulf %45, %46 : vector<2x8x8xf32>
    %48 = vector.broadcast %31 : vector<1x1x8xf32> to vector<2x8x8xf32>
    %49 = arith.addf %47, %48 : vector<2x8x8xf32>
    %cst_55 = arith.constant dense<0xFF800000> : vector<2x8xf32>
    %50 = vector.multi_reduction <maximumf>, %49, %cst_55 [2] : vector<2x8x8xf32> to vector<2x8xf32>
    %51 = vector.shape_cast %50 : vector<2x8xf32> to vector<2x8x1xf32>
    %52 = vector.broadcast %51 : vector<2x8x1xf32> to vector<2x8x8xf32>
    %53 = arith.subf %49, %52 : vector<2x8x8xf32>
    %54 = math.exp %53 : vector<2x8x8xf32>
    %cst_56 = arith.constant dense<0.000000e+00> : vector<2x8xf32>
    %55 = vector.multi_reduction <add>, %54, %cst_56 [2] : vector<2x8x8xf32> to vector<2x8xf32>
    %56 = vector.shape_cast %55 : vector<2x8xf32> to vector<2x8x1xf32>
    %57 = tpu.reciprocal %56 {approx = true} : vector<2x8x1xf32> -> vector<2x8x1xf32>
    %58 = vector.broadcast %57 : vector<2x8x1xf32> to vector<2x8x8xf32>
    %59 = arith.mulf %54, %58 : vector<2x8x8xf32>
    %60 = arith.truncf %59 : vector<2x8x8xf32> to vector<2x8x8xbf16>
    %61 = vector.extract_strided_slice %40 {offsets = [0, 0, 0], sizes = [2, 8, 16], strides = [1, 1, 1]} : vector<2x8x32xf32> to vector<2x8x16xf32>
    %62 = arith.truncf %61 : vector<2x8x16xf32> to vector<2x8x16xbf16>
    "tpu.trace_start"() <{level = 10 : i32, message = "bqk,bkd->bqd"}> : () -> ()
    %cst_57 = arith.constant dense<0.000000e+00> : vector<2x8x16xf32>
    %63 = tpu.matmul %60, %62, %cst_57 {dimension_numbers = #tpu.dot_dimension_numbers<[2], [1], [1], [2], [0, 0, 0, 1, 1, 2], [0], [0]>} : vector<2x8x8xbf16>, vector<2x8x16xbf16>, vector<2x8x16xf32> -> vector<2x8x16xf32>
    "tpu.trace_stop"() : () -> ()
    %64 = vector.shape_cast %63 : vector<2x8x16xf32> to vector<16x16xf32>
    %65 = vector.extract_strided_slice %8 {offsets = [0, 0], sizes = [16, 32], strides = [1, 1]} : vector<32x32xbf16> to vector<16x32xbf16>
    %66 = arith.truncf %64 : vector<16x16xf32> to vector<16x16xbf16>
    %cst_58 = arith.constant dense<0.000000e+00> : vector<16x32xf32>
    %67 = tpu.matmul %66, %65, %cst_58 {dimension_numbers = #tpu.dot_dimension_numbers<[1], [0], [0], [1], [0, 0, 1, 1], [], []>} : vector<16x16xbf16>, vector<16x32xbf16>, vector<16x32xf32> -> vector<16x32xf32>
    %68 = vector.shape_cast %67 : vector<16x32xf32> to vector<2x8x32xf32>
    %69 = vector.extract_strided_slice %38 {offsets = [0, 0, 16], sizes = [2, 8, 16], strides = [1, 1, 1]} : vector<2x8x32xf32> to vector<2x8x16xf32>
    %70 = arith.truncf %69 : vector<2x8x16xf32> to vector<2x8x16xbf16>
    %71 = vector.extract_strided_slice %39 {offsets = [0, 0, 16], sizes = [2, 8, 16], strides = [1, 1, 1]} : vector<2x8x32xf32> to vector<2x8x16xf32>
    %72 = arith.truncf %71 : vector<2x8x16xf32> to vector<2x8x16xbf16>
    "tpu.trace_start"() <{level = 10 : i32, message = "bqd,bkd->bqk"}> : () -> ()
    %cst_59 = arith.constant dense<0.000000e+00> : vector<2x8x8xf32>
    %73 = tpu.matmul %70, %72, %cst_59 {dimension_numbers = #tpu.dot_dimension_numbers<[2], [2], [1], [1], [0, 0, 0, 1, 1, 1], [0], [0]>} : vector<2x8x16xbf16>, vector<2x8x16xbf16>, vector<2x8x8xf32> -> vector<2x8x8xf32>
    "tpu.trace_stop"() : () -> ()
    %cst_60 = arith.constant 2.500000e-01 : f32
    %74 = vector.broadcast %cst_60 : f32 to vector<2x8x8xf32>
    %75 = arith.mulf %73, %74 : vector<2x8x8xf32>
    %76 = vector.broadcast %31 : vector<1x1x8xf32> to vector<2x8x8xf32>
    %77 = arith.addf %75, %76 : vector<2x8x8xf32>
    %cst_61 = arith.constant dense<0xFF800000> : vector<2x8xf32>
    %78 = vector.multi_reduction <maximumf>, %77, %cst_61 [2] : vector<2x8x8xf32> to vector<2x8xf32>
    %79 = vector.shape_cast %78 : vector<2x8xf32> to vector<2x8x1xf32>
    %80 = vector.broadcast %79 : vector<2x8x1xf32> to vector<2x8x8xf32>
    %81 = arith.subf %77, %80 : vector<2x8x8xf32>
    %82 = math.exp %81 : vector<2x8x8xf32>
    %cst_62 = arith.constant dense<0.000000e+00> : vector<2x8xf32>
    %83 = vector.multi_reduction <add>, %82, %cst_62 [2] : vector<2x8x8xf32> to vector<2x8xf32>
    %84 = vector.shape_cast %83 : vector<2x8xf32> to vector<2x8x1xf32>
    %85 = tpu.reciprocal %84 {approx = true} : vector<2x8x1xf32> -> vector<2x8x1xf32>
    %86 = vector.broadcast %85 : vector<2x8x1xf32> to vector<2x8x8xf32>
    %87 = arith.mulf %82, %86 : vector<2x8x8xf32>
    %88 = arith.truncf %87 : vector<2x8x8xf32> to vector<2x8x8xbf16>
    %89 = vector.extract_strided_slice %40 {offsets = [0, 0, 16], sizes = [2, 8, 16], strides = [1, 1, 1]} : vector<2x8x32xf32> to vector<2x8x16xf32>
    %90 = arith.truncf %89 : vector<2x8x16xf32> to vector<2x8x16xbf16>
    "tpu.trace_start"() <{level = 10 : i32, message = "bqk,bkd->bqd"}> : () -> ()
    %cst_63 = arith.constant dense<0.000000e+00> : vector<2x8x16xf32>
    %91 = tpu.matmul %88, %90, %cst_63 {dimension_numbers = #tpu.dot_dimension_numbers<[2], [1], [1], [2], [0, 0, 0, 1, 1, 2], [0], [0]>} : vector<2x8x8xbf16>, vector<2x8x16xbf16>, vector<2x8x16xf32> -> vector<2x8x16xf32>
    "tpu.trace_stop"() : () -> ()
    %92 = vector.shape_cast %91 : vector<2x8x16xf32> to vector<16x16xf32>
    %93 = vector.extract_strided_slice %8 {offsets = [16, 0], sizes = [16, 32], strides = [1, 1]} : vector<32x32xbf16> to vector<16x32xbf16>
    %94 = arith.truncf %92 : vector<16x16xf32> to vector<16x16xbf16>
    %cst_64 = arith.constant dense<0.000000e+00> : vector<16x32xf32>
    %95 = tpu.matmul %94, %93, %cst_64 {dimension_numbers = #tpu.dot_dimension_numbers<[1], [0], [0], [1], [0, 0, 1, 1], [], []>} : vector<16x16xbf16>, vector<16x32xbf16>, vector<16x32xf32> -> vector<16x32xf32>
    %96 = vector.shape_cast %95 : vector<16x32xf32> to vector<2x8x32xf32>
    %97 = arith.addf %68, %96 : vector<2x8x32xf32>
    %98 = vector.shape_cast %9 : vector<1x32xf32> to vector<1x1x32xf32>
    %99 = vector.broadcast %98 : vector<1x1x32xf32> to vector<2x8x32xf32>
    %100 = arith.addf %97, %99 : vector<2x8x32xf32>
    %101 = vector.extract_strided_slice %4 {offsets = [0, 0], sizes = [1, 32], strides = [1, 1]} : vector<5x32xf32> to vector<1x32xf32>
    %102 = vector.extract_strided_slice %5 {offsets = [0, 0], sizes = [1, 32], strides = [1, 1]} : vector<5x32xf32> to vector<1x32xf32>
    %cst_65 = arith.constant dense<0.000000e+00> : vector<2x8xf32>
    %103 = vector.multi_reduction <add>, %100, %cst_65 [2] : vector<2x8x32xf32> to vector<2x8xf32>
    %104 = vector.shape_cast %103 : vector<2x8xf32> to vector<2x8x1xf32>
    %cst_66 = arith.constant 3.200000e+01 : f32
    %105 = vector.broadcast %cst_66 : f32 to vector<2x8x1xf32>
    %106 = arith.divf %104, %105 : vector<2x8x1xf32>
    %107 = vector.broadcast %106 : vector<2x8x1xf32> to vector<2x8x32xf32>
    %108 = arith.subf %100, %107 : vector<2x8x32xf32>
    %109 = arith.mulf %108, %108 : vector<2x8x32xf32>
    %cst_67 = arith.constant dense<0.000000e+00> : vector<2x8xf32>
    %110 = vector.multi_reduction <add>, %109, %cst_67 [2] : vector<2x8x32xf32> to vector<2x8xf32>
    %111 = vector.shape_cast %110 : vector<2x8xf32> to vector<2x8x1xf32>
    %cst_68 = arith.constant 3.200000e+01 : f32
    %112 = vector.broadcast %cst_68 : f32 to vector<2x8x1xf32>
    %113 = arith.divf %111, %112 : vector<2x8x1xf32>
    %cst_69 = arith.constant 9.99999974E-6 : f32
    %114 = vector.broadcast %cst_69 : f32 to vector<2x8x1xf32>
    %115 = arith.addf %113, %114 : vector<2x8x1xf32>
    %116 = math.rsqrt %115 : vector<2x8x1xf32>
    %117 = vector.broadcast %116 : vector<2x8x1xf32> to vector<2x8x32xf32>
    %118 = arith.mulf %108, %117 : vector<2x8x32xf32>
    %119 = vector.shape_cast %101 : vector<1x32xf32> to vector<1x1x32xf32>
    %120 = vector.broadcast %119 : vector<1x1x32xf32> to vector<2x8x32xf32>
    %121 = arith.mulf %118, %120 : vector<2x8x32xf32>
    %122 = vector.shape_cast %102 : vector<1x32xf32> to vector<1x1x32xf32>
    %123 = vector.broadcast %122 : vector<1x1x32xf32> to vector<2x8x32xf32>
    %124 = arith.addf %121, %123 : vector<2x8x32xf32>
    %125 = vector.broadcast %3 : vector<1x64x32xf32> to vector<2x64x32xf32>
    %126 = arith.addf %1, %125 : vector<2x64x32xf32>
    %127 = arith.addf %124, %0 : vector<2x8x32xf32>
    %128 = vector.shape_cast %127 : vector<2x8x32xf32> to vector<16x32xf32>
    %129 = vector.extract_strided_slice %10 {offsets = [0, 0], sizes = [32, 16], strides = [1, 1]} : vector<32x48xbf16> to vector<32x16xbf16>
    %130 = arith.truncf %128 : vector<16x32xf32> to vector<16x32xbf16>
    %cst_70 = arith.constant dense<0.000000e+00> : vector<16x16xf32>
    %131 = tpu.matmul %130, %129, %cst_70 {dimension_numbers = #tpu.dot_dimension_numbers<[1], [0], [0], [1], [0, 0, 1, 1], [], []>} : vector<16x32xbf16>, vector<32x16xbf16>, vector<16x16xf32> -> vector<16x16xf32>
    %132 = vector.extract_strided_slice %11 {offsets = [0, 0], sizes = [1, 16], strides = [1, 1]} : vector<1x48xf32> to vector<1x16xf32>
    %133 = vector.broadcast %132 : vector<1x16xf32> to vector<16x16xf32>
    %134 = arith.addf %131, %133 : vector<16x16xf32>
    %135 = vector.shape_cast %134 : vector<16x16xf32> to vector<2x8x16xf32>
    %136 = vector.shape_cast %126 : vector<2x64x32xf32> to vector<128x32xf32>
    %137 = vector.extract_strided_slice %10 {offsets = [0, 16], sizes = [32, 16], strides = [1, 1]} : vector<32x48xbf16> to vector<32x16xbf16>
    %138 = arith.truncf %136 : vector<128x32xf32> to vector<128x32xbf16>
    %cst_71 = arith.constant dense<0.000000e+00> : vector<128x16xf32>
    %139 = tpu.matmul %138, %137, %cst_71 {dimension_numbers = #tpu.dot_dimension_numbers<[1], [0], [0], [1], [0, 0, 1, 1], [], []>} : vector<128x32xbf16>, vector<32x16xbf16>, vector<128x16xf32> -> vector<128x16xf32>
    %140 = vector.extract_strided_slice %11 {offsets = [0, 16], sizes = [1, 16], strides = [1, 1]} : vector<1x48xf32> to vector<1x16xf32>
    %141 = vector.broadcast %140 : vector<1x16xf32> to vector<128x16xf32>
    %142 = arith.addf %139, %141 : vector<128x16xf32>
    %143 = vector.shape_cast %142 : vector<128x16xf32> to vector<2x64x16xf32>
    %144 = vector.shape_cast %1 : vector<2x64x32xf32> to vector<128x32xf32>
    %145 = vector.extract_strided_slice %10 {offsets = [0, 32], sizes = [32, 16], strides = [1, 1]} : vector<32x48xbf16> to vector<32x16xbf16>
    %146 = arith.truncf %144 : vector<128x32xf32> to vector<128x32xbf16>
    %cst_72 = arith.constant dense<0.000000e+00> : vector<128x16xf32>
    %147 = tpu.matmul %146, %145, %cst_72 {dimension_numbers = #tpu.dot_dimension_numbers<[1], [0], [0], [1], [0, 0, 1, 1], [], []>} : vector<128x32xbf16>, vector<32x16xbf16>, vector<128x16xf32> -> vector<128x16xf32>
    %148 = vector.extract_strided_slice %11 {offsets = [0, 32], sizes = [1, 16], strides = [1, 1]} : vector<1x48xf32> to vector<1x16xf32>
    %149 = vector.broadcast %148 : vector<1x16xf32> to vector<128x16xf32>
    %150 = arith.addf %147, %149 : vector<128x16xf32>
    %151 = vector.shape_cast %150 : vector<128x16xf32> to vector<2x64x16xf32>
    %152 = vector.extract_strided_slice %135 {offsets = [0, 0, 0], sizes = [2, 8, 8], strides = [1, 1, 1]} : vector<2x8x16xf32> to vector<2x8x8xf32>
    %153 = arith.truncf %152 : vector<2x8x8xf32> to vector<2x8x8xbf16>
    %154 = vector.extract_strided_slice %143 {offsets = [0, 0, 0], sizes = [2, 64, 8], strides = [1, 1, 1]} : vector<2x64x16xf32> to vector<2x64x8xf32>
    %155 = arith.truncf %154 : vector<2x64x8xf32> to vector<2x64x8xbf16>
    "tpu.trace_start"() <{level = 10 : i32, message = "bqd,bkd->bqk"}> : () -> ()
    %cst_73 = arith.constant dense<0.000000e+00> : vector<2x8x64xf32>
    %156 = tpu.matmul %153, %155, %cst_73 {dimension_numbers = #tpu.dot_dimension_numbers<[2], [2], [1], [1], [0, 0, 0, 1, 1, 1], [0], [0]>} : vector<2x8x8xbf16>, vector<2x64x8xbf16>, vector<2x8x64xf32> -> vector<2x8x64xf32>
    "tpu.trace_stop"() : () -> ()
    %cst_74 = arith.constant 0.353553385 : f32
    %157 = vector.broadcast %cst_74 : f32 to vector<2x8x64xf32>
    %158 = arith.mulf %156, %157 : vector<2x8x64xf32>
    %cst_75 = arith.constant dense<0xFF800000> : vector<2x8xf32>
    %159 = vector.multi_reduction <maximumf>, %158, %cst_75 [2] : vector<2x8x64xf32> to vector<2x8xf32>
    %160 = vector.shape_cast %159 : vector<2x8xf32> to vector<2x8x1xf32>
    %161 = vector.broadcast %160 : vector<2x8x1xf32> to vector<2x8x64xf32>
    %162 = arith.subf %158, %161 : vector<2x8x64xf32>
    %163 = math.exp %162 : vector<2x8x64xf32>
    %cst_76 = arith.constant dense<0.000000e+00> : vector<2x8xf32>
    %164 = vector.multi_reduction <add>, %163, %cst_76 [2] : vector<2x8x64xf32> to vector<2x8xf32>
    %165 = vector.shape_cast %164 : vector<2x8xf32> to vector<2x8x1xf32>
    %166 = tpu.reciprocal %165 {approx = true} : vector<2x8x1xf32> -> vector<2x8x1xf32>
    %167 = vector.broadcast %166 : vector<2x8x1xf32> to vector<2x8x64xf32>
    %168 = arith.mulf %163, %167 : vector<2x8x64xf32>
    %169 = arith.truncf %168 : vector<2x8x64xf32> to vector<2x8x64xbf16>
    %170 = vector.extract_strided_slice %151 {offsets = [0, 0, 0], sizes = [2, 64, 8], strides = [1, 1, 1]} : vector<2x64x16xf32> to vector<2x64x8xf32>
    %171 = arith.truncf %170 : vector<2x64x8xf32> to vector<2x64x8xbf16>
    "tpu.trace_start"() <{level = 10 : i32, message = "bqk,bkd->bqd"}> : () -> ()
    %cst_77 = arith.constant dense<0.000000e+00> : vector<2x8x8xf32>
    %172 = tpu.matmul %169, %171, %cst_77 {dimension_numbers = #tpu.dot_dimension_numbers<[2], [1], [1], [2], [0, 0, 0, 1, 1, 2], [0], [0]>} : vector<2x8x64xbf16>, vector<2x64x8xbf16>, vector<2x8x8xf32> -> vector<2x8x8xf32>
    "tpu.trace_stop"() : () -> ()
    %173 = vector.shape_cast %172 : vector<2x8x8xf32> to vector<16x8xf32>
    %174 = vector.extract_strided_slice %12 {offsets = [0, 0], sizes = [8, 32], strides = [1, 1]} : vector<16x32xbf16> to vector<8x32xbf16>
    %175 = arith.truncf %173 : vector<16x8xf32> to vector<16x8xbf16>
    %cst_78 = arith.constant dense<0.000000e+00> : vector<16x32xf32>
    %176 = tpu.matmul %175, %174, %cst_78 {dimension_numbers = #tpu.dot_dimension_numbers<[1], [0], [0], [1], [0, 0, 1, 1], [], []>} : vector<16x8xbf16>, vector<8x32xbf16>, vector<16x32xf32> -> vector<16x32xf32>
    %177 = vector.shape_cast %176 : vector<16x32xf32> to vector<2x8x32xf32>
    %178 = vector.extract_strided_slice %135 {offsets = [0, 0, 8], sizes = [2, 8, 8], strides = [1, 1, 1]} : vector<2x8x16xf32> to vector<2x8x8xf32>
    %179 = arith.truncf %178 : vector<2x8x8xf32> to vector<2x8x8xbf16>
    %180 = vector.extract_strided_slice %143 {offsets = [0, 0, 8], sizes = [2, 64, 8], strides = [1, 1, 1]} : vector<2x64x16xf32> to vector<2x64x8xf32>
    %181 = arith.truncf %180 : vector<2x64x8xf32> to vector<2x64x8xbf16>
    "tpu.trace_start"() <{level = 10 : i32, message = "bqd,bkd->bqk"}> : () -> ()
    %cst_79 = arith.constant dense<0.000000e+00> : vector<2x8x64xf32>
    %182 = tpu.matmul %179, %181, %cst_79 {dimension_numbers = #tpu.dot_dimension_numbers<[2], [2], [1], [1], [0, 0, 0, 1, 1, 1], [0], [0]>} : vector<2x8x8xbf16>, vector<2x64x8xbf16>, vector<2x8x64xf32> -> vector<2x8x64xf32>
    "tpu.trace_stop"() : () -> ()
    %cst_80 = arith.constant 0.353553385 : f32
    %183 = vector.broadcast %cst_80 : f32 to vector<2x8x64xf32>
    %184 = arith.mulf %182, %183 : vector<2x8x64xf32>
    %cst_81 = arith.constant dense<0xFF800000> : vector<2x8xf32>
    %185 = vector.multi_reduction <maximumf>, %184, %cst_81 [2] : vector<2x8x64xf32> to vector<2x8xf32>
    %186 = vector.shape_cast %185 : vector<2x8xf32> to vector<2x8x1xf32>
    %187 = vector.broadcast %186 : vector<2x8x1xf32> to vector<2x8x64xf32>
    %188 = arith.subf %184, %187 : vector<2x8x64xf32>
    %189 = math.exp %188 : vector<2x8x64xf32>
    %cst_82 = arith.constant dense<0.000000e+00> : vector<2x8xf32>
    %190 = vector.multi_reduction <add>, %189, %cst_82 [2] : vector<2x8x64xf32> to vector<2x8xf32>
    %191 = vector.shape_cast %190 : vector<2x8xf32> to vector<2x8x1xf32>
    %192 = tpu.reciprocal %191 {approx = true} : vector<2x8x1xf32> -> vector<2x8x1xf32>
    %193 = vector.broadcast %192 : vector<2x8x1xf32> to vector<2x8x64xf32>
    %194 = arith.mulf %189, %193 : vector<2x8x64xf32>
    %195 = arith.truncf %194 : vector<2x8x64xf32> to vector<2x8x64xbf16>
    %196 = vector.extract_strided_slice %151 {offsets = [0, 0, 8], sizes = [2, 64, 8], strides = [1, 1, 1]} : vector<2x64x16xf32> to vector<2x64x8xf32>
    %197 = arith.truncf %196 : vector<2x64x8xf32> to vector<2x64x8xbf16>
    "tpu.trace_start"() <{level = 10 : i32, message = "bqk,bkd->bqd"}> : () -> ()
    %cst_83 = arith.constant dense<0.000000e+00> : vector<2x8x8xf32>
    %198 = tpu.matmul %195, %197, %cst_83 {dimension_numbers = #tpu.dot_dimension_numbers<[2], [1], [1], [2], [0, 0, 0, 1, 1, 2], [0], [0]>} : vector<2x8x64xbf16>, vector<2x64x8xbf16>, vector<2x8x8xf32> -> vector<2x8x8xf32>
    "tpu.trace_stop"() : () -> ()
    %199 = vector.shape_cast %198 : vector<2x8x8xf32> to vector<16x8xf32>
    %200 = vector.extract_strided_slice %12 {offsets = [8, 0], sizes = [8, 32], strides = [1, 1]} : vector<16x32xbf16> to vector<8x32xbf16>
    %201 = arith.truncf %199 : vector<16x8xf32> to vector<16x8xbf16>
    %cst_84 = arith.constant dense<0.000000e+00> : vector<16x32xf32>
    %202 = tpu.matmul %201, %200, %cst_84 {dimension_numbers = #tpu.dot_dimension_numbers<[1], [0], [0], [1], [0, 0, 1, 1], [], []>} : vector<16x8xbf16>, vector<8x32xbf16>, vector<16x32xf32> -> vector<16x32xf32>
    %203 = vector.shape_cast %202 : vector<16x32xf32> to vector<2x8x32xf32>
    %204 = arith.addf %177, %203 : vector<2x8x32xf32>
    %205 = vector.shape_cast %13 : vector<1x32xf32> to vector<1x1x32xf32>
    %206 = vector.broadcast %205 : vector<1x1x32xf32> to vector<2x8x32xf32>
    %207 = arith.addf %204, %206 : vector<2x8x32xf32>
    %208 = arith.addf %124, %207 : vector<2x8x32xf32>
    %209 = vector.extract_strided_slice %4 {offsets = [1, 0], sizes = [1, 32], strides = [1, 1]} : vector<5x32xf32> to vector<1x32xf32>
    %210 = vector.extract_strided_slice %5 {offsets = [1, 0], sizes = [1, 32], strides = [1, 1]} : vector<5x32xf32> to vector<1x32xf32>
    %cst_85 = arith.constant dense<0.000000e+00> : vector<2x8xf32>
    %211 = vector.multi_reduction <add>, %208, %cst_85 [2] : vector<2x8x32xf32> to vector<2x8xf32>
    %212 = vector.shape_cast %211 : vector<2x8xf32> to vector<2x8x1xf32>
    %cst_86 = arith.constant 3.200000e+01 : f32
    %213 = vector.broadcast %cst_86 : f32 to vector<2x8x1xf32>
    %214 = arith.divf %212, %213 : vector<2x8x1xf32>
    %215 = vector.broadcast %214 : vector<2x8x1xf32> to vector<2x8x32xf32>
    %216 = arith.subf %208, %215 : vector<2x8x32xf32>
    %217 = arith.mulf %216, %216 : vector<2x8x32xf32>
    %cst_87 = arith.constant dense<0.000000e+00> : vector<2x8xf32>
    %218 = vector.multi_reduction <add>, %217, %cst_87 [2] : vector<2x8x32xf32> to vector<2x8xf32>
    %219 = vector.shape_cast %218 : vector<2x8xf32> to vector<2x8x1xf32>
    %cst_88 = arith.constant 3.200000e+01 : f32
    %220 = vector.broadcast %cst_88 : f32 to vector<2x8x1xf32>
    %221 = arith.divf %219, %220 : vector<2x8x1xf32>
    %cst_89 = arith.constant 9.99999974E-6 : f32
    %222 = vector.broadcast %cst_89 : f32 to vector<2x8x1xf32>
    %223 = arith.addf %221, %222 : vector<2x8x1xf32>
    %224 = math.rsqrt %223 : vector<2x8x1xf32>
    %225 = vector.broadcast %224 : vector<2x8x1xf32> to vector<2x8x32xf32>
    %226 = arith.mulf %216, %225 : vector<2x8x32xf32>
    %227 = vector.shape_cast %209 : vector<1x32xf32> to vector<1x1x32xf32>
    %228 = vector.broadcast %227 : vector<1x1x32xf32> to vector<2x8x32xf32>
    %229 = arith.mulf %226, %228 : vector<2x8x32xf32>
    %230 = vector.shape_cast %210 : vector<1x32xf32> to vector<1x1x32xf32>
    %231 = vector.broadcast %230 : vector<1x1x32xf32> to vector<2x8x32xf32>
    %232 = arith.addf %229, %231 : vector<2x8x32xf32>
    %233 = vector.shape_cast %232 : vector<2x8x32xf32> to vector<16x32xf32>
    %234 = arith.truncf %233 : vector<16x32xf32> to vector<16x32xbf16>
    %cst_90 = arith.constant dense<0.000000e+00> : vector<16x64xf32>
    %235 = tpu.matmul %234, %22, %cst_90 {dimension_numbers = #tpu.dot_dimension_numbers<[1], [0], [0], [1], [0, 0, 1, 1], [], []>} : vector<16x32xbf16>, vector<32x64xbf16>, vector<16x64xf32> -> vector<16x64xf32>
    %236 = vector.broadcast %23 : vector<1x64xf32> to vector<16x64xf32>
    %237 = arith.addf %235, %236 : vector<16x64xf32>
    %cst_91 = arith.constant 0.000000e+00 : f32
    %238 = vector.broadcast %cst_91 : f32 to vector<16x64xf32>
    %239 = arith.maximumf %237, %238 : vector<16x64xf32>
    %240 = arith.truncf %239 : vector<16x64xf32> to vector<16x64xbf16>
    %cst_92 = arith.constant dense<0.000000e+00> : vector<16x32xf32>
    %241 = tpu.matmul %240, %24, %cst_92 {dimension_numbers = #tpu.dot_dimension_numbers<[1], [0], [0], [1], [0, 0, 1, 1], [], []>} : vector<16x64xbf16>, vector<64x32xbf16>, vector<16x32xf32> -> vector<16x32xf32>
    %242 = vector.broadcast %25 : vector<1x32xf32> to vector<16x32xf32>
    %243 = arith.addf %241, %242 : vector<16x32xf32>
    %244 = vector.shape_cast %243 : vector<16x32xf32> to vector<2x8x32xf32>
    %245 = arith.addf %232, %244 : vector<2x8x32xf32>
    %246 = vector.extract_strided_slice %4 {offsets = [2, 0], sizes = [1, 32], strides = [1, 1]} : vector<5x32xf32> to vector<1x32xf32>
    %247 = vector.extract_strided_slice %5 {offsets = [2, 0], sizes = [1, 32], strides = [1, 1]} : vector<5x32xf32> to vector<1x32xf32>
    %cst_93 = arith.constant dense<0.000000e+00> : vector<2x8xf32>
    %248 = vector.multi_reduction <add>, %245, %cst_93 [2] : vector<2x8x32xf32> to vector<2x8xf32>
    %249 = vector.shape_cast %248 : vector<2x8xf32> to vector<2x8x1xf32>
    %cst_94 = arith.constant 3.200000e+01 : f32
    %250 = vector.broadcast %cst_94 : f32 to vector<2x8x1xf32>
    %251 = arith.divf %249, %250 : vector<2x8x1xf32>
    %252 = vector.broadcast %251 : vector<2x8x1xf32> to vector<2x8x32xf32>
    %253 = arith.subf %245, %252 : vector<2x8x32xf32>
    %254 = arith.mulf %253, %253 : vector<2x8x32xf32>
    %cst_95 = arith.constant dense<0.000000e+00> : vector<2x8xf32>
    %255 = vector.multi_reduction <add>, %254, %cst_95 [2] : vector<2x8x32xf32> to vector<2x8xf32>
    %256 = vector.shape_cast %255 : vector<2x8xf32> to vector<2x8x1xf32>
    %cst_96 = arith.constant 3.200000e+01 : f32
    %257 = vector.broadcast %cst_96 : f32 to vector<2x8x1xf32>
    %258 = arith.divf %256, %257 : vector<2x8x1xf32>
    %cst_97 = arith.constant 9.99999974E-6 : f32
    %259 = vector.broadcast %cst_97 : f32 to vector<2x8x1xf32>
    %260 = arith.addf %258, %259 : vector<2x8x1xf32>
    %261 = math.rsqrt %260 : vector<2x8x1xf32>
    %262 = vector.broadcast %261 : vector<2x8x1xf32> to vector<2x8x32xf32>
    %263 = arith.mulf %253, %262 : vector<2x8x32xf32>
    %264 = vector.shape_cast %246 : vector<1x32xf32> to vector<1x1x32xf32>
    %265 = vector.broadcast %264 : vector<1x1x32xf32> to vector<2x8x32xf32>
    %266 = arith.mulf %263, %265 : vector<2x8x32xf32>
    %267 = vector.shape_cast %247 : vector<1x32xf32> to vector<1x1x32xf32>
    %268 = vector.broadcast %267 : vector<1x1x32xf32> to vector<2x8x32xf32>
    %269 = arith.addf %266, %268 : vector<2x8x32xf32>
    %270 = arith.addf %269, %0 : vector<2x8x32xf32>
    %271 = vector.shape_cast %126 : vector<2x64x32xf32> to vector<128x32xf32>
    %272 = vector.extract_strided_slice %14 {offsets = [0, 0], sizes = [32, 16], strides = [1, 1]} : vector<32x48xbf16> to vector<32x16xbf16>
    %273 = arith.truncf %271 : vector<128x32xf32> to vector<128x32xbf16>
    %cst_98 = arith.constant dense<0.000000e+00> : vector<128x16xf32>
    %274 = tpu.matmul %273, %272, %cst_98 {dimension_numbers = #tpu.dot_dimension_numbers<[1], [0], [0], [1], [0, 0, 1, 1], [], []>} : vector<128x32xbf16>, vector<32x16xbf16>, vector<128x16xf32> -> vector<128x16xf32>
    %275 = vector.extract_strided_slice %15 {offsets = [0, 0], sizes = [1, 16], strides = [1, 1]} : vector<1x48xf32> to vector<1x16xf32>
    %276 = vector.broadcast %275 : vector<1x16xf32> to vector<128x16xf32>
    %277 = arith.addf %274, %276 : vector<128x16xf32>
    %278 = vector.shape_cast %277 : vector<128x16xf32> to vector<2x64x16xf32>
    %279 = vector.shape_cast %270 : vector<2x8x32xf32> to vector<16x32xf32>
    %280 = vector.extract_strided_slice %14 {offsets = [0, 16], sizes = [32, 16], strides = [1, 1]} : vector<32x48xbf16> to vector<32x16xbf16>
    %281 = arith.truncf %279 : vector<16x32xf32> to vector<16x32xbf16>
    %cst_99 = arith.constant dense<0.000000e+00> : vector<16x16xf32>
    %282 = tpu.matmul %281, %280, %cst_99 {dimension_numbers = #tpu.dot_dimension_numbers<[1], [0], [0], [1], [0, 0, 1, 1], [], []>} : vector<16x32xbf16>, vector<32x16xbf16>, vector<16x16xf32> -> vector<16x16xf32>
    %283 = vector.extract_strided_slice %15 {offsets = [0, 16], sizes = [1, 16], strides = [1, 1]} : vector<1x48xf32> to vector<1x16xf32>
    %284 = vector.broadcast %283 : vector<1x16xf32> to vector<16x16xf32>
    %285 = arith.addf %282, %284 : vector<16x16xf32>
    %286 = vector.shape_cast %285 : vector<16x16xf32> to vector<2x8x16xf32>
    %287 = vector.shape_cast %269 : vector<2x8x32xf32> to vector<16x32xf32>
    %288 = vector.extract_strided_slice %14 {offsets = [0, 32], sizes = [32, 16], strides = [1, 1]} : vector<32x48xbf16> to vector<32x16xbf16>
    %289 = arith.truncf %287 : vector<16x32xf32> to vector<16x32xbf16>
    %cst_100 = arith.constant dense<0.000000e+00> : vector<16x16xf32>
    %290 = tpu.matmul %289, %288, %cst_100 {dimension_numbers = #tpu.dot_dimension_numbers<[1], [0], [0], [1], [0, 0, 1, 1], [], []>} : vector<16x32xbf16>, vector<32x16xbf16>, vector<16x16xf32> -> vector<16x16xf32>
    %291 = vector.extract_strided_slice %15 {offsets = [0, 32], sizes = [1, 16], strides = [1, 1]} : vector<1x48xf32> to vector<1x16xf32>
    %292 = vector.broadcast %291 : vector<1x16xf32> to vector<16x16xf32>
    %293 = arith.addf %290, %292 : vector<16x16xf32>
    %294 = vector.shape_cast %293 : vector<16x16xf32> to vector<2x8x16xf32>
    %295 = vector.extract_strided_slice %278 {offsets = [0, 0, 0], sizes = [2, 64, 8], strides = [1, 1, 1]} : vector<2x64x16xf32> to vector<2x64x8xf32>
    %296 = arith.truncf %295 : vector<2x64x8xf32> to vector<2x64x8xbf16>
    %297 = vector.extract_strided_slice %286 {offsets = [0, 0, 0], sizes = [2, 8, 8], strides = [1, 1, 1]} : vector<2x8x16xf32> to vector<2x8x8xf32>
    %298 = arith.truncf %297 : vector<2x8x8xf32> to vector<2x8x8xbf16>
    "tpu.trace_start"() <{level = 10 : i32, message = "bqd,bkd->bqk"}> : () -> ()
    %cst_101 = arith.constant dense<0.000000e+00> : vector<2x64x8xf32>
    %299 = tpu.matmul %296, %298, %cst_101 {dimension_numbers = #tpu.dot_dimension_numbers<[2], [2], [1], [1], [0, 0, 0, 1, 1, 1], [0], [0]>} : vector<2x64x8xbf16>, vector<2x8x8xbf16>, vector<2x64x8xf32> -> vector<2x64x8xf32>
    "tpu.trace_stop"() : () -> ()
    %cst_102 = arith.constant 0.353553385 : f32
    %300 = vector.broadcast %cst_102 : f32 to vector<2x64x8xf32>
    %301 = arith.mulf %299, %300 : vector<2x64x8xf32>
    %302 = vector.broadcast %31 : vector<1x1x8xf32> to vector<2x64x8xf32>
    %303 = arith.addf %301, %302 : vector<2x64x8xf32>
    %cst_103 = arith.constant dense<0xFF800000> : vector<2x64xf32>
    %304 = vector.multi_reduction <maximumf>, %303, %cst_103 [2] : vector<2x64x8xf32> to vector<2x64xf32>
    %305 = vector.shape_cast %304 : vector<2x64xf32> to vector<2x64x1xf32>
    %306 = vector.broadcast %305 : vector<2x64x1xf32> to vector<2x64x8xf32>
    %307 = arith.subf %303, %306 : vector<2x64x8xf32>
    %308 = math.exp %307 : vector<2x64x8xf32>
    %cst_104 = arith.constant dense<0.000000e+00> : vector<2x64xf32>
    %309 = vector.multi_reduction <add>, %308, %cst_104 [2] : vector<2x64x8xf32> to vector<2x64xf32>
    %310 = vector.shape_cast %309 : vector<2x64xf32> to vector<2x64x1xf32>
    %311 = tpu.reciprocal %310 {approx = true} : vector<2x64x1xf32> -> vector<2x64x1xf32>
    %312 = vector.broadcast %311 : vector<2x64x1xf32> to vector<2x64x8xf32>
    %313 = arith.mulf %308, %312 : vector<2x64x8xf32>
    %314 = arith.truncf %313 : vector<2x64x8xf32> to vector<2x64x8xbf16>
    %315 = vector.extract_strided_slice %294 {offsets = [0, 0, 0], sizes = [2, 8, 8], strides = [1, 1, 1]} : vector<2x8x16xf32> to vector<2x8x8xf32>
    %316 = arith.truncf %315 : vector<2x8x8xf32> to vector<2x8x8xbf16>
    "tpu.trace_start"() <{level = 10 : i32, message = "bqk,bkd->bqd"}> : () -> ()
    %cst_105 = arith.constant dense<0.000000e+00> : vector<2x64x8xf32>
    %317 = tpu.matmul %314, %316, %cst_105 {dimension_numbers = #tpu.dot_dimension_numbers<[2], [1], [1], [2], [0, 0, 0, 1, 1, 2], [0], [0]>} : vector<2x64x8xbf16>, vector<2x8x8xbf16>, vector<2x64x8xf32> -> vector<2x64x8xf32>
    "tpu.trace_stop"() : () -> ()
    %318 = vector.shape_cast %317 : vector<2x64x8xf32> to vector<128x8xf32>
    %319 = vector.extract_strided_slice %16 {offsets = [0, 0], sizes = [8, 32], strides = [1, 1]} : vector<16x32xbf16> to vector<8x32xbf16>
    %320 = arith.truncf %318 : vector<128x8xf32> to vector<128x8xbf16>
    %cst_106 = arith.constant dense<0.000000e+00> : vector<128x32xf32>
    %321 = tpu.matmul %320, %319, %cst_106 {dimension_numbers = #tpu.dot_dimension_numbers<[1], [0], [0], [1], [0, 0, 1, 1], [], []>} : vector<128x8xbf16>, vector<8x32xbf16>, vector<128x32xf32> -> vector<128x32xf32>
    %322 = vector.shape_cast %321 : vector<128x32xf32> to vector<2x64x32xf32>
    %323 = vector.extract_strided_slice %278 {offsets = [0, 0, 8], sizes = [2, 64, 8], strides = [1, 1, 1]} : vector<2x64x16xf32> to vector<2x64x8xf32>
    %324 = arith.truncf %323 : vector<2x64x8xf32> to vector<2x64x8xbf16>
    %325 = vector.extract_strided_slice %286 {offsets = [0, 0, 8], sizes = [2, 8, 8], strides = [1, 1, 1]} : vector<2x8x16xf32> to vector<2x8x8xf32>
    %326 = arith.truncf %325 : vector<2x8x8xf32> to vector<2x8x8xbf16>
    "tpu.trace_start"() <{level = 10 : i32, message = "bqd,bkd->bqk"}> : () -> ()
    %cst_107 = arith.constant dense<0.000000e+00> : vector<2x64x8xf32>
    %327 = tpu.matmul %324, %326, %cst_107 {dimension_numbers = #tpu.dot_dimension_numbers<[2], [2], [1], [1], [0, 0, 0, 1, 1, 1], [0], [0]>} : vector<2x64x8xbf16>, vector<2x8x8xbf16>, vector<2x64x8xf32> -> vector<2x64x8xf32>
    "tpu.trace_stop"() : () -> ()
    %cst_108 = arith.constant 0.353553385 : f32
    %328 = vector.broadcast %cst_108 : f32 to vector<2x64x8xf32>
    %329 = arith.mulf %327, %328 : vector<2x64x8xf32>
    %330 = vector.broadcast %31 : vector<1x1x8xf32> to vector<2x64x8xf32>
    %331 = arith.addf %329, %330 : vector<2x64x8xf32>
    %cst_109 = arith.constant dense<0xFF800000> : vector<2x64xf32>
    %332 = vector.multi_reduction <maximumf>, %331, %cst_109 [2] : vector<2x64x8xf32> to vector<2x64xf32>
    %333 = vector.shape_cast %332 : vector<2x64xf32> to vector<2x64x1xf32>
    %334 = vector.broadcast %333 : vector<2x64x1xf32> to vector<2x64x8xf32>
    %335 = arith.subf %331, %334 : vector<2x64x8xf32>
    %336 = math.exp %335 : vector<2x64x8xf32>
    %cst_110 = arith.constant dense<0.000000e+00> : vector<2x64xf32>
    %337 = vector.multi_reduction <add>, %336, %cst_110 [2] : vector<2x64x8xf32> to vector<2x64xf32>
    %338 = vector.shape_cast %337 : vector<2x64xf32> to vector<2x64x1xf32>
    %339 = tpu.reciprocal %338 {approx = true} : vector<2x64x1xf32> -> vector<2x64x1xf32>
    %340 = vector.broadcast %339 : vector<2x64x1xf32> to vector<2x64x8xf32>
    %341 = arith.mulf %336, %340 : vector<2x64x8xf32>
    %342 = arith.truncf %341 : vector<2x64x8xf32> to vector<2x64x8xbf16>
    %343 = vector.extract_strided_slice %294 {offsets = [0, 0, 8], sizes = [2, 8, 8], strides = [1, 1, 1]} : vector<2x8x16xf32> to vector<2x8x8xf32>
    %344 = arith.truncf %343 : vector<2x8x8xf32> to vector<2x8x8xbf16>
    "tpu.trace_start"() <{level = 10 : i32, message = "bqk,bkd->bqd"}> : () -> ()
    %cst_111 = arith.constant dense<0.000000e+00> : vector<2x64x8xf32>
    %345 = tpu.matmul %342, %344, %cst_111 {dimension_numbers = #tpu.dot_dimension_numbers<[2], [1], [1], [2], [0, 0, 0, 1, 1, 2], [0], [0]>} : vector<2x64x8xbf16>, vector<2x8x8xbf16>, vector<2x64x8xf32> -> vector<2x64x8xf32>
    "tpu.trace_stop"() : () -> ()
    %346 = vector.shape_cast %345 : vector<2x64x8xf32> to vector<128x8xf32>
    %347 = vector.extract_strided_slice %16 {offsets = [8, 0], sizes = [8, 32], strides = [1, 1]} : vector<16x32xbf16> to vector<8x32xbf16>
    %348 = arith.truncf %346 : vector<128x8xf32> to vector<128x8xbf16>
    %cst_112 = arith.constant dense<0.000000e+00> : vector<128x32xf32>
    %349 = tpu.matmul %348, %347, %cst_112 {dimension_numbers = #tpu.dot_dimension_numbers<[1], [0], [0], [1], [0, 0, 1, 1], [], []>} : vector<128x8xbf16>, vector<8x32xbf16>, vector<128x32xf32> -> vector<128x32xf32>
    %350 = vector.shape_cast %349 : vector<128x32xf32> to vector<2x64x32xf32>
    %351 = arith.addf %322, %350 : vector<2x64x32xf32>
    %352 = vector.shape_cast %17 : vector<1x32xf32> to vector<1x1x32xf32>
    %353 = vector.broadcast %352 : vector<1x1x32xf32> to vector<2x64x32xf32>
    %354 = arith.addf %351, %353 : vector<2x64x32xf32>
    %355 = arith.addf %1, %354 : vector<2x64x32xf32>
    %356 = vector.extract_strided_slice %4 {offsets = [3, 0], sizes = [1, 32], strides = [1, 1]} : vector<5x32xf32> to vector<1x32xf32>
    %357 = vector.extract_strided_slice %5 {offsets = [3, 0], sizes = [1, 32], strides = [1, 1]} : vector<5x32xf32> to vector<1x32xf32>
    %cst_113 = arith.constant dense<0.000000e+00> : vector<2x64xf32>
    %358 = vector.multi_reduction <add>, %355, %cst_113 [2] : vector<2x64x32xf32> to vector<2x64xf32>
    %359 = vector.shape_cast %358 : vector<2x64xf32> to vector<2x64x1xf32>
    %cst_114 = arith.constant 3.200000e+01 : f32
    %360 = vector.broadcast %cst_114 : f32 to vector<2x64x1xf32>
    %361 = arith.divf %359, %360 : vector<2x64x1xf32>
    %362 = vector.broadcast %361 : vector<2x64x1xf32> to vector<2x64x32xf32>
    %363 = arith.subf %355, %362 : vector<2x64x32xf32>
    %364 = arith.mulf %363, %363 : vector<2x64x32xf32>
    %cst_115 = arith.constant dense<0.000000e+00> : vector<2x64xf32>
    %365 = vector.multi_reduction <add>, %364, %cst_115 [2] : vector<2x64x32xf32> to vector<2x64xf32>
    %366 = vector.shape_cast %365 : vector<2x64xf32> to vector<2x64x1xf32>
    %cst_116 = arith.constant 3.200000e+01 : f32
    %367 = vector.broadcast %cst_116 : f32 to vector<2x64x1xf32>
    %368 = arith.divf %366, %367 : vector<2x64x1xf32>
    %cst_117 = arith.constant 9.99999974E-6 : f32
    %369 = vector.broadcast %cst_117 : f32 to vector<2x64x1xf32>
    %370 = arith.addf %368, %369 : vector<2x64x1xf32>
    %371 = math.rsqrt %370 : vector<2x64x1xf32>
    %372 = vector.broadcast %371 : vector<2x64x1xf32> to vector<2x64x32xf32>
    %373 = arith.mulf %363, %372 : vector<2x64x32xf32>
    %374 = vector.shape_cast %356 : vector<1x32xf32> to vector<1x1x32xf32>
    %375 = vector.broadcast %374 : vector<1x1x32xf32> to vector<2x64x32xf32>
    %376 = arith.mulf %373, %375 : vector<2x64x32xf32>
    %377 = vector.shape_cast %357 : vector<1x32xf32> to vector<1x1x32xf32>
    %378 = vector.broadcast %377 : vector<1x1x32xf32> to vector<2x64x32xf32>
    %379 = arith.addf %376, %378 : vector<2x64x32xf32>
    %380 = arith.addf %269, %0 : vector<2x8x32xf32>
    %381 = vector.broadcast %3 : vector<1x64x32xf32> to vector<2x64x32xf32>
    %382 = arith.addf %379, %381 : vector<2x64x32xf32>
    %383 = vector.shape_cast %380 : vector<2x8x32xf32> to vector<16x32xf32>
    %384 = vector.extract_strided_slice %18 {offsets = [0, 0], sizes = [32, 16], strides = [1, 1]} : vector<32x48xbf16> to vector<32x16xbf16>
    %385 = arith.truncf %383 : vector<16x32xf32> to vector<16x32xbf16>
    %cst_118 = arith.constant dense<0.000000e+00> : vector<16x16xf32>
    %386 = tpu.matmul %385, %384, %cst_118 {dimension_numbers = #tpu.dot_dimension_numbers<[1], [0], [0], [1], [0, 0, 1, 1], [], []>} : vector<16x32xbf16>, vector<32x16xbf16>, vector<16x16xf32> -> vector<16x16xf32>
    %387 = vector.extract_strided_slice %19 {offsets = [0, 0], sizes = [1, 16], strides = [1, 1]} : vector<1x48xf32> to vector<1x16xf32>
    %388 = vector.broadcast %387 : vector<1x16xf32> to vector<16x16xf32>
    %389 = arith.addf %386, %388 : vector<16x16xf32>
    %390 = vector.shape_cast %389 : vector<16x16xf32> to vector<2x8x16xf32>
    %391 = vector.shape_cast %382 : vector<2x64x32xf32> to vector<128x32xf32>
    %392 = vector.extract_strided_slice %18 {offsets = [0, 16], sizes = [32, 16], strides = [1, 1]} : vector<32x48xbf16> to vector<32x16xbf16>
    %393 = arith.truncf %391 : vector<128x32xf32> to vector<128x32xbf16>
    %cst_119 = arith.constant dense<0.000000e+00> : vector<128x16xf32>
    %394 = tpu.matmul %393, %392, %cst_119 {dimension_numbers = #tpu.dot_dimension_numbers<[1], [0], [0], [1], [0, 0, 1, 1], [], []>} : vector<128x32xbf16>, vector<32x16xbf16>, vector<128x16xf32> -> vector<128x16xf32>
    %395 = vector.extract_strided_slice %19 {offsets = [0, 16], sizes = [1, 16], strides = [1, 1]} : vector<1x48xf32> to vector<1x16xf32>
    %396 = vector.broadcast %395 : vector<1x16xf32> to vector<128x16xf32>
    %397 = arith.addf %394, %396 : vector<128x16xf32>
    %398 = vector.shape_cast %397 : vector<128x16xf32> to vector<2x64x16xf32>
    %399 = vector.shape_cast %379 : vector<2x64x32xf32> to vector<128x32xf32>
    %400 = vector.extract_strided_slice %18 {offsets = [0, 32], sizes = [32, 16], strides = [1, 1]} : vector<32x48xbf16> to vector<32x16xbf16>
    %401 = arith.truncf %399 : vector<128x32xf32> to vector<128x32xbf16>
    %cst_120 = arith.constant dense<0.000000e+00> : vector<128x16xf32>
    %402 = tpu.matmul %401, %400, %cst_120 {dimension_numbers = #tpu.dot_dimension_numbers<[1], [0], [0], [1], [0, 0, 1, 1], [], []>} : vector<128x32xbf16>, vector<32x16xbf16>, vector<128x16xf32> -> vector<128x16xf32>
    %403 = vector.extract_strided_slice %19 {offsets = [0, 32], sizes = [1, 16], strides = [1, 1]} : vector<1x48xf32> to vector<1x16xf32>
    %404 = vector.broadcast %403 : vector<1x16xf32> to vector<128x16xf32>
    %405 = arith.addf %402, %404 : vector<128x16xf32>
    %406 = vector.shape_cast %405 : vector<128x16xf32> to vector<2x64x16xf32>
    %407 = vector.extract_strided_slice %390 {offsets = [0, 0, 0], sizes = [2, 8, 8], strides = [1, 1, 1]} : vector<2x8x16xf32> to vector<2x8x8xf32>
    %408 = arith.truncf %407 : vector<2x8x8xf32> to vector<2x8x8xbf16>
    %409 = vector.extract_strided_slice %398 {offsets = [0, 0, 0], sizes = [2, 64, 8], strides = [1, 1, 1]} : vector<2x64x16xf32> to vector<2x64x8xf32>
    %410 = arith.truncf %409 : vector<2x64x8xf32> to vector<2x64x8xbf16>
    "tpu.trace_start"() <{level = 10 : i32, message = "bqd,bkd->bqk"}> : () -> ()
    %cst_121 = arith.constant dense<0.000000e+00> : vector<2x8x64xf32>
    %411 = tpu.matmul %408, %410, %cst_121 {dimension_numbers = #tpu.dot_dimension_numbers<[2], [2], [1], [1], [0, 0, 0, 1, 1, 1], [0], [0]>} : vector<2x8x8xbf16>, vector<2x64x8xbf16>, vector<2x8x64xf32> -> vector<2x8x64xf32>
    "tpu.trace_stop"() : () -> ()
    %cst_122 = arith.constant 0.353553385 : f32
    %412 = vector.broadcast %cst_122 : f32 to vector<2x8x64xf32>
    %413 = arith.mulf %411, %412 : vector<2x8x64xf32>
    %cst_123 = arith.constant dense<0xFF800000> : vector<2x8xf32>
    %414 = vector.multi_reduction <maximumf>, %413, %cst_123 [2] : vector<2x8x64xf32> to vector<2x8xf32>
    %415 = vector.shape_cast %414 : vector<2x8xf32> to vector<2x8x1xf32>
    %416 = vector.broadcast %415 : vector<2x8x1xf32> to vector<2x8x64xf32>
    %417 = arith.subf %413, %416 : vector<2x8x64xf32>
    %418 = math.exp %417 : vector<2x8x64xf32>
    %cst_124 = arith.constant dense<0.000000e+00> : vector<2x8xf32>
    %419 = vector.multi_reduction <add>, %418, %cst_124 [2] : vector<2x8x64xf32> to vector<2x8xf32>
    %420 = vector.shape_cast %419 : vector<2x8xf32> to vector<2x8x1xf32>
    %421 = tpu.reciprocal %420 {approx = true} : vector<2x8x1xf32> -> vector<2x8x1xf32>
    %422 = vector.broadcast %421 : vector<2x8x1xf32> to vector<2x8x64xf32>
    %423 = arith.mulf %418, %422 : vector<2x8x64xf32>
    %424 = arith.truncf %423 : vector<2x8x64xf32> to vector<2x8x64xbf16>
    %425 = vector.extract_strided_slice %406 {offsets = [0, 0, 0], sizes = [2, 64, 8], strides = [1, 1, 1]} : vector<2x64x16xf32> to vector<2x64x8xf32>
    %426 = arith.truncf %425 : vector<2x64x8xf32> to vector<2x64x8xbf16>
    "tpu.trace_start"() <{level = 10 : i32, message = "bqk,bkd->bqd"}> : () -> ()
    %cst_125 = arith.constant dense<0.000000e+00> : vector<2x8x8xf32>
    %427 = tpu.matmul %424, %426, %cst_125 {dimension_numbers = #tpu.dot_dimension_numbers<[2], [1], [1], [2], [0, 0, 0, 1, 1, 2], [0], [0]>} : vector<2x8x64xbf16>, vector<2x64x8xbf16>, vector<2x8x8xf32> -> vector<2x8x8xf32>
    "tpu.trace_stop"() : () -> ()
    %428 = vector.shape_cast %427 : vector<2x8x8xf32> to vector<16x8xf32>
    %429 = vector.extract_strided_slice %20 {offsets = [0, 0], sizes = [8, 32], strides = [1, 1]} : vector<16x32xbf16> to vector<8x32xbf16>
    %430 = arith.truncf %428 : vector<16x8xf32> to vector<16x8xbf16>
    %cst_126 = arith.constant dense<0.000000e+00> : vector<16x32xf32>
    %431 = tpu.matmul %430, %429, %cst_126 {dimension_numbers = #tpu.dot_dimension_numbers<[1], [0], [0], [1], [0, 0, 1, 1], [], []>} : vector<16x8xbf16>, vector<8x32xbf16>, vector<16x32xf32> -> vector<16x32xf32>
    %432 = vector.shape_cast %431 : vector<16x32xf32> to vector<2x8x32xf32>
    %433 = vector.extract_strided_slice %390 {offsets = [0, 0, 8], sizes = [2, 8, 8], strides = [1, 1, 1]} : vector<2x8x16xf32> to vector<2x8x8xf32>
    %434 = arith.truncf %433 : vector<2x8x8xf32> to vector<2x8x8xbf16>
    %435 = vector.extract_strided_slice %398 {offsets = [0, 0, 8], sizes = [2, 64, 8], strides = [1, 1, 1]} : vector<2x64x16xf32> to vector<2x64x8xf32>
    %436 = arith.truncf %435 : vector<2x64x8xf32> to vector<2x64x8xbf16>
    "tpu.trace_start"() <{level = 10 : i32, message = "bqd,bkd->bqk"}> : () -> ()
    %cst_127 = arith.constant dense<0.000000e+00> : vector<2x8x64xf32>
    %437 = tpu.matmul %434, %436, %cst_127 {dimension_numbers = #tpu.dot_dimension_numbers<[2], [2], [1], [1], [0, 0, 0, 1, 1, 1], [0], [0]>} : vector<2x8x8xbf16>, vector<2x64x8xbf16>, vector<2x8x64xf32> -> vector<2x8x64xf32>
    "tpu.trace_stop"() : () -> ()
    %cst_128 = arith.constant 0.353553385 : f32
    %438 = vector.broadcast %cst_128 : f32 to vector<2x8x64xf32>
    %439 = arith.mulf %437, %438 : vector<2x8x64xf32>
    %cst_129 = arith.constant dense<0xFF800000> : vector<2x8xf32>
    %440 = vector.multi_reduction <maximumf>, %439, %cst_129 [2] : vector<2x8x64xf32> to vector<2x8xf32>
    %441 = vector.shape_cast %440 : vector<2x8xf32> to vector<2x8x1xf32>
    %442 = vector.broadcast %441 : vector<2x8x1xf32> to vector<2x8x64xf32>
    %443 = arith.subf %439, %442 : vector<2x8x64xf32>
    %444 = math.exp %443 : vector<2x8x64xf32>
    %cst_130 = arith.constant dense<0.000000e+00> : vector<2x8xf32>
    %445 = vector.multi_reduction <add>, %444, %cst_130 [2] : vector<2x8x64xf32> to vector<2x8xf32>
    %446 = vector.shape_cast %445 : vector<2x8xf32> to vector<2x8x1xf32>
    %447 = tpu.reciprocal %446 {approx = true} : vector<2x8x1xf32> -> vector<2x8x1xf32>
    %448 = vector.broadcast %447 : vector<2x8x1xf32> to vector<2x8x64xf32>
    %449 = arith.mulf %444, %448 : vector<2x8x64xf32>
    %450 = arith.truncf %449 : vector<2x8x64xf32> to vector<2x8x64xbf16>
    %451 = vector.extract_strided_slice %406 {offsets = [0, 0, 8], sizes = [2, 64, 8], strides = [1, 1, 1]} : vector<2x64x16xf32> to vector<2x64x8xf32>
    %452 = arith.truncf %451 : vector<2x64x8xf32> to vector<2x64x8xbf16>
    "tpu.trace_start"() <{level = 10 : i32, message = "bqk,bkd->bqd"}> : () -> ()
    %cst_131 = arith.constant dense<0.000000e+00> : vector<2x8x8xf32>
    %453 = tpu.matmul %450, %452, %cst_131 {dimension_numbers = #tpu.dot_dimension_numbers<[2], [1], [1], [2], [0, 0, 0, 1, 1, 2], [0], [0]>} : vector<2x8x64xbf16>, vector<2x64x8xbf16>, vector<2x8x8xf32> -> vector<2x8x8xf32>
    "tpu.trace_stop"() : () -> ()
    %454 = vector.shape_cast %453 : vector<2x8x8xf32> to vector<16x8xf32>
    %455 = vector.extract_strided_slice %20 {offsets = [8, 0], sizes = [8, 32], strides = [1, 1]} : vector<16x32xbf16> to vector<8x32xbf16>
    %456 = arith.truncf %454 : vector<16x8xf32> to vector<16x8xbf16>
    %cst_132 = arith.constant dense<0.000000e+00> : vector<16x32xf32>
    %457 = tpu.matmul %456, %455, %cst_132 {dimension_numbers = #tpu.dot_dimension_numbers<[1], [0], [0], [1], [0, 0, 1, 1], [], []>} : vector<16x8xbf16>, vector<8x32xbf16>, vector<16x32xf32> -> vector<16x32xf32>
    %458 = vector.shape_cast %457 : vector<16x32xf32> to vector<2x8x32xf32>
    %459 = arith.addf %432, %458 : vector<2x8x32xf32>
    %460 = vector.shape_cast %21 : vector<1x32xf32> to vector<1x1x32xf32>
    %461 = vector.broadcast %460 : vector<1x1x32xf32> to vector<2x8x32xf32>
    %462 = arith.addf %459, %461 : vector<2x8x32xf32>
    %463 = arith.addf %269, %462 : vector<2x8x32xf32>
    %464 = vector.extract_strided_slice %4 {offsets = [4, 0], sizes = [1, 32], strides = [1, 1]} : vector<5x32xf32> to vector<1x32xf32>
    %465 = vector.extract_strided_slice %5 {offsets = [4, 0], sizes = [1, 32], strides = [1, 1]} : vector<5x32xf32> to vector<1x32xf32>
    %cst_133 = arith.constant dense<0.000000e+00> : vector<2x8xf32>
    %466 = vector.multi_reduction <add>, %463, %cst_133 [2] : vector<2x8x32xf32> to vector<2x8xf32>
    %467 = vector.shape_cast %466 : vector<2x8xf32> to vector<2x8x1xf32>
    %cst_134 = arith.constant 3.200000e+01 : f32
    %468 = vector.broadcast %cst_134 : f32 to vector<2x8x1xf32>
    %469 = arith.divf %467, %468 : vector<2x8x1xf32>
    %470 = vector.broadcast %469 : vector<2x8x1xf32> to vector<2x8x32xf32>
    %471 = arith.subf %463, %470 : vector<2x8x32xf32>
    %472 = arith.mulf %471, %471 : vector<2x8x32xf32>
    %cst_135 = arith.constant dense<0.000000e+00> : vector<2x8xf32>
    %473 = vector.multi_reduction <add>, %472, %cst_135 [2] : vector<2x8x32xf32> to vector<2x8xf32>
    %474 = vector.shape_cast %473 : vector<2x8xf32> to vector<2x8x1xf32>
    %cst_136 = arith.constant 3.200000e+01 : f32
    %475 = vector.broadcast %cst_136 : f32 to vector<2x8x1xf32>
    %476 = arith.divf %474, %475 : vector<2x8x1xf32>
    %cst_137 = arith.constant 9.99999974E-6 : f32
    %477 = vector.broadcast %cst_137 : f32 to vector<2x8x1xf32>
    %478 = arith.addf %476, %477 : vector<2x8x1xf32>
    %479 = math.rsqrt %478 : vector<2x8x1xf32>
    %480 = vector.broadcast %479 : vector<2x8x1xf32> to vector<2x8x32xf32>
    %481 = arith.mulf %471, %480 : vector<2x8x32xf32>
    %482 = vector.shape_cast %464 : vector<1x32xf32> to vector<1x1x32xf32>
    %483 = vector.broadcast %482 : vector<1x1x32xf32> to vector<2x8x32xf32>
    %484 = arith.mulf %481, %483 : vector<2x8x32xf32>
    %485 = vector.shape_cast %465 : vector<1x32xf32> to vector<1x1x32xf32>
    %486 = vector.broadcast %485 : vector<1x1x32xf32> to vector<2x8x32xf32>
    %487 = arith.addf %484, %486 : vector<2x8x32xf32>
    %c0_138 = arith.constant 0 : index
    %c0_139 = arith.constant 0 : index
    %c0_140 = arith.constant 0 : index
    %488 = vector.load %arg25[%c0_138, %c0_139, %c0_140] : memref<2x8x32xf32, #tpu.memory_space<vmem>>, vector<2x8x32xf32>
    tpu.vector_store %arg25[%c0_138, %c0_139, %c0_140], %487 {strides = array<i32>} : memref<2x8x32xf32, #tpu.memory_space<vmem>>, vector<2x8x32xf32>,
    %c0_141 = arith.constant 0 : index
    %c0_142 = arith.constant 0 : index
    %c0_143 = arith.constant 0 : index
    %489 = vector.load %arg26[%c0_141, %c0_142, %c0_143] : memref<2x64x32xf32, #tpu.memory_space<vmem>>, vector<2x64x32xf32>
    tpu.vector_store %arg26[%c0_141, %c0_142, %c0_143], %379 {strides = array<i32>} : memref<2x64x32xf32, #tpu.memory_space<vmem>>, vector<2x64x32xf32>,
    return
  }
}

module attributes {stable_mosaic.version = 11 : i64} {
  func.func @_mask_head_kernel(%arg0: memref<2x64x32xf32, #tpu.memory_space<vmem>>, %arg1: memref<2x32xf32, #tpu.memory_space<vmem>>, %arg2: memref<32x32xbf16, #tpu.memory_space<vmem>>, %arg3: memref<1x32xf32, #tpu.memory_space<vmem>>, %arg4: memref<1x32xf32, #tpu.memory_space<vmem>>, %arg5: memref<1x32xf32, #tpu.memory_space<vmem>>, %arg6: memref<32x64xbf16, #tpu.memory_space<vmem>>, %arg7: memref<1x64xf32, #tpu.memory_space<vmem>>, %arg8: memref<32x32xbf16, #tpu.memory_space<vmem>>, %arg9: memref<1x32xf32, #tpu.memory_space<vmem>>, %arg10: memref<32x32xbf16, #tpu.memory_space<vmem>>, %arg11: memref<1x32xf32, #tpu.memory_space<vmem>>, %arg12: memref<32x4xbf16, #tpu.memory_space<vmem>>, %arg13: memref<1x4xf32, #tpu.memory_space<vmem>>, %arg14: memref<32x32xbf16, #tpu.memory_space<vmem>>, %arg15: memref<4x64xbf16, #tpu.memory_space<vmem>>, %arg16: memref<64x16xbf16, #tpu.memory_space<vmem>>, %arg17: memref<2x64x16xf32, #tpu.memory_space<vmem>>) attributes {dimension_semantics = [], scalar_prefetch = 0 : i64, scratch_operands = 0 : i64, tpu.core_type = #tpu.core_type<tc>} {
    %c0 = arith.constant 0 : index
    %c0_0 = arith.constant 0 : index
    %0 = vector.load %arg1[%c0, %c0_0] : memref<2x32xf32, #tpu.memory_space<vmem>>, vector<2x32xf32>
    %c0_1 = arith.constant 0 : index
    %c0_2 = arith.constant 0 : index
    %1 = vector.load %arg8[%c0_1, %c0_2] : memref<32x32xbf16, #tpu.memory_space<vmem>>, vector<32x32xbf16>
    %2 = arith.truncf %0 : vector<2x32xf32> to vector<2x32xbf16>
    %cst = arith.constant dense<0.000000e+00> : vector<2x32xf32>
    %3 = tpu.matmul %2, %1, %cst {dimension_numbers = #tpu.dot_dimension_numbers<[1], [0], [0], [1], [0, 0, 1, 1], [], []>} : vector<2x32xbf16>, vector<32x32xbf16>, vector<2x32xf32> -> vector<2x32xf32>
    %c0_3 = arith.constant 0 : index
    %c0_4 = arith.constant 0 : index
    %4 = vector.load %arg9[%c0_3, %c0_4] : memref<1x32xf32, #tpu.memory_space<vmem>>, vector<1x32xf32>
    %5 = vector.broadcast %4 : vector<1x32xf32> to vector<2x32xf32>
    %6 = arith.addf %3, %5 : vector<2x32xf32>
    %cst_5 = arith.constant 0.000000e+00 : f32
    %7 = vector.broadcast %cst_5 : f32 to vector<2x32xf32>
    %8 = arith.maximumf %6, %7 : vector<2x32xf32>
    %c0_6 = arith.constant 0 : index
    %c0_7 = arith.constant 0 : index
    %9 = vector.load %arg10[%c0_6, %c0_7] : memref<32x32xbf16, #tpu.memory_space<vmem>>, vector<32x32xbf16>
    %10 = arith.truncf %8 : vector<2x32xf32> to vector<2x32xbf16>
    %cst_8 = arith.constant dense<0.000000e+00> : vector<2x32xf32>
    %11 = tpu.matmul %10, %9, %cst_8 {dimension_numbers = #tpu.dot_dimension_numbers<[1], [0], [0], [1], [0, 0, 1, 1], [], []>} : vector<2x32xbf16>, vector<32x32xbf16>, vector<2x32xf32> -> vector<2x32xf32>
    %c0_9 = arith.constant 0 : index
    %c0_10 = arith.constant 0 : index
    %12 = vector.load %arg11[%c0_9, %c0_10] : memref<1x32xf32, #tpu.memory_space<vmem>>, vector<1x32xf32>
    %13 = vector.broadcast %12 : vector<1x32xf32> to vector<2x32xf32>
    %14 = arith.addf %11, %13 : vector<2x32xf32>
    %cst_11 = arith.constant 0.000000e+00 : f32
    %15 = vector.broadcast %cst_11 : f32 to vector<2x32xf32>
    %16 = arith.maximumf %14, %15 : vector<2x32xf32>
    %c0_12 = arith.constant 0 : index
    %c0_13 = arith.constant 0 : index
    %17 = vector.load %arg12[%c0_12, %c0_13] : memref<32x4xbf16, #tpu.memory_space<vmem>>, vector<32x4xbf16>
    %18 = arith.truncf %16 : vector<2x32xf32> to vector<2x32xbf16>
    %cst_14 = arith.constant dense<0.000000e+00> : vector<2x4xf32>
    %19 = tpu.matmul %18, %17, %cst_14 {dimension_numbers = #tpu.dot_dimension_numbers<[1], [0], [0], [1], [0, 0, 1, 1], [], []>} : vector<2x32xbf16>, vector<32x4xbf16>, vector<2x4xf32> -> vector<2x4xf32>
    %c0_15 = arith.constant 0 : index
    %c0_16 = arith.constant 0 : index
    %20 = vector.load %arg13[%c0_15, %c0_16] : memref<1x4xf32, #tpu.memory_space<vmem>>, vector<1x4xf32>
    %21 = vector.broadcast %20 : vector<1x4xf32> to vector<2x4xf32>
    %22 = arith.addf %19, %21 : vector<2x4xf32>
    %c0_17 = arith.constant 0 : index
    %c0_18 = arith.constant 0 : index
    %23 = vector.load %arg15[%c0_17, %c0_18] : memref<4x64xbf16, #tpu.memory_space<vmem>>, vector<4x64xbf16>
    %24 = arith.truncf %22 : vector<2x4xf32> to vector<2x4xbf16>
    %cst_19 = arith.constant dense<0.000000e+00> : vector<2x64xf32>
    %25 = tpu.matmul %24, %23, %cst_19 {dimension_numbers = #tpu.dot_dimension_numbers<[1], [0], [0], [1], [0, 0, 1, 1], [], []>} : vector<2x4xbf16>, vector<4x64xbf16>, vector<2x64xf32> -> vector<2x64xf32>
    %c0_20 = arith.constant 0 : index
    %c0_21 = arith.constant 0 : index
    %c0_22 = arith.constant 0 : index
    %26 = vector.load %arg0[%c0_20, %c0_21, %c0_22] : memref<2x64x32xf32, #tpu.memory_space<vmem>>, vector<2x64x32xf32>
    %27 = vector.shape_cast %26 : vector<2x64x32xf32> to vector<128x32xf32>
    %c0_23 = arith.constant 0 : index
    %c0_24 = arith.constant 0 : index
    %28 = vector.load %arg2[%c0_23, %c0_24] : memref<32x32xbf16, #tpu.memory_space<vmem>>, vector<32x32xbf16>
    %29 = arith.truncf %27 : vector<128x32xf32> to vector<128x32xbf16>
    %cst_25 = arith.constant dense<0.000000e+00> : vector<128x32xf32>
    %30 = tpu.matmul %29, %28, %cst_25 {dimension_numbers = #tpu.dot_dimension_numbers<[1], [0], [0], [1], [0, 0, 1, 1], [], []>} : vector<128x32xbf16>, vector<32x32xbf16>, vector<128x32xf32> -> vector<128x32xf32>
    %c0_26 = arith.constant 0 : index
    %c0_27 = arith.constant 0 : index
    %31 = vector.load %arg3[%c0_26, %c0_27] : memref<1x32xf32, #tpu.memory_space<vmem>>, vector<1x32xf32>
    %32 = vector.broadcast %31 : vector<1x32xf32> to vector<128x32xf32>
    %33 = arith.addf %30, %32 : vector<128x32xf32>
    %c0_28 = arith.constant 0 : index
    %c0_29 = arith.constant 0 : index
    %34 = vector.load %arg14[%c0_28, %c0_29] : memref<32x32xbf16, #tpu.memory_space<vmem>>, vector<32x32xbf16>
    %35 = arith.truncf %33 : vector<128x32xf32> to vector<128x32xbf16>
    %cst_30 = arith.constant dense<0.000000e+00> : vector<128x32xf32>
    %36 = tpu.matmul %35, %34, %cst_30 {dimension_numbers = #tpu.dot_dimension_numbers<[1], [0], [0], [1], [0, 0, 1, 1], [], []>} : vector<128x32xbf16>, vector<32x32xbf16>, vector<128x32xf32> -> vector<128x32xf32>
    %37 = arith.subf %33, %36 : vector<128x32xf32>
    %38 = arith.mulf %37, %37 : vector<128x32xf32>
    %39 = arith.truncf %38 : vector<128x32xf32> to vector<128x32xbf16>
    %cst_31 = arith.constant dense<0.000000e+00> : vector<128x32xf32>
    %40 = tpu.matmul %39, %34, %cst_31 {dimension_numbers = #tpu.dot_dimension_numbers<[1], [0], [0], [1], [0, 0, 1, 1], [], []>} : vector<128x32xbf16>, vector<32x32xbf16>, vector<128x32xf32> -> vector<128x32xf32>
    %cst_32 = arith.constant 9.99999997E-7 : f32
    %41 = vector.broadcast %cst_32 : f32 to vector<128x32xf32>
    %42 = arith.addf %40, %41 : vector<128x32xf32>
    %43 = math.rsqrt %42 : vector<128x32xf32>
    %44 = arith.mulf %37, %43 : vector<128x32xf32>
    %c0_33 = arith.constant 0 : index
    %c0_34 = arith.constant 0 : index
    %45 = vector.load %arg4[%c0_33, %c0_34] : memref<1x32xf32, #tpu.memory_space<vmem>>, vector<1x32xf32>
    %46 = vector.broadcast %45 : vector<1x32xf32> to vector<128x32xf32>
    %47 = arith.mulf %44, %46 : vector<128x32xf32>
    %c0_35 = arith.constant 0 : index
    %c0_36 = arith.constant 0 : index
    %48 = vector.load %arg5[%c0_35, %c0_36] : memref<1x32xf32, #tpu.memory_space<vmem>>, vector<1x32xf32>
    %49 = vector.broadcast %48 : vector<1x32xf32> to vector<128x32xf32>
    %50 = arith.addf %47, %49 : vector<128x32xf32>
    %cst_37 = arith.constant 5.000000e-01 : f32
    %51 = vector.broadcast %cst_37 : f32 to vector<128x32xf32>
    %52 = arith.mulf %51, %50 : vector<128x32xf32>
    %cst_38 = arith.constant 4.471500e-02 : f32
    %53 = vector.broadcast %cst_38 : f32 to vector<128x32xf32>
    %54 = arith.mulf %53, %50 : vector<128x32xf32>
    %55 = arith.mulf %54, %50 : vector<128x32xf32>
    %56 = arith.mulf %55, %50 : vector<128x32xf32>
    %57 = arith.addf %50, %56 : vector<128x32xf32>
    %cst_39 = arith.constant 0.797884583 : f32
    %58 = vector.broadcast %cst_39 : f32 to vector<128x32xf32>
    %59 = arith.mulf %58, %57 : vector<128x32xf32>
    %60 = math.tanh %59 : vector<128x32xf32>
    %cst_40 = arith.constant 1.000000e+00 : f32
    %61 = vector.broadcast %cst_40 : f32 to vector<128x32xf32>
    %62 = arith.addf %61, %60 : vector<128x32xf32>
    %63 = arith.mulf %52, %62 : vector<128x32xf32>
    %c0_41 = arith.constant 0 : index
    %c0_42 = arith.constant 0 : index
    %64 = vector.load %arg6[%c0_41, %c0_42] : memref<32x64xbf16, #tpu.memory_space<vmem>>, vector<32x64xbf16>
    %65 = arith.truncf %63 : vector<128x32xf32> to vector<128x32xbf16>
    %cst_43 = arith.constant dense<0.000000e+00> : vector<128x64xf32>
    %66 = tpu.matmul %65, %64, %cst_43 {dimension_numbers = #tpu.dot_dimension_numbers<[1], [0], [0], [1], [0, 0, 1, 1], [], []>} : vector<128x32xbf16>, vector<32x64xbf16>, vector<128x64xf32> -> vector<128x64xf32>
    %c0_44 = arith.constant 0 : index
    %c0_45 = arith.constant 0 : index
    %67 = vector.load %arg7[%c0_44, %c0_45] : memref<1x64xf32, #tpu.memory_space<vmem>>, vector<1x64xf32>
    %68 = vector.broadcast %67 : vector<1x64xf32> to vector<128x64xf32>
    %69 = arith.addf %66, %68 : vector<128x64xf32>
    %cst_46 = arith.constant 5.000000e-01 : f32
    %70 = vector.broadcast %cst_46 : f32 to vector<128x64xf32>
    %71 = arith.mulf %70, %69 : vector<128x64xf32>
    %cst_47 = arith.constant 4.471500e-02 : f32
    %72 = vector.broadcast %cst_47 : f32 to vector<128x64xf32>
    %73 = arith.mulf %72, %69 : vector<128x64xf32>
    %74 = arith.mulf %73, %69 : vector<128x64xf32>
    %75 = arith.mulf %74, %69 : vector<128x64xf32>
    %76 = arith.addf %69, %75 : vector<128x64xf32>
    %cst_48 = arith.constant 0.797884583 : f32
    %77 = vector.broadcast %cst_48 : f32 to vector<128x64xf32>
    %78 = arith.mulf %77, %76 : vector<128x64xf32>
    %79 = math.tanh %78 : vector<128x64xf32>
    %cst_49 = arith.constant 1.000000e+00 : f32
    %80 = vector.broadcast %cst_49 : f32 to vector<128x64xf32>
    %81 = arith.addf %80, %79 : vector<128x64xf32>
    %82 = arith.mulf %71, %81 : vector<128x64xf32>
    %83 = vector.shape_cast %82 : vector<128x64xf32> to vector<2x64x64xf32>
    %84 = vector.shape_cast %25 : vector<2x64xf32> to vector<2x1x64xf32>
    %85 = vector.broadcast %84 : vector<2x1x64xf32> to vector<2x64x64xf32>
    %86 = arith.mulf %83, %85 : vector<2x64x64xf32>
    %87 = vector.shape_cast %86 : vector<2x64x64xf32> to vector<128x64xf32>
    %c0_50 = arith.constant 0 : index
    %c0_51 = arith.constant 0 : index
    %88 = vector.load %arg16[%c0_50, %c0_51] : memref<64x16xbf16, #tpu.memory_space<vmem>>, vector<64x16xbf16>
    %89 = arith.truncf %87 : vector<128x64xf32> to vector<128x64xbf16>
    %cst_52 = arith.constant dense<0.000000e+00> : vector<128x16xf32>
    %90 = tpu.matmul %89, %88, %cst_52 {dimension_numbers = #tpu.dot_dimension_numbers<[1], [0], [0], [1], [0, 0, 1, 1], [], []>} : vector<128x64xbf16>, vector<64x16xbf16>, vector<128x16xf32> -> vector<128x16xf32>
    %91 = vector.shape_cast %90 : vector<128x16xf32> to vector<2x64x16xf32>
    %c0_53 = arith.constant 0 : index
    %c0_54 = arith.constant 0 : index
    %c0_55 = arith.constant 0 : index
    %92 = vector.load %arg17[%c0_53, %c0_54, %c0_55] : memref<2x64x16xf32, #tpu.memory_space<vmem>>, vector<2x64x16xf32>
    tpu.vector_store %arg17[%c0_53, %c0_54, %c0_55], %91 {strides = array<i32>} : memref<2x64x16xf32, #tpu.memory_space<vmem>>, vector<2x64x16xf32>,
    return
  }
}

</mosaic_0001>

<bundles_post_ra>
// kernel: medsam_lite_forward.4
= control target key start
LH: loop header
LB: loop body
LE: loop exit
PB: predicated region body
PF: predicated region fallthrough
CT: control target
= control target key end

     0   :  { %vm230_vm0 = vcmask 1044480   ;;  %vm231_vm1 = vcmask 1045504   ;;  %v803_v1 = vmov 65535   ;;  %vm133_vm2 = vcmask 220160   ;;  %s1379_s1 = inlined_call_operand.vmem [shape: bf16[27,16], index: 1, kind: input, shape index: {}]   ;;  %s1380_s0 = inlined_call_operand.vmem [shape: f32[512,27], index: 0, kind: input, shape index: {}]   ;;  %s1381_s2 = inlined_call_operand.vmem [shape: f32[1,16], index: 2, kind: input, shape index: {}]   ;;  %s1382_s3 = inlined_call_operand.vmem [shape: f32[512,16], index: 3, kind: output, shape index: {}]  }
   0x1   :  { %v801_v0 = vld [vmem:[%s1379_s1 + $0x8] sm:$0x3f]   ;;  %v232_v2 = vsel %vm230_vm0, 4294967295, %v803_v1  ;;  %v15_v4 = vld [vmem:[%s1380_s0] sm:$0xff]  ;;  %v17_v12 = vld [vmem:[%s1380_s0 + $0x10] sm:$0xff]  ;;  %vm590_vm3 = vcmask 130048  }
   0x2   :  { %v233_v3 = vsel %vm231_vm1, %v232_v2, 0  ;;  %v16_v5 = vld [vmem:[%s1380_s0 + $0x8] sm:$0xff]  ;;  %v47_v6 = vld [vmem:[%s1380_s0 + $0x100] sm:$0xff]  ;;  %v18_v13 = vld [vmem:[%s1380_s0 + $0x18] sm:$0xff] }
   0x3   :  { %v235_v7 = vand.u32 %v801_v0, %v233_v3  ;;  %v802_v8 = vld [vmem:[%s1379_s1] sm:$0xff]   ;;  %v48_v9 = vld [vmem:[%s1380_s0 + $0x108] sm:$0xff]  ;;  %v83_v10 = vpack.c.bf16 %v16_v5, %v15_v4  ;;  %v49_v14 = vld [vmem:[%s1380_s0 + $0x110] sm:$0xff]  ;;  %v84_v20 = vpack.c.bf16 %v18_v13, %v17_v12 }
   0x4   :  { %v99_v11 = vpack.c.bf16 %v48_v9, %v47_v6  ;;  %v50_v15 = vld [vmem:[%s1380_s0 + $0x118] sm:$0xff]  ;;  %v19_v16 = vld [vmem:[%s1380_s0 + $0x20] sm:$0xff]  ;;  %v20_v17 = vld [vmem:[%s1380_s0 + $0x28] sm:$0xff] }
   0x5   :  { %728 = vmatprep.subr.bf16.mxu0 %v235_v7  ;;  %796 = vmatprep.subr.bf16.mxu1 %v235_v7  ;;  %v51_v18 = vld [vmem:[%s1380_s0 + $0x120] sm:$0xff]  ;;  %v52_v19 = vld [vmem:[%s1380_s0 + $0x128] sm:$0xff]  ;;  %v100_v21 = vpack.c.bf16 %v50_v15, %v49_v14  ;;  %v85_v22 = vpack.c.bf16 %v20_v17, %v19_v16  ;;  %v21_v24 = vld [vmem:[%s1380_s0 + $0x30] sm:$0xff] }
   0x6   :  { %729 = vmatpush3.bf16.msra.mxu0 %v235_v7  ;;  %798 = vmatpush3.bf16.msra.mxu1 %v235_v7  ;;  %v101_v23 = vpack.c.bf16 %v52_v19, %v51_v18  ;;  %v22_v25 = vld [vmem:[%s1380_s0 + $0x38] sm:$0xff]  ;;  %v53_v26 = vld [vmem:[%s1380_s0 + $0x130] sm:$0xff]  ;;  %v23_v28 = vld [vmem:[%s1380_s0 + $0x40] sm:$0xff] }
   0x7   :  { %730 = vmatprep.subr.bf16.mxu0 %v802_v8  ;;  %797 = vmatprep.subr.bf16.mxu1 %v802_v8  ;;  %v54_v27 = vld [vmem:[%s1380_s0 + $0x138] sm:$0xff]  ;;  %v24_v29 = vld [vmem:[%s1380_s0 + $0x48] sm:$0xff]  ;;  %v55_v30 = vld [vmem:[%s1380_s0 + $0x140] sm:$0xff]  ;;  %v86_v32 = vpack.c.bf16 %v22_v25, %v21_v24 }
   0x8   :  { %732 = vmatprep.mubr.msk.bf16.mxu0 %vm133_vm2, %v83_v10  ;;  %764 = vmatprep.mubr.msk.bf16.mxu1 %vm133_vm2, %v99_v11  ;;  %v56_v31 = vld [vmem:[%s1380_s0 + $0x148] sm:$0xff]  ;;  %v102_v33 = vpack.c.bf16 %v54_v27, %v53_v26  ;;  %v87_v34 = vpack.c.bf16 %v24_v29, %v23_v28  ;;  %v25_v36 = vld [vmem:[%s1380_s0 + $0x50] sm:$0xff]  ;;  %v26_v37 = vld [vmem:[%s1380_s0 + $0x58] sm:$0xff] }
   0x9   :  { %v103_v35 = vpack.c.bf16 %v56_v31, %v55_v30  ;;  %v57_v38 = vld [vmem:[%s1380_s0 + $0x150] sm:$0xff]  ;;  %v58_v39 = vld [vmem:[%s1380_s0 + $0x158] sm:$0xff]  ;;  %v27_v40 = vld [vmem:[%s1380_s0 + $0x60] sm:$0xff]  ;;  %v88_v44 = vpack.c.bf16 %v26_v37, %v25_v36 }
   0xa   :  { %731 = vmatpush3.bf16.msra.mxu0 %v802_v8  ;;  %799 = vmatpush3.bf16.msra.mxu1 %v802_v8  ;;  %v28_v41 = vld [vmem:[%s1380_s0 + $0x68] sm:$0xff]  ;;  %v59_v42 = vld [vmem:[%s1380_s0 + $0x160] sm:$0xff]  ;;  %v104_v45 = vpack.c.bf16 %v58_v39, %v57_v38  ;;  %v29_v48 = vld [vmem:[%s1380_s0 + $0x70] sm:$0xff] }
   0xb   :  { %v60_v43 = vld [vmem:[%s1380_s0 + $0x168] sm:$0xff]  ;;  %v89_v46 = vpack.c.bf16 %v28_v41, %v27_v40  ;;  %v30_v49 = vld [vmem:[%s1380_s0 + $0x78] sm:$0xff]  ;;  %v61_v50 = vld [vmem:[%s1380_s0 + $0x170] sm:$0xff] }
   0xc   :  { %v105_v47 = vpack.c.bf16 %v60_v43, %v59_v42  ;;  %v62_v51 = vld [vmem:[%s1380_s0 + $0x178] sm:$0xff]  ;;  %v31_v52 = vld [vmem:[%s1380_s0 + $0x80] sm:$0xff]  ;;  %v32_v53 = vld [vmem:[%s1380_s0 + $0x88] sm:$0xff]  ;;  %v90_v56 = vpack.c.bf16 %v30_v49, %v29_v48 }
   0xd   :  { %733 = vmatmul.mubr.msk.bf16.vlgmr.msra.gmra.mxu0 %vm133_vm2, %v84_v20  ;;  %765 = vmatmul.mubr.msk.bf16.vlgmr.msra.gmra.mxu1 %vm133_vm2, %v100_v21  ;;  %v63_v54 = vld [vmem:[%s1380_s0 + $0x180] sm:$0xff]  ;;  %v64_v55 = vld [vmem:[%s1380_s0 + $0x188] sm:$0xff]  ;;  %v106_v57 = vpack.c.bf16 %v62_v51, %v61_v50  ;;  %v91_v58 = vpack.c.bf16 %v32_v53, %v31_v52  ;;  %v33_v60 = vld [vmem:[%s1380_s0 + $0x90] sm:$0xff] }
   0xe   :  { %736 = vmatprep.mubr.msk.bf16.mxu0 %vm133_vm2, %v85_v22  ;;  %768 = vmatprep.mubr.msk.bf16.mxu1 %vm133_vm2, %v101_v23  ;;  %v107_v59 = vpack.c.bf16 %v64_v55, %v63_v54  ;;  %v34_v61 = vld [vmem:[%s1380_s0 + $0x98] sm:$0xff]  ;;  %v65_v62 = vld [vmem:[%s1380_s0 + $0x190] sm:$0xff]  ;;  %v35_v0 = vld [vmem:[%s1380_s0 + $0xa0] sm:$0xff] }
   0xf   :  { %v66_v63 = vld [vmem:[%s1380_s0 + $0x198] sm:$0xff]  ;;  %v36_v1 = vld [vmem:[%s1380_s0 + $0xa8] sm:$0xff]  ;;  %v67_v2 = vld [vmem:[%s1380_s0 + $0x1a0] sm:$0xff]  ;;  %v92_v4 = vpack.c.bf16 %v34_v61, %v33_v60 }
  0x10   :  { %v68_v3 = vld [vmem:[%s1380_s0 + $0x1a8] sm:$0xff]  ;;  %v108_v5 = vpack.c.bf16 %v66_v63, %v65_v62  ;;  %v93_v6 = vpack.c.bf16 %v36_v1, %v35_v0  ;;  %v37_v8 = vld [vmem:[%s1380_s0 + $0xb0] sm:$0xff]  ;;  %v38_v9 = vld [vmem:[%s1380_s0 + $0xb8] sm:$0xff] }
  0x11   :  { %v109_v7 = vpack.c.bf16 %v68_v3, %v67_v2  ;;  %v69_v10 = vld [vmem:[%s1380_s0 + $0x1b0] sm:$0xff]  ;;  %v70_v11 = vld [vmem:[%s1380_s0 + $0x1b8] sm:$0xff]  ;;  %v39_v12 = vld [vmem:[%s1380_s0 + $0xc0] sm:$0xff]  ;;  %v94_v16 = vpack.c.bf16 %v38_v9, %v37_v8 }
  0x12   :  { %v40_v13 = vld [vmem:[%s1380_s0 + $0xc8] sm:$0xff]  ;;  %v71_v14 = vld [vmem:[%s1380_s0 + $0x1c0] sm:$0xff]  ;;  %v110_v17 = vpack.c.bf16 %v70_v11, %v69_v10  ;;  %v41_v20 = vld [vmem:[%s1380_s0 + $0xd0] sm:$0xff] }
  0x13   :  { %v72_v15 = vld [vmem:[%s1380_s0 + $0x1c8] sm:$0xff]  ;;  %v95_v18 = vpack.c.bf16 %v40_v13, %v39_v12  ;;  %v42_v21 = vld [vmem:[%s1380_s0 + $0xd8] sm:$0xff]  ;;  %v73_v22 = vld [vmem:[%s1380_s0 + $0x1d0] sm:$0xff] }
  0x14   :  { %v111_v19 = vpack.c.bf16 %v72_v15, %v71_v14  ;;  %v74_v23 = vld [vmem:[%s1380_s0 + $0x1d8] sm:$0xff]  ;;  %v43_v24 = vld [vmem:[%s1380_s0 + $0xe0] sm:$0xff]  ;;  %v44_v25 = vld [vmem:[%s1380_s0 + $0xe8] sm:$0xff]  ;;  %v96_v28 = vpack.c.bf16 %v42_v21, %v41_v20 }
  0x15   :  { %737 = vmatmul.mubr.msk.bf16.gmra.mxu0 %vm133_vm2, %v86_v32  ;;  %769 = vmatmul.mubr.msk.bf16.gmra.mxu1 %vm133_vm2, %v102_v33  ;;  %v75_v26 = vld [vmem:[%s1380_s0 + $0x1e0] sm:$0xff]  ;;  %v76_v27 = vld [vmem:[%s1380_s0 + $0x1e8] sm:$0xff]  ;;  %v112_v29 = vpack.c.bf16 %v74_v23, %v73_v22  ;;  %v97_v30 = vpack.c.bf16 %v44_v25, %v43_v24  ;;  %v45_v32 = vld [vmem:[%s1380_s0 + $0xf0] sm:$0xff] }
  0x16   :  { %740 = vmatprep.mubr.msk.bf16.mxu0 %vm133_vm2, %v87_v34  ;;  %772 = vmatprep.mubr.msk.bf16.mxu1 %vm133_vm2, %v103_v35  ;;  %v113_v31 = vpack.c.bf16 %v76_v27, %v75_v26  ;;  %v46_v33 = vld [vmem:[%s1380_s0 + $0xf8] sm:$0xff]  ;;  %v77_v34 = vld [vmem:[%s1380_s0 + $0x1f0] sm:$0xff]  ;;  %v1057_v38 = vld [vmem:[%s1381_s2] ss:$0 sm:$0xff] }
  0x17   :  { %v78_v35 = vld [vmem:[%s1380_s0 + $0x1f8] sm:$0xff]  ;;  %v98_v36 = vpack.c.bf16 %v46_v33, %v45_v32 }
  0x18   :  { %v114_v37 = vpack.c.bf16 %v78_v35, %v77_v34 }
  0x1d   :  { %741 = vmatmul.mubr.msk.bf16.gmra.mxu0 %vm133_vm2, %v88_v44  ;;  %773 = vmatmul.mubr.msk.bf16.gmra.mxu1 %vm133_vm2, %v104_v45 }
  0x1e   :  { %744 = vmatprep.mubr.msk.bf16.mxu0 %vm133_vm2, %v89_v46  ;;  %776 = vmatprep.mubr.msk.bf16.mxu1 %vm133_vm2, %v105_v47 }
  0x25   :  { %745 = vmatmul.mubr.msk.bf16.gmra.mxu0 %vm133_vm2, %v90_v56  ;;  %777 = vmatmul.mubr.msk.bf16.gmra.mxu1 %vm133_vm2, %v106_v57 }
  0x26   :  { %748 = vmatprep.mubr.msk.bf16.mxu0 %vm133_vm2, %v91_v58  ;;  %780 = vmatprep.mubr.msk.bf16.mxu1 %vm133_vm2, %v107_v59 }
  0x2d   :  { %749 = vmatmul.mubr.msk.bf16.gmra.mxu0 %vm133_vm2, %v92_v4  ;;  %781 = vmatmul.mubr.msk.bf16.gmra.mxu1 %vm133_vm2, %v108_v5 }
  0x2e   :  { %752 = vmatprep.mubr.msk.bf16.mxu0 %vm133_vm2, %v93_v6  ;;  %784 = vmatprep.mubr.msk.bf16.mxu1 %vm133_vm2, %v109_v7 }
  0x35   :  { %753 = vmatmul.mubr.msk.bf16.gmra.mxu0 %vm133_vm2, %v94_v16  ;;  %785 = vmatmul.mubr.msk.bf16.gmra.mxu1 %vm133_vm2, %v110_v17 }
  0x36   :  { %756 = vmatprep.mubr.msk.bf16.mxu0 %vm133_vm2, %v95_v18  ;;  %788 = vmatprep.mubr.msk.bf16.mxu1 %vm133_vm2, %v111_v19 }
  0x3d   :  { %757 = vmatmul.mubr.msk.bf16.gmra.mxu0 %vm133_vm2, %v96_v28  ;;  %789 = vmatmul.mubr.msk.bf16.gmra.mxu1 %vm133_vm2, %v112_v29 }
  0x3e   :  { %760 = vmatprep.mubr.msk.bf16.mxu0 %vm133_vm2, %v97_v30  ;;  %792 = vmatprep.mubr.msk.bf16.mxu1 %vm133_vm2, %v113_v31 }
  0x45   :  { %761 = vmatmul.mubr.msk.bf16.gmra.mxu0 %vm133_vm2, %v98_v36  ;;  %793 = vmatmul.mubr.msk.bf16.gmra.mxu1 %vm133_vm2, %v114_v37 }
  0xcd   :  { %v734_v39 = vpop.f32.mrf.mxu0  ;;  %v766_v40 = vpop.f32.mrf.mxu1 }
  0xce   :  { %v280_v41 = vadd.f32 %v734_v39, %v1057_v38  ;;  %v408_v42 = vadd.f32 %v766_v40, %v1057_v38 }
  0xcf   :  { %v271_v43 = vpop.f32.mrf.mxu0  ;;  %v399_v44 = vpop.f32.mrf.mxu1 }
  0xd0   :  { %v528_v45 = vmax.f32 %v280_v41, 0.0  ;;  %v560_v46 = vmax.f32 %v408_v42, 0.0  ;;  %v272_v47 = vadd.f32 %v1057_v38, %v271_v43  ;;  %v400_v48 = vadd.f32 %v1057_v38, %v399_v44 }
  0xd1   :  { %v735_v49 = vpop.f32.mrf.mxu0  ;;  %v767_v50 = vpop.f32.mrf.mxu1 }
  0xd2   :  { %593 = vst.msk [vmem:[%s1382_s3 + $0x10] sm:$0xff] %vm590_vm3, %v528_v45  ;;  %625 = vst.msk [vmem:[%s1382_s3 + $0x110] sm:$0xff] %vm590_vm3, %v560_v46  ;;  %v526_v51 = vmax.f32 %v272_v47, 0.0  ;;  %v558_v52 = vmax.f32 %v400_v48, 0.0  ;;  %v283_v53 = vadd.f32 %v735_v49, %v1057_v38  ;;  %v411_v54 = vadd.f32 %v767_v50, %v1057_v38 }
  0xd3   :  { %v274_v55 = vpop.f32.mrf.mxu0  ;;  %v402_v56 = vpop.f32.mrf.mxu1 }
  0xd4   :  { %591 = vst.msk [vmem:[%s1382_s3] sm:$0xff] %vm590_vm3, %v526_v51  ;;  %623 = vst.msk [vmem:[%s1382_s3 + $0x100] sm:$0xff] %vm590_vm3, %v558_v52  ;;  %v529_v57 = vmax.f32 %v283_v53, 0.0  ;;  %v561_v58 = vmax.f32 %v411_v54, 0.0  ;;  %v275_v59 = vadd.f32 %v1057_v38, %v274_v55  ;;  %v403_v60 = vadd.f32 %v1057_v38, %v402_v56 }
  0xd5   :  { %v738_v61 = vpop.f32.mrf.mxu0  ;;  %v770_v62 = vpop.f32.mrf.mxu1 }
  0xd6   :  { %594 = vst.msk [vmem:[%s1382_s3 + $0x18] sm:$0xff] %vm590_vm3, %v529_v57  ;;  %626 = vst.msk [vmem:[%s1382_s3 + $0x118] sm:$0xff] %vm590_vm3, %v561_v58  ;;  %v527_v63 = vmax.f32 %v275_v59, 0.0  ;;  %v559_v0 = vmax.f32 %v403_v60, 0.0  ;;  %v296_v1 = vadd.f32 %v738_v61, %v1057_v38  ;;  %v424_v2 = vadd.f32 %v770_v62, %v1057_v38 }
  0xd7   :  { %v287_v3 = vpop.f32.mrf.mxu0  ;;  %v415_v4 = vpop.f32.mrf.mxu1 }
  0xd8   :  { %592 = vst.msk [vmem:[%s1382_s3 + $0x8] sm:$0xff] %vm590_vm3, %v527_v63  ;;  %624 = vst.msk [vmem:[%s1382_s3 + $0x108] sm:$0xff] %vm590_vm3, %v559_v0  ;;  %v532_v5 = vmax.f32 %v296_v1, 0.0  ;;  %v564_v6 = vmax.f32 %v424_v2, 0.0  ;;  %v288_v7 = vadd.f32 %v1057_v38, %v287_v3  ;;  %v416_v8 = vadd.f32 %v1057_v38, %v415_v4 }
  0xd9   :  { %v739_v9 = vpop.f32.mrf.mxu0  ;;  %v771_v10 = vpop.f32.mrf.mxu1 }
  0xda   :  { %597 = vst.msk [vmem:[%s1382_s3 + $0x30] sm:$0xff] %vm590_vm3, %v532_v5  ;;  %629 = vst.msk [vmem:[%s1382_s3 + $0x130] sm:$0xff] %vm590_vm3, %v564_v6  ;;  %v530_v11 = vmax.f32 %v288_v7, 0.0  ;;  %v562_v12 = vmax.f32 %v416_v8, 0.0  ;;  %v299_v13 = vadd.f32 %v739_v9, %v1057_v38  ;;  %v427_v14 = vadd.f32 %v771_v10, %v1057_v38 }
  0xdb   :  { %v290_v15 = vpop.f32.mrf.mxu0  ;;  %v418_v16 = vpop.f32.mrf.mxu1 }
  0xdc   :  { %595 = vst.msk [vmem:[%s1382_s3 + $0x20] sm:$0xff] %vm590_vm3, %v530_v11  ;;  %627 = vst.msk [vmem:[%s1382_s3 + $0x120] sm:$0xff] %vm590_vm3, %v562_v12  ;;  %v533_v17 = vmax.f32 %v299_v13, 0.0  ;;  %v565_v18 = vmax.f32 %v427_v14, 0.0  ;;  %v291_v19 = vadd.f32 %v1057_v38, %v290_v15  ;;  %v419_v20 = vadd.f32 %v1057_v38, %v418_v16 }
  0xdd   :  { %v742_v21 = vpop.f32.mrf.mxu0  ;;  %v774_v22 = vpop.f32.mrf.mxu1 }
  0xde   :  { %598 = vst.msk [vmem:[%s1382_s3 + $0x38] sm:$0xff] %vm590_vm3, %v533_v17  ;;  %630 = vst.msk [vmem:[%s1382_s3 + $0x138] sm:$0xff] %vm590_vm3, %v565_v18  ;;  %v531_v23 = vmax.f32 %v291_v19, 0.0  ;;  %v563_v24 = vmax.f32 %v419_v20, 0.0  ;;  %v312_v25 = vadd.f32 %v742_v21, %v1057_v38  ;;  %v440_v26 = vadd.f32 %v774_v22, %v1057_v38 }
  0xdf   :  { %v303_v27 = vpop.f32.mrf.mxu0  ;;  %v431_v28 = vpop.f32.mrf.mxu1 }
  0xe0   :  { %596 = vst.msk [vmem:[%s1382_s3 + $0x28] sm:$0xff] %vm590_vm3, %v531_v23  ;;  %628 = vst.msk [vmem:[%s1382_s3 + $0x128] sm:$0xff] %vm590_vm3, %v563_v24  ;;  %v536_v29 = vmax.f32 %v312_v25, 0.0  ;;  %v568_v30 = vmax.f32 %v440_v26, 0.0  ;;  %v304_v31 = vadd.f32 %v1057_v38, %v303_v27  ;;  %v432_v32 = vadd.f32 %v1057_v38, %v431_v28 }
  0xe1   :  { %v743_v33 = vpop.f32.mrf.mxu0  ;;  %v775_v34 = vpop.f32.mrf.mxu1 }
  0xe2   :  { %601 = vst.msk [vmem:[%s1382_s3 + $0x50] sm:$0xff] %vm590_vm3, %v536_v29  ;;  %633 = vst.msk [vmem:[%s1382_s3 + $0x150] sm:$0xff] %vm590_vm3, %v568_v30  ;;  %v534_v35 = vmax.f32 %v304_v31, 0.0  ;;  %v566_v36 = vmax.f32 %v432_v32, 0.0  ;;  %v315_v37 = vadd.f32 %v743_v33, %v1057_v38  ;;  %v443_v39 = vadd.f32 %v775_v34, %v1057_v38 }
  0xe3   :  { %v306_v40 = vpop.f32.mrf.mxu0  ;;  %v434_v41 = vpop.f32.mrf.mxu1 }
  0xe4   :  { %599 = vst.msk [vmem:[%s1382_s3 + $0x40] sm:$0xff] %vm590_vm3, %v534_v35  ;;  %631 = vst.msk [vmem:[%s1382_s3 + $0x140] sm:$0xff] %vm590_vm3, %v566_v36  ;;  %v537_v42 = vmax.f32 %v315_v37, 0.0  ;;  %v569_v43 = vmax.f32 %v443_v39, 0.0  ;;  %v307_v44 = vadd.f32 %v1057_v38, %v306_v40  ;;  %v435_v45 = vadd.f32 %v1057_v38, %v434_v41 }
  0xe5   :  { %v746_v46 = vpop.f32.mrf.mxu0  ;;  %v778_v47 = vpop.f32.mrf.mxu1 }
  0xe6   :  { %602 = vst.msk [vmem:[%s1382_s3 + $0x58] sm:$0xff] %vm590_vm3, %v537_v42  ;;  %634 = vst.msk [vmem:[%s1382_s3 + $0x158] sm:$0xff] %vm590_vm3, %v569_v43  ;;  %v535_v48 = vmax.f32 %v307_v44, 0.0  ;;  %v567_v49 = vmax.f32 %v435_v45, 0.0  ;;  %v328_v50 = vadd.f32 %v746_v46, %v1057_v38  ;;  %v456_v51 = vadd.f32 %v778_v47, %v1057_v38 }
  0xe7   :  { %v319_v52 = vpop.f32.mrf.mxu0  ;;  %v447_v53 = vpop.f32.mrf.mxu1 }
  0xe8   :  { %600 = vst.msk [vmem:[%s1382_s3 + $0x48] sm:$0xff] %vm590_vm3, %v535_v48  ;;  %632 = vst.msk [vmem:[%s1382_s3 + $0x148] sm:$0xff] %vm590_vm3, %v567_v49  ;;  %v540_v54 = vmax.f32 %v328_v50, 0.0  ;;  %v572_v55 = vmax.f32 %v456_v51, 0.0  ;;  %v320_v56 = vadd.f32 %v1057_v38, %v319_v52  ;;  %v448_v57 = vadd.f32 %v1057_v38, %v447_v53 }
  0xe9   :  { %v747_v58 = vpop.f32.mrf.mxu0  ;;  %v779_v59 = vpop.f32.mrf.mxu1 }
  0xea   :  { %605 = vst.msk [vmem:[%s1382_s3 + $0x70] sm:$0xff] %vm590_vm3, %v540_v54  ;;  %637 = vst.msk [vmem:[%s1382_s3 + $0x170] sm:$0xff] %vm590_vm3, %v572_v55  ;;  %v538_v60 = vmax.f32 %v320_v56, 0.0  ;;  %v570_v61 = vmax.f32 %v448_v57, 0.0  ;;  %v331_v62 = vadd.f32 %v747_v58, %v1057_v38  ;;  %v459_v63 = vadd.f32 %v779_v59, %v1057_v38 }
  0xeb   :  { %v322_v0 = vpop.f32.mrf.mxu0  ;;  %v450_v1 = vpop.f32.mrf.mxu1 }
  0xec   :  { %603 = vst.msk [vmem:[%s1382_s3 + $0x60] sm:$0xff] %vm590_vm3, %v538_v60  ;;  %635 = vst.msk [vmem:[%s1382_s3 + $0x160] sm:$0xff] %vm590_vm3, %v570_v61  ;;  %v541_v2 = vmax.f32 %v331_v62, 0.0  ;;  %v573_v3 = vmax.f32 %v459_v63, 0.0  ;;  %v323_v4 = vadd.f32 %v1057_v38, %v322_v0  ;;  %v451_v5 = vadd.f32 %v1057_v38, %v450_v1 }
  0xed   :  { %v750_v6 = vpop.f32.mrf.mxu0  ;;  %v782_v7 = vpop.f32.mrf.mxu1 }
  0xee   :  { %606 = vst.msk [vmem:[%s1382_s3 + $0x78] sm:$0xff] %vm590_vm3, %v541_v2  ;;  %638 = vst.msk [vmem:[%s1382_s3 + $0x178] sm:$0xff] %vm590_vm3, %v573_v3  ;;  %v539_v8 = vmax.f32 %v323_v4, 0.0  ;;  %v571_v9 = vmax.f32 %v451_v5, 0.0  ;;  %v344_v10 = vadd.f32 %v750_v6, %v1057_v38  ;;  %v472_v11 = vadd.f32 %v782_v7, %v1057_v38 }
  0xef   :  { %v335_v12 = vpop.f32.mrf.mxu0  ;;  %v463_v13 = vpop.f32.mrf.mxu1 }
  0xf0   :  { %604 = vst.msk [vmem:[%s1382_s3 + $0x68] sm:$0xff] %vm590_vm3, %v539_v8  ;;  %636 = vst.msk [vmem:[%s1382_s3 + $0x168] sm:$0xff] %vm590_vm3, %v571_v9  ;;  %v544_v14 = vmax.f32 %v344_v10, 0.0  ;;  %v576_v15 = vmax.f32 %v472_v11, 0.0  ;;  %v336_v16 = vadd.f32 %v1057_v38, %v335_v12  ;;  %v464_v17 = vadd.f32 %v1057_v38, %v463_v13 }
  0xf1   :  { %v751_v18 = vpop.f32.mrf.mxu0  ;;  %v783_v19 = vpop.f32.mrf.mxu1 }
  0xf2   :  { %609 = vst.msk [vmem:[%s1382_s3 + $0x90] sm:$0xff] %vm590_vm3, %v544_v14  ;;  %641 = vst.msk [vmem:[%s1382_s3 + $0x190] sm:$0xff] %vm590_vm3, %v576_v15  ;;  %v542_v20 = vmax.f32 %v336_v16, 0.0  ;;  %v574_v21 = vmax.f32 %v464_v17, 0.0  ;;  %v347_v22 = vadd.f32 %v751_v18, %v1057_v38  ;;  %v475_v23 = vadd.f32 %v783_v19, %v1057_v38 }
  0xf3   :  { %v338_v24 = vpop.f32.mrf.mxu0  ;;  %v466_v25 = vpop.f32.mrf.mxu1 }
  0xf4   :  { %607 = vst.msk [vmem:[%s1382_s3 + $0x80] sm:$0xff] %vm590_vm3, %v542_v20  ;;  %639 = vst.msk [vmem:[%s1382_s3 + $0x180] sm:$0xff] %vm590_vm3, %v574_v21  ;;  %v545_v26 = vmax.f32 %v347_v22, 0.0  ;;  %v577_v27 = vmax.f32 %v475_v23, 0.0  ;;  %v339_v28 = vadd.f32 %v1057_v38, %v338_v24  ;;  %v467_v29 = vadd.f32 %v1057_v38, %v466_v25 }
  0xf5   :  { %v754_v30 = vpop.f32.mrf.mxu0  ;;  %v786_v31 = vpop.f32.mrf.mxu1 }
  0xf6   :  { %610 = vst.msk [vmem:[%s1382_s3 + $0x98] sm:$0xff] %vm590_vm3, %v545_v26  ;;  %642 = vst.msk [vmem:[%s1382_s3 + $0x198] sm:$0xff] %vm590_vm3, %v577_v27  ;;  %v543_v32 = vmax.f32 %v339_v28, 0.0  ;;  %v575_v33 = vmax.f32 %v467_v29, 0.0  ;;  %v360_v34 = vadd.f32 %v754_v30, %v1057_v38  ;;  %v488_v35 = vadd.f32 %v786_v31, %v1057_v38 }
  0xf7   :  { %v351_v36 = vpop.f32.mrf.mxu0  ;;  %v479_v37 = vpop.f32.mrf.mxu1 }
  0xf8   :  { %608 = vst.msk [vmem:[%s1382_s3 + $0x88] sm:$0xff] %vm590_vm3, %v543_v32  ;;  %640 = vst.msk [vmem:[%s1382_s3 + $0x188] sm:$0xff] %vm590_vm3, %v575_v33  ;;  %v548_v39 = vmax.f32 %v360_v34, 0.0  ;;  %v580_v40 = vmax.f32 %v488_v35, 0.0  ;;  %v352_v41 = vadd.f32 %v1057_v38, %v351_v36  ;;  %v480_v42 = vadd.f32 %v1057_v38, %v479_v37 }
  0xf9   :  { %v755_v43 = vpop.f32.mrf.mxu0  ;;  %v787_v44 = vpop.f32.mrf.mxu1 }
  0xfa   :  { %613 = vst.msk [vmem:[%s1382_s3 + $0xb0] sm:$0xff] %vm590_vm3, %v548_v39  ;;  %645 = vst.msk [vmem:[%s1382_s3 + $0x1b0] sm:$0xff] %vm590_vm3, %v580_v40  ;;  %v546_v45 = vmax.f32 %v352_v41, 0.0  ;;  %v578_v46 = vmax.f32 %v480_v42, 0.0  ;;  %v363_v47 = vadd.f32 %v755_v43, %v1057_v38  ;;  %v491_v48 = vadd.f32 %v787_v44, %v1057_v38 }
  0xfb   :  { %v354_v49 = vpop.f32.mrf.mxu0  ;;  %v482_v50 = vpop.f32.mrf.mxu1 }
  0xfc   :  { %611 = vst.msk [vmem:[%s1382_s3 + $0xa0] sm:$0xff] %vm590_vm3, %v546_v45  ;;  %643 = vst.msk [vmem:[%s1382_s3 + $0x1a0] sm:$0xff] %vm590_vm3, %v578_v46  ;;  %v549_v51 = vmax.f32 %v363_v47, 0.0  ;;  %v581_v52 = vmax.f32 %v491_v48, 0.0  ;;  %v355_v53 = vadd.f32 %v1057_v38, %v354_v49  ;;  %v483_v54 = vadd.f32 %v1057_v38, %v482_v50 }
  0xfd   :  { %v758_v55 = vpop.f32.mrf.mxu0  ;;  %v790_v56 = vpop.f32.mrf.mxu1 }
  0xfe   :  { %614 = vst.msk [vmem:[%s1382_s3 + $0xb8] sm:$0xff] %vm590_vm3, %v549_v51  ;;  %646 = vst.msk [vmem:[%s1382_s3 + $0x1b8] sm:$0xff] %vm590_vm3, %v581_v52  ;;  %v547_v57 = vmax.f32 %v355_v53, 0.0  ;;  %v579_v58 = vmax.f32 %v483_v54, 0.0  ;;  %v376_v59 = vadd.f32 %v758_v55, %v1057_v38  ;;  %v504_v60 = vadd.f32 %v790_v56, %v1057_v38 }
  0xff   :  { %v367_v61 = vpop.f32.mrf.mxu0  ;;  %v495_v62 = vpop.f32.mrf.mxu1 }
 0x100   :  { %612 = vst.msk [vmem:[%s1382_s3 + $0xa8] sm:$0xff] %vm590_vm3, %v547_v57  ;;  %644 = vst.msk [vmem:[%s1382_s3 + $0x1a8] sm:$0xff] %vm590_vm3, %v579_v58  ;;  %v552_v63 = vmax.f32 %v376_v59, 0.0  ;;  %v584_v0 = vmax.f32 %v504_v60, 0.0  ;;  %v368_v1 = vadd.f32 %v1057_v38, %v367_v61  ;;  %v496_v2 = vadd.f32 %v1057_v38, %v495_v62 }
 0x101   :  { %v759_v3 = vpop.f32.mrf.mxu0  ;;  %v791_v4 = vpop.f32.mrf.mxu1 }
 0x102   :  { %617 = vst.msk [vmem:[%s1382_s3 + $0xd0] sm:$0xff] %vm590_vm3, %v552_v63  ;;  %649 = vst.msk [vmem:[%s1382_s3 + $0x1d0] sm:$0xff] %vm590_vm3, %v584_v0  ;;  %v550_v5 = vmax.f32 %v368_v1, 0.0  ;;  %v582_v6 = vmax.f32 %v496_v2, 0.0  ;;  %v379_v7 = vadd.f32 %v759_v3, %v1057_v38  ;;  %v507_v8 = vadd.f32 %v791_v4, %v1057_v38 }
 0x103   :  { %v370_v9 = vpop.f32.mrf.mxu0  ;;  %v498_v10 = vpop.f32.mrf.mxu1 }
 0x104   :  { %615 = vst.msk [vmem:[%s1382_s3 + $0xc0] sm:$0xff] %vm590_vm3, %v550_v5  ;;  %647 = vst.msk [vmem:[%s1382_s3 + $0x1c0] sm:$0xff] %vm590_vm3, %v582_v6  ;;  %v553_v11 = vmax.f32 %v379_v7, 0.0  ;;  %v585_v12 = vmax.f32 %v507_v8, 0.0  ;;  %v371_v13 = vadd.f32 %v1057_v38, %v370_v9  ;;  %v499_v14 = vadd.f32 %v1057_v38, %v498_v10 }
 0x105   :  { %v762_v15 = vpop.f32.mrf.mxu0  ;;  %v794_v16 = vpop.f32.mrf.mxu1 }
 0x106   :  { %618 = vst.msk [vmem:[%s1382_s3 + $0xd8] sm:$0xff] %vm590_vm3, %v553_v11  ;;  %650 = vst.msk [vmem:[%s1382_s3 + $0x1d8] sm:$0xff] %vm590_vm3, %v585_v12  ;;  %v551_v17 = vmax.f32 %v371_v13, 0.0  ;;  %v583_v18 = vmax.f32 %v499_v14, 0.0  ;;  %v392_v19 = vadd.f32 %v762_v15, %v1057_v38  ;;  %v520_v20 = vadd.f32 %v794_v16, %v1057_v38 }
 0x107   :  { %v383_v21 = vpop.f32.mrf.mxu0  ;;  %v511_v22 = vpop.f32.mrf.mxu1 }
 0x108   :  { %616 = vst.msk [vmem:[%s1382_s3 + $0xc8] sm:$0xff] %vm590_vm3, %v551_v17  ;;  %648 = vst.msk [vmem:[%s1382_s3 + $0x1c8] sm:$0xff] %vm590_vm3, %v583_v18  ;;  %v556_v23 = vmax.f32 %v392_v19, 0.0  ;;  %v588_v24 = vmax.f32 %v520_v20, 0.0  ;;  %v384_v25 = vadd.f32 %v1057_v38, %v383_v21  ;;  %v512_v26 = vadd.f32 %v1057_v38, %v511_v22 }
 0x109   :  { %v763_v27 = vpop.f32.mrf.mxu0  ;;  %v795_v28 = vpop.f32.mrf.mxu1 }
 0x10a   :  { %621 = vst.msk [vmem:[%s1382_s3 + $0xf0] sm:$0xff] %vm590_vm3, %v556_v23  ;;  %653 = vst.msk [vmem:[%s1382_s3 + $0x1f0] sm:$0xff] %vm590_vm3, %v588_v24  ;;  %v554_v29 = vmax.f32 %v384_v25, 0.0  ;;  %v586_v30 = vmax.f32 %v512_v26, 0.0  ;;  %v395_v31 = vadd.f32 %v763_v27, %v1057_v38  ;;  %v523_v32 = vadd.f32 %v795_v28, %v1057_v38 }
 0x10b   :  { %v386_v33 = vpop.f32.mrf.mxu0  ;;  %v514_v34 = vpop.f32.mrf.mxu1 }
 0x10c   :  { %619 = vst.msk [vmem:[%s1382_s3 + $0xe0] sm:$0xff] %vm590_vm3, %v554_v29  ;;  %651 = vst.msk [vmem:[%s1382_s3 + $0x1e0] sm:$0xff] %vm590_vm3, %v586_v30  ;;  %v557_v35 = vmax.f32 %v395_v31, 0.0  ;;  %v589_v36 = vmax.f32 %v523_v32, 0.0  ;;  %v387_v37 = vadd.f32 %v1057_v38, %v386_v33  ;;  %v515_v39 = vadd.f32 %v1057_v38, %v514_v34 }
 0x10e   :  { %622 = vst.msk [vmem:[%s1382_s3 + $0xf8] sm:$0xff] %vm590_vm3, %v557_v35  ;;  %654 = vst.msk [vmem:[%s1382_s3 + $0x1f8] sm:$0xff] %vm590_vm3, %v589_v36  ;;  %v555_v40 = vmax.f32 %v387_v37, 0.0  ;;  %v587_v41 = vmax.f32 %v515_v39, 0.0 }
 0x110   :  { %620 = vst.msk [vmem:[%s1382_s3 + $0xe8] sm:$0xff] %vm590_vm3, %v555_v40  ;;  %652 = vst.msk [vmem:[%s1382_s3 + $0x1e8] sm:$0xff] %vm590_vm3, %v587_v41 }

// kernel: medsam_lite_forward.5
= control target key start
LH: loop header
LB: loop body
LE: loop exit
PB: predicated region body
PF: predicated region fallthrough
CT: control target
= control target key end

     0   :  { %v575_v0 = vmov 0   ;;  %vm151_vm0 = vcmask 130048   ;;  %vm320_vm1 = vcmask 261120   ;;  %s883_s1 = inlined_call_operand.vmem [shape: bf16[144,32], index: 1, kind: input, shape index: {}]   ;;  %s884_s0 = inlined_call_operand.vmem [shape: f32[128,144], index: 0, kind: input, shape index: {}]   ;;  %s885_s3 = inlined_call_operand.vmem [shape: bf16[32,32], index: 3, kind: input, shape index: {}]   ;;  %s886_s2 = inlined_call_operand.vmem [shape: f32[1,32], index: 2, kind: input, shape index: {}]   ;;  %s887_s4 = inlined_call_operand.vmem [shape: f32[1,32], index: 4, kind: input, shape index: {}]   ;;  %s888_s5 = inlined_call_operand.vmem [shape: f32[1,32], index: 5, kind: input, shape index: {}]   ;;  %s889_s6 = inlined_call_operand.vmem [shape: f32[128,32], index: 6, kind: output, shape index: {}]  }
   0x1   :  { %176 = vmatprep.subr.bf16.mxu0 %v575_v0  ;;  %v564_v1 = vld [vmem:[%s883_s1 + $0x38] sm:$0xff]   ;;  %545 = vmatprep.subr.bf16.mxu1 %v575_v0  ;;  %v565_v2 = vld [vmem:[%s883_s1 + $0x30] sm:$0xff]   ;;  %v566_v3 = vld [vmem:[%s883_s1 + $0x28] sm:$0xff]  }
   0x2   :  { %177 = vmatpush1.bf16.msra.mxu0 %v564_v1  ;;  %554 = vmatpush1.bf16.msra.mxu1 %v564_v1  ;;  %v25_v4 = vld [vmem:[%s884_s0 + $0x8] sm:$0xff]  ;;  %v27_v5 = vld [vmem:[%s884_s0 + $0x18] sm:$0xff]  ;;  %v567_v6 = vld [vmem:[%s883_s1 + $0x20] sm:$0xff]  }
   0x3   :  { %178 = vmatprep.subr.bf16.mxu0 %v575_v0  ;;  %546 = vmatprep.subr.bf16.mxu1 %v575_v0  ;;  %v75_v7 = vpack.c.bf16 %v27_v5, %v25_v4  ;;  %v568_v8 = vld [vmem:[%s883_s1 + $0x18] sm:$0xff]   ;;  %v49_v9 = vld [vmem:[%s884_s0 + $0xc8] sm:$0xff]  ;;  %v569_v12 = vld [vmem:[%s883_s1 + $0x10] sm:$0xff]  }
   0x4   :  { %v51_v10 = vld [vmem:[%s884_s0 + $0xd8] sm:$0xff]  ;;  %v570_v13 = vld [vmem:[%s883_s1 + $0x8] sm:$0xff]   ;;  %v571_v14 = vld [vmem:[%s883_s1] sm:$0xff]  }
   0x5   :  { %495 = vmatprep.mubr.msk.bf16.mxu0 %vm151_vm0, %v75_v7  ;;  %v87_v11 = vpack.c.bf16 %v51_v10, %v49_v9  ;;  %v572_v15 = vld [vmem:[%s883_s1 + $0x40] sm:$0xff]   ;;  %v26_v17 = vld [vmem:[%s884_s0 + $0x10] sm:$0xff]  ;;  %v29_v18 = vld [vmem:[%s884_s0 + $0x28] sm:$0xff] }
   0x6   :  { %179 = vmatpush1.bf16.msra.mxu0 %v565_v2  ;;  %555 = vmatpush1.bf16.msra.mxu1 %v565_v2  ;;  %v24_v16 = vld [vmem:[%s884_s0] sm:$0xff]  ;;  %v50_v20 = vld [vmem:[%s884_s0 + $0xd0] sm:$0xff]  ;;  %v31_v21 = vld [vmem:[%s884_s0 + $0x38] sm:$0xff] }
   0x7   :  { %180 = vmatprep.subr.bf16.mxu0 %v575_v0  ;;  %547 = vmatprep.subr.bf16.mxu1 %v575_v0  ;;  %v48_v19 = vld [vmem:[%s884_s0 + $0xc0] sm:$0xff]  ;;  %v53_v22 = vld [vmem:[%s884_s0 + $0xe8] sm:$0xff]  ;;  %v55_v23 = vld [vmem:[%s884_s0 + $0xf8] sm:$0xff]  ;;  %v74_v24 = vpack.c.bf16 %v26_v17, %v24_v16  ;;  %v77_v26 = vpack.c.bf16 %v31_v21, %v29_v18 }
   0x8   :  { %501 = vmatprep.mubr.msk.bf16.mxu1 %vm151_vm0, %v87_v11  ;;  %v86_v25 = vpack.c.bf16 %v50_v20, %v48_v19  ;;  %v89_v27 = vpack.c.bf16 %v55_v23, %v53_v22  ;;  %v28_v28 = vld [vmem:[%s884_s0 + $0x20] sm:$0xff]  ;;  %v30_v29 = vld [vmem:[%s884_s0 + $0x30] sm:$0xff]  ;;  %v33_v32 = vld [vmem:[%s884_s0 + $0x48] sm:$0xff] }
   0x9   :  { %v52_v30 = vld [vmem:[%s884_s0 + $0xe0] sm:$0xff]  ;;  %v54_v31 = vld [vmem:[%s884_s0 + $0xf0] sm:$0xff]  ;;  %v35_v33 = vld [vmem:[%s884_s0 + $0x58] sm:$0xff]  ;;  %v76_v34 = vpack.c.bf16 %v30_v29, %v28_v28 }
   0xa   :  { %181 = vmatpush1.bf16.msra.mxu0 %v566_v3  ;;  %556 = vmatpush1.bf16.msra.mxu1 %v566_v3  ;;  %v88_v35 = vpack.c.bf16 %v54_v31, %v52_v30  ;;  %v79_v36 = vpack.c.bf16 %v35_v33, %v33_v32  ;;  %v32_v37 = vld [vmem:[%s884_s0 + $0x40] sm:$0xff]  ;;  %v34_v38 = vld [vmem:[%s884_s0 + $0x50] sm:$0xff]  ;;  %v37_v39 = vld [vmem:[%s884_s0 + $0x68] sm:$0xff] }
   0xb   :  { %182 = vmatprep.subr.bf16.mxu0 %v575_v0  ;;  %548 = vmatprep.subr.bf16.mxu1 %v575_v0  ;;  %v39_v40 = vld [vmem:[%s884_s0 + $0x78] sm:$0xff]  ;;  %v78_v41 = vpack.c.bf16 %v34_v38, %v32_v37  ;;  %v36_v43 = vld [vmem:[%s884_s0 + $0x60] sm:$0xff]  ;;  %v38_v44 = vld [vmem:[%s884_s0 + $0x70] sm:$0xff] }
   0xc   :  { %v81_v42 = vpack.c.bf16 %v39_v40, %v37_v39  ;;  %v41_v45 = vld [vmem:[%s884_s0 + $0x88] sm:$0xff]  ;;  %v43_v46 = vld [vmem:[%s884_s0 + $0x98] sm:$0xff]  ;;  %v80_v47 = vpack.c.bf16 %v38_v44, %v36_v43  ;;  %v40_v49 = vld [vmem:[%s884_s0 + $0x80] sm:$0xff] }
   0xd   :  { %v83_v48 = vpack.c.bf16 %v43_v46, %v41_v45  ;;  %v42_v50 = vld [vmem:[%s884_s0 + $0x90] sm:$0xff]  ;;  %v45_v51 = vld [vmem:[%s884_s0 + $0xa8] sm:$0xff]  ;;  %v47_v52 = vld [vmem:[%s884_s0 + $0xb8] sm:$0xff] }
   0xe   :  { %183 = vmatpush1.bf16.msra.mxu0 %v567_v6  ;;  %557 = vmatpush1.bf16.msra.mxu1 %v567_v6  ;;  %v82_v53 = vpack.c.bf16 %v42_v50, %v40_v49  ;;  %v85_v54 = vpack.c.bf16 %v47_v52, %v45_v51  ;;  %v44_v55 = vld [vmem:[%s884_s0 + $0xa0] sm:$0xff]  ;;  %v46_v56 = vld [vmem:[%s884_s0 + $0xb0] sm:$0xff]  ;;  %v573_v58 = vld [vmem:[%s885_s3 + $0x8] sm:$0xff]  }
   0xf   :  { %184 = vmatprep.subr.bf16.mxu0 %v575_v0  ;;  %549 = vmatprep.subr.bf16.mxu1 %v575_v0  ;;  %v84_v57 = vpack.c.bf16 %v46_v56, %v44_v55  ;;  %v574_v59 = vld [vmem:[%s885_s3] sm:$0xff]  }
  0x10   :  { %v751_v60 = vld [vmem:[%s886_s2] ss:$0 sm:$0xff] }
  0x12   :  { %185 = vmatpush1.bf16.msra.mxu0 %v568_v8  ;;  %558 = vmatpush1.bf16.msra.mxu1 %v568_v8 }
  0x13   :  { %186 = vmatprep.subr.bf16.mxu0 %v575_v0  ;;  %550 = vmatprep.subr.bf16.mxu1 %v575_v0 }
  0x16   :  { %187 = vmatpush1.bf16.msra.mxu0 %v569_v12  ;;  %559 = vmatpush1.bf16.msra.mxu1 %v569_v12 }
  0x17   :  { %188 = vmatprep.subr.bf16.mxu0 %v575_v0  ;;  %551 = vmatprep.subr.bf16.mxu1 %v575_v0 }
  0x1a   :  { %189 = vmatpush1.bf16.msra.mxu0 %v570_v13  ;;  %560 = vmatpush1.bf16.msra.mxu1 %v570_v13 }
  0x1b   :  { %190 = vmatprep.subr.bf16.mxu0 %v575_v0  ;;  %552 = vmatprep.subr.bf16.mxu1 %v575_v0 }
  0x1e   :  { %191 = vmatpush1.bf16.msra.mxu0 %v571_v14  ;;  %561 = vmatpush1.bf16.msra.mxu1 %v571_v14 }
  0x1f   :  { %206 = vmatprep.subr.bf16.mxu0 %v575_v0  ;;  %553 = vmatprep.subr.bf16.mxu1 %v575_v0 }
  0x22   :  { %207 = vmatpush2.bf16.msra.mxu0 %v572_v15  ;;  %562 = vmatpush2.bf16.msra.mxu1 %v572_v15 }
  0x23   :  { %525 = vmatprep.subr.bf16.mxu1 %v573_v58 }
  0x25   :  { %209 = vmatmul.mubr.bf16.vlgmr.msra.gmra.mxu0 %v74_v24  ;;  %257 = vmatmul.mubr.bf16.vlgmr.msra.gmra.mxu1 %v86_v25 }
  0x26   :  { %496 = vmatprep.mubr.msk.bf16.mxu0 %vm151_vm0, %v77_v26  ;;  %502 = vmatprep.mubr.msk.bf16.mxu1 %vm151_vm0, %v89_v27 }
  0x27   :  { %526 = vmatpush3.bf16.msra.mxu1 %v573_v58 }
  0x28   :  { %527 = vmatprep.subr.bf16.mxu1 %v574_v59 }
  0x2b   :  { %528 = vmatpush3.bf16.msra.mxu1 %v574_v59 }
  0x2d   :  { %217 = vmatmul.mubr.bf16.gmra.mxu0 %v76_v34  ;;  %265 = vmatmul.mubr.bf16.gmra.mxu1 %v88_v35 }
  0x2e   :  { %497 = vmatprep.mubr.msk.bf16.mxu0 %vm151_vm0, %v79_v36 }
  0x35   :  { %225 = vmatmul.mubr.bf16.gmra.mxu0 %v78_v41 }
  0x36   :  { %498 = vmatprep.mubr.msk.bf16.mxu0 %vm151_vm0, %v81_v42 }
  0x3d   :  { %233 = vmatmul.mubr.bf16.gmra.mxu0 %v80_v47 }
  0x3e   :  { %499 = vmatprep.mubr.msk.bf16.mxu0 %vm151_vm0, %v83_v48 }
  0x45   :  { %241 = vmatmul.mubr.bf16.gmra.mxu0 %v82_v53 }
  0x46   :  { %500 = vmatprep.mubr.msk.bf16.mxu0 %vm151_vm0, %v85_v54 }
  0x4d   :  { %249 = vmatmul.mubr.bf16.gmra.mxu0 %v84_v57 }
  0xe5   :  { %v210_v61 = vpop.f32.mrf.mxu0  ;;  %v258_v62 = vpop.f32.mrf.mxu1 }
  0xe6   :  { %v211_v1 = vadd.f32 %v751_v60, %v210_v61  ;;  %v259_v51 = vadd.f32 %v751_v60, %v258_v62 }
  0xe7   :  { %v212_v63 = vpop.f32.mrf.mxu0  ;;  %v260_v0 = vpop.f32.mrf.mxu1 }
  0xe8   :  { %v273_v7 = vmax.f32 %v211_v1, 0.0  ;;  %v285_v57 = vmax.f32 %v259_v51, 0.0 }
  0xe9   :  { %v213_v2 = vpop.f32.mrf.mxu0  ;;  %v261_v3 = vpop.f32.mrf.mxu1 }
  0xea   :  { %v214_v4 = vadd.f32 %v751_v60, %v213_v2  ;;  %v262_v52 = vadd.f32 %v751_v60, %v261_v3 }
  0xeb   :  { %v215_v5 = vpop.f32.mrf.mxu0  ;;  %v263_v6 = vpop.f32.mrf.mxu1 }
  0xec   :  { %v274_v8 = vmax.f32 %v214_v4, 0.0  ;;  %v286_v58 = vmax.f32 %v262_v52, 0.0  ;;  %v780_v6 = vld [vmem:[%s887_s4] ss:$0 sm:$0xff] }
  0xed   :  { %v218_v9 = vpop.f32.mrf.mxu0  ;;  %v266_v10 = vpop.f32.mrf.mxu1 }
  0xee   :  { %v293_v11 = vpack.c.bf16 %v274_v8, %v273_v7  ;;  %v219_v14 = vadd.f32 %v751_v60, %v218_v9  ;;  %v267_v0 = vadd.f32 %v751_v60, %v266_v10  ;;  %v299_v2 = vpack.c.bf16 %v286_v58, %v285_v57 }
  0xef   :  { %v220_v12 = vpop.f32.mrf.mxu0  ;;  %v268_v13 = vpop.f32.mrf.mxu1 }
  0xf0   :  { %529 = vmatprep.mubr.msk.bf16.mxu1 %vm320_vm1, %v293_v11  ;;  %v275_v20 = vmax.f32 %v219_v14, 0.0  ;;  %v287_v3 = vmax.f32 %v267_v0, 0.0 }
  0xf1   :  { %v221_v15 = vpop.f32.mrf.mxu0  ;;  %v269_v16 = vpop.f32.mrf.mxu1 }
  0xf2   :  { %v222_v17 = vadd.f32 %v751_v60, %v221_v15  ;;  %v270_v62 = vadd.f32 %v751_v60, %v269_v16 }
  0xf3   :  { %v223_v18 = vpop.f32.mrf.mxu0  ;;  %v271_v19 = vpop.f32.mrf.mxu1 }
  0xf4   :  { %v276_v21 = vmax.f32 %v222_v17, 0.0  ;;  %v288_v4 = vmax.f32 %v270_v62, 0.0 }
  0xf5   :  { %v226_v22 = vpop.f32.mrf.mxu0 }
  0xf6   :  { %v294_v23 = vpack.c.bf16 %v276_v21, %v275_v20  ;;  %v227_v25 = vadd.f32 %v751_v60, %v226_v22  ;;  %v300_v5 = vpack.c.bf16 %v288_v4, %v287_v3 }
  0xf7   :  { %v228_v24 = vpop.f32.mrf.mxu0 }
  0xf8   :  { %530 = vmatmul.mubr.msk.bf16.vlgmr.msra.gmra.mxu1 %vm320_vm1, %v294_v23  ;;  %v277_v29 = vmax.f32 %v227_v25, 0.0 }
  0xf9   :  { %v229_v26 = vpop.f32.mrf.mxu0 }
  0xfa   :  { %v230_v27 = vadd.f32 %v751_v60, %v229_v26 }
  0xfb   :  { %v231_v28 = vpop.f32.mrf.mxu0 }
  0xfc   :  { %v278_v30 = vmax.f32 %v230_v27, 0.0 }
  0xfd   :  { %v234_v31 = vpop.f32.mrf.mxu0 }
  0xfe   :  { %v295_v32 = vpack.c.bf16 %v278_v30, %v277_v29  ;;  %v235_v34 = vadd.f32 %v751_v60, %v234_v31 }
  0xff   :  { %v236_v33 = vpop.f32.mrf.mxu0 }
 0x100   :  { %533 = vmatprep.mubr.msk.bf16.mxu1 %vm320_vm1, %v295_v32  ;;  %v279_v38 = vmax.f32 %v235_v34, 0.0 }
 0x101   :  { %v237_v35 = vpop.f32.mrf.mxu0 }
 0x102   :  { %v238_v36 = vadd.f32 %v751_v60, %v237_v35 }
 0x103   :  { %v239_v37 = vpop.f32.mrf.mxu0 }
 0x104   :  { %v280_v39 = vmax.f32 %v238_v36, 0.0 }
 0x105   :  { %v242_v40 = vpop.f32.mrf.mxu0 }
 0x106   :  { %v296_v41 = vpack.c.bf16 %v280_v39, %v279_v38  ;;  %v243_v43 = vadd.f32 %v751_v60, %v242_v40 }
 0x107   :  { %v244_v42 = vpop.f32.mrf.mxu0 }
 0x108   :  { %534 = vmatmul.mubr.msk.bf16.gmra.mxu1 %vm320_vm1, %v296_v41  ;;  %v281_v47 = vmax.f32 %v243_v43, 0.0 }
 0x109   :  { %v245_v44 = vpop.f32.mrf.mxu0 }
 0x10a   :  { %v246_v45 = vadd.f32 %v751_v60, %v245_v44 }
 0x10b   :  { %v247_v46 = vpop.f32.mrf.mxu0 }
 0x10c   :  { %v282_v48 = vmax.f32 %v246_v45, 0.0 }
 0x10d   :  { %v250_v49 = vpop.f32.mrf.mxu0 }
 0x10e   :  { %v297_v50 = vpack.c.bf16 %v282_v48, %v281_v47  ;;  %v251_v54 = vadd.f32 %v751_v60, %v250_v49 }
 0x10f   :  { %v252_v53 = vpop.f32.mrf.mxu0 }
 0x110   :  { %537 = vmatprep.mubr.msk.bf16.mxu1 %vm320_vm1, %v297_v50  ;;  %v283_v61 = vmax.f32 %v251_v54, 0.0 }
 0x111   :  { %v253_v55 = vpop.f32.mrf.mxu0 }
 0x112   :  { %v254_v56 = vadd.f32 %v751_v60, %v253_v55  ;;  %v785_v60 = vld [vmem:[%s888_s5] ss:$0 sm:$0xff] }
 0x113   :  { %v255_v59 = vpop.f32.mrf.mxu0 }
 0x114   :  { %v284_v63 = vmax.f32 %v254_v56, 0.0 }
 0x116   :  { %v298_v1 = vpack.c.bf16 %v284_v63, %v283_v61 }
 0x118   :  { %538 = vmatmul.mubr.msk.bf16.gmra.mxu1 %vm320_vm1, %v298_v1 }
 0x119   :  { %541 = vmatprep.mubr.msk.bf16.mxu1 %vm320_vm1, %v299_v2 }
 0x120   :  { %542 = vmatmul.mubr.msk.bf16.gmra.mxu1 %vm320_vm1, %v300_v5 }
 0x1b8   :  { %v531_v7 = vpop.f32.mrf.mxu1 }
 0x1b9   :  { %v388_v8 = vadd.f32 %v531_v7, %v780_v6 }
 0x1ba   :  { %v379_v9 = vpop.f32.mrf.mxu1 }
 0x1bb   :  { %v451_v10 = vadd.f32 %v785_v60, %v388_v8  ;;  %v380_v11 = vadd.f32 %v780_v6, %v379_v9 }
 0x1bc   :  { %v532_v12 = vpop.f32.mrf.mxu1 }
 0x1bd   :  { %467 = vst.msk [vmem:[%s889_s6 + $0x10] sm:$0xff] %vm320_vm1, %v451_v10  ;;  %v449_v13 = vadd.f32 %v785_v60, %v380_v11  ;;  %v391_v14 = vadd.f32 %v532_v12, %v780_v6 }
 0x1be   :  { %v382_v15 = vpop.f32.mrf.mxu1 }
 0x1bf   :  { %465 = vst.msk [vmem:[%s889_s6] sm:$0xff] %vm320_vm1, %v449_v13  ;;  %v452_v16 = vadd.f32 %v785_v60, %v391_v14  ;;  %v383_v17 = vadd.f32 %v780_v6, %v382_v15 }
 0x1c1   :  { %468 = vst.msk [vmem:[%s889_s6 + $0x18] sm:$0xff] %vm320_vm1, %v452_v16  ;;  %v450_v18 = vadd.f32 %v785_v60, %v383_v17 }
 0x1c3   :  { %466 = vst.msk [vmem:[%s889_s6 + $0x8] sm:$0xff] %vm320_vm1, %v450_v18 }
 0x1c8   :  { %v535_v19 = vpop.f32.mrf.mxu1 }
 0x1c9   :  { %v404_v20 = vadd.f32 %v535_v19, %v780_v6 }
 0x1ca   :  { %v395_v21 = vpop.f32.mrf.mxu1 }
 0x1cb   :  { %v455_v22 = vadd.f32 %v785_v60, %v404_v20  ;;  %v396_v23 = vadd.f32 %v780_v6, %v395_v21 }
 0x1cc   :  { %v536_v24 = vpop.f32.mrf.mxu1 }
 0x1cd   :  { %471 = vst.msk [vmem:[%s889_s6 + $0x30] sm:$0xff] %vm320_vm1, %v455_v22  ;;  %v453_v25 = vadd.f32 %v785_v60, %v396_v23  ;;  %v407_v26 = vadd.f32 %v536_v24, %v780_v6 }
 0x1ce   :  { %v398_v27 = vpop.f32.mrf.mxu1 }
 0x1cf   :  { %469 = vst.msk [vmem:[%s889_s6 + $0x20] sm:$0xff] %vm320_vm1, %v453_v25  ;;  %v456_v28 = vadd.f32 %v785_v60, %v407_v26  ;;  %v399_v29 = vadd.f32 %v780_v6, %v398_v27 }
 0x1d1   :  { %472 = vst.msk [vmem:[%s889_s6 + $0x38] sm:$0xff] %vm320_vm1, %v456_v28  ;;  %v454_v30 = vadd.f32 %v785_v60, %v399_v29 }
 0x1d3   :  { %470 = vst.msk [vmem:[%s889_s6 + $0x28] sm:$0xff] %vm320_vm1, %v454_v30 }
 0x1d8   :  { %v539_v31 = vpop.f32.mrf.mxu1 }
 0x1d9   :  { %v420_v32 = vadd.f32 %v539_v31, %v780_v6 }
 0x1da   :  { %v411_v33 = vpop.f32.mrf.mxu1 }
 0x1db   :  { %v459_v34 = vadd.f32 %v785_v60, %v420_v32  ;;  %v412_v35 = vadd.f32 %v780_v6, %v411_v33 }
 0x1dc   :  { %v540_v36 = vpop.f32.mrf.mxu1 }
 0x1dd   :  { %475 = vst.msk [vmem:[%s889_s6 + $0x50] sm:$0xff] %vm320_vm1, %v459_v34  ;;  %v457_v37 = vadd.f32 %v785_v60, %v412_v35  ;;  %v423_v38 = vadd.f32 %v540_v36, %v780_v6 }
 0x1de   :  { %v414_v39 = vpop.f32.mrf.mxu1 }
 0x1df   :  { %473 = vst.msk [vmem:[%s889_s6 + $0x40] sm:$0xff] %vm320_vm1, %v457_v37  ;;  %v460_v40 = vadd.f32 %v785_v60, %v423_v38  ;;  %v415_v41 = vadd.f32 %v780_v6, %v414_v39 }
 0x1e0   :  { %v543_v42 = vpop.f32.mrf.mxu1 }
 0x1e1   :  { %476 = vst.msk [vmem:[%s889_s6 + $0x58] sm:$0xff] %vm320_vm1, %v460_v40  ;;  %v458_v43 = vadd.f32 %v785_v60, %v415_v41  ;;  %v436_v44 = vadd.f32 %v543_v42, %v780_v6 }
 0x1e2   :  { %v427_v45 = vpop.f32.mrf.mxu1 }
 0x1e3   :  { %474 = vst.msk [vmem:[%s889_s6 + $0x48] sm:$0xff] %vm320_vm1, %v458_v43  ;;  %v463_v46 = vadd.f32 %v785_v60, %v436_v44  ;;  %v428_v47 = vadd.f32 %v780_v6, %v427_v45 }
 0x1e4   :  { %v544_v48 = vpop.f32.mrf.mxu1 }
 0x1e5   :  { %479 = vst.msk [vmem:[%s889_s6 + $0x70] sm:$0xff] %vm320_vm1, %v463_v46  ;;  %v461_v49 = vadd.f32 %v785_v60, %v428_v47  ;;  %v439_v50 = vadd.f32 %v544_v48, %v780_v6 }
 0x1e6   :  { %v430_v51 = vpop.f32.mrf.mxu1 }
 0x1e7   :  { %477 = vst.msk [vmem:[%s889_s6 + $0x60] sm:$0xff] %vm320_vm1, %v461_v49  ;;  %v464_v52 = vadd.f32 %v785_v60, %v439_v50  ;;  %v431_v53 = vadd.f32 %v780_v6, %v430_v51 }
 0x1e9   :  { %480 = vst.msk [vmem:[%s889_s6 + $0x78] sm:$0xff] %vm320_vm1, %v464_v52  ;;  %v462_v54 = vadd.f32 %v785_v60, %v431_v53 }
 0x1eb   :  { %478 = vst.msk [vmem:[%s889_s6 + $0x68] sm:$0xff] %vm320_vm1, %v462_v54 }

// kernel: medsam_lite_forward.7
= control target key start
LH: loop header
LB: loop body
LE: loop exit
PB: predicated region body
PF: predicated region fallthrough
CT: control target
= control target key end

     0   :  { %v1919_v0 = vmov 0.0   ;;  %vm1920_vm0 = vmmov 0   ;;  %vm82_vm1 = vcmask 261120   ;;  %vm268_vm2 = vcmask 1041408   ;;  %s2631_s8 = inlined_call_operand.vmem [shape: bf16[32,32], index: 8, kind: input, shape index: {}]   ;;  %s2632_s1 = inlined_call_operand.vmem [shape: f32[2,32], index: 1, kind: input, shape index: {}]   ;;  %s2633_s10 = inlined_call_operand.vmem [shape: bf16[32,32], index: 10, kind: input, shape index: {}]   ;;  %s2634_s12 = inlined_call_operand.vmem [shape: bf16[32,4], index: 12, kind: input, shape index: {}]   ;;  %s2635_s9 = inlined_call_operand.vmem [shape: f32[1,32], index: 9, kind: input, shape index: {}]   ;;  %s2636_s2 = inlined_call_operand.vmem [shape: bf16[32,32], index: 2, kind: input, shape index: {}]   ;;  %s2637_s15 = inlined_call_operand.vmem [shape: bf16[4,64], index: 15, kind: input, shape index: {}]   ;;  %s2638_s11 = inlined_call_operand.vmem [shape: f32[1,32], index: 11, kind: input, shape index: {}]   ;;  %s2639_s0 = inlined_call_operand.vmem [shape: f32[2,64,32], index: 0, kind: input, shape index: {}]   ;;  %s2640_s14 = inlined_call_operand.vmem [shape: bf16[32,32], index: 14, kind: input, shape index: {}]   ;;  %s2641_s13 = inlined_call_operand.vmem [shape: f32[1,4], index: 13, kind: input, shape index: {}]   ;;  %s2642_s3 = inlined_call_operand.vmem [shape: f32[1,32], index: 3, kind: input, shape index: {}]   ;;  %s2643_s6 = inlined_call_operand.vmem [shape: bf16[32,64], index: 6, kind: input, shape index: {}]   ;;  %s2644_s4 = inlined_call_operand.vmem [shape: f32[1,32], index: 4, kind: input, shape index: {}]   ;;  %s2645_s5 = inlined_call_operand.vmem [shape: f32[1,32], index: 5, kind: input, shape index: {}]   ;;  %s2646_s16 = inlined_call_operand.vmem [shape: bf16[64,16], index: 16, kind: input, shape index: {}]   ;;  %s2647_s7 = inlined_call_operand.vmem [shape: f32[1,64], index: 7, kind: input, shape index: {}]   ;;  %s2648_s17 = inlined_call_operand.vmem [shape: f32[2,64,16], index: 17, kind: output, shape index: {}]  }
   0x1   :  { %2650 = sst [smem:[#allocation2_spill]] %s2631_s8  ;;  %1666 = vmatprep.subr.bf16.mxu0 %v1919_v0  ;;  %1670 = vmatprep.mubr.msk.bf16.mxu0 %vm1920_vm0, %v1919_v0  ;;  %v1809_v5 = vld [vmem:[%s2633_s10 + $0x8] sm:$0xff]   ;;  %v1810_v6 = vld [vmem:[%s2633_s10] sm:$0xff]   ;;  %v314_v32 = vld [vmem:[%s2639_s0 + $0x10] sm:$0xff]  ;;  %vm264_vm3 = vcmask 31744   ;;  %vm1393_vm4 = vcmask 523264  }
   0x2   :  { %2651 = sst [smem:[#allocation3_spill]] %s2632_s1  ;;  %1674 = vmatprep.subr.bf16.mxu1 %v1919_v0  ;;  %1678 = vmatprep.mubr.msk.bf16.mxu1 %vm1920_vm0, %v1919_v0  ;;  %v1811_v7 = vld [vmem:[%s2634_s12 + $0x8] sm:$0xff]   ;;  %v1536_v8 = vld [vmem:[%s2635_s9] ss:$0 sm:$0xff]  ;;  %v315_v33 = vld [vmem:[%s2639_s0 + $0x18] sm:$0xff]  ;;  %vm1515_vm5 = vcmask 130048  }
   0x3   :  { %s2652_s26 = sld [smem:[#allocation2_spill]]  ;;  %1675 = vmatpush3.bf16.msra.mxu1 %v1809_v5  ;;  %v1812_v16 = vld [vmem:[%s2634_s12] sm:$0xff]   ;;  %v1813_v17 = vld [vmem:[%s2636_s2 + $0x8] sm:$0xff]   ;;  %v333_v36 = vpack.c.bf16 %v315_v33, %v314_v32  ;;  %v318_v38 = vld [vmem:[%s2639_s0 + $0x30] sm:$0xff] }
   0x4   :  { %s2653_s30 = sld [smem:[#allocation3_spill]]  ;;  %1676 = vmatprep.subr.bf16.mxu1 %v1919_v0  ;;  %v262_v18 = vld [vmem:[%s2637_s15] sm:$0x3]  ;;  %v313_v24 = vld [vmem:[%s2639_s0 + $0x8] sm:$0xff]  ;;  %v319_v39 = vld [vmem:[%s2639_s0 + $0x38] sm:$0xff] }
   0x5   :  { %v270_v19 = vsel %vm268_vm2, %v262_v18, 0  ;;  %v1540_v20 = vld [vmem:[%s2638_s11] ss:$0 sm:$0xff]  ;;  %v317_v35 = vld [vmem:[%s2639_s0 + $0x28] sm:$0xff]  ;;  %v335_v40 = vpack.c.bf16 %v319_v39, %v318_v38  ;;  %v322_v53 = vld [vmem:[%s2639_s0 + $0x50] sm:$0xff] }
   0x6   :  { %v312_v23 = vld [vmem:[%s2639_s0] sm:$0xff]  ;;  %v1815_v41 = vld [vmem:[%s2640_s14 + $0x8] sm:$0xff]   ;;  %v323_v54 = vld [vmem:[%s2639_s0 + $0x58] sm:$0xff] }
   0x7   :  { %1677 = vmatpush3.bf16.msra.mxu1 %v1810_v6  ;;  %v332_v28 = vpack.c.bf16 %v313_v24, %v312_v23  ;;  %v1814_v30 = vld [vmem:[%s2636_s2] sm:$0xff]   ;;  %v321_v45 = vld [vmem:[%s2639_s0 + $0x48] sm:$0xff]  ;;  %v337_v58 = vpack.c.bf16 %v323_v54, %v322_v53 }
   0x8   :  { %1690 = vmatprep.subr.bf16.mxu1 %v1919_v0  ;;  %v316_v34 = vld [vmem:[%s2639_s0 + $0x20] sm:$0xff]  ;;  %v325_v56 = vld [vmem:[%s2639_s0 + $0x68] sm:$0xff] }
   0x9   :  { %v1807_v1 = vld [vmem:[%s2652_s26 + $0x8] sm:$0xff]   ;;  %v1808_v2 = vld [vmem:[%s2652_s26] sm:$0xff]   ;;  %v334_v37 = vpack.c.bf16 %v317_v35, %v316_v34 }
   0xa   :  { %1667 = vmatpush3.bf16.msra.mxu0 %v1807_v1  ;;  %v57_v3 = vld [vmem:[%s2653_s30] sm:$0x3]  ;;  %v327_v1 = vld [vmem:[%s2639_s0 + $0x78] sm:$0xff] }
   0xb   :  { %1668 = vmatprep.subr.bf16.mxu0 %v1919_v0  ;;  %v62_v4 = vpack.c.bf16 %v57_v3, %v57_v3  ;;  %v1816_v42 = vld [vmem:[%s2640_s14] sm:$0xff]  }
   0xc   :  { %v1544_v43 = vld [vmem:[%s2641_s13] ss:$0 sm:$0xff] }
   0xd   :  { %v320_v44 = vld [vmem:[%s2639_s0 + $0x40] sm:$0xff] }
   0xe   :  { %1669 = vmatpush3.bf16.msra.mxu0 %v1808_v2  ;;  %v336_v49 = vpack.c.bf16 %v321_v45, %v320_v44  ;;  %v324_v55 = vld [vmem:[%s2639_s0 + $0x60] sm:$0xff] }
   0xf   :  { %1682 = vmatprep.subr.bf16.mxu0 %v1919_v0  ;;  %v338_v60 = vpack.c.bf16 %v325_v56, %v324_v55  ;;  %v2114_v61 = vld [vmem:[%s2642_s3] ss:$0 sm:$0xff] }
  0x11   :  { %1671 = vmatmul.mubr.msk.bf16.vlgmr.msra.gmra.mxu0 %vm82_vm1, %v62_v4 }
  0x12   :  { %1686 = vmatprep.mubr.msk.bf16.mxu0 %vm1920_vm0, %v1919_v0  ;;  %1683 = vmatpush3.bf16.msra.mxu0 %v1811_v7 }
  0x13   :  { %1684 = vmatprep.subr.bf16.mxu0 %v1919_v0 }
  0x16   :  { %1685 = vmatpush3.bf16.msra.mxu0 %v1812_v16 }
  0x17   :  { %1696 = vmatprep.subr.bf16.mxu0 %v1813_v17 }
  0xd1   :  { %v120_v9 = vpop.f32.mrf.mxu0 }
  0xd2   :  { %v121_v10 = vadd.f32 %v1536_v8, %v120_v9 }
  0xd3   :  { %v1672_v11 = vpop.f32.mrf.mxu0 }
  0xd4   :  { %v126_v12 = vmax.f32 %v121_v10, 0.0 }
  0xd5   :  { %v123_v13 = vpop.f32.mrf.mxu0 }
  0xd6   :  { %v131_v14 = vpack.c.bf16 %v126_v12, %v126_v12 }
  0xd7   :  { %v1673_v15 = vpop.f32.mrf.mxu0 }
  0xd8   :  { %1679 = vmatmul.mubr.msk.bf16.vlgmr.msra.gmra.mxu1 %vm82_vm1, %v131_v14 }
  0xd9   :  { %1692 = vmatprep.mubr.msk.bf16.mxu1 %vm1920_vm0, %v1919_v0  ;;  %1691 = vmatpush3.bf16.msra.mxu1 %v270_v19  ;;  %v326_v0 = vld [vmem:[%s2639_s0 + $0x70] sm:$0xff]  ;;  %v1921_v19 = vmov 1966171168  }
  0xda   :  { %1800 = vmatprep.subr.bf16.mxu1 %v1813_v17  ;;  %v339_v5 = vpack.c.bf16 %v327_v1, %v326_v0 }
 0x198   :  { %v188_v21 = vpop.f32.mrf.mxu1 }
 0x199   :  { %v189_v22 = vadd.f32 %v1540_v20, %v188_v21  ;;  %v1306_v20 = vunpack.c.l.s4 %v1921_v19  ;;  %v1308_v21 = vlaneseq  ;;  %v1818_v19 = vld [vmem:[%s2643_s6] sm:$0xff]  }
 0x19a   :  { %v1680_v25 = vpop.f32.mrf.mxu1 }
 0x19b   :  { %v194_v26 = vmax.f32 %v189_v22, 0.0  ;;  %v1307_v22 = vunpack.c.0.s8 %v1306_v20  ;;  %v2152_v23 = vshrl.u32 %v1308_v21, 7 }
 0x19c   :  { %v191_v27 = vpop.f32.mrf.mxu1 }
 0x19d   :  { %v199_v29 = vpack.c.bf16 %v194_v26, %v194_v26  ;;  %v2155_v24 = vsub.s32 %v1307_v22, %v2152_v23 }
 0x19e   :  { %v1681_v31 = vpop.f32.mrf.mxu1 }
 0x19f   :  { %1687 = vmatmul.mubr.msk.bf16.vlgmr.msra.gmra.mxu0 %vm82_vm1, %v199_v29  ;;  %v1329_v31 = vsub.s32 0, %v2152_v23 }
 0x1a0   :  { %1697 = vmatpush3.bf16.msra.mxu0 %v1813_v17  ;;  %1700 = vmatprep.mubr.msk.bf16.mxu0 %vm82_vm1, %v332_v28 }
 0x1a1   :  { %1698 = vmatprep.subr.bf16.mxu0 %v1814_v30 }
 0x1a4   :  { %1699 = vmatpush3.bf16.msra.mxu0 %v1814_v30 }
 0x1a5   :  { %1736 = vmatprep.subr.bf16.mxu0 %v1815_v41 }
 0x1a7   :  { %1701 = vmatmul.mubr.msk.bf16.vlgmr.msra.gmra.mxu0 %vm82_vm1, %v333_v36 }
 0x1a8   :  { %1704 = vmatprep.mubr.msk.bf16.mxu0 %vm82_vm1, %v334_v37  ;;  %1737 = vmatpush3.bf16.msra.mxu0 %v1815_v41 }
 0x1a9   :  { %1738 = vmatprep.subr.bf16.mxu0 %v1816_v42 }
 0x1ac   :  { %1739 = vmatpush3.bf16.msra.mxu0 %v1816_v42 }
 0x1af   :  { %1705 = vmatmul.mubr.msk.bf16.gmra.mxu0 %vm82_vm1, %v335_v40 }
 0x25f   :  { %v256_v46 = vpop.f32.mrf.mxu0 }
 0x260   :  { %v257_v47 = vadd.f32 %v1544_v43, %v256_v46 }
 0x261   :  { %v1688_v48 = vpop.f32.mrf.mxu0 }
 0x262   :  { %v263_v50 = vpack.c.bf16 %v257_v47, %v257_v47 }
 0x263   :  { %v259_v51 = vpop.f32.mrf.mxu0 }
 0x264   :  { %1693 = vmatmul.mubr.msk.bf16.vlgmr.msra.gmra.mxu1 %vm264_vm3, %v263_v50 }
 0x265   :  { %1802 = vmatpush3.bf16.msra.mxu1 %v1813_v17  ;;  %v1689_v52 = vpop.f32.mrf.mxu0  ;;  %1708 = vmatprep.mubr.msk.bf16.mxu1 %vm82_vm1, %v336_v49 }
 0x266   :  { %1801 = vmatprep.subr.bf16.mxu1 %v1814_v30 }
 0x267   :  { %v1702_v57 = vpop.f32.mrf.mxu0 }
 0x268   :  { %v426_v9 = vadd.f32 %v1702_v57, %v2114_v61 }
 0x269   :  { %1803 = vmatpush3.bf16.msra.mxu1 %v1814_v30  ;;  %v417_v59 = vpop.f32.mrf.mxu0 }
 0x26a   :  { %1716 = vmatprep.subr.bf16.mxu1 %v1815_v41  ;;  %v2118_v63 = vadd.f32 %v2114_v61, %v417_v59 }
 0x26b   :  { %v1703_v62 = vpop.f32.mrf.mxu0 }
 0x26c   :  { %1709 = vmatmul.mubr.msk.bf16.vlgmr.msra.gmra.mxu1 %vm82_vm1, %v337_v58  ;;  %v429_v10 = vadd.f32 %v1703_v62, %v2114_v61 }
 0x26d   :  { %1712 = vmatprep.mubr.msk.bf16.mxu1 %vm82_vm1, %v338_v60  ;;  %1717 = vmatpush3.bf16.msra.mxu1 %v1815_v41  ;;  %v420_v2 = vpop.f32.mrf.mxu0 }
 0x26e   :  { %v2128_v3 = vadd.f32 %v2114_v61, %v420_v2  ;;  %1718 = vmatprep.subr.bf16.mxu1 %v1816_v42  ;;  %v485_v14 = vpack.c.bf16 %v429_v10, %v426_v9 }
 0x26f   :  { %v1706_v4 = vpop.f32.mrf.mxu0 }
 0x270   :  { %v484_v6 = vpack.c.bf16 %v2128_v3, %v2118_v63  ;;  %v2145_v16 = vadd.f32 %v1706_v4, %v2114_v61 }
 0x271   :  { %1719 = vmatpush3.bf16.msra.mxu1 %v1816_v42  ;;  %v433_v7 = vpop.f32.mrf.mxu0 }
 0x272   :  { %v2136_v11 = vadd.f32 %v2114_v61, %v433_v7 }
 0x273   :  { %v1707_v8 = vpop.f32.mrf.mxu0 }
 0x274   :  { %1713 = vmatmul.mubr.msk.bf16.gmra.mxu1 %vm82_vm1, %v339_v5  ;;  %v445_v17 = vadd.f32 %v1707_v8, %v2114_v61 }
 0x275   :  { %1720 = vmatprep.mubr.msk.bf16.mxu1 %vm82_vm1, %v484_v6  ;;  %v436_v12 = vpop.f32.mrf.mxu0 }
 0x276   :  { %v2140_v13 = vadd.f32 %v2114_v61, %v436_v12  ;;  %v487_v18 = vpack.c.bf16 %v445_v17, %v2145_v16 }
 0x278   :  { %v486_v15 = vpack.c.bf16 %v2140_v13, %v2136_v11 }
 0x27c   :  { %1721 = vmatmul.mubr.msk.bf16.vlgmr.msra.gmra.mxu1 %vm82_vm1, %v485_v14 }
 0x27d   :  { %1724 = vmatprep.mubr.msk.bf16.mxu1 %vm82_vm1, %v486_v15 }
 0x284   :  { %1725 = vmatmul.mubr.msk.bf16.gmra.mxu1 %vm82_vm1, %v487_v18 }
 0x324   :  { %v306_v25 = vpop.f32.mrf.mxu1 }
 0x325   :  { %v2158_v26 = vrot.slane %v306_v25, %v2155_v24 }
 0x326   :  { %v1694_v27 = vpop.f32.mrf.mxu1 }
 0x327   :  { %v1312_v28 = vcombine.high %v2158_v26, %v2158_v26 }
 0x328   :  { %v309_v29 = vpop.f32.mrf.mxu1 }
 0x329   :  { %v1326_v30 = vrot.slane %v1312_v28, %v2155_v24 }
 0x32a   :  { %v1695_v32 = vpop.f32.mrf.mxu1 }
 0x32b   :  { %v2166_v33 = vrot.slane %v1326_v30, %v1329_v31 }
 0x32c   :  { %v1710_v34 = vpop.f32.mrf.mxu1 }
 0x32d   :  { %v458_v41 = vadd.f32 %v1710_v34, %v2114_v61 }
 0x32e   :  { %v449_v35 = vpop.f32.mrf.mxu1 }
 0x32f   :  { %v450_v39 = vadd.f32 %v2114_v61, %v449_v35 }
 0x330   :  { %v1711_v36 = vpop.f32.mrf.mxu1 }
 0x331   :  { %v2169_v37 = vadd.f32 %v1711_v36, %v2114_v61 }
 0x332   :  { %v452_v38 = vpop.f32.mrf.mxu1 }
 0x333   :  { %v2173_v40 = vadd.f32 %v2114_v61, %v452_v38  ;;  %v489_v44 = vpack.c.bf16 %v2169_v37, %v458_v41 }
 0x334   :  { %v1714_v42 = vpop.f32.mrf.mxu1 }
 0x335   :  { %v488_v43 = vpack.c.bf16 %v2173_v40, %v450_v39  ;;  %v2190_v51 = vadd.f32 %v1714_v42, %v2114_v61 }
 0x336   :  { %v465_v45 = vpop.f32.mrf.mxu1 }
 0x337   :  { %1728 = vmatprep.mubr.msk.bf16.mxu1 %vm82_vm1, %v488_v43  ;;  %v2184_v49 = vadd.f32 %v2114_v61, %v465_v45 }
 0x338   :  { %v1715_v46 = vpop.f32.mrf.mxu1  ;;  %1729 = vmatmul.mubr.msk.bf16.gmra.mxu1 %vm82_vm1, %v489_v44 }
 0x339   :  { %v2181_v47 = vadd.f32 %v1715_v46, %v2114_v61 }
 0x33a   :  { %v468_v48 = vpop.f32.mrf.mxu1 }
 0x33b   :  { %v2187_v50 = vadd.f32 %v2114_v61, %v468_v48  ;;  %v491_v54 = vpack.c.bf16 %v2181_v47, %v2190_v51 }
 0x33c   :  { %v1722_v52 = vpop.f32.mrf.mxu1 }
 0x33d   :  { %v490_v53 = vpack.c.bf16 %v2187_v50, %v2184_v49  ;;  %v2203_v59 = vsub.f32 %v426_v9, %v1722_v52 }
 0x33e   :  { %v562_v55 = vpop.f32.mrf.mxu1 }
 0x33f   :  { %1732 = vmatprep.mubr.msk.bf16.mxu1 %vm82_vm1, %v490_v53  ;;  %v2199_v57 = vsub.f32 %v2118_v63, %v562_v55  ;;  %v643_v63 = vmul.f32 %v2203_v59, %v2203_v59 }
 0x340   :  { %v1723_v56 = vpop.f32.mrf.mxu1  ;;  %1733 = vmatmul.mubr.msk.bf16.gmra.mxu1 %vm82_vm1, %v491_v54 }
 0x341   :  { %v2201_v58 = vsub.f32 %v429_v10, %v1723_v56  ;;  %v641_v1 = vmul.f32 %v2199_v57, %v2199_v57 }
 0x342   :  { %v565_v60 = vpop.f32.mrf.mxu1 }
 0x343   :  { %v2206_v61 = vsub.f32 %v2128_v3, %v565_v60  ;;  %v644_v62 = vmul.f32 %v2201_v58, %v2201_v58 }
 0x344   :  { %v1726_v0 = vpop.f32.mrf.mxu1 }
 0x345   :  { %v642_v2 = vmul.f32 %v2206_v61, %v2206_v61  ;;  %v658_v6 = vpack.c.bf16 %v644_v62, %v643_v63  ;;  %v2223_v9 = vsub.f32 %v2145_v16, %v1726_v0 }
 0x346   :  { %v578_v4 = vpop.f32.mrf.mxu1 }
 0x347   :  { %v657_v5 = vpack.c.bf16 %v642_v2, %v641_v1  ;;  %v2217_v3 = vsub.f32 %v2136_v11, %v578_v4 }
 0x348   :  { %v1727_v7 = vpop.f32.mrf.mxu1 }
 0x349   :  { %v2219_v8 = vsub.f32 %v445_v17, %v1727_v7  ;;  %1740 = vmatprep.mubr.msk.bf16.mxu0 %vm82_vm1, %v657_v5  ;;  %v645_v11 = vmul.f32 %v2217_v3, %v2217_v3  ;;  %v647_v17 = vmul.f32 %v2223_v9, %v2223_v9 }
 0x34a   :  { %v581_v10 = vpop.f32.mrf.mxu1  ;;  %1741 = vmatmul.mubr.msk.bf16.vlgmr.msra.gmra.mxu0 %vm82_vm1, %v658_v6 }
 0x34b   :  { %v2227_v12 = vsub.f32 %v2140_v13, %v581_v10  ;;  %v648_v14 = vmul.f32 %v2219_v8, %v2219_v8  ;;  %v1817_v13 = vld [vmem:[%s2643_s6 + $0x8] sm:$0xff]  }
 0x34c   :  { %1756 = vmatprep.subr.bf16.mxu1 %v1817_v13 }
 0x34d   :  { %v646_v15 = vmul.f32 %v2227_v12, %v2227_v12  ;;  %v660_v18 = vpack.c.bf16 %v648_v14, %v647_v17  ;;  %1757 = vmatpush3.bf16.msra.mxu1 %v1817_v13 }
 0x34e   :  { %1758 = vmatprep.subr.bf16.mxu1 %v1818_v19 }
 0x34f   :  { %v659_v16 = vpack.c.bf16 %v646_v15, %v645_v11  ;;  %v2290_v15 = vld [vmem:[%s2644_s4] ss:$0 sm:$0xff] }
 0x351   :  { %1744 = vmatprep.mubr.msk.bf16.mxu0 %vm82_vm1, %v659_v16  ;;  %1759 = vmatpush3.bf16.msra.mxu1 %v1818_v19 }
 0x352   :  { %1745 = vmatmul.mubr.msk.bf16.gmra.mxu0 %vm82_vm1, %v660_v18  ;;  %v2296_v18 = vld [vmem:[%s2645_s5] ss:$0 sm:$0xff] }
 0x3f8   :  { %v1730_v20 = vpop.f32.mrf.mxu1 }
 0x3f9   :  { %v2250_v28 = vsub.f32 %v458_v41, %v1730_v20 }
 0x3fa   :  { %v594_v21 = vpop.f32.mrf.mxu1 }
 0x3fb   :  { %v2245_v25 = vsub.f32 %v450_v39, %v594_v21 }
 0x3fc   :  { %v1731_v22 = vpop.f32.mrf.mxu1 }
 0x3fd   :  { %v2248_v27 = vsub.f32 %v2169_v37, %v1731_v22  ;;  %v649_v35 = vmul.f32 %v2245_v25, %v2245_v25  ;;  %v651_v37 = vmul.f32 %v2250_v28, %v2250_v28 }
 0x3fe   :  { %v597_v29 = vpop.f32.mrf.mxu1 }
 0x3ff   :  { %v2253_v30 = vsub.f32 %v2173_v40, %v597_v29  ;;  %v652_v32 = vmul.f32 %v2248_v27, %v2248_v27 }
 0x400   :  { %v1734_v34 = vpop.f32.mrf.mxu1 }
 0x401   :  { %v650_v36 = vmul.f32 %v2253_v30, %v2253_v30  ;;  %v662_v41 = vpack.c.bf16 %v652_v32, %v651_v37  ;;  %v2271_v44 = vsub.f32 %v2190_v51, %v1734_v34 }
 0x402   :  { %v610_v38 = vpop.f32.mrf.mxu1 }
 0x403   :  { %v661_v39 = vpack.c.bf16 %v650_v36, %v649_v35  ;;  %v2264_v40 = vsub.f32 %v2184_v49, %v610_v38  ;;  %v655_v52 = vmul.f32 %v2271_v44, %v2271_v44 }
 0x404   :  { %v1735_v42 = vpop.f32.mrf.mxu1 }
 0x405   :  { %v2267_v43 = vsub.f32 %v2181_v47, %v1735_v42  ;;  %1748 = vmatprep.mubr.msk.bf16.mxu0 %vm82_vm1, %v661_v39  ;;  %v653_v49 = vmul.f32 %v2264_v40, %v2264_v40 }
 0x406   :  { %v613_v45 = vpop.f32.mrf.mxu1  ;;  %1749 = vmatmul.mubr.msk.bf16.gmra.mxu0 %vm82_vm1, %v662_v41 }
 0x407   :  { %v2275_v46 = vsub.f32 %v2187_v50, %v613_v45  ;;  %v656_v48 = vmul.f32 %v2267_v43, %v2267_v43 }
 0x409   :  { %v654_v47 = vmul.f32 %v2275_v46, %v2275_v46  ;;  %v664_v55 = vpack.c.bf16 %v656_v48, %v655_v52 }
 0x40a   :  { %v1742_v51 = vpop.f32.mrf.mxu0 }
 0x40b   :  { %v663_v53 = vpack.c.bf16 %v654_v47, %v653_v49  ;;  %v732_v54 = vadd.f32 1e-06, %v1742_v51 }
 0x40c   :  { %v723_v56 = vpop.f32.mrf.mxu0 }
 0x40d   :  { %1823 = vrsqrt.f32 %v732_v54  ;;  %v724_v50 = vadd.f32 1e-06, %v723_v56  ;;  %1752 = vmatprep.mubr.msk.bf16.mxu0 %vm82_vm1, %v663_v53 }
 0x40e   :  { %v1743_v60 = vpop.f32.mrf.mxu0  ;;  %1753 = vmatmul.mubr.msk.bf16.gmra.mxu0 %vm82_vm1, %v664_v55 }
 0x40f   :  { %1825 = vrsqrt.f32 %v724_v50  ;;  %v735_v62 = vadd.f32 1e-06, %v1743_v60 }
 0x410   :  { %v726_v0 = vpop.f32.mrf.mxu0 }
 0x411   :  { %1827 = vrsqrt.f32 %v735_v62  ;;  %v727_v1 = vadd.f32 1e-06, %v726_v0 }
 0x412   :  { %v1746_v2 = vpop.f32.mrf.mxu0 }
 0x413   :  { %1829 = vrsqrt.f32 %v727_v1  ;;  %v748_v63 = vadd.f32 1e-06, %v1746_v2 }
 0x414   :  { %v739_v4 = vpop.f32.mrf.mxu0 }
 0x415   :  { %1831 = vrsqrt.f32 %v748_v63  ;;  %v740_v5 = vadd.f32 1e-06, %v739_v4 }
 0x416   :  { %v1747_v6 = vpop.f32.mrf.mxu0 }
 0x417   :  { %1833 = vrsqrt.f32 %v740_v5  ;;  %v751_v7 = vadd.f32 1e-06, %v1747_v6 }
 0x418   :  { %v742_v10 = vpop.f32.mrf.mxu0 }
 0x419   :  { %1835 = vrsqrt.f32 %v751_v7  ;;  %v743_v14 = vadd.f32 1e-06, %v742_v10 }
 0x41a   :  { %v1824_v11 = vpop.eup %1823 }
 0x41b   :  { %v804_v17 = vmul.f32 %v1824_v11, %v2203_v59  ;;  %1837 = vrsqrt.f32 %v743_v14 }
 0x41c   :  { %v1826_v16 = vpop.eup %1825 }
 0x41d   :  { %v827_v13 = vmul.f32 %v2290_v15, %v804_v17  ;;  %v802_v19 = vmul.f32 %v1826_v16, %v2199_v57 }
 0x41e   :  { %v1828_v20 = vpop.eup %1827 }
 0x41f   :  { %v2301_v21 = vadd.f32 %v2296_v18, %v827_v13  ;;  %v825_v22 = vmul.f32 %v2290_v15, %v802_v19  ;;  %v805_v29 = vmul.f32 %v1828_v20, %v2201_v58 }
 0x420   :  { %v1830_v59 = vpop.eup %1829 }
 0x421   :  { %v882_v32 = vmul.f32 0.044715, %v2301_v21  ;;  %v2307_v34 = vadd.f32 %v2296_v18, %v825_v22  ;;  %v828_v35 = vmul.f32 %v2290_v15, %v805_v29  ;;  %v803_v36 = vmul.f32 %v1830_v59, %v2206_v61 }
 0x422   :  { %v1832_v37 = vpop.eup %1831 }
 0x423   :  { %v2312_v57 = vadd.f32 %v2296_v18, %v828_v35  ;;  %v826_v38 = vmul.f32 %v2290_v15, %v803_v36  ;;  %v808_v39 = vmul.f32 %v1832_v37, %v2223_v9  ;;  %v880_v58 = vmul.f32 0.044715, %v2307_v34 }
 0x424   :  { %v1834_v41 = vpop.eup %1833  ;;  %v898_v42 = vmul.f32 %v882_v32, %v2301_v21 }
 0x425   :  { %v883_v45 = vmul.f32 0.044715, %v2312_v57  ;;  %v2320_v48 = vadd.f32 %v2296_v18, %v826_v38  ;;  %v831_v61 = vmul.f32 %v2290_v15, %v808_v39  ;;  %v806_v49 = vmul.f32 %v1834_v41, %v2217_v3 }
 0x426   :  { %v1836_v47 = vpop.eup %1835  ;;  %v896_v52 = vmul.f32 %v880_v58, %v2307_v34  ;;  %v914_v51 = vmul.f32 %v898_v42, %v2301_v21 }
 0x427   :  { %v829_v9 = vmul.f32 %v2290_v15, %v806_v49  ;;  %v809_v53 = vmul.f32 %v1836_v47, %v2219_v8  ;;  %v881_v55 = vmul.f32 0.044715, %v2320_v48  ;;  %v899_v50 = vmul.f32 %v883_v45, %v2312_v57 }
 0x428   :  { %v1838_v54 = vpop.eup %1837  ;;  %v912_v56 = vmul.f32 %v896_v52, %v2307_v34  ;;  %v930_v60 = vadd.f32 %v914_v51, %v2301_v21  ;;  %v2333_v3 = vadd.f32 %v2296_v18, %v831_v61 }
 0x429   :  { %v2336_v62 = vadd.f32 %v2296_v18, %v829_v9  ;;  %v832_v0 = vmul.f32 %v2290_v15, %v809_v53  ;;  %v807_v1 = vmul.f32 %v1838_v54, %v2227_v12  ;;  %v897_v8 = vmul.f32 %v881_v55, %v2320_v48 }
 0x42a   :  { %v928_v2 = vadd.f32 %v912_v56, %v2307_v34  ;;  %v915_v63 = vmul.f32 %v899_v50, %v2312_v57  ;;  %v946_v6 = vmul.f32 0.7978846, %v930_v60  ;;  %v886_v16 = vmul.f32 0.044715, %v2333_v3 }
 0x42b   :  { %v2344_v4 = vadd.f32 %v2296_v18, %v832_v0  ;;  %v830_v5 = vmul.f32 %v2290_v15, %v807_v1  ;;  %v884_v7 = vmul.f32 0.044715, %v2336_v62  ;;  %v913_v10 = vmul.f32 %v897_v8, %v2320_v48 }
 0x42c   :  { %v944_v14 = vmul.f32 0.7978846, %v928_v2  ;;  %v931_v11 = vadd.f32 %v915_v63, %v2312_v57  ;;  %v902_v59 = vmul.f32 %v886_v16, %v2333_v3  ;;  %v867_v50 = vmul.f32 0.5, %v2312_v57 }
 0x42d   :  { %v853_v12 = vadd.f32 %v2296_v18, %v830_v5  ;;  %v900_v17 = vmul.f32 %v884_v7, %v2336_v62  ;;  %v929_v13 = vadd.f32 %v913_v10, %v2320_v48  ;;  %v887_v20 = vmul.f32 0.044715, %v2344_v4 }
 0x42e   :  { %1839 = vtanh.f32 %v944_v14  ;;  %v947_v19 = vmul.f32 0.7978846, %v931_v11  ;;  %v918_v38 = vmul.f32 %v902_v59, %v2333_v3  ;;  %v864_v0 = vmul.f32 0.5, %v2307_v34 }
 0x42f   :  { %1841 = vtanh.f32 %v946_v6  ;;  %v885_v22 = vmul.f32 0.044715, %v853_v12  ;;  %v916_v29 = vmul.f32 %v900_v17, %v2336_v62  ;;  %v945_v32 = vmul.f32 0.7978846, %v929_v13 }
 0x430   :  { %1843 = vtanh.f32 %v947_v19  ;;  %v903_v35 = vmul.f32 %v887_v20, %v2344_v4  ;;  %v934_v42 = vadd.f32 %v918_v38, %v2333_v3  ;;  %v865_v1 = vmul.f32 0.5, %v2320_v48 }
 0x431   :  { %v901_v36 = vmul.f32 %v885_v22, %v853_v12  ;;  %v932_v37 = vadd.f32 %v916_v29, %v2336_v62  ;;  %1845 = vtanh.f32 %v945_v32  ;;  %v866_v2 = vmul.f32 0.5, %v2301_v21 }
 0x432   :  { %v919_v39 = vmul.f32 %v903_v35, %v2344_v4  ;;  %v950_v49 = vmul.f32 0.7978846, %v934_v42  ;;  %v868_v34 = vmul.f32 0.5, %v2336_v62  ;;  %v869_v48 = vmul.f32 0.5, %v853_v12  ;;  %v1819_v62 = vld [vmem:[%s2646_s16 + $0x18] sm:$0xff]  }
 0x433   :  { %v917_v41 = vmul.f32 %v901_v36, %v853_v12  ;;  %v948_v58 = vmul.f32 0.7978846, %v932_v37  ;;  %v871_v20 = vmul.f32 0.5, %v2344_v4  ;;  %v870_v32 = vmul.f32 0.5, %v2333_v3  ;;  %1776 = vmatprep.subr.bf16.mxu0 %v1819_v62  ;;  %v1821_v3 = vld [vmem:[%s2646_s16 + $0x8] sm:$0xff]  }
 0x434   :  { %v935_v45 = vadd.f32 %v919_v39, %v2344_v4  ;;  %1777 = vmatpush3.bf16.msra.mxu0 %v1819_v62  ;;  %v1820_v4 = vld [vmem:[%s2646_s16 + $0x10] sm:$0xff]  }
 0x435   :  { %v933_v61 = vadd.f32 %v917_v41, %v853_v12  ;;  %1847 = vtanh.f32 %v948_v58  ;;  %1778 = vmatprep.subr.bf16.mxu0 %v1820_v4  ;;  %v1822_v12 = vld [vmem:[%s2646_s16] sm:$0xff]  }
 0x436   :  { %v951_v47 = vmul.f32 0.7978846, %v935_v45  ;;  %1849 = vtanh.f32 %v950_v49 }
 0x437   :  { %v949_v52 = vmul.f32 0.7978846, %v933_v61 }
 0x438   :  { %1851 = vtanh.f32 %v951_v47  ;;  %1779 = vmatpush3.bf16.msra.mxu0 %v1820_v4 }
 0x439   :  { %1853 = vtanh.f32 %v949_v52  ;;  %1780 = vmatprep.subr.bf16.mxu0 %v1821_v3 }
 0x43b   :  { %v1840_v51 = vpop.eup %1839 }
 0x43c   :  { %v1842_v9 = vpop.eup %1841  ;;  %v976_v54 = vadd.f32 1.0, %v1840_v51  ;;  %1781 = vmatpush3.bf16.msra.mxu0 %v1821_v3 }
 0x43d   :  { %v1844_v53 = vpop.eup %1843  ;;  %v978_v60 = vadd.f32 1.0, %v1842_v9  ;;  %1782 = vmatprep.subr.bf16.mxu0 %v1822_v12 }
 0x43e   :  { %v979_v55 = vadd.f32 1.0, %v1844_v53  ;;  %v1846_v56 = vpop.eup %1845  ;;  %v992_v6 = vmul.f32 %v976_v54, %v864_v0 }
 0x43f   :  { %v977_v8 = vadd.f32 1.0, %v1846_v56  ;;  %v994_v10 = vmul.f32 %v978_v60, %v866_v2 }
 0x440   :  { %v995_v63 = vmul.f32 %v979_v55, %v867_v50  ;;  %1783 = vmatpush3.bf16.msra.mxu0 %v1822_v12 }
 0x441   :  { %v993_v7 = vmul.f32 %v977_v8, %v865_v1 }
 0x442   :  { %v1848_v5 = vpop.eup %1847  ;;  %v1013_v16 = vpack.c.bf16 %v995_v63, %v994_v10 }
 0x443   :  { %v1850_v14 = vpop.eup %1849  ;;  %v1012_v11 = vpack.c.bf16 %v993_v7, %v992_v6  ;;  %v980_v13 = vadd.f32 1.0, %v1848_v5 }
 0x444   :  { %v982_v22 = vadd.f32 1.0, %v1850_v14 }
 0x445   :  { %v1852_v17 = vpop.eup %1851  ;;  %1760 = vmatprep.mubr.msk.bf16.mxu1 %vm82_vm1, %v1012_v11  ;;  %v996_v29 = vmul.f32 %v980_v13, %v868_v34 }
 0x446   :  { %v1854_v19 = vpop.eup %1853  ;;  %v983_v57 = vadd.f32 1.0, %v1852_v17  ;;  %1761 = vmatmul.mubr.msk.bf16.vlgmr.msra.gmra.mxu1 %vm82_vm1, %v1013_v16  ;;  %v998_v37 = vmul.f32 %v982_v22, %v870_v32 }
 0x447   :  { %v981_v21 = vadd.f32 1.0, %v1854_v19 }
 0x448   :  { %v999_v35 = vmul.f32 %v983_v57, %v871_v20 }
 0x449   :  { %v997_v59 = vmul.f32 %v981_v21, %v869_v48 }
 0x44a   :  { %v1015_v38 = vpack.c.bf16 %v999_v35, %v998_v37 }
 0x44b   :  { %v1014_v36 = vpack.c.bf16 %v997_v59, %v996_v29 }
 0x44d   :  { %1764 = vmatprep.mubr.msk.bf16.mxu1 %vm82_vm1, %v1014_v36 }
 0x44e   :  { %1765 = vmatmul.mubr.msk.bf16.gmra.mxu1 %vm82_vm1, %v1015_v38 }
 0x4c6   :  { %v1750_v39 = vpop.f32.mrf.mxu0 }
 0x4c7   :  { %v764_v41 = vadd.f32 1e-06, %v1750_v39 }
 0x4c8   :  { %v755_v58 = vpop.f32.mrf.mxu0 }
 0x4c9   :  { %1855 = vrsqrt.f32 %v764_v41  ;;  %v756_v42 = vadd.f32 1e-06, %v755_v58 }
 0x4ca   :  { %v1751_v45 = vpop.f32.mrf.mxu0 }
 0x4cb   :  { %1857 = vrsqrt.f32 %v756_v42  ;;  %v767_v61 = vadd.f32 1e-06, %v1751_v45 }
 0x4cc   :  { %v758_v49 = vpop.f32.mrf.mxu0 }
 0x4cd   :  { %1859 = vrsqrt.f32 %v767_v61  ;;  %v759_v47 = vadd.f32 1e-06, %v758_v49 }
 0x4ce   :  { %v1754_v52 = vpop.f32.mrf.mxu0 }
 0x4cf   :  { %1861 = vrsqrt.f32 %v759_v47  ;;  %v780_v51 = vadd.f32 1e-06, %v1754_v52 }
 0x4d0   :  { %v771_v9 = vpop.f32.mrf.mxu0 }
 0x4d1   :  { %1863 = vrsqrt.f32 %v780_v51  ;;  %v772_v53 = vadd.f32 1e-06, %v771_v9 }
 0x4d2   :  { %v1755_v54 = vpop.f32.mrf.mxu0 }
 0x4d3   :  { %1865 = vrsqrt.f32 %v772_v53  ;;  %v783_v55 = vadd.f32 1e-06, %v1755_v54 }
 0x4d4   :  { %v774_v56 = vpop.f32.mrf.mxu0 }
 0x4d5   :  { %1867 = vrsqrt.f32 %v783_v55  ;;  %v775_v50 = vadd.f32 1e-06, %v774_v56 }
 0x4d6   :  { %v1856_v60 = vpop.eup %1855 }
 0x4d7   :  { %v812_v0 = vmul.f32 %v1856_v60, %v2250_v28  ;;  %1869 = vrsqrt.f32 %v775_v50 }
 0x4d8   :  { %v1858_v1 = vpop.eup %1857 }
 0x4d9   :  { %v835_v8 = vmul.f32 %v2290_v15, %v812_v0  ;;  %v810_v2 = vmul.f32 %v1858_v1, %v2245_v25 }
 0x4da   :  { %v1860_v63 = vpop.eup %1859 }
 0x4db   :  { %v2390_v5 = vadd.f32 %v2296_v18, %v835_v8  ;;  %v833_v6 = vmul.f32 %v2290_v15, %v810_v2  ;;  %v813_v7 = vmul.f32 %v1860_v63, %v2248_v27 }
 0x4dc   :  { %v1862_v10 = vpop.eup %1861 }
 0x4dd   :  { %v2395_v14 = vadd.f32 %v2296_v18, %v833_v6  ;;  %v836_v28 = vmul.f32 %v2290_v15, %v813_v7  ;;  %v811_v11 = vmul.f32 %v1862_v10, %v2253_v30  ;;  %v890_v16 = vmul.f32 0.044715, %v2390_v5 }
 0x4de   :  { %v1864_v17 = vpop.eup %1863 }
 0x4df   :  { %v2401_v25 = vadd.f32 %v2296_v18, %v836_v28  ;;  %v834_v13 = vmul.f32 %v2290_v15, %v811_v11  ;;  %v816_v19 = vmul.f32 %v1864_v17, %v2271_v44  ;;  %v888_v27 = vmul.f32 0.044715, %v2395_v14 }
 0x4e0   :  { %v1866_v34 = vpop.eup %1865  ;;  %v906_v57 = vmul.f32 %v890_v16, %v2390_v5 }
 0x4e1   :  { %v2408_v48 = vadd.f32 %v2296_v18, %v834_v13  ;;  %v839_v30 = vmul.f32 %v2290_v15, %v816_v19  ;;  %v814_v21 = vmul.f32 %v1866_v34, %v2264_v40  ;;  %v904_v22 = vmul.f32 %v888_v27, %v2395_v14 }
 0x4e2   :  { %v1868_v20 = vpop.eup %1867  ;;  %v891_v29 = vmul.f32 0.044715, %v2401_v25  ;;  %v922_v59 = vmul.f32 %v906_v57, %v2390_v5 }
 0x4e3   :  { %v837_v44 = vmul.f32 %v2290_v15, %v814_v21  ;;  %v817_v32 = vmul.f32 %v1868_v20, %v2267_v43  ;;  %v889_v36 = vmul.f32 0.044715, %v2408_v48  ;;  %v920_v37 = vmul.f32 %v904_v22, %v2395_v14 }
 0x4e4   :  { %v1870_v35 = vpop.eup %1869  ;;  %v907_v38 = vmul.f32 %v891_v29, %v2401_v25  ;;  %v938_v40 = vadd.f32 %v922_v59, %v2390_v5  ;;  %v2422_v62 = vadd.f32 %v2296_v18, %v839_v30  ;;  %v875_v21 = vmul.f32 0.5, %v2401_v25 }
 0x4e5   :  { %v2425_v4 = vadd.f32 %v2296_v18, %v837_v44  ;;  %v840_v3 = vmul.f32 %v2290_v15, %v817_v32  ;;  %v815_v12 = vmul.f32 %v1870_v35, %v2275_v46  ;;  %v905_v43 = vmul.f32 %v889_v36, %v2408_v48 }
 0x4e6   :  { %v936_v39 = vadd.f32 %v920_v37, %v2395_v14  ;;  %v923_v41 = vmul.f32 %v907_v38, %v2401_v25  ;;  %v954_v45 = vmul.f32 0.7978846, %v938_v40  ;;  %v894_v9 = vmul.f32 0.044715, %v2422_v62 }
 0x4e7   :  { %v2433_v58 = vadd.f32 %v2296_v18, %v840_v3  ;;  %v838_v42 = vmul.f32 %v2290_v15, %v815_v12  ;;  %v892_v61 = vmul.f32 0.044715, %v2425_v4  ;;  %v921_v49 = vmul.f32 %v905_v43, %v2408_v48 }
 0x4e8   :  { %v952_v47 = vmul.f32 0.7978846, %v936_v39  ;;  %v939_v52 = vadd.f32 %v923_v41, %v2401_v25  ;;  %v910_v50 = vmul.f32 %v894_v9, %v2422_v62  ;;  %v872_v22 = vmul.f32 0.5, %v2395_v14 }
 0x4e9   :  { %v861_v46 = vadd.f32 %v2296_v18, %v838_v42  ;;  %v908_v51 = vmul.f32 %v892_v61, %v2425_v4  ;;  %v937_v53 = vadd.f32 %v921_v49, %v2408_v48  ;;  %v895_v15 = vmul.f32 0.044715, %v2433_v58  ;;  %v2463_v61 = vld [vmem:[%s2647_s7] ss:$0 sm:$0xff] }
 0x4ea   :  { %1871 = vtanh.f32 %v952_v47  ;;  %v955_v54 = vmul.f32 0.7978846, %v939_v52  ;;  %v926_v8 = vmul.f32 %v910_v50, %v2422_v62  ;;  %v873_v29 = vmul.f32 0.5, %v2408_v48 }
 0x4eb   :  { %1873 = vtanh.f32 %v954_v45  ;;  %v893_v55 = vmul.f32 0.044715, %v861_v46  ;;  %v924_v56 = vmul.f32 %v908_v51, %v2425_v4  ;;  %v953_v60 = vmul.f32 0.7978846, %v937_v53 }
 0x4ec   :  { %1875 = vtanh.f32 %v955_v54  ;;  %v911_v18 = vmul.f32 %v895_v15, %v2433_v58  ;;  %v942_v7 = vadd.f32 %v926_v8, %v2422_v62  ;;  %v874_v44 = vmul.f32 0.5, %v2390_v5 }
 0x4ed   :  { %v909_v0 = vmul.f32 %v893_v55, %v861_v46  ;;  %v940_v1 = vadd.f32 %v924_v56, %v2425_v4  ;;  %1877 = vtanh.f32 %v953_v60  ;;  %v876_v14 = vmul.f32 0.5, %v2425_v4 }
 0x4ee   :  { %v927_v2 = vmul.f32 %v911_v18, %v2433_v58  ;;  %v958_v11 = vmul.f32 0.7978846, %v942_v7  ;;  %v877_v48 = vmul.f32 0.5, %v861_v46  ;;  %v879_v42 = vmul.f32 0.5, %v2433_v58 }
 0x4ef   :  { %v925_v63 = vmul.f32 %v909_v0, %v861_v46  ;;  %v956_v6 = vmul.f32 0.7978846, %v940_v1  ;;  %v878_v52 = vmul.f32 0.5, %v2422_v62 }
 0x4f0   :  { %v943_v10 = vadd.f32 %v927_v2, %v2433_v58 }
 0x4f1   :  { %v941_v28 = vadd.f32 %v925_v63, %v861_v46  ;;  %1879 = vtanh.f32 %v956_v6 }
 0x4f2   :  { %v959_v17 = vmul.f32 0.7978846, %v943_v10  ;;  %1881 = vtanh.f32 %v958_v11 }
 0x4f3   :  { %v957_v16 = vmul.f32 0.7978846, %v941_v28 }
 0x4f4   :  { %1883 = vtanh.f32 %v959_v17 }
 0x4f5   :  { %1885 = vtanh.f32 %v957_v16 }
 0x4f7   :  { %v1872_v13 = vpop.eup %1871 }
 0x4f8   :  { %v1874_v19 = vpop.eup %1873  ;;  %v984_v27 = vadd.f32 1.0, %v1872_v13 }
 0x4f9   :  { %v1876_v34 = vpop.eup %1875  ;;  %v986_v20 = vadd.f32 1.0, %v1874_v19 }
 0x4fa   :  { %v987_v57 = vadd.f32 1.0, %v1876_v34  ;;  %v1878_v30 = vpop.eup %1877  ;;  %v1000_v36 = vmul.f32 %v984_v27, %v872_v22 }
 0x4fb   :  { %v985_v59 = vadd.f32 1.0, %v1878_v30  ;;  %v1002_v38 = vmul.f32 %v986_v20, %v874_v44 }
 0x4fc   :  { %v1003_v32 = vmul.f32 %v987_v57, %v875_v21 }
 0x4fd   :  { %v1001_v37 = vmul.f32 %v985_v59, %v873_v29 }
 0x4fe   :  { %v1880_v35 = vpop.eup %1879  ;;  %v1017_v43 = vpack.c.bf16 %v1003_v32, %v1002_v38 }
 0x4ff   :  { %v1882_v40 = vpop.eup %1881  ;;  %v1016_v3 = vpack.c.bf16 %v1001_v37, %v1000_v36  ;;  %v988_v39 = vadd.f32 1.0, %v1880_v35 }
 0x500   :  { %v990_v45 = vadd.f32 1.0, %v1882_v40 }
 0x501   :  { %v1884_v12 = vpop.eup %1883  ;;  %1768 = vmatprep.mubr.msk.bf16.mxu1 %vm82_vm1, %v1016_v3  ;;  %v1004_v49 = vmul.f32 %v988_v39, %v876_v14 }
 0x502   :  { %v1886_v41 = vpop.eup %1885  ;;  %v991_v25 = vadd.f32 1.0, %v1884_v12  ;;  %1769 = vmatmul.mubr.msk.bf16.gmra.mxu1 %vm82_vm1, %v1017_v43  ;;  %v1006_v53 = vmul.f32 %v990_v45, %v878_v52 }
 0x503   :  { %v989_v5 = vadd.f32 1.0, %v1886_v41 }
 0x504   :  { %v1007_v51 = vmul.f32 %v991_v25, %v879_v42 }
 0x505   :  { %v1005_v47 = vmul.f32 %v989_v5, %v877_v48 }
 0x506   :  { %v1762_v9 = vpop.f32.mrf.mxu1  ;;  %v1019_v58 = vpack.c.bf16 %v1007_v51, %v1006_v53 }
 0x507   :  { %v1018_v4 = vpack.c.bf16 %v1005_v47, %v1004_v49  ;;  %v2467_v54 = vadd.f32 %v1762_v9, %v2463_v61 }
 0x508   :  { %v1097_v46 = vpop.f32.mrf.mxu1 }
 0x509   :  { %1772 = vmatprep.mubr.msk.bf16.mxu1 %vm82_vm1, %v1018_v4  ;;  %v1178_v15 = vmul.f32 0.044715, %v2467_v54  ;;  %v2472_v55 = vadd.f32 %v2463_v61, %v1097_v46 }
 0x50a   :  { %v1763_v56 = vpop.f32.mrf.mxu1  ;;  %1773 = vmatmul.mubr.msk.bf16.gmra.mxu1 %vm82_vm1, %v1019_v58 }
 0x50b   :  { %v1194_v62 = vmul.f32 %v1178_v15, %v2467_v54  ;;  %v1176_v50 = vmul.f32 0.044715, %v2472_v55  ;;  %v1109_v60 = vadd.f32 %v1763_v56, %v2463_v61  ;;  %v1319_v15 = vrot.slane %v2158_v26, %v2155_v24 }
 0x50c   :  { %v1100_v18 = vpop.f32.mrf.mxu1 }
 0x50d   :  { %v1210_v0 = vmul.f32 %v1194_v62, %v2467_v54  ;;  %v1192_v1 = vmul.f32 %v1176_v50, %v2472_v55  ;;  %v1179_v8 = vmul.f32 0.044715, %v1109_v60  ;;  %v2481_v2 = vadd.f32 %v2463_v61, %v1100_v18 }
 0x50e   :  { %v1766_v63 = vpop.f32.mrf.mxu1  ;;  %v1163_v62 = vmul.f32 0.5, %v1109_v60  ;;  %v1160_v18 = vmul.f32 0.5, %v2472_v55 }
 0x50f   :  { %v1226_v6 = vadd.f32 %v1210_v0, %v2467_v54  ;;  %v1208_v7 = vmul.f32 %v1192_v1, %v2472_v55  ;;  %v1195_v10 = vmul.f32 %v1179_v8, %v1109_v60  ;;  %v2486_v28 = vadd.f32 %v1766_v63, %v2463_v61 }
 0x510   :  { %v1177_v11 = vmul.f32 0.044715, %v2481_v2  ;;  %v1113_v17 = vpop.f32.mrf.mxu1  ;;  %v1162_v1 = vmul.f32 0.5, %v2467_v54  ;;  %v1161_v63 = vmul.f32 0.5, %v2481_v2 }
 0x511   :  { %v1242_v16 = vmul.f32 0.7978846, %v1226_v6  ;;  %v1224_v13 = vadd.f32 %v1208_v7, %v2472_v55  ;;  %v1211_v19 = vmul.f32 %v1195_v10, %v1109_v60  ;;  %v1182_v27 = vmul.f32 0.044715, %v2486_v28 }
 0x512   :  { %v1193_v34 = vmul.f32 %v1177_v11, %v2481_v2  ;;  %v2493_v57 = vadd.f32 %v2463_v61, %v1113_v17  ;;  %v1767_v30 = vpop.f32.mrf.mxu1  ;;  %v1330_v10 = vrot.slane %v1319_v15, %v1329_v31  ;;  %v1166_v31 = vmul.f32 0.5, %v2486_v28 }
 0x513   :  { %v1240_v21 = vmul.f32 0.7978846, %v1224_v13  ;;  %v1227_v20 = vadd.f32 %v1211_v19, %v1109_v60  ;;  %v1125_v22 = vadd.f32 %v1767_v30, %v2463_v61  ;;  %1887 = vtanh.f32 %v1242_v16 }
 0x514   :  { %v1209_v29 = vmul.f32 %v1193_v34, %v2481_v2  ;;  %v1198_v59 = vmul.f32 %v1182_v27, %v2486_v28  ;;  %v1180_v44 = vmul.f32 0.044715, %v2493_v57  ;;  %v1116_v32 = vpop.f32.mrf.mxu1 }
 0x515   :  { %1889 = vtanh.f32 %v1240_v21  ;;  %v1243_v35 = vmul.f32 0.7978846, %v1227_v20  ;;  %v1183_v36 = vmul.f32 0.044715, %v1125_v22  ;;  %v1117_v3 = vadd.f32 %v2463_v61, %v1116_v32 }
 0x516   :  { %v1225_v37 = vadd.f32 %v1209_v29, %v2481_v2  ;;  %v1214_v38 = vmul.f32 %v1198_v59, %v2486_v28  ;;  %v1196_v40 = vmul.f32 %v1180_v44, %v2493_v57  ;;  %v1167_v27 = vmul.f32 0.5, %v1125_v22 }
 0x517   :  { %1891 = vtanh.f32 %v1243_v35  ;;  %v1199_v12 = vmul.f32 %v1183_v36, %v1125_v22  ;;  %v1181_v25 = vmul.f32 0.044715, %v1117_v3  ;;  %v1164_v21 = vmul.f32 0.5, %v2493_v57 }
 0x518   :  { %v1241_v43 = vmul.f32 0.7978846, %v1225_v37  ;;  %v1230_v39 = vadd.f32 %v1214_v38, %v2486_v28  ;;  %v1212_v41 = vmul.f32 %v1196_v40, %v2493_v57  ;;  %v1165_v59 = vmul.f32 0.5, %v1117_v3 }
 0x519   :  { %v1215_v14 = vmul.f32 %v1199_v12, %v1125_v22  ;;  %v1197_v45 = vmul.f32 %v1181_v25, %v1117_v3 }
 0x51a   :  { %1893 = vtanh.f32 %v1241_v43  ;;  %v1246_v48 = vmul.f32 0.7978846, %v1230_v39  ;;  %v1228_v5 = vadd.f32 %v1212_v41, %v2493_v57 }
 0x51b   :  { %v1231_v42 = vadd.f32 %v1215_v14, %v1125_v22  ;;  %v1213_v52 = vmul.f32 %v1197_v45, %v1117_v3 }
 0x51c   :  { %v1244_v49 = vmul.f32 0.7978846, %v1228_v5  ;;  %1895 = vtanh.f32 %v1246_v48 }
 0x51d   :  { %v1247_v47 = vmul.f32 0.7978846, %v1231_v42  ;;  %v1229_v51 = vadd.f32 %v1213_v52, %v1117_v3 }
 0x51e   :  { %1897 = vtanh.f32 %v1244_v49 }
 0x51f   :  { %1899 = vtanh.f32 %v1247_v47  ;;  %v1245_v4 = vmul.f32 0.7978846, %v1229_v51 }
 0x520   :  { %v1888_v9 = vpop.eup %1887 }
 0x521   :  { %1901 = vtanh.f32 %v1245_v4  ;;  %v1274_v56 = vadd.f32 1.0, %v1888_v9 }
 0x522   :  { %v1890_v53 = vpop.eup %1889 }
 0x523   :  { %v1272_v58 = vadd.f32 1.0, %v1890_v53  ;;  %v1290_v11 = vmul.f32 %v1274_v56, %v1162_v1 }
 0x524   :  { %v1892_v46 = vpop.eup %1891 }
 0x525   :  { %v1275_v50 = vadd.f32 1.0, %v1892_v46  ;;  %v1288_v7 = vmul.f32 %v1272_v58, %v1160_v18  ;;  %v1339_v55 = vmul.f32 %v1330_v10, %v1290_v11 }
 0x527   :  { %v1894_v0 = vpop.eup %1893  ;;  %v1291_v8 = vmul.f32 %v1275_v50, %v1163_v62  ;;  %v1337_v13 = vmul.f32 %v1330_v10, %v1288_v7 }
 0x528   :  { %v1273_v6 = vadd.f32 1.0, %v1894_v0 }
 0x529   :  { %v1896_v17 = vpop.eup %1895  ;;  %v1340_v26 = vmul.f32 %v1330_v10, %v1291_v8 }
 0x52a   :  { %v1289_v16 = vmul.f32 %v1273_v6, %v1161_v63  ;;  %v1278_v2 = vadd.f32 1.0, %v1896_v17 }
 0x52b   :  { %v1898_v24 = vpop.eup %1897  ;;  %v1362_v20 = vpack.c.bf16 %v1340_v26, %v1339_v55 }
 0x52c   :  { %v1900_v60 = vpop.eup %1899  ;;  %v1338_v19 = vmul.f32 %v1330_v10, %v1289_v16  ;;  %v1276_v34 = vadd.f32 1.0, %v1898_v24  ;;  %v1294_v35 = vmul.f32 %v1278_v2, %v1166_v31 }
 0x52d   :  { %v1279_v54 = vadd.f32 1.0, %v1900_v60 }
 0x52e   :  { %v1361_v30 = vpack.c.bf16 %v1338_v19, %v1337_v13  ;;  %v1902_v23 = vpop.eup %1901  ;;  %v1292_v32 = vmul.f32 %v1276_v34, %v1164_v21  ;;  %v1343_v40 = vmul.f32 %v1330_v10, %v1294_v35 }
 0x52f   :  { %v1295_v29 = vmul.f32 %v1279_v54, %v1167_v27  ;;  %v1277_v44 = vadd.f32 1.0, %v1902_v23 }
 0x530   :  { %1784 = vmatprep.mubr.msk.bf16.mxu0 %vm1393_vm4, %v1361_v30  ;;  %v1341_v22 = vmul.f32 %v1330_v10, %v1292_v32 }
 0x531   :  { %1785 = vmatmul.mubr.msk.bf16.vlgmr.msra.gmra.mxu0 %vm1393_vm4, %v1362_v20  ;;  %v1293_v36 = vmul.f32 %v1277_v44, %v1165_v59  ;;  %v1344_v37 = vmul.f32 %v1330_v10, %v1295_v29 }
 0x533   :  { %v1342_v38 = vmul.f32 %v1330_v10, %v1293_v36  ;;  %v1364_v57 = vpack.c.bf16 %v1344_v37, %v1343_v40 }
 0x535   :  { %v1363_v12 = vpack.c.bf16 %v1342_v38, %v1341_v22 }
 0x537   :  { %1788 = vmatprep.mubr.msk.bf16.mxu0 %vm1393_vm4, %v1363_v12 }
 0x539   :  { %1789 = vmatmul.mubr.msk.bf16.gmra.mxu0 %vm1393_vm4, %v1364_v57 }
 0x5c2   :  { %v1770_v28 = vpop.f32.mrf.mxu1 }
 0x5c3   :  { %v2520_v43 = vadd.f32 %v1770_v28, %v2463_v61 }
 0x5c4   :  { %v1129_v3 = vpop.f32.mrf.mxu1 }
 0x5c5   :  { %v1186_v39 = vmul.f32 0.044715, %v2520_v43  ;;  %v2524_v41 = vadd.f32 %v2463_v61, %v1129_v3 }
 0x5c6   :  { %v1771_v14 = vpop.f32.mrf.mxu1 }
 0x5c7   :  { %v1202_v25 = vmul.f32 %v1186_v39, %v2520_v43  ;;  %v1184_v48 = vmul.f32 0.044715, %v2524_v41  ;;  %v1141_v5 = vadd.f32 %v1771_v14, %v2463_v61  ;;  %v1168_v28 = vmul.f32 0.5, %v2524_v41 }
 0x5c8   :  { %v1132_v42 = vpop.f32.mrf.mxu1  ;;  %v1170_v39 = vmul.f32 0.5, %v2520_v43 }
 0x5c9   :  { %v1218_v45 = vmul.f32 %v1202_v25, %v2520_v43  ;;  %v1200_v49 = vmul.f32 %v1184_v48, %v2524_v41  ;;  %v1187_v47 = vmul.f32 0.044715, %v1141_v5  ;;  %v1133_v52 = vadd.f32 %v2463_v61, %v1132_v42 }
 0x5ca   :  { %v1774_v51 = vpop.f32.mrf.mxu1  ;;  %v1171_v40 = vmul.f32 0.5, %v1141_v5 }
 0x5cb   :  { %v1234_v9 = vadd.f32 %v1218_v45, %v2520_v43  ;;  %v1216_v4 = vmul.f32 %v1200_v49, %v2524_v41  ;;  %v1203_v53 = vmul.f32 %v1187_v47, %v1141_v5  ;;  %v2535_v46 = vadd.f32 %v1774_v51, %v2463_v61 }
 0x5cc   :  { %v1185_v58 = vmul.f32 0.044715, %v1133_v52  ;;  %v1145_v15 = vpop.f32.mrf.mxu1  ;;  %v1169_v25 = vmul.f32 0.5, %v1133_v52 }
 0x5cd   :  { %v1250_v56 = vmul.f32 0.7978846, %v1234_v9  ;;  %v1232_v62 = vadd.f32 %v1216_v4, %v2524_v41  ;;  %v1219_v50 = vmul.f32 %v1203_v53, %v1141_v5  ;;  %v1190_v0 = vmul.f32 0.044715, %v2535_v46 }
 0x5ce   :  { %v1201_v18 = vmul.f32 %v1185_v58, %v1133_v52  ;;  %v2540_v1 = vadd.f32 %v2463_v61, %v1145_v15  ;;  %v1775_v8 = vpop.f32.mrf.mxu1 }
 0x5cf   :  { %v1248_v63 = vmul.f32 0.7978846, %v1232_v62  ;;  %v1235_v6 = vadd.f32 %v1219_v50, %v1141_v5  ;;  %v1157_v7 = vadd.f32 %v1775_v8, %v2463_v61  ;;  %1903 = vtanh.f32 %v1250_v56 }
 0x5d0   :  { %v1217_v10 = vmul.f32 %v1201_v18, %v1133_v52  ;;  %v1206_v11 = vmul.f32 %v1190_v0, %v2535_v46  ;;  %v1188_v17 = vmul.f32 0.044715, %v2540_v1  ;;  %v1148_v16 = vpop.f32.mrf.mxu1  ;;  %v1172_v62 = vmul.f32 0.5, %v2540_v1 }
 0x5d1   :  { %1905 = vtanh.f32 %v1248_v63  ;;  %v1251_v24 = vmul.f32 0.7978846, %v1235_v6  ;;  %v1191_v26 = vmul.f32 0.044715, %v1157_v7  ;;  %v1149_v55 = vadd.f32 %v2463_v61, %v1148_v16 }
 0x5d2   :  { %v1233_v60 = vadd.f32 %v1217_v10, %v1133_v52  ;;  %v1222_v13 = vmul.f32 %v1206_v11, %v2535_v46  ;;  %v1204_v19 = vmul.f32 %v1188_v17, %v2540_v1  ;;  %v1175_v43 = vmul.f32 0.5, %v1157_v7 }
 0x5d3   :  { %1907 = vtanh.f32 %v1251_v24  ;;  %v1207_v34 = vmul.f32 %v1191_v26, %v1157_v7  ;;  %v1189_v21 = vmul.f32 0.044715, %v1149_v55  ;;  %v1174_v0 = vmul.f32 0.5, %v2535_v46 }
 0x5d4   :  { %v1249_v54 = vmul.f32 0.7978846, %v1233_v60  ;;  %v1238_v27 = vadd.f32 %v1222_v13, %v2535_v46  ;;  %v1220_v30 = vmul.f32 %v1204_v19, %v2540_v1  ;;  %v1173_v63 = vmul.f32 0.5, %v1149_v55 }
 0x5d5   :  { %v1223_v2 = vmul.f32 %v1207_v34, %v1157_v7  ;;  %v1205_v29 = vmul.f32 %v1189_v21, %v1149_v55 }
 0x5d6   :  { %1909 = vtanh.f32 %v1249_v54  ;;  %v1254_v20 = vmul.f32 0.7978846, %v1238_v27  ;;  %v1236_v23 = vadd.f32 %v1220_v30, %v2540_v1 }
 0x5d7   :  { %v1239_v31 = vadd.f32 %v1223_v2, %v1157_v7  ;;  %v1221_v32 = vmul.f32 %v1205_v29, %v1149_v55 }
 0x5d8   :  { %v1252_v59 = vmul.f32 0.7978846, %v1236_v23  ;;  %1911 = vtanh.f32 %v1254_v20 }
 0x5d9   :  { %v1255_v44 = vmul.f32 0.7978846, %v1239_v31  ;;  %v1237_v61 = vadd.f32 %v1221_v32, %v1149_v55 }
 0x5da   :  { %1913 = vtanh.f32 %v1252_v59 }
 0x5db   :  { %1915 = vtanh.f32 %v1255_v44  ;;  %v1253_v36 = vmul.f32 0.7978846, %v1237_v61 }
 0x5dc   :  { %v1904_v35 = vpop.eup %1903 }
 0x5dd   :  { %1917 = vtanh.f32 %v1253_v36  ;;  %v1282_v12 = vadd.f32 1.0, %v1904_v35 }
 0x5de   :  { %v1906_v37 = vpop.eup %1905 }
 0x5df   :  { %v1280_v38 = vadd.f32 1.0, %v1906_v37  ;;  %v1298_v45 = vmul.f32 %v1282_v12, %v1170_v39 }
 0x5e0   :  { %v1908_v22 = vpop.eup %1907 }
 0x5e1   :  { %v1283_v57 = vadd.f32 1.0, %v1908_v22  ;;  %v1296_v42 = vmul.f32 %v1280_v38, %v1168_v28  ;;  %v1347_v41 = vmul.f32 %v2166_v33, %v1298_v45 }
 0x5e3   :  { %v1910_v3 = vpop.eup %1909  ;;  %v1299_v14 = vmul.f32 %v1283_v57, %v1171_v40  ;;  %v1345_v5 = vmul.f32 %v2166_v33, %v1296_v42 }
 0x5e4   :  { %v1281_v48 = vadd.f32 1.0, %v1910_v3 }
 0x5e5   :  { %v1912_v49 = vpop.eup %1911  ;;  %v1348_v9 = vmul.f32 %v2166_v33, %v1299_v14 }
 0x5e6   :  { %v1297_v47 = vmul.f32 %v1281_v48, %v1169_v25  ;;  %v1286_v52 = vadd.f32 1.0, %v1912_v49 }
 0x5e7   :  { %v1914_v51 = vpop.eup %1913  ;;  %v1366_v50 = vpack.c.bf16 %v1348_v9, %v1347_v41 }
 0x5e8   :  { %v1916_v4 = vpop.eup %1915  ;;  %v1346_v53 = vmul.f32 %v2166_v33, %v1297_v47  ;;  %v1284_v58 = vadd.f32 1.0, %v1914_v51  ;;  %v1302_v11 = vmul.f32 %v1286_v52, %v1174_v0 }
 0x5e9   :  { %v1287_v15 = vadd.f32 1.0, %v1916_v4 }
 0x5ea   :  { %v1365_v56 = vpack.c.bf16 %v1346_v53, %v1345_v5  ;;  %v1918_v18 = vpop.eup %1917  ;;  %v1300_v10 = vmul.f32 %v1284_v58, %v1172_v62  ;;  %v1351_v46 = vmul.f32 %v2166_v33, %v1302_v11 }
 0x5eb   :  { %v1303_v8 = vmul.f32 %v1287_v15, %v1175_v43  ;;  %v1285_v6 = vadd.f32 1.0, %v1918_v18 }
 0x5ec   :  { %1792 = vmatprep.mubr.msk.bf16.mxu0 %vm1393_vm4, %v1365_v56  ;;  %v1349_v1 = vmul.f32 %v2166_v33, %v1300_v10 }
 0x5ed   :  { %1793 = vmatmul.mubr.msk.bf16.gmra.mxu0 %vm1393_vm4, %v1366_v50  ;;  %v1301_v17 = vmul.f32 %v1285_v6, %v1173_v63  ;;  %v1352_v7 = vmul.f32 %v2166_v33, %v1303_v8 }
 0x5ef   :  { %v1350_v24 = vmul.f32 %v2166_v33, %v1301_v17  ;;  %v1368_v13 = vpack.c.bf16 %v1352_v7, %v1351_v46 }
 0x5f1   :  { %v1786_v16 = vpop.f32.mrf.mxu0  ;;  %v1367_v60 = vpack.c.bf16 %v1350_v24, %v1349_v1 }
 0x5f2   :  { %1518 = vst.msk [vmem:[%s2648_s17 + $0x10] sm:$0xff] %vm1515_vm5, %v1786_v16 }
 0x5f3   :  { %v1452_v26 = vpop.f32.mrf.mxu0  ;;  %1796 = vmatprep.mubr.msk.bf16.mxu0 %vm1393_vm4, %v1367_v60 }
 0x5f4   :  { %1516 = vst.msk [vmem:[%s2648_s17] sm:$0xff] %vm1515_vm5, %v1452_v26 }
 0x5f5   :  { %v1787_v19 = vpop.f32.mrf.mxu0  ;;  %1797 = vmatmul.mubr.msk.bf16.gmra.mxu0 %vm1393_vm4, %v1368_v13 }
 0x5f6   :  { %1519 = vst.msk [vmem:[%s2648_s17 + $0x18] sm:$0xff] %vm1515_vm5, %v1787_v19 }
 0x5f7   :  { %v1455_v55 = vpop.f32.mrf.mxu0 }
 0x5f8   :  { %1517 = vst.msk [vmem:[%s2648_s17 + $0x8] sm:$0xff] %vm1515_vm5, %v1455_v55 }
 0x5f9   :  { %v1790_v33 = vpop.f32.mrf.mxu0 }
 0x5fa   :  { %1522 = vst.msk [vmem:[%s2648_s17 + $0x30] sm:$0xff] %vm1515_vm5, %v1790_v33 }
 0x5fb   :  { %v1468_v34 = vpop.f32.mrf.mxu0 }
 0x5fc   :  { %1520 = vst.msk [vmem:[%s2648_s17 + $0x20] sm:$0xff] %vm1515_vm5, %v1468_v34 }
 0x5fd   :  { %v1791_v54 = vpop.f32.mrf.mxu0 }
 0x5fe   :  { %1523 = vst.msk [vmem:[%s2648_s17 + $0x38] sm:$0xff] %vm1515_vm5, %v1791_v54 }
 0x5ff   :  { %v1471_v27 = vpop.f32.mrf.mxu0 }
 0x600   :  { %1521 = vst.msk [vmem:[%s2648_s17 + $0x28] sm:$0xff] %vm1515_vm5, %v1471_v27 }
 0x6ad   :  { %v1794_v30 = vpop.f32.mrf.mxu0 }
 0x6ae   :  { %1526 = vst.msk [vmem:[%s2648_s17 + $0x50] sm:$0xff] %vm1515_vm5, %v1794_v30 }
 0x6af   :  { %v1484_v2 = vpop.f32.mrf.mxu0 }
 0x6b0   :  { %1524 = vst.msk [vmem:[%s2648_s17 + $0x40] sm:$0xff] %vm1515_vm5, %v1484_v2 }
 0x6b1   :  { %v1795_v21 = vpop.f32.mrf.mxu0 }
 0x6b2   :  { %1527 = vst.msk [vmem:[%s2648_s17 + $0x58] sm:$0xff] %vm1515_vm5, %v1795_v21 }
 0x6b3   :  { %v1487_v20 = vpop.f32.mrf.mxu0 }
 0x6b4   :  { %1525 = vst.msk [vmem:[%s2648_s17 + $0x48] sm:$0xff] %vm1515_vm5, %v1487_v20 }
 0x6b5   :  { %v1798_v23 = vpop.f32.mrf.mxu0 }
 0x6b6   :  { %1530 = vst.msk [vmem:[%s2648_s17 + $0x70] sm:$0xff] %vm1515_vm5, %v1798_v23 }
 0x6b7   :  { %v1500_v31 = vpop.f32.mrf.mxu0 }
 0x6b8   :  { %1528 = vst.msk [vmem:[%s2648_s17 + $0x60] sm:$0xff] %vm1515_vm5, %v1500_v31 }
 0x6b9   :  { %v1799_v29 = vpop.f32.mrf.mxu0 }
 0x6ba   :  { %1531 = vst.msk [vmem:[%s2648_s17 + $0x78] sm:$0xff] %vm1515_vm5, %v1799_v29 }
 0x6bb   :  { %v1503_v59 = vpop.f32.mrf.mxu0 }
 0x6bc   :  { %1529 = vst.msk [vmem:[%s2648_s17 + $0x68] sm:$0xff] %vm1515_vm5, %v1503_v59 }

// kernel: medsam_lite_forward.6
= control target key start
LH: loop header
LB: loop body
LE: loop exit
PB: predicated region body
PF: predicated region fallthrough
CT: control target
= control target key end

     0   :  { %v6228_v0 = vmov 0.0   ;;  %vm6229_vm0 = vmmov 0   ;;  %vm182_vm1 = vcmask 261120   ;;  %vm232_vm2 = vcmask 130048   ;;  %s6234_s27 = smov 80   ;;  %s8355_s5 = inlined_call_operand.vmem [shape: bf16[32,96], index: 5, kind: input, shape index: {}]   ;;  %s8356_s0 = inlined_call_operand.vmem [shape: f32[2,8,32], index: 0, kind: input, shape index: {}]   ;;  %s8357_s6 = inlined_call_operand.vmem [shape: f32[1,96], index: 6, kind: input, shape index: {}]   ;;  %s8358_s7 = inlined_call_operand.vmem [shape: bf16[32,32], index: 7, kind: input, shape index: {}]   ;;  %s8359_s9 = inlined_call_operand.vmem [shape: bf16[32,48], index: 9, kind: input, shape index: {}]   ;;  %s8360_s8 = inlined_call_operand.vmem [shape: f32[1,32], index: 8, kind: input, shape index: {}]   ;;  %s8361_s1 = inlined_call_operand.vmem [shape: f32[2,64,32], index: 1, kind: input, shape index: {}]   ;;  %s8362_s2 = inlined_call_operand.vmem [shape: f32[64,32], index: 2, kind: input, shape index: {}]   ;;  %s8363_s10 = inlined_call_operand.vmem [shape: f32[1,48], index: 10, kind: input, shape index: {}]   ;;  %s8364_s3 = inlined_call_operand.vmem [shape: f32[5,32], index: 3, kind: input, shape index: {}]   ;;  %s8365_s4 = inlined_call_operand.vmem [shape: f32[5,32], index: 4, kind: input, shape index: {}]   ;;  %s8366_s11 = inlined_call_operand.vmem [shape: bf16[16,32], index: 11, kind: input, shape index: {}]   ;;  %s8367_s12 = inlined_call_operand.vmem [shape: f32[1,32], index: 12, kind: input, shape index: {}]   ;;  %s8368_s13 = inlined_call_operand.vmem [shape: bf16[32,64], index: 13, kind: input, shape index: {}]   ;;  %s8369_s15 = inlined_call_operand.vmem [shape: bf16[64,32], index: 15, kind: input, shape index: {}]   ;;  %s8370_s14 = inlined_call_operand.vmem [shape: f32[1,64], index: 14, kind: input, shape index: {}]   ;;  %s8371_s16 = inlined_call_operand.vmem [shape: f32[1,32], index: 16, kind: input, shape index: {}]   ;;  %s8372_s17 = inlined_call_operand.vmem [shape: bf16[32,48], index: 17, kind: input, shape index: {}]   ;;  %s8373_s18 = inlined_call_operand.vmem [shape: f32[1,48], index: 18, kind: input, shape index: {}]   ;;  %s8374_s19 = inlined_call_operand.vmem [shape: bf16[16,32], index: 19, kind: input, shape index: {}]   ;;  %s8375_s21 = inlined_call_operand.vmem [shape: bf16[32,48], index: 21, kind: input, shape index: {}]   ;;  %s8376_s20 = inlined_call_operand.vmem [shape: f32[1,32], index: 20, kind: input, shape index: {}]   ;;  %s8377_s22 = inlined_call_operand.vmem [shape: f32[1,48], index: 22, kind: input, shape index: {}]   ;;  %s8378_s26 = inlined_call_operand.vmem [shape: f32[2,64,32], index: 26, kind: output, shape index: {1}]   ;;  %s8379_s23 = inlined_call_operand.vmem [shape: bf16[16,32], index: 23, kind: input, shape index: {}]   ;;  %s8380_s24 = inlined_call_operand.vmem [shape: f32[1,32], index: 24, kind: input, shape index: {}]   ;;  %s8381_s25 = inlined_call_operand.vmem [shape: f32[2,8,32], index: 25, kind: output, shape index: {0}]  }
   0x1   :  { %8390 = sst [smem:[#allocation2_spill]] %s8355_s5  ;;  %5385 = vmatprep.subr.bf16.mxu0 %v6228_v0  ;;  %5389 = vmatprep.mubr.msk.bf16.mxu0 %vm6229_vm0, %v6228_v0  ;;  %v159_v19 = vlaneseq  ;;  %v6231_v22 = vmov -1e+30   ;;  %vm332_vm4 = vcmask 64512   ;;  %vm362_vm5 = vcmask 1043456  }
   0x2   :  { %8391 = sst [smem:[#allocation3_spill]] %s8356_s0  ;;  %5393 = vmatprep.subr.bf16.mxu1 %v6228_v0  ;;  %5395 = vmatprep.mubr.msk.bf16.mxu1 %vm6229_vm0, %v6228_v0  ;;  %s6232_s0 = smov 64   ;;  %vm1308_vm6 = vcmask 523264  }
   0x3   :  { %8392 = sst [smem:[#allocation4_spill]] %s8357_s6  ;;  %v160_v20 = vand.u32 127, %v159_v19 }
   0x4   :  { %8393 = sst [smem:[#allocation5_spill]] %s8358_s7 }
   0x5   :  { %8394 = sst [smem:[#allocation6_spill]] %s8359_s9  ;;  %vm161_vm3 = vcmp.lt.s32.totalorder %v160_v20, 7  ;;  %s6235_s9 = smov 48  }
   0x6   :  { %8395 = sst [smem:[#allocation7_spill]] %s8360_s8  ;;  %v6425_v23 = vsel %vm161_vm3, 0.0, %v6231_v22 }
   0x7   :  { %8396 = sst [smem:[#allocation8_spill]] %s8361_s1  ;;  %s6230_s1 = smov 96  }
   0x8   :  { %8397 = sst [smem:[#allocation9_spill]] %s8362_s2  ;;  %s6233_s2 = smov 112  }
   0x9   :  { %8398 = sst [smem:[#allocation10_spill]] %s8363_s10 }
   0xa   :  { %8399 = sst [smem:[#allocation11_spill]] %s8364_s3 }
   0xb   :  { %8400 = sst [smem:[#allocation12_spill]] %s8365_s4 }
   0xc   :  { %s8401_s7 = sld [smem:[#allocation2_spill]] }
   0xd   :  { %s8402_s29 = sld [smem:[#allocation3_spill]] }
   0xe   :  { %s8403_s6 = sld [smem:[#allocation4_spill]] }
   0xf   :  { %s8404_s10 = sld [smem:[#allocation5_spill]] }
  0x10   :  { %s8405_s8 = sld [smem:[#allocation6_spill]] }
  0x11   :  { %s8406_s28 = sld [smem:[#allocation7_spill]] }
  0x12   :  { %v5956_v1 = vld [vmem:[%s8401_s7 + $0x8] sm:$0xff]   ;;  %v5957_v2 = vld [vmem:[%s8401_s7] sm:$0xff]   ;;  %s8407_s3 = sld [smem:[#allocation8_spill]] }
  0x13   :  { %5386 = vmatpush3.bf16.msra.mxu0 %v5956_v1  ;;  %v6387_v3 = vld [vmem:[%s8402_s29] sm:$0xff]  ;;  %v6392_v4 = vld [vmem:[%s8402_s29 + $0x8] sm:$0xff]  ;;  %s8410_s30 = sld [smem:[#allocation11_spill]] }
  0x14   :  { %5387 = vmatprep.subr.bf16.mxu0 %v6228_v0  ;;  %v163_v5 = vpack.c.bf16 %v6392_v4, %v6387_v3  ;;  %v4995_v6 = vld [vmem:[%s8403_s6] ss:$0 sm:$0xff]  ;;  %s8408_s6 = sld [smem:[#allocation9_spill]] }
  0x15   :  { %v5958_v62 = vld [vmem:[%s8404_s10] sm:$0xff]  }
  0x17   :  { %5388 = vmatpush3.bf16.msra.mxu0 %v5957_v2 }
  0x18   :  { %5399 = vmatprep.subr.bf16.mxu0 %v6228_v0 }
  0x1a   :  { %5390 = vmatmul.mubr.msk.bf16.vlgmr.msra.gmra.mxu0 %vm182_vm1, %v163_v5 }
  0x1b   :  { %5401 = vmatprep.mubr.msk.bf16.mxu0 %vm6229_vm0, %v6228_v0 }
  0xda   :  { %v220_v7 = vpop.f32.mrf.mxu0 }
  0xdb   :  { %v221_v8 = vadd.f32 %v4995_v6, %v220_v7 }
  0xdc   :  { %v5391_v9 = vpop.f32.mrf.mxu0 }
  0xdd   :  { %v6404_v10 = vpack.c.bf16 %v221_v8, %v221_v8 }
  0xde   :  { %v223_v11 = vpop.f32.mrf.mxu0 }
  0xdf   :  { %v224_v12 = vadd.f32 %v4995_v6, %v223_v11  ;;  %230 = vrot.lane.b32.xlu0 %v6404_v10, %s6230_s1 }
  0xe0   :  { %v5392_v13 = vpop.f32.mrf.mxu0 }
  0xe1   :  { %v6408_v14 = vpack.c.bf16 %v224_v12, %v224_v12 }
  0xe3   :  { %280 = vrot.lane.b32.xlu0 %v6408_v14, %s6230_s1 }
 0x151   :  { %v231_v15 = vpop.permute.xlu0 %230 }
 0x152   :  { %v237_v16 = vsel %vm232_vm2, %v231_v15, 0 }
 0x153   :  { %5394 = vmatpush3.bf16.xpose.msra.mxu1 %v237_v16 }
 0x154   :  { %5405 = vmatprep.subr.bf16.mxu1 %v6228_v0 }
 0x155   :  { %v281_v17 = vpop.permute.xlu0 %280 }
 0x156   :  { %v286_v18 = vsel %vm232_vm2, %v281_v17, 0 }
 0x157   :  { %5400 = vmatpush3.bf16.xpose.msra.mxu0 %v286_v18 }
 0x158   :  { %5411 = vmatprep.subr.bf16.mxu0 %v6228_v0 }
 0x15a   :  { %5396 = vmatmul.mubr.msk.bf16.vlgmr.msra.gmra.mxu1 %vm232_vm2, %v6404_v10 }
 0x15b   :  { %5407 = vmatprep.mubr.msk.bf16.mxu1 %vm6229_vm0, %v6228_v0 }
 0x15e   :  { %5402 = vmatmul.mubr.msk.bf16.vlgmr.msra.gmra.mxu0 %vm232_vm2, %v6408_v14 }
 0x15f   :  { %5413 = vmatprep.mubr.msk.bf16.mxu0 %vm6229_vm0, %v6228_v0 }
 0x21a   :  { %v273_v21 = vpop.f32.mrf.mxu1 }
 0x21b   :  { %v328_v24 = vmul.f32 0.25, %v273_v21 }
 0x21c   :  { %v5397_v25 = vpop.f32.mrf.mxu1 }
 0x21d   :  { %v330_v26 = vadd.f32 %v328_v24, %v6425_v23 }
 0x21e   :  { %v276_v27 = vpop.f32.mrf.mxu1  ;;  %v322_v28 = vpop.f32.mrf.mxu0 }
 0x21f   :  { %v329_v29 = vmul.f32 0.25, %v322_v28  ;;  %v333_v30 = vsel %vm332_vm4, %v330_v26, -inf }
 0x220   :  { %334 = vmax.xlane.f32.xlu1 %v333_v30  ;;  %v5398_v31 = vpop.f32.mrf.mxu1  ;;  %v5403_v32 = vpop.f32.mrf.mxu0 }
 0x221   :  { %v331_v33 = vadd.f32 %v329_v29, %v6425_v23 }
 0x222   :  { %v325_v34 = vpop.f32.mrf.mxu0 }
 0x223   :  { %v336_v35 = vsel %vm332_vm4, %v331_v33, -inf }
 0x224   :  { %337 = vmax.xlane.f32.xlu1 %v336_v35  ;;  %v5404_v36 = vpop.f32.mrf.mxu0 }
 0x235   :  { %357 = vrot.lane.b32.xlu1 %v6404_v10, %s6232_s0 }
 0x2a9   :  { %v335_v37 = vpop.xlane.xlu1 %334 }
 0x2aa   :  { %v339_v38 = vsub.f32 %v330_v26, %v335_v37 }
 0x2ac   :  { %v341_v39 = vmul.f32 1.442695, %v339_v38 }
 0x2ad   :  { %v338_v40 = vpop.xlane.xlu1 %337 }
 0x2ae   :  { %5972 = vpow2.f32 %v341_v39  ;;  %v340_v41 = vsub.f32 %v331_v33, %v338_v40 }
 0x2b0   :  { %v343_v42 = vmul.f32 1.442695, %v340_v41 }
 0x2b1   :  { %v358_v43 = vpop.permute.xlu1 %357 }
 0x2b2   :  { %5974 = vpow2.f32 %v343_v42  ;;  %v364_v44 = vsel %vm362_vm5, %v358_v43, 0 }
 0x2b3   :  { %5406 = vmatpush3.bf16.msra.mxu1 %v364_v44 }
 0x2b4   :  { %5417 = vmatprep.subr.bf16.mxu1 %v6228_v0 }
 0x2bb   :  { %v5973_v45 = vpop.eup %5972 }
 0x2bc   :  { %v345_v46 = vsel %vm332_vm4, %v5973_v45, 0.0 }
 0x2bd   :  { %346 = vadd.xlane.f32.xlu0 %v345_v46 }
 0x2bf   :  { %v5975_v47 = vpop.eup %5974 }
 0x2c0   :  { %v348_v48 = vsel %vm332_vm4, %v5975_v47, 0.0 }
 0x2c1   :  { %349 = vadd.xlane.f32.xlu1 %v348_v48 }
 0x2d2   :  { %406 = vrot.lane.b32.xlu1 %v6408_v14, %s6232_s0  ;;  %s8411_s0 = sld [smem:[#allocation12_spill]] }
 0x2d3   :  { %505 = vrot.lane.b32.xlu0 %v6404_v10, %s6233_s2 }
 0x2d6   :  { %507 = vrot.lane.b32.xlu1 %v6404_v10, %s6234_s27 }
 0x2da   :  { %557 = vrot.lane.b32.xlu1 %v6408_v14, %s6234_s27  ;;  %s6236_s27 = smov 120  }
 0x2de   :  { %555 = vrot.lane.b32.xlu1 %v6408_v14, %s6233_s2 }
 0x346   :  { %v347_v49 = vpop.xlane.xlu0 %346 }
 0x347   :  { %5976 = vrcp.f32 %v347_v49 }
 0x34a   :  { %v350_v50 = vpop.xlane.xlu1 %349  ;;  %v506_v61 = vpop.permute.xlu0 %505 }
 0x34b   :  { %5978 = vrcp.f32 %v350_v50 }
 0x34e   :  { %v407_v51 = vpop.permute.xlu1 %406 }
 0x34f   :  { %v412_v52 = vsel %vm362_vm5, %v407_v51, 0 }
 0x350   :  { %5412 = vmatpush3.bf16.msra.mxu0 %v412_v52 }
 0x351   :  { %5423 = vmatprep.subr.bf16.mxu0 %v6228_v0 }
 0x352   :  { %v508_v58 = vpop.permute.xlu1 %507 }
 0x353   :  { %v513_v60 = vsel %vm232_vm2, %v508_v58, 0 }
 0x354   :  { %v5977_v53 = vpop.eup %5976 }
 0x355   :  { %v353_v54 = vmul.f32 %v5977_v53, %v5973_v45 }
 0x356   :  { %v558_v2 = vpop.permute.xlu1 %557 }
 0x357   :  { %v355_v55 = vpack.c.bf16 %v353_v54, %v353_v54  ;;  %v563_v11 = vsel %vm232_vm2, %v558_v2, 0 }
 0x358   :  { %v5979_v56 = vpop.eup %5978 }
 0x359   :  { %5408 = vmatmul.mubr.msk.bf16.vlgmr.msra.gmra.mxu1 %vm332_vm4, %v355_v55  ;;  %v354_v57 = vmul.f32 %v5979_v56, %v5975_v47  ;;  %v5959_v56 = vld [vmem:[%s8404_s10 + $0x8] sm:$0xff]   ;;  %s8409_s10 = sld [smem:[#allocation10_spill]] }
 0x35a   :  { %5419 = vmatprep.mubr.msk.bf16.mxu1 %vm6229_vm0, %v6228_v0  ;;  %5418 = vmatpush3.bf16.msra.mxu1 %v5958_v62  ;;  %v556_v17 = vpop.permute.xlu1 %555 }
 0x35b   :  { %v356_v59 = vpack.c.bf16 %v354_v57, %v354_v57  ;;  %5429 = vmatprep.subr.bf16.mxu1 %v6228_v0 }
 0x35d   :  { %5414 = vmatmul.mubr.msk.bf16.vlgmr.msra.gmra.mxu0 %vm332_vm4, %v356_v59 }
 0x35e   :  { %5424 = vmatpush3.bf16.xpose.msra.mxu0 %v513_v60  ;;  %5425 = vmatprep.mubr.msk.bf16.mxu0 %vm6229_vm0, %v6228_v0 }
 0x35f   :  { %5435 = vmatprep.subr.bf16.mxu0 %v6228_v0 }
 0x365   :  { %5426 = vmatmul.mubr.msk.bf16.vlgmr.msra.gmra.mxu0 %vm232_vm2, %v506_v61 }
 0x366   :  { %5437 = vmatprep.mubr.msk.bf16.mxu0 %vm6229_vm0, %v6228_v0 }
 0x419   :  { %v400_v63 = vpop.f32.mrf.mxu1 }
 0x41b   :  { %v5409_v1 = vpop.f32.mrf.mxu1 }
 0x41d   :  { %v403_v5 = vpop.f32.mrf.mxu1  ;;  %v448_v6 = vpop.f32.mrf.mxu0 }
 0x41e   :  { %v454_v7 = vpack.c.bf16 %v448_v6, %v400_v63  ;;  %v6497_v5 = vld [vmem:[%s8405_s8 + $0x8] sm:$0xff]   ;;  %v6504_v6 = vld [vmem:[%s8405_s8] sm:$0xff]  }
 0x41f   :  { %v5410_v8 = vpop.f32.mrf.mxu1  ;;  %v5415_v9 = vpop.f32.mrf.mxu0 }
 0x420   :  { %5420 = vmatmul.mubr.msk.bf16.vlgmr.msra.gmra.mxu1 %vm232_vm2, %v454_v7  ;;  %v5011_v8 = vld [vmem:[%s8406_s28] ss:$0 sm:$0xff] }
 0x421   :  { %5430 = vmatpush3.bf16.xpose.msra.mxu1 %v563_v11  ;;  %v451_v12 = vpop.f32.mrf.mxu0  ;;  %5431 = vmatprep.mubr.msk.bf16.mxu1 %vm6229_vm0, %v6228_v0 }
 0x422   :  { %5441 = vmatprep.subr.bf16.mxu1 %v6228_v0 }
 0x423   :  { %v5416_v13 = vpop.f32.mrf.mxu0 }
 0x425   :  { %v549_v15 = vpop.f32.mrf.mxu0 }
 0x426   :  { %v605_v16 = vmul.f32 0.25, %v549_v15 }
 0x427   :  { %v5427_v18 = vpop.f32.mrf.mxu0 }
 0x428   :  { %5432 = vmatmul.mubr.msk.bf16.vlgmr.msra.gmra.mxu1 %vm232_vm2, %v556_v17  ;;  %v607_v20 = vadd.f32 %v605_v16, %v6425_v23 }
 0x429   :  { %v552_v21 = vpop.f32.mrf.mxu0  ;;  %5443 = vmatprep.mubr.msk.bf16.mxu1 %vm6229_vm0, %v6228_v0 }
 0x42a   :  { %v609_v22 = vsel %vm332_vm4, %v607_v20, -inf  ;;  %v6519_v21 = vld [vmem:[%s8407_s3] sm:$0xff] }
 0x42b   :  { %610 = vmax.xlane.f32.xlu1 %v609_v22  ;;  %v5428_v24 = vpop.f32.mrf.mxu0  ;;  %v6524_v22 = vld [vmem:[%s8407_s3 + $0x8] sm:$0xff] }
 0x42c   :  { %v101_v24 = vld [vmem:[%s8408_s6] sm:$0xff] }
 0x4b4   :  { %v611_v25 = vpop.xlane.xlu1 %610 }
 0x4b5   :  { %v615_v26 = vsub.f32 %v607_v20, %v611_v25  ;;  %v102_v25 = vld [vmem:[%s8408_s6 + $0x8] sm:$0xff] }
 0x4b7   :  { %v617_v27 = vmul.f32 1.442695, %v615_v26  ;;  %v829_v26 = vadd.f32 %v101_v24, %v6519_v21 }
 0x4b9   :  { %5980 = vpow2.f32 %v617_v27  ;;  %v830_v27 = vadd.f32 %v102_v25, %v6524_v22 }
 0x4c6   :  { %v5981_v28 = vpop.eup %5980 }
 0x4c7   :  { %v621_v29 = vsel %vm332_vm4, %v5981_v28, 0.0 }
 0x4c8   :  { %622 = vadd.xlane.f32.xlu1 %v621_v29 }
 0x4e0   :  { %v6471_v30 = vpop.f32.mrf.mxu1 }
 0x4e2   :  { %v5421_v31 = vpop.f32.mrf.mxu1 }
 0x4e3   :  { %v6543_v31 = vld [vmem:[%s8407_s3 + $0x10] sm:$0xff] }
 0x4e4   :  { %v6473_v32 = vpop.f32.mrf.mxu1 }
 0x4e6   :  { %v5422_v33 = vpop.f32.mrf.mxu1 }
 0x4e7   :  { %v103_v33 = vld [vmem:[%s8408_s6 + $0x10] sm:$0xff] }
 0x4e8   :  { %v599_v34 = vpop.f32.mrf.mxu1 }
 0x4e9   :  { %v606_v35 = vmul.f32 0.25, %v599_v34  ;;  %v104_v34 = vld [vmem:[%s8408_s6 + $0x18] sm:$0xff] }
 0x4ea   :  { %v5433_v36 = vpop.f32.mrf.mxu1 }
 0x4eb   :  { %v608_v37 = vadd.f32 %v606_v35, %v6425_v23  ;;  %v6559_v35 = vld [vmem:[%s8407_s3 + $0x20] sm:$0xff] }
 0x4ec   :  { %v602_v38 = vpop.f32.mrf.mxu1 }
 0x4ed   :  { %v612_v39 = vsel %vm332_vm4, %v608_v37, -inf  ;;  %v105_v38 = vld [vmem:[%s8408_s6 + $0x20] sm:$0xff] }
 0x4ee   :  { %613 = vmax.xlane.f32.xlu0 %v612_v39  ;;  %v5434_v40 = vpop.f32.mrf.mxu1  ;;  %v106_v39 = vld [vmem:[%s8408_s6 + $0x28] sm:$0xff] }
 0x504   :  { %681 = vrot.lane.b32.xlu0 %v6408_v14, %s6235_s9 }
 0x551   :  { %v623_v48 = vpop.xlane.xlu1 %622 }
 0x577   :  { %v614_v41 = vpop.xlane.xlu0 %613 }
 0x578   :  { %v616_v42 = vsub.f32 %v608_v37, %v614_v41  ;;  %v6566_v37 = vld [vmem:[%s8407_s3 + $0x28] sm:$0xff] }
 0x57a   :  { %v619_v43 = vmul.f32 1.442695, %v616_v42 }
 0x57b   :  { %v682_v44 = vpop.permute.xlu0 %681 }
 0x57c   :  { %5982 = vpow2.f32 %v619_v43  ;;  %v687_v45 = vsel %vm362_vm5, %v682_v44, 0  ;;  %v831_v44 = vadd.f32 %v103_v33, %v6543_v31 }
 0x57d   :  { %5442 = vmatpush3.bf16.msra.mxu1 %v687_v45  ;;  %5984 = vrcp.f32 %v623_v48 }
 0x57e   :  { %5453 = vmatprep.subr.bf16.mxu1 %v6228_v0 }
 0x589   :  { %v5983_v46 = vpop.eup %5982 }
 0x58a   :  { %v624_v47 = vsel %vm332_vm4, %v5983_v46, 0.0  ;;  %v5985_v49 = vpop.eup %5984 }
 0x58b   :  { %625 = vadd.xlane.f32.xlu1 %v624_v47  ;;  %v629_v50 = vmul.f32 %v5985_v49, %v5981_v28  ;;  %v6536_v28 = vpack.c.bf16 %v830_v27, %v829_v26  ;;  %v834_v47 = vadd.f32 %v106_v39, %v6566_v37  ;;  %v6690_v26 = vld [vmem:[%s8409_s10] ss:$0 sm:$0xff] }
 0x58d   :  { %v631_v53 = vpack.c.bf16 %v629_v50, %v629_v50 }
 0x59c   :  { %633 = vrot.lane.b32.xlu1 %v6404_v10, %s6235_s9 }
 0x614   :  { %v626_v14 = vpop.xlane.xlu1 %625 }
 0x615   :  { %5986 = vrcp.f32 %v626_v14 }
 0x618   :  { %v634_v51 = vpop.permute.xlu1 %633 }
 0x619   :  { %v639_v52 = vsel %vm362_vm5, %v634_v51, 0 }
 0x61a   :  { %5436 = vmatpush3.bf16.msra.mxu0 %v639_v52  ;;  %v6590_v52 = vld [vmem:[%s8407_s3 + $0x30] sm:$0xff] }
 0x61b   :  { %5447 = vmatprep.subr.bf16.mxu0 %v6228_v0 }
 0x61d   :  { %5438 = vmatmul.mubr.msk.bf16.vlgmr.msra.gmra.mxu0 %vm332_vm4, %v631_v53 }
 0x61e   :  { %5449 = vmatprep.mubr.msk.bf16.mxu0 %vm6229_vm0, %v6228_v0  ;;  %5448 = vmatpush3.bf16.msra.mxu0 %v5959_v56 }
 0x622   :  { %v5987_v54 = vpop.eup %5986 }
 0x623   :  { %v630_v10 = vmul.f32 %v5987_v54, %v5983_v46  ;;  %v833_v46 = vadd.f32 %v105_v38, %v6559_v35  ;;  %v6597_v54 = vld [vmem:[%s8407_s3 + $0x38] sm:$0xff] }
 0x625   :  { %v632_v55 = vpack.c.bf16 %v630_v10, %v630_v10  ;;  %v6592_v53 = vpack.c.bf16 %v834_v47, %v833_v46  ;;  %v107_v10 = vld [vmem:[%s8408_s6 + $0x30] sm:$0xff] }
 0x627   :  { %5444 = vmatmul.mubr.msk.bf16.vlgmr.msra.gmra.mxu1 %vm332_vm4, %v632_v55  ;;  %v108_v55 = vld [vmem:[%s8408_s6 + $0x38] sm:$0xff] }
 0x628   :  { %5457 = vmatprep.mubr.msk.bf16.mxu1 %vm6229_vm0, %v6228_v0  ;;  %5454 = vmatpush3.bf16.msra.mxu1 %v6497_v5 }
 0x629   :  { %5455 = vmatprep.subr.bf16.mxu1 %v6228_v0 }
 0x62c   :  { %5456 = vmatpush3.bf16.msra.mxu1 %v6504_v6 }
 0x6dd   :  { %v675_v57 = vpop.f32.mrf.mxu0 }
 0x6df   :  { %v5439_v58 = vpop.f32.mrf.mxu0 }
 0x6e0   :  { %v6614_v58 = vld [vmem:[%s8407_s3 + $0x48] sm:$0xff] }
 0x6e1   :  { %v678_v59 = vpop.f32.mrf.mxu0 }
 0x6e2   :  { %v835_v59 = vadd.f32 %v107_v10, %v6590_v52 }
 0x6e3   :  { %v5440_v60 = vpop.f32.mrf.mxu0 }
 0x6e4   :  { %v836_v60 = vadd.f32 %v108_v55, %v6597_v54 }
 0x6e7   :  { %v723_v61 = vpop.f32.mrf.mxu1 }
 0x6e8   :  { %v729_v62 = vpack.c.bf16 %v723_v61, %v675_v57  ;;  %v6609_v57 = vld [vmem:[%s8407_s3 + $0x40] sm:$0xff] }
 0x6e9   :  { %v5445_v63 = vpop.f32.mrf.mxu1  ;;  %v837_v61 = vadd.f32 %v101_v24, %v6609_v57 }
 0x6ea   :  { %5450 = vmatmul.mubr.msk.bf16.vlgmr.msra.gmra.mxu0 %vm232_vm2, %v729_v62  ;;  %v838_v62 = vadd.f32 %v102_v25, %v6614_v58  ;;  %v6625_v63 = vpack.c.bf16 %v836_v60, %v835_v59 }
 0x6eb   :  { %v726_v1 = vpop.f32.mrf.mxu1  ;;  %5465 = vmatprep.mubr.msk.bf16.mxu0 %vm182_vm1, %v6536_v28 }
 0x6ec   :  { %v6627_v1 = vpack.c.bf16 %v838_v62, %v837_v61 }
 0x6ed   :  { %v5446_v2 = vpop.f32.mrf.mxu1 }
 0x6ee   :  { %v6632_v2 = vld [vmem:[%s8407_s3 + $0x50] sm:$0xff] }
 0x7aa   :  { %v773_v7 = vpop.f32.mrf.mxu0 }
 0x7ab   :  { %v780_v9 = vadd.f32 %v773_v7, %v6471_v30  ;;  %v6637_v7 = vld [vmem:[%s8407_s3 + $0x58] sm:$0xff] }
 0x7ac   :  { %v5451_v11 = vpop.f32.mrf.mxu0 }
 0x7ad   :  { %v788_v12 = vadd.f32 %v5011_v8, %v780_v9  ;;  %v6647_v9 = vld [vmem:[%s8407_s3 + $0x68] sm:$0xff]  ;;  %v839_v11 = vadd.f32 %v103_v33, %v6632_v2 }
 0x7ae   :  { %v776_v13 = vpop.f32.mrf.mxu0 }
 0x7af   :  { %v781_v15 = vadd.f32 %v776_v13, %v6473_v32  ;;  %v790_v16 = vsel %vm182_vm1, %v788_v12, 0.0  ;;  %v6548_v32 = vld [vmem:[%s8407_s3 + $0x18] sm:$0xff] }
 0x7b0   :  { %791 = vadd.xlane.f32.xlu1 %v790_v16  ;;  %v5452_v17 = vpop.f32.mrf.mxu0  ;;  %v832_v45 = vadd.f32 %v104_v34, %v6548_v32 }
 0x7b1   :  { %v789_v18 = vadd.f32 %v5011_v8, %v781_v15  ;;  %v6642_v8 = vld [vmem:[%s8407_s3 + $0x60] sm:$0xff]  ;;  %v842_v15 = vadd.f32 %v106_v39, %v6647_v9  ;;  %v6695_v39 = vshrl.u32 %v159_v19, 7 }
 0x7b2   :  { %v6585_v51 = vpack.c.bf16 %v832_v45, %v831_v44  ;;  %v841_v13 = vadd.f32 %v105_v38, %v6642_v8  ;;  %v6707_v44 = vld [vmem:[%s8411_s0] sm:$0x1f] }
 0x7b3   :  { %v793_v20 = vsel %vm182_vm1, %v789_v18, 0.0 }
 0x7b4   :  { %794 = vadd.xlane.f32.xlu0 %v793_v20  ;;  %v6661_v17 = vpack.c.bf16 %v842_v15, %v841_v13  ;;  %v6671_v20 = vld [vmem:[%s8407_s3 + $0x78] sm:$0xff] }
 0x7b5   :  { %v844_v25 = vadd.f32 %v108_v55, %v6671_v20 }
 0x7c1   :  { %920 = vrot.lane.b32.xlu1 %v6497_v5, %s6233_s2 }
 0x7ca   :  { %918 = vrot.lane.b32.xlu0 %v6504_v6, %s6233_s2 }
 0x839   :  { %v792_v29 = vpop.xlane.xlu1 %791 }
 0x83a   :  { %v797_v30 = vmul.f32 0.03125, %v792_v29 }
 0x83c   :  { %v6561_v36 = vsub.f32 %v788_v12, %v797_v30  ;;  %v840_v12 = vadd.f32 %v104_v34, %v6637_v7 }
 0x83d   :  { %v795_v40 = vpop.xlane.xlu0 %794  ;;  %v921_v41 = vpop.permute.xlu1 %920 }
 0x83e   :  { %v798_v42 = vmul.f32 0.03125, %v795_v40  ;;  %v801_v43 = vmul.f32 %v6561_v36, %v6561_v36  ;;  %5461 = vmatprep.subr.bf16.mxu0 %v921_v41  ;;  %v6657_v16 = vpack.c.bf16 %v840_v12, %v839_v11  ;;  %v819_v40 = vsub.s32 0, %v6695_v39 }
 0x83f   :  { %5462 = vmatpush3.bf16.msra.mxu0 %v921_v41  ;;  %v6701_v41 = vld [vmem:[%s8410_s30] sm:$0x1f] }
 0x840   :  { %v6580_v48 = vsub.f32 %v789_v18, %v798_v42  ;;  %v803_v49 = vsel %vm182_vm1, %v801_v43, 0.0  ;;  %v6666_v18 = vld [vmem:[%s8407_s3 + $0x70] sm:$0xff]  ;;  %v820_v42 = vrot.slane %v6701_v41, %v819_v40  ;;  %v826_v19 = vrot.slane %v6707_v44, %v819_v40 }
 0x841   :  { %804 = vadd.xlane.f32.xlu1 %v803_v49  ;;  %v919_v14 = vpop.permute.xlu0 %918  ;;  %v843_v24 = vadd.f32 %v107_v10, %v6666_v18 }
 0x842   :  { %v802_v50 = vmul.f32 %v6580_v48, %v6580_v48  ;;  %5463 = vmatprep.subr.bf16.mxu0 %v919_v14 }
 0x843   :  { %5464 = vmatpush3.bf16.msra.mxu0 %v919_v14 }
 0x844   :  { %v806_v56 = vsel %vm182_vm1, %v802_v50, 0.0  ;;  %5501 = vmatprep.subr.bf16.mxu0 %v6228_v0 }
 0x845   :  { %807 = vadd.xlane.f32.xlu0 %v806_v56 }
 0x846   :  { %5466 = vmatmul.mubr.msk.bf16.vlgmr.msra.gmra.mxu0 %vm182_vm1, %v6585_v51 }
 0x847   :  { %5469 = vmatprep.mubr.msk.bf16.mxu0 %vm182_vm1, %v6592_v53 }
 0x84e   :  { %5470 = vmatmul.mubr.msk.bf16.gmra.mxu0 %vm182_vm1, %v6625_v63 }
 0x84f   :  { %5473 = vmatprep.mubr.msk.bf16.mxu0 %vm182_vm1, %v6627_v1 }
 0x852   :  { %1058 = vrot.lane.b32.xlu1 %v6497_v5, %s6230_s1  ;;  %v6681_v5 = vpack.c.bf16 %v844_v25, %v843_v24 }
 0x856   :  { %5474 = vmatmul.mubr.msk.bf16.gmra.mxu0 %vm182_vm1, %v6657_v16  ;;  %1056 = vrot.lane.b32.xlu1 %v6504_v6, %s6230_s1 }
 0x857   :  { %5477 = vmatprep.mubr.msk.bf16.mxu0 %vm182_vm1, %v6661_v17 }
 0x85b   :  { %924 = vrot.lane.b32.xlu0 %v6690_v26, %s6233_s2 }
 0x85e   :  { %5478 = vmatmul.mubr.msk.bf16.gmra.mxu0 %vm182_vm1, %v6681_v5 }
 0x85f   :  { %5509 = vmatprep.mubr.msk.bf16.mxu0 %vm6229_vm0, %v6228_v0 }
 0x8ca   :  { %v805_v6 = vpop.xlane.xlu1 %804 }
 0x8cb   :  { %v809_v27 = vmul.f32 0.03125, %v805_v6 }
 0x8cd   :  { %v811_v29 = vadd.f32 1e-05, %v809_v27 }
 0x8ce   :  { %v808_v30 = vpop.xlane.xlu0 %807  ;;  %v1059_v33 = vpop.permute.xlu1 %1058 }
 0x8cf   :  { %5988 = vrsqrt.f32 %v811_v29  ;;  %v810_v34 = vmul.f32 0.03125, %v808_v30  ;;  %5481 = vmatprep.subr.bf16.mxu1 %v1059_v33 }
 0x8d1   :  { %v812_v38 = vadd.f32 1e-05, %v810_v34 }
 0x8d2   :  { %v1057_v60 = vpop.permute.xlu1 %1056 }
 0x8d3   :  { %5990 = vrsqrt.f32 %v812_v38 }
 0x8dc   :  { %v5989_v43 = vpop.eup %5988 }
 0x8dd   :  { %v815_v45 = vmul.f32 %v5989_v43, %v6561_v36  ;;  %v1048_v36 = vpack.c.bf16 %v6524_v22, %v6519_v21  ;;  %v1052_v21 = vpack.c.bf16 %v6614_v58, %v6609_v57  ;;  %v1053_v22 = vpack.c.bf16 %v6637_v7, %v6632_v2  ;;  %v925_v58 = vpop.permute.xlu0 %924 }
 0x8df   :  { %v821_v46 = vmul.f32 %v820_v42, %v815_v45 }
 0x8e0   :  { %v5991_v47 = vpop.eup %5990 }
 0x8e1   :  { %v816_v49 = vmul.f32 %v5991_v47, %v6580_v48  ;;  %v6712_v50 = vadd.f32 %v826_v19, %v821_v46  ;;  %v1049_v48 = vpack.c.bf16 %v6548_v32, %v6543_v31  ;;  %v1054_v31 = vpack.c.bf16 %v6647_v9, %v6642_v8 }
 0x8e3   :  { %v822_v14 = vmul.f32 %v820_v42, %v816_v49  ;;  %v845_v55 = vadd.f32 %v6712_v50, %v6387_v3  ;;  %v1050_v3 = vpack.c.bf16 %v6566_v37, %v6559_v35  ;;  %v1055_v35 = vpack.c.bf16 %v6671_v20, %v6666_v18 }
 0x8e5   :  { %v6714_v10 = vadd.f32 %v826_v19, %v822_v14 }
 0x8e7   :  { %v846_v56 = vadd.f32 %v6714_v10, %v6392_v4  ;;  %v1051_v4 = vpack.c.bf16 %v6597_v54, %v6590_v52 }
 0x8e9   :  { %v847_v59 = vpack.c.bf16 %v846_v56, %v845_v55 }
 0x8eb   :  { %5458 = vmatmul.mubr.msk.bf16.vlgmr.msra.gmra.mxu1 %vm182_vm1, %v847_v59 }
 0x8ec   :  { %5482 = vmatpush3.bf16.msra.mxu1 %v1059_v33  ;;  %5485 = vmatprep.mubr.msk.bf16.mxu1 %vm182_vm1, %v1048_v36 }
 0x8ed   :  { %5483 = vmatprep.subr.bf16.mxu1 %v1057_v60 }
 0x8f0   :  { %5484 = vmatpush3.bf16.msra.mxu1 %v1057_v60 }
 0x8f1   :  { %5513 = vmatprep.subr.bf16.mxu1 %v6228_v0 }
 0x8f3   :  { %5486 = vmatmul.mubr.msk.bf16.vlgmr.msra.gmra.mxu1 %vm182_vm1, %v1049_v48 }
 0x8f4   :  { %5489 = vmatprep.mubr.msk.bf16.mxu1 %vm182_vm1, %v1050_v3 }
 0x8fb   :  { %5490 = vmatmul.mubr.msk.bf16.gmra.mxu1 %vm182_vm1, %v1051_v4 }
 0x8fc   :  { %5493 = vmatprep.mubr.msk.bf16.mxu1 %vm182_vm1, %v1052_v21 }
 0x903   :  { %5494 = vmatmul.mubr.msk.bf16.gmra.mxu1 %vm182_vm1, %v1053_v22 }
 0x904   :  { %5497 = vmatprep.mubr.msk.bf16.mxu1 %vm182_vm1, %v1054_v31 }
 0x906   :  { %v5467_v32 = vpop.f32.mrf.mxu0 }
 0x907   :  { %v994_v27 = vadd.f32 %v5467_v32, %v925_v58 }
 0x908   :  { %v985_v37 = vpop.f32.mrf.mxu0 }
 0x909   :  { %v986_v45 = vadd.f32 %v985_v37, %v925_v58 }
 0x90a   :  { %v5468_v52 = vpop.f32.mrf.mxu0 }
 0x90b   :  { %5498 = vmatmul.mubr.msk.bf16.gmra.mxu1 %vm182_vm1, %v1055_v35  ;;  %v997_v29 = vadd.f32 %v5468_v52, %v925_v58 }
 0x90c   :  { %v988_v54 = vpop.f32.mrf.mxu0  ;;  %5521 = vmatprep.mubr.msk.bf16.mxu1 %vm6229_vm0, %v6228_v0 }
 0x90d   :  { %v6758_v38 = vpack.c.bf16 %v997_v29, %v994_v27  ;;  %v989_v46 = vadd.f32 %v988_v54, %v925_v58 }
 0x90e   :  { %v5471_v57 = vpop.f32.mrf.mxu0 }
 0x90f   :  { %v1010_v62 = vadd.f32 %v5471_v57, %v925_v58  ;;  %v1203_v49 = vsel %vm332_vm4, %v6758_v38, 0  ;;  %v6770_v36 = vpack.c.bf16 %v989_v46, %v986_v45 }
 0x910   :  { %v1001_v61 = vpop.f32.mrf.mxu0 }
 0x911   :  { %v1002_v11 = vadd.f32 %v1001_v61, %v925_v58  ;;  %v1200_v48 = vsel %vm332_vm4, %v6770_v36, 0 }
 0x912   :  { %v5472_v2 = vpop.f32.mrf.mxu0 }
 0x913   :  { %v1013_v7 = vadd.f32 %v5472_v2, %v925_v58 }
 0x914   :  { %v1004_v8 = vpop.f32.mrf.mxu0 }
 0x915   :  { %v6748_v9 = vpack.c.bf16 %v1013_v7, %v1010_v62  ;;  %v1005_v12 = vadd.f32 %v1004_v8, %v925_v58 }
 0x916   :  { %v5475_v13 = vpop.f32.mrf.mxu0 }
 0x917   :  { %v1209_v15 = vsel %vm332_vm4, %v6748_v9, 0  ;;  %v6752_v20 = vpack.c.bf16 %v1005_v12, %v1002_v11  ;;  %v1026_v59 = vadd.f32 %v5475_v13, %v925_v58 }
 0x918   :  { %v1017_v18 = vpop.f32.mrf.mxu0  ;;  %5502 = vmatpush3.bf16.xpose.msra.mxu0 %v1209_v15 }
 0x919   :  { %5503 = vmatprep.subr.bf16.mxu0 %v6228_v0  ;;  %v1206_v6 = vsel %vm332_vm4, %v6752_v20, 0  ;;  %v1018_v21 = vadd.f32 %v1017_v18, %v925_v58 }
 0x91a   :  { %v5476_v24 = vpop.f32.mrf.mxu0 }
 0x91b   :  { %v1029_v60 = vadd.f32 %v5476_v24, %v925_v58 }
 0x91c   :  { %v1020_v25 = vpop.f32.mrf.mxu0 }
 0x91d   :  { %v6776_v4 = vpack.c.bf16 %v1029_v60, %v1026_v59  ;;  %v1021_v22 = vadd.f32 %v1020_v25, %v925_v58 }
 0x91e   :  { %v5479_v30 = vpop.f32.mrf.mxu0 }
 0x91f   :  { %v1042_v34 = vadd.f32 %v5479_v30, %v925_v58  ;;  %v1258_v31 = vsel %vm332_vm4, %v6776_v4, 0  ;;  %v6782_v32 = vpack.c.bf16 %v1021_v22, %v1018_v21 }
 0x920   :  { %v1033_v33 = vpop.f32.mrf.mxu0  ;;  %5504 = vmatpush3.bf16.xpose.msra.mxu0 %v1206_v6 }
 0x921   :  { %5505 = vmatprep.subr.bf16.mxu0 %v6228_v0  ;;  %v1034_v19 = vadd.f32 %v1033_v33, %v925_v58  ;;  %v1255_v35 = vsel %vm332_vm4, %v6782_v32, 0 }
 0x922   :  { %v5480_v40 = vpop.f32.mrf.mxu0 }
 0x923   :  { %v1045_v42 = vadd.f32 %v5480_v40, %v925_v58 }
 0x924   :  { %v1036_v43 = vpop.f32.mrf.mxu0 }
 0x925   :  { %v6760_v47 = vpack.c.bf16 %v1045_v42, %v1042_v34  ;;  %v1037_v14 = vadd.f32 %v1036_v43, %v925_v58 }
 0x927   :  { %v1264_v55 = vsel %vm332_vm4, %v6760_v47, 0  ;;  %v6766_v56 = vpack.c.bf16 %v1037_v14, %v1034_v19 }
 0x928   :  { %5506 = vmatpush3.bf16.xpose.msra.mxu0 %v1203_v49  ;;  %5514 = vmatpush3.bf16.xpose.msra.mxu1 %v1264_v55 }
 0x929   :  { %5507 = vmatprep.subr.bf16.mxu0 %v6228_v0  ;;  %5515 = vmatprep.subr.bf16.mxu1 %v6228_v0  ;;  %v1261_v3 = vsel %vm332_vm4, %v6766_v56, 0 }
 0x930   :  { %5508 = vmatpush3.bf16.xpose.msra.mxu0 %v1200_v48  ;;  %5516 = vmatpush3.bf16.xpose.msra.mxu1 %v1261_v3 }
 0x931   :  { %5517 = vmatprep.subr.bf16.mxu1 %v6228_v0  ;;  %5525 = vmatprep.subr.bf16.mxu0 %v6228_v0 }
 0x938   :  { %5518 = vmatpush3.bf16.xpose.msra.mxu1 %v1258_v31 }
 0x939   :  { %5519 = vmatprep.subr.bf16.mxu1 %v6228_v0 }
 0x940   :  { %5520 = vmatpush3.bf16.xpose.msra.mxu1 %v1255_v35 }
 0x941   :  { %5537 = vmatprep.subr.bf16.mxu1 %v6228_v0 }
 0x9ab   :  { %v903_v37 = vpop.f32.mrf.mxu1 }
 0x9ac   :  { %v904_v52 = vadd.f32 %v6690_v26, %v903_v37 }
 0x9ad   :  { %v5459_v54 = vpop.f32.mrf.mxu1 }
 0x9ae   :  { %v6789_v57 = vpack.c.bf16 %v904_v52, %v904_v52 }
 0x9af   :  { %v906_v58 = vpop.f32.mrf.mxu1 }
 0x9b0   :  { %v907_v61 = vadd.f32 %v6690_v26, %v906_v58  ;;  %5510 = vmatmul.mubr.msk.bf16.vlgmr.msra.gmra.mxu0 %vm332_vm4, %v6789_v57 }
 0x9b1   :  { %v5460_v62 = vpop.f32.mrf.mxu1  ;;  %5533 = vmatprep.mubr.msk.bf16.mxu0 %vm6229_vm0, %v6228_v0 }
 0x9b2   :  { %v1187_v2 = vpack.c.bf16 %v907_v61, %v907_v61 }
 0x9b3   :  { %v6799_v7 = vpop.f32.mrf.mxu1 }
 0x9b4   :  { %5522 = vmatmul.mubr.msk.bf16.vlgmr.msra.gmra.mxu1 %vm332_vm4, %v1187_v2 }
 0x9b5   :  { %5545 = vmatprep.mubr.msk.bf16.mxu1 %vm6229_vm0, %v6228_v0  ;;  %v6801_v8 = vpop.f32.mrf.mxu1 }
 0x9b7   :  { %v6803_v11 = vpop.f32.mrf.mxu1 }
 0x9b9   :  { %v6805_v12 = vpop.f32.mrf.mxu1 }
 0x9bb   :  { %v5491_v13 = vpop.f32.mrf.mxu1 }
 0x9bd   :  { %v1139_v15 = vpop.f32.mrf.mxu1 }
 0x9bf   :  { %v5492_v18 = vpop.f32.mrf.mxu1 }
 0x9c1   :  { %v1142_v24 = vpop.f32.mrf.mxu1 }
 0x9c3   :  { %v6807_v25 = vpop.f32.mrf.mxu1 }
 0x9c5   :  { %v6809_v6 = vpop.f32.mrf.mxu1 }
 0x9c7   :  { %v6811_v27 = vpop.f32.mrf.mxu1 }
 0x9c9   :  { %v6813_v29 = vpop.f32.mrf.mxu1 }
 0x9cb   :  { %v5499_v30 = vpop.f32.mrf.mxu1 }
 0x9cd   :  { %v1171_v33 = vpop.f32.mrf.mxu1 }
 0x9cf   :  { %v5500_v34 = vpop.f32.mrf.mxu1 }
 0x9d1   :  { %v1174_v43 = vpop.f32.mrf.mxu1 }
 0xa70   :  { %v1245_v40 = vpop.f32.mrf.mxu0 }
 0xa71   :  { %v1306_v42 = vmul.f32 0.35355338, %v1245_v40 }
 0xa72   :  { %v5511_v45 = vpop.f32.mrf.mxu0 }
 0xa73   :  { %v1309_v46 = vsel %vm1308_vm6, %v1306_v42, -inf }
 0xa74   :  { %v1300_v19 = vpop.f32.mrf.mxu1  ;;  %1310 = vmax.xlane.f32.xlu1 %v1309_v46  ;;  %v1248_v49 = vpop.f32.mrf.mxu0 }
 0xa75   :  { %v1307_v14 = vmul.f32 0.35355338, %v1300_v19 }
 0xa76   :  { %v5512_v55 = vpop.f32.mrf.mxu0  ;;  %v5523_v59 = vpop.f32.mrf.mxu1 }
 0xa77   :  { %v1312_v60 = vsel %vm1308_vm6, %v1307_v14, -inf }
 0xa78   :  { %1313 = vmax.xlane.f32.xlu0 %v1312_v60  ;;  %v1303_v48 = vpop.f32.mrf.mxu1 }
 0xa7a   :  { %v5524_v3 = vpop.f32.mrf.mxu1 }
 0xafd   :  { %v1311_v21 = vpop.xlane.xlu1 %1310 }
 0xafe   :  { %v1315_v22 = vsub.f32 %v1306_v42, %v1311_v21 }
 0xb00   :  { %v1317_v31 = vmul.f32 1.442695, %v1315_v22 }
 0xb01   :  { %v1314_v35 = vpop.xlane.xlu0 %1313 }
 0xb02   :  { %5992 = vpow2.f32 %v1317_v31  ;;  %v1316_v37 = vsub.f32 %v1307_v14, %v1314_v35 }
 0xb04   :  { %v1319_v52 = vmul.f32 1.442695, %v1316_v37 }
 0xb06   :  { %5994 = vpow2.f32 %v1319_v52 }
 0xb0f   :  { %v5993_v54 = vpop.eup %5992 }
 0xb10   :  { %v1321_v58 = vsel %vm1308_vm6, %v5993_v54, 0.0 }
 0xb11   :  { %1322 = vadd.xlane.f32.xlu0 %v1321_v58 }
 0xb13   :  { %v5995_v61 = vpop.eup %5994 }
 0xb14   :  { %v1324_v62 = vsel %vm1308_vm6, %v5995_v61, 0.0 }
 0xb15   :  { %1325 = vadd.xlane.f32.xlu1 %v1324_v62 }
 0xb26   :  { %1488 = vrot.lane.b32.xlu1 %v6748_v9, %s6236_s27 }
 0xb27   :  { %1062 = vrot.lane.b32.xlu0 %v6690_v26, %s6230_s1 }
 0xb2a   :  { %1558 = vrot.lane.b32.xlu1 %v6760_v47, %s6236_s27 }
 0xb2b   :  { %1486 = vrot.lane.b32.xlu0 %v6752_v20, %s6236_s27 }
 0xb2e   :  { %1556 = vrot.lane.b32.xlu1 %v6766_v56, %s6236_s27 }
 0xb2f   :  { %1484 = vrot.lane.b32.xlu0 %v6758_v38, %s6236_s27 }
 0xb32   :  { %1554 = vrot.lane.b32.xlu1 %v6776_v4, %s6236_s27 }
 0xb33   :  { %1482 = vrot.lane.b32.xlu0 %v6770_v36, %s6236_s27 }
 0xb36   :  { %1552 = vrot.lane.b32.xlu1 %v6782_v32, %s6236_s27 }
 0xb37   :  { %1476 = vrot.lane.b32.xlu0 %v6789_v57, %s6236_s27 }
 0xb3a   :  { %1546 = vrot.lane.b32.xlu1 %v1187_v2, %s6236_s27 }
 0xb9a   :  { %v1323_v26 = vpop.xlane.xlu0 %1322 }
 0xb9b   :  { %5996 = vrcp.f32 %v1323_v26 }
 0xb9e   :  { %v1063_v9 = vpop.permute.xlu0 %1062  ;;  %v1326_v20 = vpop.xlane.xlu1 %1325 }
 0xb9f   :  { %5998 = vrcp.f32 %v1326_v20  ;;  %v1148_v38 = vadd.f32 %v5491_v13, %v1063_v9  ;;  %v1151_v47 = vadd.f32 %v5492_v18, %v1063_v9  ;;  %v1180_v56 = vadd.f32 %v5499_v30, %v1063_v9 }
 0xba0   :  { %v1183_v4 = vadd.f32 %v5500_v34, %v1063_v9  ;;  %v1140_v36 = vadd.f32 %v1139_v15, %v1063_v9  ;;  %v1143_v42 = vadd.f32 %v1142_v24, %v1063_v9  ;;  %v1172_v32 = vadd.f32 %v1171_v33, %v1063_v9 }
 0xba1   :  { %v6840_v40 = vpack.c.bf16 %v1151_v47, %v1148_v38  ;;  %v1175_v46 = vadd.f32 %v1174_v43, %v1063_v9  ;;  %v1132_v2 = vadd.f32 %v6799_v7, %v1063_v9  ;;  %v1135_v13 = vadd.f32 %v6803_v11, %v1063_v9 }
 0xba2   :  { %v6842_v45 = vpack.c.bf16 %v1183_v4, %v1180_v56  ;;  %v6848_v57 = vpack.c.bf16 %v1143_v42, %v1140_v36  ;;  %v1164_v18 = vadd.f32 %v6807_v25, %v1063_v9  ;;  %v1167_v24 = vadd.f32 %v6811_v27, %v1063_v9  ;;  %v1489_v14 = vpop.permute.xlu1 %1488  ;;  %v1487_v48 = vpop.permute.xlu0 %1486 }
 0xba3   :  { %5526 = vmatpush3.bf16.msra.mxu0 %v6840_v40  ;;  %v6852_v15 = vpack.c.bf16 %v1175_v46, %v1172_v32  ;;  %v6860_v33 = vpack.c.bf16 %v1135_v13, %v1132_v2  ;;  %v1124_v7 = vadd.f32 %v6801_v8, %v1063_v9  ;;  %v1127_v11 = vadd.f32 %v6805_v12, %v1063_v9  ;;  %v126_v12 = vld [vmem:[%s8366_s11] sm:$0xf] }
 0xba4   :  { %5538 = vmatpush3.bf16.msra.mxu1 %v6842_v45  ;;  %5527 = vmatprep.subr.bf16.mxu0 %v6228_v0  ;;  %v6864_v34 = vpack.c.bf16 %v1167_v24, %v1164_v18  ;;  %v1156_v25 = vadd.f32 %v6809_v6, %v1063_v9  ;;  %v1159_v27 = vadd.f32 %v6813_v29, %v1063_v9  ;;  %v1432_v59 = vsel %vm362_vm5, %v126_v12, 0 }
 0xba5   :  { %5539 = vmatprep.subr.bf16.mxu1 %v6228_v0  ;;  %v6872_v49 = vpack.c.bf16 %v1127_v11, %v1124_v7  ;;  %v1503_v60 = vsel %vm332_vm4, %v1489_v14, 0  ;;  %v1500_v3 = vsel %vm332_vm4, %v1487_v48, 0 }
 0xba6   :  { %v6877_v6 = vpack.c.bf16 %v1159_v27, %v1156_v25  ;;  %v1485_v21 = vpop.permute.xlu0 %1484 }
 0xba7   :  { %5528 = vmatpush3.bf16.msra.mxu0 %v6848_v57  ;;  %v1497_v22 = vsel %vm332_vm4, %v1485_v21, 0 }
 0xba8   :  { %5540 = vmatpush3.bf16.msra.mxu1 %v6852_v15  ;;  %5529 = vmatprep.subr.bf16.mxu0 %v6228_v0  ;;  %v5997_v30 = vpop.eup %5996 }
 0xba9   :  { %5541 = vmatprep.subr.bf16.mxu1 %v6228_v0  ;;  %v1329_v19 = vmul.f32 %v5997_v30, %v5993_v54  ;;  %v1559_v54 = vpop.permute.xlu1 %1558 }
 0xbaa   :  { %v1483_v31 = vpop.permute.xlu0 %1482  ;;  %v1573_v9 = vsel %vm332_vm4, %v1559_v54, 0 }
 0xbab   :  { %5530 = vmatpush3.bf16.msra.mxu0 %v6860_v33  ;;  %v1331_v55 = vpack.c.bf16 %v1329_v19, %v1329_v19  ;;  %v1494_v35 = vsel %vm332_vm4, %v1483_v31, 0 }
 0xbac   :  { %v5999_v43 = vpop.eup %5998  ;;  %5542 = vmatpush3.bf16.msra.mxu1 %v6864_v34  ;;  %5531 = vmatprep.subr.bf16.mxu0 %v6228_v0 }
 0xbad   :  { %5543 = vmatprep.subr.bf16.mxu1 %v6228_v0  ;;  %v1330_v8 = vmul.f32 %v5999_v43, %v5995_v61  ;;  %v1557_v4 = vpop.permute.xlu1 %1556 }
 0xbae   :  { %v1477_v37 = vpop.permute.xlu0 %1476  ;;  %v1570_v36 = vsel %vm332_vm4, %v1557_v4, 0 }
 0xbaf   :  { %5532 = vmatpush3.bf16.msra.mxu0 %v6872_v49  ;;  %v1332_v29 = vpack.c.bf16 %v1330_v8, %v1330_v8 }
 0xbb0   :  { %5544 = vmatpush3.bf16.msra.mxu1 %v6877_v6  ;;  %5549 = vmatprep.subr.bf16.mxu0 %v6228_v0 }
 0xbb1   :  { %5555 = vmatprep.subr.bf16.mxu1 %v6228_v0  ;;  %v1555_v42 = vpop.permute.xlu1 %1554 }
 0xbb2   :  { %5534 = vmatmul.mubr.msk.bf16.vlgmr.msra.gmra.mxu0 %vm1308_vm6, %v1331_v55  ;;  %v1567_v32 = vsel %vm332_vm4, %v1555_v42, 0 }
 0xbb3   :  { %5546 = vmatmul.mubr.msk.bf16.vlgmr.msra.gmra.mxu1 %vm1308_vm6, %v1332_v29  ;;  %5550 = vmatpush3.bf16.msra.mxu0 %v1432_v59 }
 0xbb4   :  { %5556 = vmatpush3.bf16.xpose.msra.mxu1 %v1503_v60  ;;  %5563 = vmatprep.mubr.msk.bf16.mxu1 %vm6229_vm0, %v6228_v0 }
 0xbb5   :  { %5557 = vmatprep.subr.bf16.mxu1 %v6228_v0  ;;  %5551 = vmatprep.mubr.msk.bf16.mxu0 %vm6229_vm0, %v6228_v0  ;;  %v1553_v46 = vpop.permute.xlu1 %1552 }
 0xbb6   :  { %5567 = vmatprep.subr.bf16.mxu0 %v6228_v0  ;;  %v1564_v2 = vsel %vm332_vm4, %v1553_v46, 0 }
 0xbb9   :  { %v1547_v24 = vpop.permute.xlu1 %1546 }
 0xbbc   :  { %5558 = vmatpush3.bf16.xpose.msra.mxu1 %v1500_v3 }
 0xbbd   :  { %5559 = vmatprep.subr.bf16.mxu1 %v6228_v0 }
 0xbc4   :  { %5560 = vmatpush3.bf16.xpose.msra.mxu1 %v1497_v22 }
 0xbc5   :  { %5561 = vmatprep.subr.bf16.mxu1 %v6228_v0 }
 0xbcc   :  { %5562 = vmatpush3.bf16.xpose.msra.mxu1 %v1494_v35 }
 0xbcd   :  { %5579 = vmatprep.subr.bf16.mxu1 %v6228_v0 }
 0xbd3   :  { %5564 = vmatmul.mubr.msk.bf16.vlgmr.msra.gmra.mxu1 %vm332_vm4, %v1477_v37 }
 0xbd4   :  { %5587 = vmatprep.mubr.msk.bf16.mxu1 %vm6229_vm0, %v6228_v0 }
 0xc72   :  { %v1378_v52 = vpop.f32.mrf.mxu0 }
 0xc73   :  { %v1421_v58 = vpop.f32.mrf.mxu1 }
 0xc74   :  { %v1427_v61 = vpack.c.bf16 %v1421_v58, %v1378_v52  ;;  %v5535_v62 = vpop.f32.mrf.mxu0 }
 0xc75   :  { %v5547_v26 = vpop.f32.mrf.mxu1 }
 0xc76   :  { %5552 = vmatmul.mubr.msk.bf16.vlgmr.msra.gmra.mxu0 %vm332_vm4, %v1427_v61  ;;  %v1381_v20 = vpop.f32.mrf.mxu0 }
 0xc77   :  { %5568 = vmatpush3.bf16.xpose.msra.mxu0 %v1573_v9  ;;  %v1424_v38 = vpop.f32.mrf.mxu1  ;;  %5575 = vmatprep.mubr.msk.bf16.mxu0 %vm6229_vm0, %v6228_v0 }
 0xc78   :  { %v5536_v47 = vpop.f32.mrf.mxu0  ;;  %5569 = vmatprep.subr.bf16.mxu0 %v6228_v0 }
 0xc79   :  { %v5548_v56 = vpop.f32.mrf.mxu1 }
 0xc7f   :  { %5570 = vmatpush3.bf16.xpose.msra.mxu0 %v1570_v36 }
 0xc80   :  { %5571 = vmatprep.subr.bf16.mxu0 %v6228_v0 }
 0xc87   :  { %5572 = vmatpush3.bf16.xpose.msra.mxu0 %v1567_v32 }
 0xc88   :  { %5573 = vmatprep.subr.bf16.mxu0 %v6228_v0 }
 0xc8f   :  { %5574 = vmatpush3.bf16.xpose.msra.mxu0 %v1564_v2 }
 0xc90   :  { %5591 = vmatprep.subr.bf16.mxu0 %v6228_v0 }
 0xc93   :  { %v1539_v13 = vpop.f32.mrf.mxu1 }
 0xc94   :  { %v1615_v18 = vmul.f32 0.35355338, %v1539_v13 }
 0xc95   :  { %v5565_v30 = vpop.f32.mrf.mxu1 }
 0xc96   :  { %5576 = vmatmul.mubr.msk.bf16.vlgmr.msra.gmra.mxu0 %vm332_vm4, %v1547_v24  ;;  %v1617_v7 = vsel %vm1308_vm6, %v1615_v18, -inf }
 0xc97   :  { %1618 = vmax.xlane.f32.xlu0 %v1617_v7  ;;  %v1542_v11 = vpop.f32.mrf.mxu1  ;;  %5599 = vmatprep.mubr.msk.bf16.mxu0 %vm6229_vm0, %v6228_v0 }
 0xc98   :  { %v5042_v11 = vld [vmem:[%s8367_s12] ss:$0 sm:$0xff] }
 0xc99   :  { %v5566_v25 = vpop.f32.mrf.mxu1 }
 0xd20   :  { %v1619_v27 = vpop.xlane.xlu0 %1618 }
 0xd21   :  { %v1623_v43 = vsub.f32 %v1615_v18, %v1619_v27 }
 0xd23   :  { %v1625_v19 = vmul.f32 1.442695, %v1623_v43 }
 0xd25   :  { %6000 = vpow2.f32 %v1625_v19 }
 0xd32   :  { %v6001_v8 = vpop.eup %6000 }
 0xd33   :  { %v1629_v12 = vsel %vm1308_vm6, %v6001_v8, 0.0 }
 0xd34   :  { %1630 = vadd.xlane.f32.xlu0 %v1629_v12 }
 0xd36   :  { %v6918_v29 = vpop.f32.mrf.mxu0 }
 0xd38   :  { %v5553_v14 = vpop.f32.mrf.mxu0 }
 0xd3a   :  { %v6920_v55 = vpop.f32.mrf.mxu0 }
 0xd3c   :  { %v5554_v59 = vpop.f32.mrf.mxu0 }
 0xd4a   :  { %1710 = vrot.lane.b32.xlu0 %v6842_v45, %s6236_s27 }
 0xd4e   :  { %1647 = vrot.lane.b32.xlu0 %v6860_v33, %s6236_s27 }
 0xd56   :  { %v1609_v60 = vpop.f32.mrf.mxu0 }
 0xd57   :  { %v1616_v48 = vmul.f32 0.35355338, %v1609_v60 }
 0xd58   :  { %v5577_v3 = vpop.f32.mrf.mxu0 }
 0xd59   :  { %v1620_v21 = vsel %vm1308_vm6, %v1616_v48, -inf }
 0xd5a   :  { %1621 = vmax.xlane.f32.xlu1 %v1620_v21  ;;  %v1612_v22 = vpop.f32.mrf.mxu0 }
 0xd5c   :  { %v5578_v31 = vpop.f32.mrf.mxu0 }
 0xd6b   :  { %1651 = vrot.lane.b32.xlu1 %v6840_v40, %s6236_s27 }
 0xd6f   :  { %1649 = vrot.lane.b32.xlu1 %v6848_v57, %s6236_s27 }
 0xd73   :  { %1708 = vrot.lane.b32.xlu1 %v6852_v15, %s6236_s27 }
 0xd77   :  { %1706 = vrot.lane.b32.xlu1 %v6864_v34, %s6236_s27 }
 0xd7b   :  { %1704 = vrot.lane.b32.xlu1 %v6877_v6, %s6236_s27 }
 0xdbd   :  { %v1631_v45 = vpop.xlane.xlu0 %1630 }
 0xdc1   :  { %v1711_v33 = vpop.permute.xlu0 %1710 }
 0xdc2   :  { %5592 = vmatpush3.bf16.msra.mxu0 %v1711_v33 }
 0xdc3   :  { %5593 = vmatprep.subr.bf16.mxu0 %v6228_v0 }
 0xdc5   :  { %v1648_v15 = vpop.permute.xlu0 %1647 }
 0xde3   :  { %v1622_v35 = vpop.xlane.xlu1 %1621 }
 0xde4   :  { %v1624_v37 = vsub.f32 %v1616_v48, %v1622_v35 }
 0xde6   :  { %v1627_v40 = vmul.f32 1.442695, %v1624_v37 }
 0xde7   :  { %v1652_v52 = vpop.permute.xlu1 %1651 }
 0xde8   :  { %6002 = vpow2.f32 %v1627_v40  ;;  %5580 = vmatpush3.bf16.msra.mxu1 %v1652_v52  ;;  %v5963_v52 = vld [vmem:[%s8368_s13] sm:$0xff]  }
 0xde9   :  { %5581 = vmatprep.subr.bf16.mxu1 %v6228_v0  ;;  %6004 = vrcp.f32 %v1631_v45 }
 0xdeb   :  { %v1650_v57 = vpop.permute.xlu1 %1649 }
 0xdec   :  { %5582 = vmatpush3.bf16.msra.mxu1 %v1650_v57  ;;  %v5964_v57 = vld [vmem:[%s8369_s15 + $0x18] sm:$0xff]  }
 0xded   :  { %5583 = vmatprep.subr.bf16.mxu1 %v6228_v0 }
 0xdef   :  { %v1709_v34 = vpop.permute.xlu1 %1708 }
 0xdf0   :  { %5584 = vmatpush3.bf16.msra.mxu1 %v1648_v15  ;;  %5594 = vmatpush3.bf16.msra.mxu0 %v1709_v34 }
 0xdf1   :  { %5595 = vmatprep.subr.bf16.mxu0 %v6228_v0  ;;  %5585 = vmatprep.subr.bf16.mxu1 %v6228_v0 }
 0xdf3   :  { %v1707_v6 = vpop.permute.xlu1 %1706 }
 0xdf4   :  { %5596 = vmatpush3.bf16.msra.mxu0 %v1707_v6 }
 0xdf5   :  { %v6003_v54 = vpop.eup %6002  ;;  %5597 = vmatprep.subr.bf16.mxu0 %v6228_v0 }
 0xdf6   :  { %v1632_v58 = vsel %vm1308_vm6, %v6003_v54, 0.0  ;;  %v6005_v62 = vpop.eup %6004 }
 0xdf7   :  { %1633 = vadd.xlane.f32.xlu0 %v1632_v58  ;;  %v1705_v61 = vpop.permute.xlu1 %1704  ;;  %v1637_v9 = vmul.f32 %v6005_v62, %v6001_v8  ;;  %v1847_v62 = vsub.s32 1, %v6695_v39 }
 0xdf8   :  { %5598 = vmatpush3.bf16.msra.mxu0 %v1705_v61 }
 0xdf9   :  { %5609 = vmatprep.subr.bf16.mxu0 %v6228_v0  ;;  %v1639_v38 = vpack.c.bf16 %v1637_v9, %v1637_v9 }
 0xe0d   :  { %1645 = vrot.lane.b32.xlu0 %v6872_v49, %s6236_s27  ;;  %v127_v49 = vld [vmem:[%s8366_s11 + $0x4] sm:$0xf] }
 0xe0e   :  { %v1764_v36 = vsel %vm362_vm5, %v127_v49, 0 }
 0xe80   :  { %v1634_v26 = vpop.xlane.xlu0 %1633 }
 0xe81   :  { %6006 = vrcp.f32 %v1634_v26 }
 0xe84   :  { %v1646_v20 = vpop.permute.xlu0 %1645 }
 0xe85   :  { %5586 = vmatpush3.bf16.msra.mxu1 %v1646_v20  ;;  %v1848_v20 = vrot.slane %v6701_v41, %v1847_v62  ;;  %v5966_v41 = vld [vmem:[%s8369_s15 + $0x8] sm:$0xff]  }
 0xe86   :  { %5603 = vmatprep.subr.bf16.mxu1 %v6228_v0 }
 0xe88   :  { %5588 = vmatmul.mubr.msk.bf16.vlgmr.msra.gmra.mxu1 %vm1308_vm6, %v1639_v38 }
 0xe89   :  { %5605 = vmatprep.mubr.msk.bf16.mxu1 %vm6229_vm0, %v6228_v0  ;;  %5604 = vmatpush3.bf16.msra.mxu1 %v1764_v36 }
 0xe8a   :  { %5617 = vmatprep.subr.bf16.mxu1 %v6228_v0 }
 0xe8e   :  { %v6007_v47 = vpop.eup %6006 }
 0xe8f   :  { %v1638_v56 = vmul.f32 %v6007_v47, %v6003_v54 }
 0xe91   :  { %v1640_v4 = vpack.c.bf16 %v1638_v56, %v1638_v56 }
 0xe93   :  { %5600 = vmatmul.mubr.msk.bf16.vlgmr.msra.gmra.mxu0 %vm1308_vm6, %v1640_v4  ;;  %v1854_v4 = vrot.slane %v6707_v44, %v1847_v62  ;;  %v5967_v44 = vld [vmem:[%s8369_s15] sm:$0xff]  }
 0xe94   :  { %5613 = vmatprep.mubr.msk.bf16.mxu0 %vm6229_vm0, %v6228_v0 }
 0xf48   :  { %v1694_v42 = vpop.f32.mrf.mxu1 }
 0xf4a   :  { %v5589_v32 = vpop.f32.mrf.mxu1 }
 0xf4c   :  { %v1697_v46 = vpop.f32.mrf.mxu1 }
 0xf4d   :  { %v5965_v46 = vld [vmem:[%s8369_s15 + $0x10] sm:$0xff]  }
 0xf4e   :  { %v5590_v2 = vpop.f32.mrf.mxu1 }
 0xf53   :  { %v1753_v13 = vpop.f32.mrf.mxu0 }
 0xf54   :  { %v1759_v18 = vpack.c.bf16 %v1753_v13, %v1694_v42 }
 0xf55   :  { %v5601_v24 = vpop.f32.mrf.mxu0 }
 0xf56   :  { %5606 = vmatmul.mubr.msk.bf16.vlgmr.msra.gmra.mxu1 %vm332_vm4, %v1759_v18 }
 0xf57   :  { %v1756_v30 = vpop.f32.mrf.mxu0  ;;  %5625 = vmatprep.mubr.msk.bf16.mxu1 %vm6229_vm0, %v6228_v0  ;;  %5618 = vmatpush3.bf16.msra.mxu1 %v5964_v57 }
 0xf58   :  { %5619 = vmatprep.subr.bf16.mxu1 %v6228_v0 }
 0xf59   :  { %v5602_v7 = vpop.f32.mrf.mxu0 }
 0xf5b   :  { %5620 = vmatpush3.bf16.msra.mxu1 %v5965_v46 }
 0xf5c   :  { %5621 = vmatprep.subr.bf16.mxu1 %v6228_v0 }
 0xf5f   :  { %5622 = vmatpush3.bf16.msra.mxu1 %v5966_v41  ;;  %v2027_v41 = vsub.s32 2, %v6695_v39 }
 0xf60   :  { %5623 = vmatprep.subr.bf16.mxu1 %v6228_v0 }
 0xf63   :  { %5624 = vmatpush3.bf16.msra.mxu1 %v5967_v44  ;;  %v6196_v44 = vld [vmem:[%s8410_s30] sm:$0x1f] }
 0xf64   :  { %5649 = vmatprep.subr.bf16.mxu1 %v6228_v0 }
0x1016   :  { %v1800_v25 = vpop.f32.mrf.mxu1 }
0x1017   :  { %v1807_v27 = vadd.f32 %v1800_v25, %v6918_v29 }
0x1018   :  { %v5607_v43 = vpop.f32.mrf.mxu1 }
0x1019   :  { %v1815_v19 = vadd.f32 %v5042_v11, %v1807_v27  ;;  %v5047_v43 = vld [vmem:[%s8371_s16] ss:$0 sm:$0xff] }
0x101a   :  { %v1803_v8 = vpop.f32.mrf.mxu1 }
0x101b   :  { %v1808_v12 = vadd.f32 %v1803_v8, %v6920_v55  ;;  %v1817_v14 = vadd.f32 %v1815_v19, %v6712_v50 }
0x101c   :  { %v5608_v59 = vpop.f32.mrf.mxu1 }
0x101d   :  { %v1816_v60 = vadd.f32 %v5042_v11, %v1808_v12  ;;  %v1819_v48 = vsel %vm182_vm1, %v1817_v14, 0.0 }
0x101e   :  { %1820 = vadd.xlane.f32.xlu0 %v1819_v48 }
0x101f   :  { %v1818_v3 = vadd.f32 %v1816_v60, %v6714_v10  ;;  %v5962_v10 = vld [vmem:[%s8368_s13 + $0x8] sm:$0xff]  }
0x1020   :  { %5610 = vmatpush3.bf16.msra.mxu0 %v5962_v10 }
0x1021   :  { %v1822_v21 = vsel %vm182_vm1, %v1818_v3, 0.0  ;;  %5611 = vmatprep.subr.bf16.mxu0 %v6228_v0 }
0x1022   :  { %1823 = vadd.xlane.f32.xlu1 %v1822_v21 }
0x1024   :  { %5612 = vmatpush3.bf16.msra.mxu0 %v5963_v52 }
0x10a7   :  { %v1821_v22 = vpop.xlane.xlu0 %1820 }
0x10a8   :  { %v1825_v31 = vmul.f32 0.03125, %v1821_v22 }
0x10aa   :  { %v1827_v29 = vsub.f32 %v1817_v14, %v1825_v31  ;;  %v5968_v31 = vld [vmem:[%s8372_s17 + $0x8] sm:$0xff]  }
0x10ab   :  { %v1824_v45 = vpop.xlane.xlu1 %1823  ;;  %5629 = vmatprep.subr.bf16.mxu0 %v5968_v31 }
0x10ac   :  { %v1826_v33 = vmul.f32 0.03125, %v1824_v45  ;;  %v1829_v35 = vmul.f32 %v1827_v29, %v1827_v29 }
0x10ae   :  { %v1828_v37 = vsub.f32 %v1818_v3, %v1826_v33  ;;  %v1831_v55 = vsel %vm182_vm1, %v1829_v35, 0.0 }
0x10af   :  { %1832 = vadd.xlane.f32.xlu0 %v1831_v55 }
0x10b0   :  { %v1830_v50 = vmul.f32 %v1828_v37, %v1828_v37 }
0x10b2   :  { %v1834_v40 = vsel %vm182_vm1, %v1830_v50, 0.0 }
0x10b3   :  { %1835 = vadd.xlane.f32.xlu0 %v1834_v40 }
0x1138   :  { %v1833_v15 = vpop.xlane.xlu0 %1832 }
0x1139   :  { %v1837_v34 = vmul.f32 0.03125, %v1833_v15 }
0x113b   :  { %v1839_v6 = vadd.f32 1e-05, %v1837_v34 }
0x113c   :  { %v1836_v54 = vpop.xlane.xlu0 %1835 }
0x113d   :  { %6008 = vrsqrt.f32 %v1839_v6  ;;  %v1838_v58 = vmul.f32 0.03125, %v1836_v54 }
0x113f   :  { %v1840_v61 = vadd.f32 1e-05, %v1838_v58 }
0x1141   :  { %6010 = vrsqrt.f32 %v1840_v61 }
0x114a   :  { %v6009_v26 = vpop.eup %6008 }
0x114b   :  { %v1843_v9 = vmul.f32 %v6009_v26, %v1827_v29  ;;  %v5969_v29 = vld [vmem:[%s8372_s17] sm:$0xff]  }
0x114d   :  { %v1849_v56 = vmul.f32 %v1848_v20, %v1843_v9 }
0x114e   :  { %v6011_v38 = vpop.eup %6010 }
0x114f   :  { %v1844_v47 = vmul.f32 %v6011_v38, %v1828_v37  ;;  %v1855_v36 = vadd.f32 %v1854_v4, %v1849_v56 }
0x1151   :  { %v1850_v49 = vmul.f32 %v1848_v20, %v1844_v47 }
0x1153   :  { %v1856_v42 = vadd.f32 %v1854_v4, %v1850_v49 }
0x1155   :  { %v1857_v32 = vpack.c.bf16 %v1856_v42, %v1855_v36 }
0x1157   :  { %5614 = vmatmul.mubr.msk.bf16.vlgmr.msra.gmra.mxu0 %vm182_vm1, %v1857_v32 }
0x1158   :  { %5633 = vmatprep.mubr.msk.bf16.mxu0 %vm182_vm1, %v6536_v28  ;;  %v5043_v28 = vld [vmem:[%s8370_s14] ss:$0 sm:$0xff]  ;;  %5630 = vmatpush3.bf16.msra.mxu0 %v5968_v31 }
0x1159   :  { %5631 = vmatprep.subr.bf16.mxu0 %v5969_v29 }
0x115c   :  { %5632 = vmatpush3.bf16.msra.mxu0 %v5969_v29 }
0x115f   :  { %5634 = vmatmul.mubr.msk.bf16.vlgmr.msra.gmra.mxu0 %vm182_vm1, %v6585_v51 }
0x1160   :  { %5637 = vmatprep.mubr.msk.bf16.mxu0 %vm182_vm1, %v6592_v53 }
0x1167   :  { %5638 = vmatmul.mubr.msk.bf16.gmra.mxu0 %vm182_vm1, %v6625_v63 }
0x1168   :  { %5641 = vmatprep.mubr.msk.bf16.mxu0 %vm182_vm1, %v6627_v1 }
0x116f   :  { %5642 = vmatmul.mubr.msk.bf16.gmra.mxu0 %vm182_vm1, %v6657_v16  ;;  %v7039_v16 = vld [vmem:[%s8373_s18] ss:$0 sm:$0xff] }
0x1170   :  { %5645 = vmatprep.mubr.msk.bf16.mxu0 %vm182_vm1, %v6661_v17 }
0x1177   :  { %5646 = vmatmul.mubr.msk.bf16.gmra.mxu0 %vm182_vm1, %v6681_v5 }
0x1217   :  { %v1913_v2 = vpop.f32.mrf.mxu0 }
0x1218   :  { %v1914_v18 = vadd.f32 %v5043_v28, %v1913_v2 }
0x1219   :  { %v5615_v13 = vpop.f32.mrf.mxu0 }
0x121a   :  { %v1920_v11 = vmax.f32 %v1914_v18, 0.0 }
0x121b   :  { %v1916_v24 = vpop.f32.mrf.mxu0 }
0x121c   :  { %v1917_v30 = vadd.f32 %v5043_v28, %v1916_v24  ;;  %v2028_v28 = vrot.slane %v6196_v44, %v2027_v41  ;;  %v6197_v24 = vld [vmem:[%s8411_s0] sm:$0x1f] }
0x121d   :  { %v5616_v7 = vpop.f32.mrf.mxu0 }
0x121e   :  { %v1921_v25 = vmax.f32 %v1917_v30, 0.0  ;;  %v2034_v30 = vrot.slane %v6197_v24, %v2027_v41 }
0x121f   :  { %v5635_v17 = vpop.f32.mrf.mxu0 }
0x1220   :  { %v1922_v27 = vpack.c.bf16 %v1921_v25, %v1920_v11  ;;  %v2100_v40 = vadd.f32 %v5635_v17, %v7039_v16 }
0x1221   :  { %v2091_v5 = vpop.f32.mrf.mxu0 }
0x1222   :  { %5626 = vmatmul.mubr.msk.bf16.vlgmr.msra.gmra.mxu1 %vm1308_vm6, %v1922_v27 }
0x1223   :  { %5653 = vmatprep.mubr.msk.bf16.mxu1 %vm6229_vm0, %v6228_v0  ;;  %v5636_v10 = vpop.f32.mrf.mxu0 }
0x1224   :  { %v2103_v52 = vadd.f32 %v5636_v10, %v7039_v16 }
0x1225   :  { %v2094_v57 = vpop.f32.mrf.mxu0 }
0x1226   :  { %v7048_v15 = vpack.c.bf16 %v2103_v52, %v2100_v40 }
0x1227   :  { %v5639_v34 = vpop.f32.mrf.mxu0 }
0x1228   :  { %v2116_v54 = vadd.f32 %v5639_v34, %v7039_v16 }
0x1229   :  { %v2107_v6 = vpop.f32.mrf.mxu0 }
0x122a   :  { %v2108_v61 = vadd.f32 %v7039_v16, %v2107_v6 }
0x122b   :  { %v5640_v58 = vpop.f32.mrf.mxu0 }
0x122c   :  { %v2119_v62 = vadd.f32 %v5640_v58, %v7039_v16 }
0x122d   :  { %v2110_v26 = vpop.f32.mrf.mxu0 }
0x122e   :  { %v7053_v9 = vpack.c.bf16 %v2119_v62, %v2116_v54  ;;  %v2111_v20 = vadd.f32 %v7039_v16, %v2110_v26 }
0x1230   :  { %v7056_v38 = vpack.c.bf16 %v2111_v20, %v2108_v61 }
0x12e2   :  { %v1990_v19 = vpop.f32.mrf.mxu1 }
0x12e3   :  { %v1991_v8 = vadd.f32 %v5047_v43, %v1990_v19 }
0x12e4   :  { %v5627_v12 = vpop.f32.mrf.mxu1 }
0x12e5   :  { %v1997_v14 = vadd.f32 %v1991_v8, %v1855_v36  ;;  %v6198_v8 = vld [vmem:[%s8402_s29] sm:$0xff] }
0x12e6   :  { %v1993_v59 = vpop.f32.mrf.mxu1 }
0x12e7   :  { %v1994_v60 = vadd.f32 %v5047_v43, %v1993_v59  ;;  %v1999_v48 = vsel %vm182_vm1, %v1997_v14, 0.0 }
0x12e8   :  { %2000 = vadd.xlane.f32.xlu1 %v1999_v48  ;;  %v5628_v3 = vpop.f32.mrf.mxu1 }
0x12e9   :  { %v1998_v21 = vadd.f32 %v1994_v60, %v1856_v42  ;;  %v2092_v3 = vadd.f32 %v7039_v16, %v2091_v5 }
0x12eb   :  { %v2002_v22 = vsel %vm182_vm1, %v1998_v21, 0.0 }
0x12ec   :  { %2003 = vadd.xlane.f32.xlu0 %v2002_v22 }
0x1371   :  { %v2001_v45 = vpop.xlane.xlu1 %2000 }
0x1372   :  { %v2005_v51 = vmul.f32 0.03125, %v2001_v45  ;;  %v5643_v45 = vpop.f32.mrf.mxu0 }
0x1374   :  { %v2007_v33 = vsub.f32 %v1997_v14, %v2005_v51  ;;  %v6199_v14 = vld [vmem:[%s8402_s29 + $0x8] sm:$0xff]  ;;  %v2123_v51 = vpop.f32.mrf.mxu0 }
0x1375   :  { %v2004_v35 = vpop.xlane.xlu0 %2003 }
0x1376   :  { %v2006_v53 = vmul.f32 0.03125, %v2004_v35  ;;  %v2009_v37 = vmul.f32 %v2007_v33, %v2007_v33  ;;  %v2124_v35 = vadd.f32 %v7039_v16, %v2123_v51 }
0x1378   :  { %v2008_v55 = vsub.f32 %v1998_v21, %v2006_v53  ;;  %v2011_v63 = vsel %vm182_vm1, %v2009_v37, 0.0  ;;  %v2095_v21 = vadd.f32 %v7039_v16, %v2094_v57 }
0x1379   :  { %2012 = vadd.xlane.f32.xlu1 %v2011_v63 }
0x137a   :  { %v2010_v1 = vmul.f32 %v2008_v55, %v2008_v55 }
0x137c   :  { %v2014_v50 = vsel %vm182_vm1, %v2010_v1, 0.0 }
0x137d   :  { %2015 = vadd.xlane.f32.xlu0 %v2014_v50 }
0x138a   :  { %2157 = vrot.lane.b32.xlu1 %v5968_v31, %s6233_s2 }
0x138e   :  { %2161 = vrot.lane.b32.xlu1 %v7039_v16, %s6233_s2 }
0x1392   :  { %2211 = vrot.lane.b32.xlu1 %v5968_v31, %s6230_s1  ;;  %v7088_v31 = vpack.c.bf16 %v2095_v21, %v2092_v3 }
0x1393   :  { %2155 = vrot.lane.b32.xlu0 %v5969_v29, %s6233_s2 }
0x1397   :  { %2209 = vrot.lane.b32.xlu0 %v5969_v29, %s6230_s1 }
0x1402   :  { %v2013_v47 = vpop.xlane.xlu1 %2012 }
0x1403   :  { %v2017_v56 = vmul.f32 0.03125, %v2013_v47 }
0x1405   :  { %v2019_v4 = vadd.f32 1e-05, %v2017_v56  ;;  %v2132_v56 = vadd.f32 %v5643_v45, %v7039_v16 }
0x1406   :  { %v2016_v49 = vpop.xlane.xlu0 %2015  ;;  %v2158_v36 = vpop.permute.xlu1 %2157 }
0x1407   :  { %6012 = vrsqrt.f32 %v2019_v4  ;;  %v2018_v42 = vmul.f32 0.03125, %v2016_v49  ;;  %5650 = vmatpush3.bf16.msra.mxu1 %v2158_v36 }
0x1408   :  { %5651 = vmatprep.subr.bf16.mxu1 %v6228_v0 }
0x1409   :  { %v2020_v32 = vadd.f32 1e-05, %v2018_v42 }
0x140a   :  { %v2156_v46 = vpop.permute.xlu0 %2155  ;;  %v2162_v27 = vpop.permute.xlu1 %2161 }
0x140b   :  { %6014 = vrsqrt.f32 %v2020_v32  ;;  %5652 = vmatpush3.bf16.msra.mxu1 %v2156_v46 }
0x140c   :  { %5657 = vmatprep.subr.bf16.mxu1 %v6228_v0 }
0x140e   :  { %v2212_v60 = vpop.permute.xlu1 %2211  ;;  %v2210_v22 = vpop.permute.xlu0 %2209 }
0x1414   :  { %v6013_v2 = vpop.eup %6012 }
0x1415   :  { %v2023_v13 = vmul.f32 %v6013_v2, %v2007_v33  ;;  %v5644_v33 = vpop.f32.mrf.mxu0 }
0x1416   :  { %v2135_v4 = vadd.f32 %v5644_v33, %v7039_v16 }
0x1417   :  { %v2029_v18 = vmul.f32 %v2028_v28, %v2023_v13  ;;  %v2126_v53 = vpop.f32.mrf.mxu0 }
0x1418   :  { %v6015_v7 = vpop.eup %6014  ;;  %v2127_v37 = vadd.f32 %v7039_v16, %v2126_v53  ;;  %v7127_v32 = vpack.c.bf16 %v2135_v4, %v2132_v56 }
0x1419   :  { %v2024_v11 = vmul.f32 %v6015_v7, %v2008_v55  ;;  %v7067_v43 = vadd.f32 %v2034_v30, %v2029_v18  ;;  %v5647_v63 = vpop.f32.mrf.mxu0 }
0x141a   :  { %v7097_v55 = vpack.c.bf16 %v2127_v37, %v2124_v35  ;;  %v2148_v46 = vadd.f32 %v5647_v63, %v7039_v16 }
0x141b   :  { %v2030_v25 = vmul.f32 %v2028_v28, %v2024_v11  ;;  %v2037_v12 = vadd.f32 %v6198_v8, %v7067_v43  ;;  %v2139_v1 = vpop.f32.mrf.mxu0 }
0x141c   :  { %5677 = vmatprep.mubr.msk.bf16.mxu0 %vm332_vm4, %v7097_v55  ;;  %v2140_v26 = vadd.f32 %v7039_v16, %v2139_v1 }
0x141d   :  { %v7069_v19 = vadd.f32 %v2034_v30, %v2030_v25  ;;  %v5648_v10 = vpop.f32.mrf.mxu0 }
0x141e   :  { %v2151_v41 = vadd.f32 %v5648_v10, %v7039_v16 }
0x141f   :  { %v2038_v59 = vadd.f32 %v6199_v14, %v7069_v19  ;;  %v2208_v29 = vpack.c.bf16 %v7069_v19, %v7067_v43  ;;  %v2142_v58 = vpop.f32.mrf.mxu0 }
0x1420   :  { %v2143_v47 = vadd.f32 %v7039_v16, %v2142_v58  ;;  %v7137_v44 = vpack.c.bf16 %v2151_v41, %v2148_v46 }
0x1421   :  { %v7079_v48 = vpack.c.bf16 %v2038_v59, %v2037_v12 }
0x1422   :  { %v7123_v36 = vpack.c.bf16 %v2143_v47, %v2140_v26 }
0x1423   :  { %5654 = vmatmul.mubr.msk.bf16.vlgmr.msra.gmra.mxu1 %vm182_vm1, %v7079_v48 }
0x1424   :  { %5658 = vmatpush3.bf16.msra.mxu1 %v2212_v60  ;;  %5661 = vmatprep.mubr.msk.bf16.mxu1 %vm6229_vm0, %v6228_v0 }
0x1425   :  { %5659 = vmatprep.subr.bf16.mxu1 %v6228_v0 }
0x1428   :  { %5660 = vmatpush3.bf16.msra.mxu1 %v2210_v22 }
0x142b   :  { %5662 = vmatmul.mubr.msk.bf16.vlgmr.msra.gmra.mxu1 %vm182_vm1, %v2208_v29 }
0x142c   :  { %5667 = vmatprep.mubr.msk.bf16.mxu1 %vm332_vm4, %v7088_v31 }
0x14e3   :  { %v2201_v50 = vpop.f32.mrf.mxu1 }
0x14e4   :  { %v2202_v17 = vadd.f32 %v2201_v50, %v2162_v27 }
0x14e5   :  { %v5655_v5 = vpop.f32.mrf.mxu1 }
0x14e6   :  { %v7101_v40 = vpack.c.bf16 %v2202_v17, %v2202_v17 }
0x14e7   :  { %v2204_v52 = vpop.f32.mrf.mxu1 }
0x14e8   :  { %v2205_v57 = vadd.f32 %v2204_v52, %v2162_v27  ;;  %5937 = vmatprep.subr.msk.bf16.mxu1 %vm332_vm4, %v7101_v40  ;;  %v2285_v34 = vsel %vm332_vm4, %v7101_v40, 0 }
0x14e9   :  { %v5656_v6 = vpop.f32.mrf.mxu1  ;;  %5666 = vmatpush3.bf16.xpose.msra.mxu1 %v2285_v34 }
0x14ea   :  { %v7107_v54 = vpack.c.bf16 %v2205_v57, %v2205_v57 }
0x14eb   :  { %v7109_v61 = vpop.f32.mrf.mxu1 }
0x14ec   :  { %5938 = vmatprep.subr.msk.bf16.mxu0 %vm332_vm4, %v7107_v54  ;;  %v2365_v62 = vsel %vm332_vm4, %v7107_v54, 0 }
0x14ed   :  { %v5663_v20 = vpop.f32.mrf.mxu1  ;;  %5676 = vmatpush3.bf16.xpose.msra.mxu0 %v2365_v62 }
0x14ef   :  { %v7119_v49 = vpop.f32.mrf.mxu1 }
0x14f0   :  { %5668 = vmatmul.mubr.msk.bf16.vlgmr.msra.gmra.mxu1 %vm332_vm4, %v7048_v15 }
0x14f1   :  { %v5664_v42 = vpop.f32.mrf.mxu1  ;;  %5671 = vmatprep.mubr.msk.bf16.mxu1 %vm332_vm4, %v7056_v38 }
0x14f4   :  { %5678 = vmatmul.mubr.msk.bf16.vlgmr.msra.gmra.mxu0 %vm332_vm4, %v7127_v32 }
0x14f5   :  { %5681 = vmatprep.mubr.msk.bf16.mxu0 %vm332_vm4, %v7123_v36 }
0x14f8   :  { %5672 = vmatmul.mubr.msk.bf16.gmra.mxu1 %vm332_vm4, %v7053_v9 }
0x14fc   :  { %5682 = vmatmul.mubr.msk.bf16.gmra.mxu0 %vm332_vm4, %v7137_v44 }
0x15b4   :  { %v5679_v28 = vpop.f32.mrf.mxu0 }
0x15b5   :  { %v2442_v7 = vmul.f32 0.35355338, %v5679_v28 }
0x15b6   :  { %v2401_v2 = vpop.f32.mrf.mxu0 }
0x15b7   :  { %v2440_v13 = vmul.f32 0.35355338, %v2401_v2  ;;  %v2458_v60 = vadd.f32 %v2442_v7, %v6425_v23 }
0x15b8   :  { %v5680_v18 = vpop.f32.mrf.mxu0 }
0x15b9   :  { %v2443_v24 = vmul.f32 0.35355338, %v5680_v18  ;;  %v2456_v30 = vadd.f32 %v2440_v13, %v6425_v23  ;;  %v2494_v51 = vsel %vm332_vm4, %v2458_v60, -inf }
0x15ba   :  { %v2404_v11 = vpop.f32.mrf.mxu0 }
0x15bb   :  { %v2441_v25 = vmul.f32 0.35355338, %v2404_v11  ;;  %v2488_v27 = vsel %vm332_vm4, %v2456_v30, -inf  ;;  %v2459_v12 = vadd.f32 %v2443_v24, %v6425_v23 }
0x15bc   :  { %2489 = vmax.xlane.f32.xlu1 %v2488_v27  ;;  %v5683_v8 = vpop.f32.mrf.mxu0 }
0x15bd   :  { %v2457_v14 = vadd.f32 %v2441_v25, %v6425_v23  ;;  %v2497_v21 = vsel %vm332_vm4, %v2459_v12, -inf  ;;  %v2446_v33 = vmul.f32 0.35355338, %v5683_v8 }
0x15be   :  { %v2417_v59 = vpop.f32.mrf.mxu0 }
0x15bf   :  { %v2444_v3 = vmul.f32 0.35355338, %v2417_v59  ;;  %v2491_v22 = vsel %vm332_vm4, %v2457_v14, -inf  ;;  %v2462_v17 = vadd.f32 %v2446_v33, %v6425_v23 }
0x15c0   :  { %2498 = vmax.xlane.f32.xlu1 %v2497_v21  ;;  %2492 = vmax.xlane.f32.xlu0 %v2491_v22  ;;  %v5684_v29 = vpop.f32.mrf.mxu0 }
0x15c1   :  { %v2447_v35 = vmul.f32 0.35355338, %v5684_v29  ;;  %v2460_v37 = vadd.f32 %v2444_v3, %v6425_v23  ;;  %v2506_v10 = vsel %vm332_vm4, %v2462_v17, -inf }
0x15c2   :  { %v2420_v45 = vpop.f32.mrf.mxu0 }
0x15c3   :  { %v2445_v53 = vmul.f32 0.35355338, %v2420_v45  ;;  %v2500_v1 = vsel %vm332_vm4, %v2460_v37, -inf  ;;  %v2463_v5 = vadd.f32 %v2447_v35, %v6425_v23 }
0x15c4   :  { %2495 = vmax.xlane.f32.xlu0 %v2494_v51 }
0x15c5   :  { %v2461_v63 = vadd.f32 %v2445_v53, %v6425_v23  ;;  %v2509_v52 = vsel %vm332_vm4, %v2463_v5, -inf }
0x15c7   :  { %v2503_v50 = vsel %vm332_vm4, %v2461_v63, -inf }
0x15c8   :  { %2501 = vmax.xlane.f32.xlu0 %v2500_v1  ;;  %2504 = vmax.xlane.f32.xlu1 %v2503_v50 }
0x15cc   :  { %2507 = vmax.xlane.f32.xlu0 %v2506_v10  ;;  %2510 = vmax.xlane.f32.xlu1 %v2509_v52 }
0x15dd   :  { %2955 = vrot.lane.b32.xlu1 %v7101_v40, %s6236_s27 }
0x15e2   :  { %2215 = vrot.lane.b32.xlu0 %v7039_v16, %s6230_s1 }
0x1645   :  { %v2490_v57 = vpop.xlane.xlu1 %2489 }
0x1646   :  { %v2520_v26 = vsub.f32 %v2456_v30, %v2490_v57 }
0x1648   :  { %v2544_v42 = vmul.f32 1.442695, %v2520_v26 }
0x1649   :  { %v2499_v34 = vpop.xlane.xlu1 %2498  ;;  %v2493_v6 = vpop.xlane.xlu0 %2492 }
0x164a   :  { %v2523_v58 = vsub.f32 %v2459_v12, %v2499_v34  ;;  %v2521_v62 = vsub.f32 %v2457_v14, %v2493_v6 }
0x164c   :  { %v2550_v20 = vmul.f32 1.442695, %v2523_v58  ;;  %v2546_v47 = vmul.f32 1.442695, %v2521_v62 }
0x164d   :  { %v2496_v56 = vpop.xlane.xlu0 %2495 }
0x164e   :  { %6016 = vpow2.f32 %v2550_v20  ;;  %v2522_v4 = vsub.f32 %v2458_v60, %v2496_v56 }
0x164f   :  { %6018 = vpow2.f32 %v2546_v47 }
0x1650   :  { %v2548_v46 = vmul.f32 1.442695, %v2522_v4 }
0x1651   :  { %v2502_v41 = vpop.xlane.xlu0 %2501  ;;  %v2505_v28 = vpop.xlane.xlu1 %2504 }
0x1652   :  { %6020 = vpow2.f32 %v2548_v46  ;;  %v2524_v40 = vsub.f32 %v2460_v37, %v2502_v41  ;;  %v2525_v16 = vsub.f32 %v2461_v63, %v2505_v28 }
0x1653   :  { %6022 = vpow2.f32 %v2544_v42 }
0x1654   :  { %v2552_v7 = vmul.f32 1.442695, %v2524_v40  ;;  %v2554_v25 = vmul.f32 1.442695, %v2525_v16 }
0x1655   :  { %v2508_v2 = vpop.xlane.xlu0 %2507  ;;  %v2511_v13 = vpop.xlane.xlu1 %2510 }
0x1656   :  { %v2526_v18 = vsub.f32 %v2462_v17, %v2508_v2  ;;  %v2527_v24 = vsub.f32 %v2463_v5, %v2511_v13 }
0x1658   :  { %v2556_v30 = vmul.f32 1.442695, %v2526_v18  ;;  %v2558_v11 = vmul.f32 1.442695, %v2527_v24 }
0x1659   :  { %v2216_v27 = vpop.permute.xlu0 %2215  ;;  %v7183_v29 = vpop.permute.xlu1 %2955 }
0x165a   :  { %6024 = vpow2.f32 %v2556_v30  ;;  %v2256_v8 = vadd.f32 %v7109_v61, %v2216_v27  ;;  %v2259_v12 = vadd.f32 %v7119_v49, %v2216_v27 }
0x165b   :  { %v7163_v14 = vpop.eup %6016  ;;  %6026 = vpow2.f32 %v2558_v11 }
0x165c   :  { %6028 = vpow2.f32 %v2552_v7  ;;  %v7165_v59 = vpack.c.bf16 %v2256_v8, %v2256_v8  ;;  %v7167_v60 = vpack.c.bf16 %v2259_v12, %v2259_v12  ;;  %v2593_v3 = vsel %vm332_vm4, %v7163_v14, 0.0  ;;  %v7171_v21 = vpop.eup %6018 }
0x165d   :  { %6030 = vpow2.f32 %v2554_v25  ;;  %2594 = vadd.xlane.f32.xlu1 %v2593_v3  ;;  %v2587_v51 = vsel %vm332_vm4, %v7171_v21, 0.0 }
0x165e   :  { %5939 = vmatprep.subr.msk.bf16.mxu1 %vm362_vm5, %v7165_v59  ;;  %5940 = vmatprep.subr.msk.bf16.mxu0 %vm362_vm5, %v7167_v60  ;;  %v2663_v61 = vsel %vm362_vm5, %v7165_v59, 0  ;;  %v2743_v49 = vsel %vm362_vm5, %v7167_v60, 0 }
0x165f   :  { %v7181_v22 = vpop.eup %6020  ;;  %5686 = vmatpush3.bf16.msra.mxu1 %v2663_v61  ;;  %5696 = vmatpush3.bf16.msra.mxu0 %v2743_v49 }
0x1660   :  { %5942 = vmatprep.subr.msk.bf16.mxu0 %vm332_vm4, %v7183_v29  ;;  %v2590_v45 = vsel %vm332_vm4, %v7181_v22, 0.0  ;;  %v7191_v33 = vpop.eup %6022 }
0x1661   :  { %2591 = vadd.xlane.f32.xlu0 %v2590_v45  ;;  %2588 = vadd.xlane.f32.xlu1 %v2587_v51  ;;  %v2584_v35 = vsel %vm332_vm4, %v7191_v33, 0.0 }
0x1665   :  { %2585 = vadd.xlane.f32.xlu0 %v2584_v35 }
0x1667   :  { %v7195_v53 = vpop.eup %6024 }
0x1668   :  { %v7197_v37 = vpop.eup %6026  ;;  %v2602_v63 = vsel %vm332_vm4, %v7195_v53, 0.0 }
0x1669   :  { %v7201_v1 = vpop.eup %6028  ;;  %2603 = vadd.xlane.f32.xlu0 %v2602_v63  ;;  %v2605_v50 = vsel %vm332_vm4, %v7197_v37, 0.0 }
0x166a   :  { %v7205_v17 = vpop.eup %6030  ;;  %2606 = vadd.xlane.f32.xlu1 %v2605_v50  ;;  %v2596_v5 = vsel %vm332_vm4, %v7201_v1, 0.0 }
0x166b   :  { %v2599_v10 = vsel %vm332_vm4, %v7205_v17, 0.0 }
0x166d   :  { %2597 = vadd.xlane.f32.xlu0 %v2596_v5 }
0x166e   :  { %2600 = vadd.xlane.f32.xlu1 %v2599_v10 }
0x167f   :  { %2946 = vrot.lane.b32.xlu1 %v7088_v31, %s6236_s27 }
0x1683   :  { %2950 = vrot.lane.b32.xlu1 %v7056_v38, %s6236_s27  ;;  %2948 = vrot.lane.b32.xlu0 %v7048_v15, %s6236_s27  ;;  %v5669_v38 = vpop.f32.mrf.mxu1 }
0x1685   :  { %v2321_v15 = vpop.f32.mrf.mxu1 }
0x1686   :  { %v2432_v57 = vmul.f32 0.35355338, %v2321_v15 }
0x1687   :  { %3050 = vrot.lane.b32.xlu1 %v7107_v54, %s6236_s27  ;;  %2952 = vrot.lane.b32.xlu0 %v7053_v9, %s6236_s27  ;;  %v5670_v31 = vpop.f32.mrf.mxu1  ;;  %v2434_v9 = vmul.f32 0.35355338, %v5669_v38 }
0x1688   :  { %v7230_v6 = vadd.f32 %v2432_v57, %v6425_v23 }
0x1689   :  { %v2324_v52 = vpop.f32.mrf.mxu1  ;;  %v7235_v62 = vadd.f32 %v2434_v9, %v6425_v23  ;;  %v2970_v9 = vsel %vm332_vm4, %v7183_v29, 0 }
0x168b   :  { %3043 = vrot.lane.b32.xlu1 %v7127_v32, %s6236_s27  ;;  %3041 = vrot.lane.b32.xlu0 %v7097_v55, %s6236_s27  ;;  %v5673_v54 = vpop.f32.mrf.mxu1  ;;  %v2433_v32 = vmul.f32 0.35355338, %v2324_v52  ;;  %v2435_v55 = vmul.f32 0.35355338, %v5670_v31  ;;  %v2470_v56 = vsel %vm332_vm4, %v7235_v62, -inf }
0x168c   :  { %v2438_v42 = vmul.f32 0.35355338, %v5673_v54 }
0x168d   :  { %v2337_v34 = vpop.f32.mrf.mxu1  ;;  %v7243_v4 = vadd.f32 %v2435_v55, %v6425_v23 }
0x168e   :  { %v2436_v26 = vmul.f32 0.35355338, %v2337_v34  ;;  %v7256_v2 = vadd.f32 %v2438_v42, %v6425_v23 }
0x168f   :  { %3047 = vrot.lane.b32.xlu1 %v7137_v44, %s6236_s27  ;;  %3045 = vrot.lane.b32.xlu0 %v7123_v36, %s6236_s27  ;;  %v5674_v58 = vpop.f32.mrf.mxu1  ;;  %v2464_v44 = vsel %vm332_vm4, %v7230_v6, -inf  ;;  %v7238_v36 = vadd.f32 %v2433_v32, %v6425_v23  ;;  %v2473_v40 = vsel %vm332_vm4, %v7243_v4, -inf }
0x1690   :  { %v7246_v46 = vadd.f32 %v2436_v26, %v6425_v23  ;;  %v2439_v28 = vmul.f32 0.35355338, %v5674_v58  ;;  %v2482_v7 = vsel %vm332_vm4, %v7256_v2, -inf }
0x1691   :  { %v2340_v20 = vpop.f32.mrf.mxu1  ;;  %v2467_v41 = vsel %vm332_vm4, %v7238_v36, -inf }
0x1692   :  { %v2437_v47 = vmul.f32 0.35355338, %v2340_v20  ;;  %v2476_v13 = vsel %vm332_vm4, %v7246_v46, -inf  ;;  %v7263_v24 = vadd.f32 %v2439_v28, %v6425_v23 }
0x1694   :  { %v7253_v16 = vadd.f32 %v2437_v47, %v6425_v23  ;;  %v2485_v30 = vsel %vm332_vm4, %v7263_v24, -inf }
0x1696   :  { %v2479_v18 = vsel %vm332_vm4, %v7253_v16, -inf }
0x16ae   :  { %2465 = vmax.xlane.f32.xlu0 %v2464_v44 }
0x16b2   :  { %2471 = vmax.xlane.f32.xlu0 %v2470_v56 }
0x16b3   :  { %2468 = vmax.xlane.f32.xlu1 %v2467_v41 }
0x16b6   :  { %2474 = vmax.xlane.f32.xlu0 %v2473_v40 }
0x16b7   :  { %2477 = vmax.xlane.f32.xlu1 %v2476_v13 }
0x16ba   :  { %2480 = vmax.xlane.f32.xlu0 %v2479_v18 }
0x16bb   :  { %2483 = vmax.xlane.f32.xlu1 %v2482_v7 }
0x16be   :  { %2486 = vmax.xlane.f32.xlu0 %v2485_v30 }
0x16e6   :  { %v2595_v11 = vpop.xlane.xlu1 %2594 }
0x16ea   :  { %v2592_v25 = vpop.xlane.xlu0 %2591  ;;  %v2589_v27 = vpop.xlane.xlu1 %2588 }
0x16eb   :  { %6032 = vrcp.f32 %v2592_v25 }
0x16ec   :  { %6034 = vrcp.f32 %v2589_v27 }
0x16ed   :  { %6036 = vrcp.f32 %v2595_v11 }
0x16ee   :  { %v2586_v8 = vpop.xlane.xlu0 %2585 }
0x16ef   :  { %6038 = vrcp.f32 %v2586_v8 }
0x16f2   :  { %v2604_v12 = vpop.xlane.xlu0 %2603 }
0x16f3   :  { %v2607_v3 = vpop.xlane.xlu1 %2606  ;;  %6040 = vrcp.f32 %v2604_v12 }
0x16f4   :  { %6042 = vrcp.f32 %v2607_v3 }
0x16f6   :  { %v2598_v61 = vpop.xlane.xlu0 %2597 }
0x16f7   :  { %6044 = vrcp.f32 %v2598_v61  ;;  %v2601_v49 = vpop.xlane.xlu1 %2600 }
0x16f8   :  { %6046 = vrcp.f32 %v2601_v49  ;;  %v6033_v45 = vpop.eup %6032 }
0x16f9   :  { %v6035_v51 = vpop.eup %6034  ;;  %v2634_v5 = vmul.f32 %v6033_v45, %v7181_v22 }
0x16fa   :  { %v6037_v35 = vpop.eup %6036  ;;  %v2633_v38 = vmul.f32 %v6035_v51, %v7171_v21  ;;  %v2949_v29 = vpop.permute.xlu0 %2948 }
0x16fb   :  { %v2947_v63 = vpop.permute.xlu1 %2946  ;;  %v2635_v15 = vmul.f32 %v6037_v35, %v7163_v14 }
0x16fc   :  { %v6039_v50 = vpop.eup %6038 }
0x16fd   :  { %v2632_v10 = vmul.f32 %v6039_v50, %v7191_v33  ;;  %v2645_v54 = vpack.c.bf16 %v2635_v15, %v2634_v5 }
0x16ff   :  { %v2951_v31 = vpop.permute.xlu1 %2950  ;;  %v2644_v52 = vpack.c.bf16 %v2633_v38, %v2632_v10 }
0x1700   :  { %v6041_v57 = vpop.eup %6040 }
0x1701   :  { %5697 = vmatprep.mubr.msk.bf16.mxu0 %vm332_vm4, %v2644_v52  ;;  %v6043_v34 = vpop.eup %6042  ;;  %v2638_v33 = vmul.f32 %v6041_v57, %v7195_v53  ;;  %v2953_v53 = vpop.permute.xlu0 %2952 }
0x1702   :  { %5698 = vmatmul.mubr.msk.bf16.vlgmr.msra.gmra.mxu0 %vm332_vm4, %v2645_v54  ;;  %v2639_v58 = vmul.f32 %v6043_v34, %v7197_v37 }
0x1703   :  { %5724 = vmatpush3.bf16.xpose.msra.mxu0 %v2970_v9  ;;  %v3051_v22 = vpop.permute.xlu1 %3050 }
0x1704   :  { %v6045_v32 = vpop.eup %6044  ;;  %5943 = vmatprep.subr.msk.bf16.mxu0 %vm332_vm4, %v3051_v22  ;;  %v2647_v26 = vpack.c.bf16 %v2639_v58, %v2638_v33  ;;  %v3065_v20 = vsel %vm332_vm4, %v3051_v22, 0 }
0x1705   :  { %v6047_v21 = vpop.eup %6046  ;;  %v2636_v14 = vmul.f32 %v6045_v32, %v7201_v1  ;;  %v3042_v37 = vpop.permute.xlu0 %3041 }
0x1706   :  { %v2637_v55 = vmul.f32 %v6047_v21, %v7205_v17 }
0x1707   :  { %v3044_v1 = vpop.permute.xlu1 %3043 }
0x1708   :  { %v2646_v44 = vpack.c.bf16 %v2637_v55, %v2636_v14 }
0x1709   :  { %v3046_v17 = vpop.permute.xlu0 %3045 }
0x170a   :  { %5701 = vmatprep.mubr.msk.bf16.mxu0 %vm332_vm4, %v2646_v44 }
0x170b   :  { %5702 = vmatmul.mubr.msk.bf16.gmra.mxu0 %vm332_vm4, %v2647_v26  ;;  %v3048_v47 = vpop.permute.xlu1 %3047 }
0x170c   :  { %5725 = vmatprep.mubr.msk.bf16.mxu0 %vm332_vm4, %v2947_v63 }
0x1713   :  { %5726 = vmatmul.mubr.msk.bf16.vlgmr.msra.gmra.mxu0 %vm332_vm4, %v2949_v29 }
0x1714   :  { %5734 = vmatpush3.bf16.xpose.msra.mxu0 %v3065_v20  ;;  %5729 = vmatprep.mubr.msk.bf16.mxu0 %vm332_vm4, %v2951_v31 }
0x171b   :  { %5730 = vmatmul.mubr.msk.bf16.gmra.mxu0 %vm332_vm4, %v2953_v53 }
0x171c   :  { %5735 = vmatprep.mubr.msk.bf16.mxu0 %vm332_vm4, %v3042_v37 }
0x1723   :  { %5736 = vmatmul.mubr.msk.bf16.vlgmr.msra.gmra.mxu0 %vm332_vm4, %v3044_v1 }
0x1724   :  { %5739 = vmatprep.mubr.msk.bf16.mxu0 %vm332_vm4, %v3046_v17 }
0x172b   :  { %5740 = vmatmul.mubr.msk.bf16.gmra.mxu0 %vm332_vm4, %v3048_v47 }
0x1737   :  { %v2466_v56 = vpop.xlane.xlu0 %2465 }
0x1738   :  { %v2512_v42 = vsub.f32 %v7230_v6, %v2466_v56 }
0x173a   :  { %v2528_v41 = vmul.f32 1.442695, %v2512_v42 }
0x173b   :  { %v2472_v28 = vpop.xlane.xlu0 %2471 }
0x173c   :  { %6048 = vpow2.f32 %v2528_v41  ;;  %v2514_v40 = vsub.f32 %v7235_v62, %v2472_v28  ;;  %v2469_v13 = vpop.xlane.xlu1 %2468 }
0x173d   :  { %v2513_v18 = vsub.f32 %v7238_v36, %v2469_v13 }
0x173e   :  { %v2532_v7 = vmul.f32 1.442695, %v2514_v40 }
0x173f   :  { %v2530_v30 = vmul.f32 1.442695, %v2513_v18  ;;  %v2475_v11 = vpop.xlane.xlu0 %2474 }
0x1740   :  { %6050 = vpow2.f32 %v2532_v7  ;;  %v2515_v25 = vsub.f32 %v7243_v4, %v2475_v11  ;;  %v2478_v27 = vpop.xlane.xlu1 %2477 }
0x1741   :  { %6052 = vpow2.f32 %v2530_v30  ;;  %v2516_v8 = vsub.f32 %v7246_v46, %v2478_v27 }
0x1742   :  { %v2534_v12 = vmul.f32 1.442695, %v2515_v25 }
0x1743   :  { %v2536_v6 = vmul.f32 1.442695, %v2516_v8  ;;  %v2481_v3 = vpop.xlane.xlu0 %2480 }
0x1744   :  { %6054 = vpow2.f32 %v2534_v12  ;;  %v2484_v61 = vpop.xlane.xlu1 %2483  ;;  %v2517_v62 = vsub.f32 %v7253_v16, %v2481_v3 }
0x1745   :  { %6056 = vpow2.f32 %v2536_v6  ;;  %v2518_v36 = vsub.f32 %v7256_v2, %v2484_v61 }
0x1746   :  { %v2538_v49 = vmul.f32 1.442695, %v2517_v62 }
0x1747   :  { %v2540_v45 = vmul.f32 1.442695, %v2518_v36  ;;  %v2487_v51 = vpop.xlane.xlu0 %2486 }
0x1748   :  { %6058 = vpow2.f32 %v2538_v49  ;;  %v2519_v4 = vsub.f32 %v7263_v24, %v2487_v51 }
0x1749   :  { %v7301_v35 = vpop.eup %6048  ;;  %6060 = vpow2.f32 %v2540_v45 }
0x174a   :  { %v2542_v46 = vmul.f32 1.442695, %v2519_v4  ;;  %v2560_v63 = vsel %vm332_vm4, %v7301_v35, 0.0 }
0x174b   :  { %2561 = vadd.xlane.f32.xlu1 %v2560_v63 }
0x174c   :  { %6062 = vpow2.f32 %v2542_v46 }
0x174d   :  { %v7305_v50 = vpop.eup %6050 }
0x174e   :  { %v7307_v16 = vpop.eup %6052  ;;  %v2566_v2 = vsel %vm332_vm4, %v7305_v50, 0.0 }
0x174f   :  { %2567 = vadd.xlane.f32.xlu1 %v2566_v2  ;;  %v2563_v24 = vsel %vm332_vm4, %v7307_v16, 0.0 }
0x1750   :  { %2564 = vadd.xlane.f32.xlu0 %v2563_v24 }
0x1751   :  { %v7313_v5 = vpop.eup %6054 }
0x1752   :  { %v7315_v10 = vpop.eup %6056  ;;  %v2569_v38 = vsel %vm332_vm4, %v7313_v5, 0.0 }
0x1753   :  { %v2572_v15 = vsel %vm332_vm4, %v7315_v10, 0.0 }
0x1754   :  { %2573 = vadd.xlane.f32.xlu1 %v2572_v15  ;;  %2570 = vadd.xlane.f32.xlu0 %v2569_v38 }
0x1755   :  { %v7321_v31 = vpop.eup %6058 }
0x1756   :  { %v7323_v52 = vpop.eup %6060  ;;  %v2575_v54 = vsel %vm332_vm4, %v7321_v31, 0.0 }
0x1757   :  { %v2578_v57 = vsel %vm332_vm4, %v7323_v52, 0.0 }
0x1758   :  { %2579 = vadd.xlane.f32.xlu1 %v2578_v57  ;;  %2576 = vadd.xlane.f32.xlu0 %v2575_v54 }
0x1759   :  { %v7329_v34 = vpop.eup %6062 }
0x175a   :  { %v2581_v9 = vsel %vm332_vm4, %v7329_v34, 0.0 }
0x175c   :  { %2582 = vadd.xlane.f32.xlu0 %v2581_v9 }
0x17c2   :  { %v7333_v22 = vpop.f32.mrf.mxu0 }
0x17c4   :  { %v7335_v32 = vpop.f32.mrf.mxu0 }
0x17c6   :  { %v7337_v21 = vpop.f32.mrf.mxu0 }
0x17c7   :  { %v2815_v14 = vpack.c.bf16 %v7337_v21, %v7333_v22 }
0x17c8   :  { %v7341_v33 = vpop.f32.mrf.mxu0 }
0x17c9   :  { %v2814_v58 = vpack.c.bf16 %v7341_v33, %v7335_v32 }
0x17cb   :  { %v7345_v55 = vpop.f32.mrf.mxu0 }
0x17cd   :  { %v7347_v44 = vpop.f32.mrf.mxu0 }
0x17cf   :  { %v7349_v26 = vpop.f32.mrf.mxu0 }
0x17d0   :  { %v2817_v29 = vpack.c.bf16 %v7349_v26, %v7345_v55 }
0x17d1   :  { %v7353_v20 = vpop.f32.mrf.mxu0 }
0x17d2   :  { %v2816_v53 = vpack.c.bf16 %v7353_v20, %v7347_v44 }
0x17d3   :  { %v5727_v37 = vpop.f32.mrf.mxu0 }
0x17d4   :  { %v2562_v1 = vpop.xlane.xlu1 %2561  ;;  %v3134_v17 = vmul.f32 0.35355338, %v5727_v37 }
0x17d5   :  { %v3006_v47 = vpop.f32.mrf.mxu0  ;;  %6064 = vrcp.f32 %v2562_v1 }
0x17d6   :  { %v3132_v56 = vmul.f32 0.35355338, %v3006_v47  ;;  %v7361_v40 = vadd.f32 %v3134_v17, %v6425_v23 }
0x17d7   :  { %v5728_v42 = vpop.f32.mrf.mxu0 }
0x17d8   :  { %v7358_v41 = vadd.f32 %v3132_v56, %v6425_v23  ;;  %v2568_v28 = vpop.xlane.xlu1 %2567  ;;  %v3135_v7 = vmul.f32 0.35355338, %v5728_v42  ;;  %v3170_v6 = vsel %vm332_vm4, %v7361_v40, -inf }
0x17d9   :  { %v3009_v13 = vpop.f32.mrf.mxu0  ;;  %v2565_v18 = vpop.xlane.xlu0 %2564 }
0x17da   :  { %v3133_v30 = vmul.f32 0.35355338, %v3009_v13  ;;  %6066 = vrcp.f32 %v2565_v18  ;;  %v3164_v11 = vsel %vm332_vm4, %v7358_v41, -inf  ;;  %v7371_v3 = vadd.f32 %v3135_v7, %v6425_v23 }
0x17db   :  { %v5731_v25 = vpop.f32.mrf.mxu0  ;;  %3165 = vmax.xlane.f32.xlu1 %v3164_v11  ;;  %6068 = vrcp.f32 %v2568_v28 }
0x17dc   :  { %v7366_v27 = vadd.f32 %v3133_v30, %v6425_v23  ;;  %v3138_v61 = vmul.f32 0.35355338, %v5731_v25  ;;  %v3173_v54 = vsel %vm332_vm4, %v7371_v3, -inf }
0x17dd   :  { %v3022_v8 = vpop.f32.mrf.mxu0  ;;  %v2574_v12 = vpop.xlane.xlu1 %2573 }
0x17de   :  { %v3136_v62 = vmul.f32 0.35355338, %v3022_v8  ;;  %v2571_v36 = vpop.xlane.xlu0 %2570  ;;  %v3167_v49 = vsel %vm332_vm4, %v7366_v27, -inf  ;;  %v7379_v63 = vadd.f32 %v3138_v61, %v6425_v23 }
0x17df   :  { %6070 = vrcp.f32 %v2571_v36  ;;  %v5732_v45 = vpop.f32.mrf.mxu0  ;;  %3171 = vmax.xlane.f32.xlu1 %v3170_v6  ;;  %3168 = vmax.xlane.f32.xlu0 %v3167_v49 }
0x17e0   :  { %v7376_v51 = vadd.f32 %v3136_v62, %v6425_v23  ;;  %6072 = vrcp.f32 %v2574_v12  ;;  %v3139_v4 = vmul.f32 0.35355338, %v5732_v45  ;;  %v3182_v28 = vsel %vm332_vm4, %v7379_v63, -inf }
0x17e1   :  { %v3025_v46 = vpop.f32.mrf.mxu0  ;;  %v2580_v24 = vpop.xlane.xlu1 %2579 }
0x17e2   :  { %v3137_v2 = vmul.f32 0.35355338, %v3025_v46  ;;  %v2577_v38 = vpop.xlane.xlu0 %2576  ;;  %v3176_v15 = vsel %vm332_vm4, %v7376_v51, -inf  ;;  %v6065_v37 = vpop.eup %6064  ;;  %v7389_v1 = vadd.f32 %v3139_v4, %v6425_v23 }
0x17e3   :  { %6074 = vrcp.f32 %v2577_v38  ;;  %v5737_v57 = vpop.f32.mrf.mxu0  ;;  %3177 = vmax.xlane.f32.xlu1 %v3176_v15  ;;  %3174 = vmax.xlane.f32.xlu0 %v3173_v54  ;;  %v2624_v11 = vmul.f32 %v6065_v37, %v7301_v35 }
0x17e4   :  { %v7386_v9 = vadd.f32 %v3137_v2, %v6425_v23  ;;  %6076 = vrcp.f32 %v2580_v24  ;;  %v3142_v47 = vmul.f32 0.35355338, %v5737_v57  ;;  %v3185_v6 = vsel %vm332_vm4, %v7389_v1, -inf }
0x17e5   :  { %v3101_v17 = vpop.f32.mrf.mxu0 }
0x17e6   :  { %v3140_v56 = vmul.f32 0.35355338, %v3101_v17  ;;  %v2583_v42 = vpop.xlane.xlu0 %2582  ;;  %v3179_v13 = vsel %vm332_vm4, %v7386_v9, -inf  ;;  %v7403_v62 = vadd.f32 %v3142_v47, %v6425_v23 }
0x17e7   :  { %v6067_v18 = vpop.eup %6066  ;;  %6078 = vrcp.f32 %v2583_v42  ;;  %v5738_v7 = vpop.f32.mrf.mxu0  ;;  %3183 = vmax.xlane.f32.xlu1 %v3182_v28  ;;  %3180 = vmax.xlane.f32.xlu0 %v3179_v13 }
0x17e8   :  { %v7396_v30 = vadd.f32 %v3140_v56, %v6425_v23  ;;  %v2625_v25 = vmul.f32 %v6067_v18, %v7307_v16  ;;  %v3143_v8 = vmul.f32 0.35355338, %v5738_v7  ;;  %v6069_v61 = vpop.eup %6068  ;;  %v3194_v37 = vsel %vm332_vm4, %v7403_v62, -inf }
0x17e9   :  { %v3104_v12 = vpop.f32.mrf.mxu0  ;;  %v2626_v46 = vmul.f32 %v6069_v61, %v7305_v50 }
0x17ea   :  { %v3141_v36 = vmul.f32 0.35355338, %v3104_v12  ;;  %v3188_v49 = vsel %vm332_vm4, %v7396_v30, -inf  ;;  %v2640_v45 = vpack.c.bf16 %v2625_v25, %v2624_v11  ;;  %v7414_v24 = vadd.f32 %v3143_v8, %v6425_v23 }
0x17eb   :  { %v5741_v4 = vpop.f32.mrf.mxu0  ;;  %3189 = vmax.xlane.f32.xlu1 %v3188_v49  ;;  %3186 = vmax.xlane.f32.xlu0 %v3185_v6 }
0x17ec   :  { %v6071_v35 = vpop.eup %6070  ;;  %v7408_v16 = vadd.f32 %v3141_v36, %v6425_v23  ;;  %5687 = vmatprep.mubr.msk.bf16.mxu1 %vm332_vm4, %v2640_v45  ;;  %v3146_v54 = vmul.f32 0.35355338, %v5741_v4  ;;  %v3197_v28 = vsel %vm332_vm4, %v7414_v24, -inf }
0x17ed   :  { %v2627_v2 = vmul.f32 %v6071_v35, %v7313_v5  ;;  %v3117_v38 = vpop.f32.mrf.mxu0  ;;  %v6073_v15 = vpop.eup %6072 }
0x17ee   :  { %v3144_v57 = vmul.f32 0.35355338, %v3117_v38  ;;  %v3191_v17 = vsel %vm332_vm4, %v7408_v16, -inf  ;;  %v2628_v13 = vmul.f32 %v6073_v15, %v7315_v10  ;;  %v7429_v11 = vadd.f32 %v3146_v54, %v6425_v23 }
0x17ef   :  { %v5742_v47 = vpop.f32.mrf.mxu0  ;;  %3195 = vmax.xlane.f32.xlu1 %v3194_v37  ;;  %3192 = vmax.xlane.f32.xlu0 %v3191_v17  ;;  %v2641_v56 = vpack.c.bf16 %v2627_v2, %v2626_v46 }
0x17f0   :  { %v6075_v50 = vpop.eup %6074  ;;  %v7421_v5 = vadd.f32 %v3144_v57, %v6425_v23  ;;  %v3147_v25 = vmul.f32 0.35355338, %v5742_v47  ;;  %v3206_v45 = vsel %vm332_vm4, %v7429_v11, -inf }
0x17f1   :  { %5688 = vmatmul.mubr.msk.bf16.vlgmr.msra.gmra.mxu1 %vm332_vm4, %v2641_v56  ;;  %v3120_v42 = vpop.f32.mrf.mxu0  ;;  %v2629_v18 = vmul.f32 %v6075_v50, %v7321_v31  ;;  %v6077_v7 = vpop.eup %6076 }
0x17f2   :  { %v3145_v8 = vmul.f32 0.35355338, %v3120_v42  ;;  %v3200_v12 = vsel %vm332_vm4, %v7421_v5, -inf  ;;  %v2630_v10 = vmul.f32 %v6077_v7, %v7323_v52  ;;  %v7440_v49 = vadd.f32 %v3147_v25, %v6425_v23 }
0x17f3   :  { %3201 = vmax.xlane.f32.xlu1 %v3200_v12  ;;  %3198 = vmax.xlane.f32.xlu0 %v3197_v28  ;;  %v2642_v6 = vpack.c.bf16 %v2629_v18, %v2628_v13 }
0x17f4   :  { %v6079_v61 = vpop.eup %6078  ;;  %v7434_v36 = vadd.f32 %v3145_v8, %v6425_v23  ;;  %v3209_v46 = vsel %vm332_vm4, %v7440_v49, -inf  ;;  %v134_v23 = vld [vmem:[%s8374_s19] sm:$0xf] }
0x17f5   :  { %5691 = vmatprep.mubr.msk.bf16.mxu1 %vm332_vm4, %v2642_v6  ;;  %v2631_v31 = vmul.f32 %v6079_v61, %v7329_v34  ;;  %5941 = vmatprep.subr.msk.bf16.mxu1 %vm362_vm5, %v134_v23  ;;  %v2843_v52 = vsel %vm362_vm5, %v134_v23, 0 }
0x17f6   :  { %v3203_v4 = vsel %vm332_vm4, %v7434_v36, -inf  ;;  %5706 = vmatpush3.bf16.msra.mxu1 %v2843_v52 }
0x17f7   :  { %3207 = vmax.xlane.f32.xlu1 %v3206_v45  ;;  %3204 = vmax.xlane.f32.xlu0 %v3203_v4  ;;  %v2643_v35 = vpack.c.bf16 %v2631_v31, %v2630_v10 }
0x17f9   :  { %5692 = vmatmul.mubr.msk.bf16.gmra.mxu1 %vm332_vm4, %v2643_v35 }
0x17fb   :  { %3210 = vmax.xlane.f32.xlu0 %v3209_v46 }
0x1864   :  { %v3166_v34 = vpop.xlane.xlu1 %3165 }
0x1865   :  { %v3212_v2 = vsub.f32 %v7358_v41, %v3166_v34 }
0x1867   :  { %v3228_v57 = vmul.f32 1.442695, %v3212_v2 }
0x1868   :  { %v3172_v38 = vpop.xlane.xlu1 %3171  ;;  %v3169_v15 = vpop.xlane.xlu0 %3168 }
0x1869   :  { %v3214_v54 = vsub.f32 %v7361_v40, %v3172_v38  ;;  %v3213_v17 = vsub.f32 %v7366_v27, %v3169_v15 }
0x186b   :  { %v3232_v37 = vmul.f32 1.442695, %v3214_v54  ;;  %v3230_v13 = vmul.f32 1.442695, %v3213_v17 }
0x186c   :  { %v3178_v47 = vpop.xlane.xlu1 %3177  ;;  %v3175_v56 = vpop.xlane.xlu0 %3174 }
0x186d   :  { %6080 = vpow2.f32 %v3232_v37  ;;  %v3215_v50 = vsub.f32 %v7371_v3, %v3175_v56  ;;  %v3216_v42 = vsub.f32 %v7376_v51, %v3178_v47 }
0x186e   :  { %6082 = vpow2.f32 %v3228_v57 }
0x186f   :  { %v3234_v28 = vmul.f32 1.442695, %v3215_v50  ;;  %v3236_v40 = vmul.f32 1.442695, %v3216_v42 }
0x1870   :  { %v3184_v18 = vpop.xlane.xlu1 %3183  ;;  %v3181_v41 = vpop.xlane.xlu0 %3180 }
0x1871   :  { %v3218_v7 = vsub.f32 %v7379_v63, %v3184_v18  ;;  %6084 = vpow2.f32 %v3234_v28  ;;  %v3217_v27 = vsub.f32 %v7386_v9, %v3181_v41 }
0x1872   :  { %6086 = vpow2.f32 %v3230_v13 }
0x1873   :  { %v3240_v25 = vmul.f32 1.442695, %v3218_v7  ;;  %v3238_v61 = vmul.f32 1.442695, %v3217_v27 }
0x1874   :  { %v3190_v8 = vpop.xlane.xlu1 %3189  ;;  %v3187_v12 = vpop.xlane.xlu0 %3186 }
0x1875   :  { %6088 = vpow2.f32 %v3240_v25  ;;  %v3219_v3 = vsub.f32 %v7389_v1, %v3187_v12  ;;  %v3220_v51 = vsub.f32 %v7396_v30, %v3190_v8 }
0x1876   :  { %6090 = vpow2.f32 %v3236_v40 }
0x1877   :  { %v3242_v6 = vmul.f32 1.442695, %v3219_v3  ;;  %v3244_v4 = vmul.f32 1.442695, %v3220_v51 }
0x1878   :  { %v3196_v10 = vpop.xlane.xlu1 %3195  ;;  %v3193_v31 = vpop.xlane.xlu0 %3192 }
0x1879   :  { %v3222_v63 = vsub.f32 %v7403_v62, %v3196_v10  ;;  %6092 = vpow2.f32 %v3242_v6  ;;  %v3221_v1 = vsub.f32 %v7408_v16, %v3193_v31 }
0x187a   :  { %v7464_v45 = vpop.eup %6080  ;;  %6094 = vpow2.f32 %v3238_v61 }
0x187b   :  { %v3248_v35 = vmul.f32 1.442695, %v3222_v63  ;;  %v3266_v9 = vsel %vm332_vm4, %v7464_v45, 0.0  ;;  %v7468_v46 = vpop.eup %6082  ;;  %v3246_v15 = vmul.f32 1.442695, %v3221_v1 }
0x187c   :  { %3267 = vadd.xlane.f32.xlu1 %v3266_v9  ;;  %v3202_v30 = vpop.xlane.xlu1 %3201  ;;  %v3199_v23 = vpop.xlane.xlu0 %3198  ;;  %v3260_v38 = vsel %vm332_vm4, %v7468_v46, 0.0 }
0x187d   :  { %6096 = vpow2.f32 %v3248_v35  ;;  %v3223_v52 = vsub.f32 %v7414_v24, %v3199_v23  ;;  %v3224_v34 = vsub.f32 %v7421_v5, %v3202_v30 }
0x187e   :  { %v7472_v62 = vpop.eup %6084  ;;  %6098 = vpow2.f32 %v3244_v4 }
0x187f   :  { %v3250_v2 = vmul.f32 1.442695, %v3223_v52  ;;  %v3269_v16 = vsel %vm332_vm4, %v7472_v62, 0.0  ;;  %v7479_v37 = vpop.eup %6086  ;;  %v3252_v5 = vmul.f32 1.442695, %v3224_v34 }
0x1880   :  { %3261 = vadd.xlane.f32.xlu1 %v3260_v38  ;;  %v3208_v54 = vpop.xlane.xlu1 %3207  ;;  %v3205_v57 = vpop.xlane.xlu0 %3204  ;;  %3270 = vadd.xlane.f32.xlu0 %v3269_v16  ;;  %v3263_v28 = vsel %vm332_vm4, %v7479_v37, 0.0 }
0x1881   :  { %v3226_v24 = vsub.f32 %v7429_v11, %v3208_v54  ;;  %6100 = vpow2.f32 %v3250_v2  ;;  %v3225_v42 = vsub.f32 %v7434_v36, %v3205_v57 }
0x1882   :  { %v7482_v17 = vpop.eup %6088  ;;  %6102 = vpow2.f32 %v3246_v15 }
0x1883   :  { %v3256_v47 = vmul.f32 1.442695, %v3226_v24  ;;  %v3278_v56 = vsel %vm332_vm4, %v7482_v17, 0.0  ;;  %v7486_v50 = vpop.eup %6090  ;;  %v3254_v40 = vmul.f32 1.442695, %v3225_v42 }
0x1884   :  { %3279 = vadd.xlane.f32.xlu1 %v3278_v56  ;;  %v3211_v13 = vpop.xlane.xlu0 %3210  ;;  %3264 = vadd.xlane.f32.xlu0 %v3263_v28  ;;  %v3272_v7 = vsel %vm332_vm4, %v7486_v50, 0.0 }
0x1885   :  { %6104 = vpow2.f32 %v3256_v47  ;;  %v3227_v11 = vsub.f32 %v7440_v49, %v3211_v13 }
0x1886   :  { %v7492_v18 = vpop.eup %6092  ;;  %6106 = vpow2.f32 %v3252_v5 }
0x1887   :  { %v3258_v41 = vmul.f32 1.442695, %v3227_v11  ;;  %v3281_v36 = vsel %vm332_vm4, %v7492_v18, 0.0  ;;  %v7498_v25 = vpop.eup %6094 }
0x1888   :  { %3273 = vadd.xlane.f32.xlu1 %v3272_v7  ;;  %3282 = vadd.xlane.f32.xlu0 %v3281_v36  ;;  %v3275_v12 = vsel %vm332_vm4, %v7498_v25, 0.0 }
0x1889   :  { %6108 = vpow2.f32 %v3258_v41 }
0x188a   :  { %v7500_v27 = vpop.eup %6096  ;;  %6110 = vpow2.f32 %v3254_v40 }
0x188b   :  { %v3290_v49 = vsel %vm332_vm4, %v7500_v27, 0.0  ;;  %v7504_v8 = vpop.eup %6098 }
0x188c   :  { %3291 = vadd.xlane.f32.xlu1 %v3290_v49  ;;  %3276 = vadd.xlane.f32.xlu0 %v3275_v12  ;;  %v3284_v51 = vsel %vm332_vm4, %v7504_v8, 0.0 }
0x188e   :  { %v7508_v3 = vpop.eup %6100 }
0x188f   :  { %v3293_v6 = vsel %vm332_vm4, %v7508_v3, 0.0  ;;  %v7514_v61 = vpop.eup %6102 }
0x1890   :  { %3285 = vadd.xlane.f32.xlu1 %v3284_v51  ;;  %3294 = vadd.xlane.f32.xlu0 %v3293_v6  ;;  %v3287_v4 = vsel %vm332_vm4, %v7514_v61, 0.0 }
0x1892   :  { %v7516_v10 = vpop.eup %6104 }
0x1893   :  { %v3302_v31 = vsel %vm332_vm4, %v7516_v10, 0.0  ;;  %v7520_v63 = vpop.eup %6106 }
0x1894   :  { %3303 = vadd.xlane.f32.xlu1 %v3302_v31  ;;  %3288 = vadd.xlane.f32.xlu0 %v3287_v4  ;;  %v3296_v9 = vsel %vm332_vm4, %v7520_v63, 0.0 }
0x1896   :  { %v7524_v35 = vpop.eup %6108 }
0x1897   :  { %v3305_v1 = vsel %vm332_vm4, %v7524_v35, 0.0  ;;  %v7530_v30 = vpop.eup %6110 }
0x1898   :  { %3297 = vadd.xlane.f32.xlu1 %v3296_v9  ;;  %3306 = vadd.xlane.f32.xlu0 %v3305_v1  ;;  %v3299_v23 = vsel %vm332_vm4, %v7530_v30, 0.0 }
0x189c   :  { %3300 = vadd.xlane.f32.xlu0 %v3299_v23 }
0x18a9   :  { %3349 = vrot.lane.b32.xlu1 %v7165_v59, %s6236_s27 }
0x18b1   :  { %v5689_v52 = vpop.f32.mrf.mxu1 }
0x18b2   :  { %3432 = vrot.lane.b32.xlu0 %v7167_v60, %s6236_s27 }
0x18b3   :  { %v2699_v34 = vpop.f32.mrf.mxu1 }
0x18b5   :  { %v5690_v2 = vpop.f32.mrf.mxu1 }
0x18b6   :  { %v2811_v54 = vpack.c.bf16 %v5690_v2, %v5689_v52 }
0x18b7   :  { %v2702_v38 = vpop.f32.mrf.mxu1 }
0x18b8   :  { %v2810_v15 = vpack.c.bf16 %v2702_v38, %v2699_v34 }
0x18b9   :  { %v5693_v16 = vpop.f32.mrf.mxu1 }
0x18ba   :  { %5707 = vmatprep.mubr.msk.bf16.mxu1 %vm332_vm4, %v2810_v15 }
0x18bb   :  { %v2715_v57 = vpop.f32.mrf.mxu1  ;;  %5708 = vmatmul.mubr.msk.bf16.vlgmr.msra.gmra.mxu1 %vm332_vm4, %v2811_v54 }
0x18bd   :  { %v5694_v24 = vpop.f32.mrf.mxu1 }
0x18be   :  { %v2813_v56 = vpack.c.bf16 %v5694_v24, %v5693_v16 }
0x18bf   :  { %v2718_v5 = vpop.f32.mrf.mxu1 }
0x18c0   :  { %v2812_v47 = vpack.c.bf16 %v2718_v5, %v2715_v57 }
0x18c2   :  { %5711 = vmatprep.mubr.msk.bf16.mxu1 %vm332_vm4, %v2812_v47 }
0x18c3   :  { %5712 = vmatmul.mubr.msk.bf16.gmra.mxu1 %vm332_vm4, %v2813_v56  ;;  %v7581_v56 = vld [vmem:[%s8375_s21 + $0x8] sm:$0xff]  }
0x18c4   :  { %5715 = vmatprep.mubr.msk.bf16.mxu1 %vm332_vm4, %v2814_v58 }
0x18cb   :  { %5716 = vmatmul.mubr.msk.bf16.gmra.mxu1 %vm332_vm4, %v2815_v14 }
0x18cc   :  { %5719 = vmatprep.mubr.msk.bf16.mxu1 %vm332_vm4, %v2816_v53 }
0x18d3   :  { %5720 = vmatmul.mubr.msk.bf16.gmra.mxu1 %vm332_vm4, %v2817_v29 }
0x1905   :  { %v3268_v59 = vpop.xlane.xlu1 %3267 }
0x1909   :  { %v3262_v60 = vpop.xlane.xlu1 %3261  ;;  %v3271_v32 = vpop.xlane.xlu0 %3270 }
0x190a   :  { %6112 = vrcp.f32 %v3262_v60 }
0x190d   :  { %v3280_v33 = vpop.xlane.xlu1 %3279  ;;  %v3265_v58 = vpop.xlane.xlu0 %3264 }
0x190e   :  { %6114 = vrcp.f32 %v3265_v58 }
0x190f   :  { %6116 = vrcp.f32 %v3271_v32 }
0x1910   :  { %6118 = vrcp.f32 %v3268_v59 }
0x1911   :  { %v3274_v22 = vpop.xlane.xlu1 %3273  ;;  %v3283_v21 = vpop.xlane.xlu0 %3282 }
0x1912   :  { %6120 = vrcp.f32 %v3274_v22 }
0x1915   :  { %v3292_v14 = vpop.xlane.xlu1 %3291  ;;  %v3277_v44 = vpop.xlane.xlu0 %3276 }
0x1916   :  { %6122 = vrcp.f32 %v3277_v44 }
0x1917   :  { %v6113_v53 = vpop.eup %6112  ;;  %6124 = vrcp.f32 %v3280_v33 }
0x1918   :  { %6126 = vrcp.f32 %v3283_v21  ;;  %v3324_v42 = vmul.f32 %v6113_v53, %v7468_v46 }
0x1919   :  { %v3286_v20 = vpop.xlane.xlu1 %3285  ;;  %v3295_v55 = vpop.xlane.xlu0 %3294 }
0x191a   :  { %6128 = vrcp.f32 %v3295_v55 }
0x191b   :  { %v6115_v26 = vpop.eup %6114  ;;  %6130 = vrcp.f32 %v3286_v20 }
0x191c   :  { %v3325_v28 = vmul.f32 %v6115_v26, %v7479_v37  ;;  %6132 = vrcp.f32 %v3292_v14  ;;  %v6117_v41 = vpop.eup %6116 }
0x191d   :  { %v3304_v29 = vpop.xlane.xlu1 %3303  ;;  %v3289_v13 = vpop.xlane.xlu0 %3288  ;;  %v3327_v51 = vmul.f32 %v6117_v41, %v7472_v62 }
0x191e   :  { %6134 = vrcp.f32 %v3289_v13  ;;  %v3340_v11 = vpack.c.bf16 %v3325_v28, %v3324_v42  ;;  %v6119_v40 = vpop.eup %6118 }
0x191f   :  { %v6121_v49 = vpop.eup %6120  ;;  %v3326_v37 = vmul.f32 %v6119_v40, %v7464_v45 }
0x1920   :  { %5745 = vmatprep.mubr.msk.bf16.mxu1 %vm332_vm4, %v3340_v11  ;;  %v3328_v1 = vmul.f32 %v6121_v49, %v7486_v50 }
0x1921   :  { %v3298_v7 = vpop.xlane.xlu1 %3297  ;;  %v3307_v36 = vpop.xlane.xlu0 %3306  ;;  %v3341_v62 = vpack.c.bf16 %v3327_v51, %v3326_v37 }
0x1922   :  { %6136 = vrcp.f32 %v3307_v36 }
0x1923   :  { %v6123_v12 = vpop.eup %6122  ;;  %6138 = vrcp.f32 %v3298_v7 }
0x1924   :  { %v3329_v46 = vmul.f32 %v6123_v12, %v7498_v25  ;;  %6140 = vrcp.f32 %v3304_v29  ;;  %v6125_v9 = vpop.eup %6124 }
0x1925   :  { %v3350_v6 = vpop.permute.xlu1 %3349  ;;  %v3301_v4 = vpop.xlane.xlu0 %3300  ;;  %v3330_v5 = vmul.f32 %v6125_v9, %v7482_v17  ;;  %v7590_v17 = vld [vmem:[%s8375_s21] sm:$0xff]  }
0x1926   :  { %v3364_v31 = vsel %vm362_vm5, %v3350_v6, 0  ;;  %5944 = vmatprep.subr.msk.bf16.mxu1 %vm362_vm5, %v3350_v6  ;;  %6142 = vrcp.f32 %v3301_v4  ;;  %v6127_v23 = vpop.eup %6126  ;;  %v3342_v34 = vpack.c.bf16 %v3329_v46, %v3328_v1 }
0x1927   :  { %5744 = vmatpush3.bf16.msra.mxu1 %v3364_v31  ;;  %v6129_v52 = vpop.eup %6128  ;;  %v3331_v50 = vmul.f32 %v6127_v23, %v7492_v18 }
0x1928   :  { %v6131_v2 = vpop.eup %6130  ;;  %v3335_v54 = vmul.f32 %v6129_v52, %v7508_v3 }
0x1929   :  { %v3433_v38 = vpop.permute.xlu0 %3432  ;;  %v6133_v45 = vpop.eup %6132  ;;  %v3332_v16 = vmul.f32 %v6131_v2, %v7504_v8  ;;  %v3343_v59 = vpack.c.bf16 %v3331_v50, %v3330_v5 }
0x192a   :  { %5746 = vmatmul.mubr.msk.bf16.vlgmr.msra.gmra.mxu1 %vm332_vm4, %v3341_v62  ;;  %v3447_v25 = vsel %vm362_vm5, %v3433_v38, 0  ;;  %5945 = vmatprep.subr.msk.bf16.mxu0 %vm362_vm5, %v3433_v38  ;;  %v3334_v24 = vmul.f32 %v6133_v45, %v7500_v27 }
0x192b   :  { %5749 = vmatprep.mubr.msk.bf16.mxu1 %vm332_vm4, %v3342_v34  ;;  %v6135_v15 = vpop.eup %6134  ;;  %5754 = vmatpush3.bf16.msra.mxu0 %v3447_v25 }
0x192c   :  { %v3333_v57 = vmul.f32 %v6135_v15, %v7514_v61  ;;  %5781 = vmatprep.subr.bf16.mxu0 %v6228_v0  ;;  %v3345_v3 = vpack.c.bf16 %v3335_v54, %v3334_v24 }
0x192e   :  { %v3344_v47 = vpack.c.bf16 %v3333_v57, %v3332_v16 }
0x192f   :  { %v6137_v60 = vpop.eup %6136 }
0x1930   :  { %5755 = vmatprep.mubr.msk.bf16.mxu0 %vm332_vm4, %v3344_v47  ;;  %v6139_v18 = vpop.eup %6138  ;;  %v3339_v61 = vmul.f32 %v6137_v60, %v7524_v35  ;;  %v7648_v60 = vld [vmem:[%s8376_s20] ss:$0 sm:$0xff] }
0x1931   :  { %5756 = vmatmul.mubr.msk.bf16.vlgmr.msra.gmra.mxu0 %vm332_vm4, %v3345_v3  ;;  %v6141_v8 = vpop.eup %6140  ;;  %v3336_v32 = vmul.f32 %v6139_v18, %v7520_v63  ;;  %v135_v63 = vld [vmem:[%s8374_s19 + $0x4] sm:$0xf] }
0x1932   :  { %5750 = vmatmul.mubr.msk.bf16.gmra.mxu1 %vm332_vm4, %v3343_v59  ;;  %5782 = vmatpush3.bf16.msra.mxu0 %v7581_v56  ;;  %v3338_v58 = vmul.f32 %v6141_v8, %v7516_v10  ;;  %v3547_v10 = vsel %vm362_vm5, %v135_v63, 0 }
0x1933   :  { %v6143_v27 = vpop.eup %6142  ;;  %5783 = vmatprep.subr.bf16.mxu0 %v6228_v0  ;;  %5946 = vmatprep.subr.msk.bf16.mxu1 %vm362_vm5, %v135_v63 }
0x1934   :  { %v3337_v33 = vmul.f32 %v6143_v27, %v7530_v30  ;;  %v3347_v21 = vpack.c.bf16 %v3339_v61, %v3338_v58  ;;  %5764 = vmatpush3.bf16.msra.mxu1 %v3547_v10 }
0x1936   :  { %v3346_v22 = vpack.c.bf16 %v3337_v33, %v3336_v32  ;;  %5784 = vmatpush3.bf16.msra.mxu0 %v7590_v17 }
0x1938   :  { %5759 = vmatprep.mubr.msk.bf16.mxu0 %vm332_vm4, %v3346_v22 }
0x1939   :  { %5760 = vmatmul.mubr.msk.bf16.gmra.mxu0 %vm332_vm4, %v3347_v21  ;;  %v6200_v21 = vld [vmem:[%s8407_s3] sm:$0xff] }
0x193a   :  { %5785 = vmatprep.mubr.msk.bf16.mxu0 %vm6229_vm0, %v6228_v0 }
0x1941   :  { %5786 = vmatmul.mubr.msk.bf16.vlgmr.msra.gmra.mxu0 %vm182_vm1, %v7079_v48 }
0x197b   :  { %v5709_v35 = vpop.f32.mrf.mxu1 }
0x197d   :  { %v2879_v30 = vpop.f32.mrf.mxu1 }
0x197f   :  { %v5710_v14 = vpop.f32.mrf.mxu1 }
0x1981   :  { %v2882_v44 = vpop.f32.mrf.mxu1 }
0x1983   :  { %v7609_v20 = vpop.f32.mrf.mxu1 }
0x1985   :  { %v7611_v53 = vpop.f32.mrf.mxu1 }
0x1987   :  { %v7613_v55 = vpop.f32.mrf.mxu1 }
0x1989   :  { %v7615_v48 = vpop.f32.mrf.mxu1 }
0x198b   :  { %v7617_v26 = vpop.f32.mrf.mxu1 }
0x198d   :  { %v7619_v29 = vpop.f32.mrf.mxu1 }
0x198f   :  { %v7621_v42 = vpop.f32.mrf.mxu1 }
0x1991   :  { %v7623_v28 = vpop.f32.mrf.mxu1 }
0x1993   :  { %v7625_v13 = vpop.f32.mrf.mxu1 }
0x1995   :  { %v7627_v11 = vpop.f32.mrf.mxu1 }
0x1997   :  { %v7629_v41 = vpop.f32.mrf.mxu1 }
0x1999   :  { %v7631_v7 = vpop.f32.mrf.mxu1 }
0x19ea   :  { %v5747_v40 = vpop.f32.mrf.mxu1 }
0x19ec   :  { %v3400_v36 = vpop.f32.mrf.mxu1 }
0x19ee   :  { %v5748_v49 = vpop.f32.mrf.mxu1 }
0x19ef   :  { %v3515_v6 = vpack.c.bf16 %v5748_v49, %v5747_v40 }
0x19f0   :  { %v3403_v12 = vpop.f32.mrf.mxu1 }
0x19f1   :  { %v3514_v51 = vpack.c.bf16 %v3403_v12, %v3400_v36  ;;  %v5757_v46 = vpop.f32.mrf.mxu0 }
0x19f2   :  { %v5751_v37 = vpop.f32.mrf.mxu1 }
0x19f3   :  { %5765 = vmatprep.mubr.msk.bf16.mxu1 %vm332_vm4, %v3514_v51  ;;  %v3483_v31 = vpop.f32.mrf.mxu0  ;;  %v6202_v51 = vld [vmem:[%s8407_s3 + $0x8] sm:$0xff] }
0x19f4   :  { %v3416_v4 = vpop.f32.mrf.mxu1  ;;  %5766 = vmatmul.mubr.msk.bf16.vlgmr.msra.gmra.mxu1 %vm332_vm4, %v3515_v6 }
0x19f5   :  { %v5758_v9 = vpop.f32.mrf.mxu0 }
0x19f6   :  { %v5752_v1 = vpop.f32.mrf.mxu1  ;;  %v3519_v54 = vpack.c.bf16 %v5758_v9, %v5757_v46 }
0x19f7   :  { %v3486_v23 = vpop.f32.mrf.mxu0  ;;  %v3517_v34 = vpack.c.bf16 %v5752_v1, %v5751_v37  ;;  %v6203_v37 = vld [vmem:[%s8407_s3 + $0x18] sm:$0xff] }
0x19f8   :  { %v3419_v62 = vpop.f32.mrf.mxu1  ;;  %v3518_v38 = vpack.c.bf16 %v3486_v23, %v3483_v31 }
0x19f9   :  { %v3516_v52 = vpack.c.bf16 %v3419_v62, %v3416_v4  ;;  %v5761_v2 = vpop.f32.mrf.mxu0 }
0x19fb   :  { %5769 = vmatprep.mubr.msk.bf16.mxu1 %vm332_vm4, %v3516_v52  ;;  %v3499_v45 = vpop.f32.mrf.mxu0  ;;  %v6204_v52 = vld [vmem:[%s8407_s3 + $0x20] sm:$0xff] }
0x19fc   :  { %5770 = vmatmul.mubr.msk.bf16.gmra.mxu1 %vm332_vm4, %v3517_v34 }
0x19fd   :  { %5773 = vmatprep.mubr.msk.bf16.mxu1 %vm332_vm4, %v3518_v38  ;;  %v5762_v25 = vpop.f32.mrf.mxu0  ;;  %v6205_v38 = vld [vmem:[%s8407_s3 + $0x30] sm:$0xff] }
0x19fe   :  { %v3521_v47 = vpack.c.bf16 %v5762_v25, %v5761_v2 }
0x19ff   :  { %v3502_v15 = vpop.f32.mrf.mxu0 }
0x1a00   :  { %v3520_v16 = vpack.c.bf16 %v3502_v15, %v3499_v45 }
0x1a01   :  { %v7638_v50 = vpop.f32.mrf.mxu0 }
0x1a03   :  { %v5787_v57 = vpop.f32.mrf.mxu0 }
0x1a04   :  { %5774 = vmatmul.mubr.msk.bf16.gmra.mxu1 %vm332_vm4, %v3519_v54 }
0x1a05   :  { %5777 = vmatprep.mubr.msk.bf16.mxu1 %vm332_vm4, %v3520_v16  ;;  %v7642_v24 = vpop.f32.mrf.mxu0 }
0x1a07   :  { %v5788_v5 = vpop.f32.mrf.mxu0 }
0x1a08   :  { %v6206_v5 = vld [vmem:[%s8407_s3 + $0x28] sm:$0xff] }
0x1a0c   :  { %5778 = vmatmul.mubr.msk.bf16.gmra.mxu1 %vm332_vm4, %v3521_v47 }
0x1ab4   :  { %v5767_v3 = vpop.f32.mrf.mxu1 }
0x1ab5   :  { %v3648_v59 = vadd.f32 %v5767_v3, %v5709_v35 }
0x1ab6   :  { %v3583_v18 = vpop.f32.mrf.mxu1 }
0x1ab7   :  { %v3646_v8 = vadd.f32 %v3583_v18, %v2879_v30  ;;  %v3670_v61 = vadd.f32 %v7648_v60, %v3648_v59 }
0x1ab8   :  { %v5768_v27 = vpop.f32.mrf.mxu1 }
0x1ab9   :  { %v3668_v32 = vadd.f32 %v7648_v60, %v3646_v8  ;;  %v3649_v33 = vadd.f32 %v5768_v27, %v5710_v14  ;;  %v6201_v14 = vld [vmem:[%s8407_s3 + $0x10] sm:$0xff] }
0x1aba   :  { %v3586_v58 = vpop.f32.mrf.mxu1 }
0x1abb   :  { %v3647_v22 = vadd.f32 %v3586_v58, %v2882_v44  ;;  %v7655_v63 = vadd.f32 %v6200_v21, %v3668_v32  ;;  %v3671_v10 = vadd.f32 %v7648_v60, %v3649_v33  ;;  %v7665_v44 = vadd.f32 %v6201_v14, %v3670_v61  ;;  %v6208_v58 = vld [vmem:[%s8407_s3 + $0x40] sm:$0xff] }
0x1abc   :  { %v5771_v35 = vpop.f32.mrf.mxu1 }
0x1abd   :  { %v3669_v40 = vadd.f32 %v7648_v60, %v3647_v22  ;;  %v3652_v30 = vadd.f32 %v5771_v35, %v7609_v20  ;;  %v3700_v36 = vsel %vm182_vm1, %v7655_v63, 0.0  ;;  %v7677_v31 = vadd.f32 %v6203_v37, %v3671_v10  ;;  %v6209_v10 = vld [vmem:[%s8407_s3 + $0x50] sm:$0xff] }
0x1abe   :  { %3701 = vadd.xlane.f32.xlu1 %v3700_v36  ;;  %v3599_v49 = vpop.f32.mrf.mxu1 }
0x1abf   :  { %v3650_v12 = vadd.f32 %v3599_v49, %v7611_v53  ;;  %v7671_v6 = vadd.f32 %v6202_v51, %v3669_v40  ;;  %v3674_v20 = vadd.f32 %v7648_v60, %v3652_v30  ;;  %v3706_v53 = vsel %vm182_vm1, %v7665_v44, 0.0 }
0x1ac0   :  { %v5772_v46 = vpop.f32.mrf.mxu1 }
0x1ac1   :  { %v3672_v4 = vadd.f32 %v7648_v60, %v3650_v12  ;;  %v3653_v9 = vadd.f32 %v5772_v46, %v7613_v55  ;;  %v3703_v1 = vsel %vm182_vm1, %v7671_v6, 0.0  ;;  %v3709_v55 = vsel %vm182_vm1, %v7677_v31, 0.0  ;;  %v6210_v12 = vld [vmem:[%s8407_s3 + $0x48] sm:$0xff]  ;;  %v6211_v46 = vld [vmem:[%s8407_s3 + $0x58] sm:$0xff] }
0x1ac2   :  { %3707 = vadd.xlane.f32.xlu1 %v3706_v53  ;;  %3704 = vadd.xlane.f32.xlu0 %v3703_v1  ;;  %v3602_v23 = vpop.f32.mrf.mxu1  ;;  %v7696_v45 = vadd.f32 %v6205_v38, %v3674_v20 }
0x1ac3   :  { %v3651_v62 = vadd.f32 %v3602_v23, %v7615_v48  ;;  %v7689_v34 = vadd.f32 %v6204_v52, %v3672_v4  ;;  %v3675_v25 = vadd.f32 %v7648_v60, %v3653_v9 }
0x1ac4   :  { %v5775_v2 = vpop.f32.mrf.mxu1 }
0x1ac5   :  { %v3673_v48 = vadd.f32 %v7648_v60, %v3651_v62  ;;  %v3656_v15 = vadd.f32 %v5775_v2, %v7617_v26  ;;  %v3712_v54 = vsel %vm182_vm1, %v7689_v34, 0.0  ;;  %v3718_v26 = vsel %vm182_vm1, %v7696_v45, 0.0  ;;  %v6212_v62 = vld [vmem:[%s8407_s3 + $0x60] sm:$0xff] }
0x1ac6   :  { %3710 = vadd.xlane.f32.xlu0 %v3709_v55  ;;  %3713 = vadd.xlane.f32.xlu1 %v3712_v54  ;;  %v3615_v16 = vpop.f32.mrf.mxu1 }
0x1ac7   :  { %v3654_v57 = vadd.f32 %v3615_v16, %v7619_v29  ;;  %v7707_v47 = vadd.f32 %v6206_v5, %v3673_v48  ;;  %v3678_v3 = vadd.f32 %v7648_v60, %v3656_v15  ;;  %v6207_v29 = vld [vmem:[%s8407_s3 + $0x38] sm:$0xff]  ;;  %v6214_v48 = vld [vmem:[%s8407_s3 + $0x68] sm:$0xff] }
0x1ac8   :  { %v5776_v59 = vpop.f32.mrf.mxu1  ;;  %v7719_v61 = vadd.f32 %v6207_v29, %v3675_v25  ;;  %v6215_v16 = vld [vmem:[%s8407_s3 + $0x78] sm:$0xff] }
0x1ac9   :  { %v3676_v18 = vadd.f32 %v7648_v60, %v3654_v57  ;;  %v3657_v8 = vadd.f32 %v5776_v59, %v7621_v42  ;;  %v3715_v27 = vsel %vm182_vm1, %v7707_v47, 0.0  ;;  %v7731_v35 = vadd.f32 %v6209_v10, %v3678_v3 }
0x1aca   :  { %3719 = vadd.xlane.f32.xlu1 %v3718_v26  ;;  %3716 = vadd.xlane.f32.xlu0 %v3715_v27  ;;  %v3618_v32 = vpop.f32.mrf.mxu1 }
0x1acb   :  { %v3655_v33 = vadd.f32 %v3618_v32, %v7623_v28  ;;  %v7725_v22 = vadd.f32 %v6208_v58, %v3676_v18  ;;  %v3679_v42 = vadd.f32 %v7648_v60, %v3657_v8  ;;  %v3721_v28 = vsel %vm182_vm1, %v7719_v61, 0.0 }
0x1acc   :  { %v5779_v21 = vpop.f32.mrf.mxu1 }
0x1acd   :  { %v3677_v40 = vadd.f32 %v7648_v60, %v3655_v33  ;;  %v3660_v30 = vadd.f32 %v5779_v21, %v7625_v13  ;;  %v3724_v36 = vsel %vm182_vm1, %v7725_v22, 0.0  ;;  %v3730_v13 = vsel %vm182_vm1, %v7731_v35, 0.0 }
0x1ace   :  { %3722 = vadd.xlane.f32.xlu0 %v3721_v28  ;;  %3725 = vadd.xlane.f32.xlu1 %v3724_v36  ;;  %v3631_v14 = vpop.f32.mrf.mxu1  ;;  %v7750_v37 = vadd.f32 %v6211_v46, %v3679_v42 }
0x1acf   :  { %v3658_v49 = vadd.f32 %v3631_v14, %v7627_v11  ;;  %v7743_v51 = vadd.f32 %v6210_v12, %v3677_v40  ;;  %v3682_v4 = vadd.f32 %v7648_v60, %v3660_v30 }
0x1ad0   :  { %v5780_v20 = vpop.f32.mrf.mxu1  ;;  %v3733_v2 = vsel %vm182_vm1, %v7750_v37, 0.0 }
0x1ad1   :  { %v3680_v11 = vadd.f32 %v7648_v60, %v3658_v49  ;;  %v3661_v9 = vadd.f32 %v5780_v20, %v7629_v41  ;;  %v3727_v53 = vsel %vm182_vm1, %v7743_v51, 0.0 }
0x1ad2   :  { %3731 = vadd.xlane.f32.xlu1 %v3730_v13  ;;  %3728 = vadd.xlane.f32.xlu0 %v3727_v53  ;;  %v3634_v1 = vpop.f32.mrf.mxu1 }
0x1ad3   :  { %v3659_v23 = vadd.f32 %v3634_v1, %v7631_v7  ;;  %v7761_v52 = vadd.f32 %v6212_v62, %v3680_v11  ;;  %v3683_v55 = vadd.f32 %v7648_v60, %v3661_v9  ;;  %v6213_v7 = vld [vmem:[%s8407_s3 + $0x70] sm:$0xff] }
0x1ad4   :  { %v7772_v25 = vadd.f32 %v6213_v7, %v3682_v4 }
0x1ad5   :  { %v3681_v41 = vadd.f32 %v7648_v60, %v3659_v23  ;;  %v3736_v38 = vsel %vm182_vm1, %v7761_v52, 0.0  ;;  %v7786_v57 = vadd.f32 %v6215_v16, %v3683_v55 }
0x1ad6   :  { %3734 = vadd.xlane.f32.xlu0 %v3733_v2  ;;  %3737 = vadd.xlane.f32.xlu1 %v3736_v38  ;;  %v3742_v60 = vsel %vm182_vm1, %v7772_v25, 0.0 }
0x1ad7   :  { %v7777_v15 = vadd.f32 %v6214_v48, %v3681_v41  ;;  %v3745_v5 = vsel %vm182_vm1, %v7786_v57, 0.0 }
0x1ad9   :  { %v3739_v54 = vsel %vm182_vm1, %v7777_v15, 0.0 }
0x1ada   :  { %3743 = vadd.xlane.f32.xlu1 %v3742_v60  ;;  %3740 = vadd.xlane.f32.xlu0 %v3739_v54 }
0x1ade   :  { %3746 = vadd.xlane.f32.xlu0 %v3745_v5 }
0x1b47   :  { %v3702_v3 = vpop.xlane.xlu1 %3701 }
0x1b48   :  { %v3748_v59 = vmul.f32 0.03125, %v3702_v3 }
0x1b4a   :  { %v7791_v27 = vsub.f32 %v7655_v63, %v3748_v59 }
0x1b4b   :  { %v3708_v26 = vpop.xlane.xlu1 %3707  ;;  %v3705_v18 = vpop.xlane.xlu0 %3704 }
0x1b4c   :  { %v3750_v8 = vmul.f32 0.03125, %v3708_v26  ;;  %v3749_v29 = vmul.f32 0.03125, %v3705_v18  ;;  %v3780_v40 = vmul.f32 %v7791_v27, %v7791_v27 }
0x1b4e   :  { %v7794_v32 = vsub.f32 %v7665_v44, %v3750_v8  ;;  %v7799_v10 = vsub.f32 %v7671_v6, %v3749_v29  ;;  %v3796_v12 = vsel %vm182_vm1, %v3780_v40, 0.0 }
0x1b4f   :  { %v3714_v33 = vpop.xlane.xlu1 %3713  ;;  %v3711_v58 = vpop.xlane.xlu0 %3710 }
0x1b50   :  { %v3751_v42 = vmul.f32 0.03125, %v3711_v58  ;;  %v3782_v21 = vmul.f32 %v7794_v32, %v7794_v32  ;;  %v3752_v30 = vmul.f32 0.03125, %v3714_v33  ;;  %v3781_v6 = vmul.f32 %v7799_v10, %v7799_v10 }
0x1b52   :  { %v7804_v63 = vsub.f32 %v7677_v31, %v3751_v42  ;;  %v3802_v28 = vsel %vm182_vm1, %v3782_v21, 0.0  ;;  %v7813_v20 = vsub.f32 %v7689_v34, %v3752_v30  ;;  %v3799_v23 = vsel %vm182_vm1, %v3781_v6, 0.0 }
0x1b53   :  { %v3720_v44 = vpop.xlane.xlu1 %3719  ;;  %3803 = vadd.xlane.f32.xlu1 %v3802_v28  ;;  %v3717_v36 = vpop.xlane.xlu0 %3716 }
0x1b54   :  { %v3754_v14 = vmul.f32 0.03125, %v3720_v44  ;;  %v3783_v49 = vmul.f32 %v7804_v63, %v7804_v63  ;;  %v3753_v13 = vmul.f32 0.03125, %v3717_v36  ;;  %v3784_v2 = vmul.f32 %v7813_v20, %v7813_v20 }
0x1b56   :  { %v7816_v31 = vsub.f32 %v7696_v45, %v3754_v14  ;;  %v3805_v46 = vsel %vm182_vm1, %v3783_v49, 0.0  ;;  %v7823_v34 = vsub.f32 %v7707_v47, %v3753_v13  ;;  %v3808_v60 = vsel %vm182_vm1, %v3784_v2, 0.0 }
0x1b57   :  { %v3726_v4 = vpop.xlane.xlu1 %3725  ;;  %3797 = vadd.xlane.f32.xlu1 %v3796_v12  ;;  %3806 = vadd.xlane.f32.xlu0 %v3805_v46  ;;  %v3723_v11 = vpop.xlane.xlu0 %3722 }
0x1b58   :  { %v3755_v9 = vmul.f32 0.03125, %v3723_v11  ;;  %v3786_v53 = vmul.f32 %v7816_v31, %v7816_v31  ;;  %v3756_v1 = vmul.f32 0.03125, %v3726_v4  ;;  %v3785_v16 = vmul.f32 %v7823_v34, %v7823_v34 }
0x1b5a   :  { %v7826_v45 = vsub.f32 %v7719_v61, %v3755_v9  ;;  %v3814_v62 = vsel %vm182_vm1, %v3786_v53, 0.0  ;;  %v7834_v48 = vsub.f32 %v7725_v22, %v3756_v1  ;;  %v3811_v33 = vsel %vm182_vm1, %v3785_v16, 0.0  ;;  %v7891_v53 = vld [vmem:[%s8377_s22] ss:$0 sm:$0xff] }
0x1b5b   :  { %v3732_v55 = vpop.xlane.xlu1 %3731  ;;  %3815 = vadd.xlane.f32.xlu1 %v3814_v62  ;;  %3800 = vadd.xlane.f32.xlu0 %v3799_v23  ;;  %v3729_v41 = vpop.xlane.xlu0 %3728 }
0x1b5c   :  { %v3758_v38 = vmul.f32 0.03125, %v3732_v55  ;;  %v3787_v7 = vmul.f32 %v7826_v45, %v7826_v45  ;;  %v3757_v47 = vmul.f32 0.03125, %v3729_v41 }
0x1b5e   :  { %v7837_v61 = vsub.f32 %v7731_v35, %v3758_v38  ;;  %v3817_v54 = vsel %vm182_vm1, %v3787_v7, 0.0  ;;  %v7846_v26 = vsub.f32 %v7743_v51, %v3757_v47  ;;  %v3788_v35 = vmul.f32 %v7834_v48, %v7834_v48 }
0x1b5f   :  { %3809 = vadd.xlane.f32.xlu1 %v3808_v60  ;;  %v3738_v5 = vpop.xlane.xlu1 %3737  ;;  %3818 = vadd.xlane.f32.xlu0 %v3817_v54  ;;  %v3735_v3 = vpop.xlane.xlu0 %3734 }
0x1b60   :  { %v3759_v59 = vmul.f32 0.03125, %v3735_v3  ;;  %v3790_v22 = vmul.f32 %v7837_v61, %v7837_v61  ;;  %v3760_v18 = vmul.f32 0.03125, %v3738_v5  ;;  %v3820_v40 = vsel %vm182_vm1, %v3788_v35, 0.0 }
0x1b61   :  { %v3789_v30 = vmul.f32 %v7846_v26, %v7846_v26 }
0x1b62   :  { %v7851_v8 = vsub.f32 %v7750_v37, %v3759_v59  ;;  %v3826_v29 = vsel %vm182_vm1, %v3790_v22, 0.0  ;;  %v7861_v37 = vsub.f32 %v7761_v52, %v3760_v18  ;;  %v3910_v22 = vsub.s32 3, %v6695_v39 }
0x1b63   :  { %3827 = vadd.xlane.f32.xlu1 %v3826_v29  ;;  %v3744_v58 = vpop.xlane.xlu1 %3743  ;;  %3812 = vadd.xlane.f32.xlu0 %v3811_v33  ;;  %v3741_v42 = vpop.xlane.xlu0 %3740  ;;  %v3823_v6 = vsel %vm182_vm1, %v3789_v30, 0.0 }
0x1b64   :  { %v3762_v21 = vmul.f32 0.03125, %v3744_v58  ;;  %v3791_v51 = vmul.f32 %v7851_v8, %v7851_v8  ;;  %v3761_v44 = vmul.f32 0.03125, %v3741_v42  ;;  %v3792_v46 = vmul.f32 %v7861_v37, %v7861_v37 }
0x1b66   :  { %v7864_v28 = vsub.f32 %v7772_v25, %v3762_v21  ;;  %v3829_v36 = vsel %vm182_vm1, %v3791_v51, 0.0  ;;  %v7871_v13 = vsub.f32 %v7777_v15, %v3761_v44  ;;  %v3832_v11 = vsel %vm182_vm1, %v3792_v46, 0.0  ;;  %v6216_v21 = vld [vmem:[%s8410_s30] sm:$0x1f] }
0x1b67   :  { %3821 = vadd.xlane.f32.xlu1 %v3820_v40  ;;  %3830 = vadd.xlane.f32.xlu0 %v3829_v36  ;;  %v3747_v14 = vpop.xlane.xlu0 %3746  ;;  %v7905_v51 = vrot.slane %v6216_v21, %v3910_v22  ;;  %v6217_v36 = vld [vmem:[%s8411_s0] sm:$0x1f] }
0x1b68   :  { %v3763_v49 = vmul.f32 0.03125, %v3747_v14  ;;  %v3794_v12 = vmul.f32 %v7864_v28, %v7864_v28  ;;  %v3793_v15 = vmul.f32 %v7871_v13, %v7871_v13  ;;  %v7910_v14 = vrot.slane %v6217_v36, %v3910_v22 }
0x1b6a   :  { %v7874_v52 = vsub.f32 %v7786_v57, %v3763_v49  ;;  %v3838_v25 = vsel %vm182_vm1, %v3794_v12, 0.0  ;;  %v3835_v57 = vsel %vm182_vm1, %v3793_v15, 0.0 }
0x1b6b   :  { %3839 = vadd.xlane.f32.xlu1 %v3838_v25  ;;  %3824 = vadd.xlane.f32.xlu0 %v3823_v6 }
0x1b6c   :  { %v3795_v4 = vmul.f32 %v7874_v52, %v7874_v52 }
0x1b6e   :  { %v3841_v9 = vsel %vm182_vm1, %v3795_v4, 0.0 }
0x1b6f   :  { %3833 = vadd.xlane.f32.xlu1 %v3832_v11  ;;  %3842 = vadd.xlane.f32.xlu0 %v3841_v9 }
0x1b73   :  { %3836 = vadd.xlane.f32.xlu0 %v3835_v57 }
0x1b80   :  { %4033 = vrot.lane.b32.xlu1 %v7581_v56, %s6233_s2 }
0x1b84   :  { %4037 = vrot.lane.b32.xlu1 %v7891_v53, %s6233_s2 }
0x1b88   :  { %4171 = vrot.lane.b32.xlu1 %v7581_v56, %s6230_s1 }
0x1b89   :  { %4031 = vrot.lane.b32.xlu0 %v7590_v17, %s6233_s2 }
0x1b8d   :  { %4169 = vrot.lane.b32.xlu0 %v7590_v17, %s6230_s1 }
0x1bdc   :  { %v3804_v1 = vpop.xlane.xlu1 %3803 }
0x1bdd   :  { %v3846_v23 = vmul.f32 0.03125, %v3804_v1 }
0x1bdf   :  { %v3862_v62 = vadd.f32 1e-05, %v3846_v23 }
0x1be0   :  { %v3798_v2 = vpop.xlane.xlu1 %3797  ;;  %v3807_v55 = vpop.xlane.xlu0 %3806 }
0x1be1   :  { %6144 = vrsqrt.f32 %v3862_v62  ;;  %v3844_v41 = vmul.f32 0.03125, %v3798_v2  ;;  %v3847_v38 = vmul.f32 0.03125, %v3807_v55 }
0x1be3   :  { %v3860_v7 = vadd.f32 1e-05, %v3844_v41  ;;  %v3863_v47 = vadd.f32 1e-05, %v3847_v38 }
0x1be4   :  { %v3816_v60 = vpop.xlane.xlu1 %3815  ;;  %v3801_v54 = vpop.xlane.xlu0 %3800 }
0x1be5   :  { %6146 = vrsqrt.f32 %v3860_v7  ;;  %v3850_v56 = vmul.f32 0.03125, %v3816_v60  ;;  %v3845_v16 = vmul.f32 0.03125, %v3801_v54 }
0x1be6   :  { %6148 = vrsqrt.f32 %v3863_v47 }
0x1be7   :  { %v3866_v5 = vadd.f32 1e-05, %v3850_v56  ;;  %v3861_v3 = vadd.f32 1e-05, %v3845_v16 }
0x1be8   :  { %v3810_v59 = vpop.xlane.xlu1 %3809  ;;  %v3819_v17 = vpop.xlane.xlu0 %3818 }
0x1be9   :  { %6150 = vrsqrt.f32 %v3866_v5  ;;  %v3848_v35 = vmul.f32 0.03125, %v3810_v59  ;;  %v3851_v18 = vmul.f32 0.03125, %v3819_v17 }
0x1bea   :  { %6152 = vrsqrt.f32 %v3861_v3 }
0x1beb   :  { %v3864_v29 = vadd.f32 1e-05, %v3848_v35  ;;  %v3867_v33 = vadd.f32 1e-05, %v3851_v18 }
0x1bec   :  { %v3828_v58 = vpop.xlane.xlu1 %3827  ;;  %v3813_v42 = vpop.xlane.xlu0 %3812 }
0x1bed   :  { %6154 = vrsqrt.f32 %v3864_v29  ;;  %v3854_v40 = vmul.f32 0.03125, %v3828_v58  ;;  %v3849_v30 = vmul.f32 0.03125, %v3813_v42 }
0x1bee   :  { %v6145_v44 = vpop.eup %6144  ;;  %6156 = vrsqrt.f32 %v3867_v33 }
0x1bef   :  { %v3894_v49 = vmul.f32 %v6145_v44, %v7794_v32  ;;  %v3870_v12 = vadd.f32 1e-05, %v3854_v40  ;;  %v3865_v6 = vadd.f32 1e-05, %v3849_v30 }
0x1bf0   :  { %v3822_v25 = vpop.xlane.xlu1 %3821  ;;  %v3831_v46 = vpop.xlane.xlu0 %3830 }
0x1bf1   :  { %v3914_v4 = vmul.f32 %v7905_v51, %v3894_v49  ;;  %6158 = vrsqrt.f32 %v3870_v12  ;;  %v3852_v11 = vmul.f32 0.03125, %v3822_v25  ;;  %v3855_v9 = vmul.f32 0.03125, %v3831_v46 }
0x1bf2   :  { %v6147_v15 = vpop.eup %6146  ;;  %6160 = vrsqrt.f32 %v3865_v6  ;;  %v7952_v6 = vld [vmem:[%s8408_s6] sm:$0xff] }
0x1bf3   :  { %v6149_v57 = vpop.eup %6148  ;;  %v7915_v1 = vadd.f32 %v7910_v14, %v3914_v4  ;;  %v3892_v23 = vmul.f32 %v6147_v15, %v7791_v27  ;;  %v3868_v62 = vadd.f32 1e-05, %v3852_v11  ;;  %v3871_v2 = vadd.f32 1e-05, %v3855_v9  ;;  %v7969_v11 = vld [vmem:[%s8408_s6 + $0x8] sm:$0xff] }
0x1bf4   :  { %v3895_v32 = vmul.f32 %v6149_v57, %v7804_v63  ;;  %v3840_v55 = vpop.xlane.xlu1 %3839  ;;  %v3825_v41 = vpop.xlane.xlu0 %3824 }
0x1bf5   :  { %4973 = vst.msk [vmem:[%s8378_s26 + $0x10] sm:$0xff] %vm182_vm1, %v7915_v1  ;;  %6162 = vrsqrt.f32 %v3868_v62  ;;  %v3858_v38 = vmul.f32 0.03125, %v3840_v55  ;;  %v3853_v7 = vmul.f32 0.03125, %v3825_v41  ;;  %v3912_v47 = vmul.f32 %v7905_v51, %v3892_v23  ;;  %v7976_v62 = vld [vmem:[%s8408_s6 + $0x18] sm:$0xff] }
0x1bf6   :  { %v6151_v60 = vpop.eup %6150  ;;  %v3915_v27 = vmul.f32 %v7905_v51, %v3895_v32  ;;  %6164 = vrsqrt.f32 %v3871_v2 }
0x1bf7   :  { %v6153_v54 = vpop.eup %6152  ;;  %v3898_v63 = vmul.f32 %v6151_v60, %v7816_v31  ;;  %v3874_v56 = vadd.f32 1e-05, %v3858_v38  ;;  %v3869_v16 = vadd.f32 1e-05, %v3853_v7  ;;  %v3932_v5 = vadd.f32 %v7910_v14, %v3912_v47  ;;  %v7994_v60 = vld [vmem:[%s8408_s6 + $0x10] sm:$0xff] }
0x1bf8   :  { %v7929_v3 = vadd.f32 %v7910_v14, %v3915_v27  ;;  %v3893_v59 = vmul.f32 %v6153_v54, %v7799_v10  ;;  %v3834_v17 = vpop.xlane.xlu1 %3833  ;;  %v3843_v22 = vpop.xlane.xlu0 %3842 }
0x1bf9   :  { %v3918_v35 = vmul.f32 %v7905_v51, %v3898_v63  ;;  %6166 = vrsqrt.f32 %v3874_v56  ;;  %v3856_v18 = vmul.f32 0.03125, %v3834_v17  ;;  %v3859_v29 = vmul.f32 0.03125, %v3843_v22  ;;  %4971 = vst.msk [vmem:[%s8378_s26] sm:$0xff] %vm182_vm1, %v3932_v5 }
0x1bfa   :  { %v6155_v31 = vpop.eup %6154  ;;  %4974 = vst.msk [vmem:[%s8378_s26 + $0x18] sm:$0xff] %vm182_vm1, %v7929_v3  ;;  %6168 = vrsqrt.f32 %v3869_v16  ;;  %v3913_v10 = vmul.f32 %v7905_v51, %v3893_v59  ;;  %v3951_v2 = vadd.f32 %v7976_v62, %v7929_v3 }
0x1bfb   :  { %v6157_v33 = vpop.eup %6156  ;;  %v3896_v58 = vmul.f32 %v6155_v31, %v7813_v20  ;;  %v3872_v42 = vadd.f32 1e-05, %v3856_v18  ;;  %v3875_v21 = vadd.f32 1e-05, %v3859_v29  ;;  %v7945_v40 = vadd.f32 %v7910_v14, %v3918_v35 }
0x1bfc   :  { %v3899_v30 = vmul.f32 %v6157_v33, %v7826_v45  ;;  %v4034_v44 = vpop.permute.xlu1 %4033  ;;  %v3837_v36 = vpop.xlane.xlu0 %3836  ;;  %v3933_v49 = vadd.f32 %v7910_v14, %v3913_v10  ;;  %v3948_v20 = vadd.f32 %v7952_v6, %v3932_v5  ;;  %v6223_v10 = vld [vmem:[%s8408_s6 + $0x28] sm:$0xff] }
0x1bfd   :  { %6170 = vrsqrt.f32 %v3872_v42  ;;  %v3857_v12 = vmul.f32 0.03125, %v3837_v36  ;;  %5789 = vmatprep.subr.bf16.mxu0 %v4034_v44  ;;  %v3916_v25 = vmul.f32 %v7905_v51, %v3896_v58  ;;  %4977 = vst.msk [vmem:[%s8378_s26 + $0x30] sm:$0xff] %vm182_vm1, %v7945_v40 }
0x1bfe   :  { %v6159_v45 = vpop.eup %6158  ;;  %v3919_v46 = vmul.f32 %v7905_v51, %v3899_v30  ;;  %6172 = vrsqrt.f32 %v3875_v21  ;;  %5790 = vmatpush3.bf16.msra.mxu0 %v4034_v44  ;;  %v4161_v4 = vpack.c.bf16 %v3933_v49, %v3932_v5  ;;  %4972 = vst.msk [vmem:[%s8378_s26 + $0x8] sm:$0xff] %vm182_vm1, %v3933_v49  ;;  %v3949_v9 = vadd.f32 %v7969_v11, %v3933_v49  ;;  %v6224_v21 = vld [vmem:[%s8408_s6 + $0x38] sm:$0xff] }
0x1bff   :  { %v6161_v15 = vpop.eup %6160  ;;  %v3902_v57 = vmul.f32 %v6159_v45, %v7837_v61  ;;  %v3873_v23 = vadd.f32 1e-05, %v3857_v12  ;;  %v7981_v32 = vadd.f32 %v7910_v14, %v3916_v25 }
0x1c00   :  { %v3897_v55 = vmul.f32 %v6161_v15, %v7823_v34  ;;  %5813 = vmatprep.mubr.msk.bf16.mxu1 %vm182_vm1, %v4161_v4  ;;  %v7985_v41 = vpop.permute.xlu1 %4037  ;;  %v4032_v38 = vpop.permute.xlu0 %4031  ;;  %v4023_v61 = vpack.c.bf16 %v3949_v9, %v3948_v20  ;;  %v7988_v7 = vadd.f32 %v7910_v14, %v3919_v46  ;;  %v3950_v34 = vadd.f32 %v7994_v60, %v7915_v1 }
0x1c01   :  { %v3922_v47 = vmul.f32 %v7905_v51, %v3902_v57  ;;  %6174 = vrsqrt.f32 %v3873_v23  ;;  %5791 = vmatprep.subr.bf16.mxu0 %v4032_v38  ;;  %4975 = vst.msk [vmem:[%s8378_s26 + $0x20] sm:$0xff] %vm182_vm1, %v7981_v32  ;;  %v4162_v15 = vpack.c.bf16 %v7929_v3, %v7915_v1 }
0x1c02   :  { %v6163_v27 = vpop.eup %6162  ;;  %5793 = vmatprep.mubr.msk.bf16.mxu0 %vm182_vm1, %v4023_v61  ;;  %5792 = vmatpush3.bf16.msra.mxu0 %v4032_v38  ;;  %v3917_v54 = vmul.f32 %v7905_v51, %v3897_v55  ;;  %4978 = vst.msk [vmem:[%s8378_s26 + $0x38] sm:$0xff] %vm182_vm1, %v7988_v7  ;;  %v4024_v16 = vpack.c.bf16 %v3951_v2, %v3950_v34 }
0x1c03   :  { %v6165_v63 = vpop.eup %6164  ;;  %v3900_v56 = vmul.f32 %v6163_v27, %v7834_v48  ;;  %v8012_v5 = vadd.f32 %v7910_v14, %v3922_v47  ;;  %5829 = vmatprep.subr.bf16.mxu0 %v6228_v0  ;;  %v3955_v30 = vadd.f32 %v6224_v21, %v7988_v7 }
0x1c04   :  { %v3903_v59 = vmul.f32 %v6165_v63, %v7851_v8  ;;  %v4172_v17 = vpop.permute.xlu1 %4171  ;;  %v4170_v22 = vpop.permute.xlu0 %4169  ;;  %v3937_v35 = vadd.f32 %v7910_v14, %v3917_v54  ;;  %v6222_v8 = vld [vmem:[%s8408_s6 + $0x20] sm:$0xff] }
0x1c05   :  { %5794 = vmatmul.mubr.msk.bf16.vlgmr.msra.gmra.mxu0 %vm182_vm1, %v4024_v16  ;;  %5809 = vmatprep.subr.bf16.mxu1 %v4172_v17  ;;  %v3920_v18 = vmul.f32 %v7905_v51, %v3900_v56  ;;  %4981 = vst.msk [vmem:[%s8378_s26 + $0x50] sm:$0xff] %vm182_vm1, %v8012_v5  ;;  %v3952_v31 = vadd.f32 %v6222_v8, %v7981_v32 }
0x1c06   :  { %v6167_v48 = vpop.eup %6166  ;;  %v3923_v29 = vmul.f32 %v7905_v51, %v3903_v59  ;;  %5810 = vmatpush3.bf16.msra.mxu1 %v4172_v17  ;;  %v3953_v33 = vadd.f32 %v6223_v10, %v3937_v35  ;;  %4976 = vst.msk [vmem:[%s8378_s26 + $0x28] sm:$0xff] %vm182_vm1, %v3937_v35  ;;  %v4163_v2 = vpack.c.bf16 %v3937_v35, %v7981_v32 }
0x1c07   :  { %v6169_v58 = vpop.eup %6168  ;;  %v3906_v42 = vmul.f32 %v6167_v48, %v7864_v28  ;;  %5811 = vmatprep.subr.bf16.mxu1 %v4170_v22  ;;  %v3940_v44 = vadd.f32 %v7910_v14, %v3920_v18  ;;  %v6225_v28 = vld [vmem:[%s8408_s6 + $0x30] sm:$0xff]  ;;  %v3958_v54 = vadd.f32 %v7994_v60, %v8012_v5 }
0x1c08   :  { %v3901_v36 = vmul.f32 %v6169_v58, %v7846_v26  ;;  %v4025_v49 = vpack.c.bf16 %v3953_v33, %v3952_v31  ;;  %v3943_v12 = vadd.f32 %v7910_v14, %v3923_v29  ;;  %v3954_v25 = vadd.f32 %v6225_v28, %v7945_v40 }
0x1c09   :  { %v3926_v20 = vmul.f32 %v7905_v51, %v3906_v42  ;;  %4979 = vst.msk [vmem:[%s8378_s26 + $0x40] sm:$0xff] %vm182_vm1, %v3940_v44 }
0x1c0a   :  { %v6171_v45 = vpop.eup %6170  ;;  %5797 = vmatprep.mubr.msk.bf16.mxu0 %vm182_vm1, %v4025_v49  ;;  %5812 = vmatpush3.bf16.msra.mxu1 %v4170_v22  ;;  %v3921_v26 = vmul.f32 %v7905_v51, %v3901_v36  ;;  %4982 = vst.msk [vmem:[%s8378_s26 + $0x58] sm:$0xff] %vm182_vm1, %v3943_v12  ;;  %v4026_v9 = vpack.c.bf16 %v3955_v30, %v3954_v25 }
0x1c0b   :  { %v6173_v46 = vpop.eup %6172  ;;  %v3904_v4 = vmul.f32 %v6171_v45, %v7861_v37  ;;  %v3946_v57 = vadd.f32 %v7910_v14, %v3926_v20  ;;  %5841 = vmatprep.subr.bf16.mxu1 %v6228_v0  ;;  %v3959_v61 = vadd.f32 %v7976_v62, %v3943_v12 }
0x1c0c   :  { %v3907_v23 = vmul.f32 %v6173_v46, %v7874_v52  ;;  %v3941_v55 = vadd.f32 %v7910_v14, %v3921_v26  ;;  %v3956_v52 = vadd.f32 %v7952_v6, %v3940_v44 }
0x1c0d   :  { %5798 = vmatmul.mubr.msk.bf16.gmra.mxu0 %vm182_vm1, %v4026_v9  ;;  %5814 = vmatmul.mubr.msk.bf16.vlgmr.msra.gmra.mxu1 %vm182_vm1, %v4162_v15  ;;  %v3924_v37 = vmul.f32 %v7905_v51, %v3904_v4  ;;  %4985 = vst.msk [vmem:[%s8378_s26 + $0x70] sm:$0xff] %vm182_vm1, %v3946_v57 }
0x1c0e   :  { %v6175_v1 = vpop.eup %6174  ;;  %v3927_v3 = vmul.f32 %v7905_v51, %v3907_v23  ;;  %5817 = vmatprep.mubr.msk.bf16.mxu1 %vm182_vm1, %v4163_v2  ;;  %v3957_v32 = vadd.f32 %v7969_v11, %v3941_v55  ;;  %4980 = vst.msk [vmem:[%s8378_s26 + $0x48] sm:$0xff] %vm182_vm1, %v3941_v55  ;;  %v4164_v11 = vpack.c.bf16 %v7988_v7, %v7945_v40 }
0x1c0f   :  { %v3905_v38 = vmul.f32 %v6175_v1, %v7871_v13  ;;  %v3944_v47 = vadd.f32 %v7910_v14, %v3924_v37  ;;  %v4028_v13 = vpack.c.bf16 %v3959_v61, %v3958_v54  ;;  %v4165_v60 = vpack.c.bf16 %v3941_v55, %v3940_v44 }
0x1c10   :  { %v4027_v34 = vpack.c.bf16 %v3957_v32, %v3956_v52  ;;  %v3947_v27 = vadd.f32 %v7910_v14, %v3927_v3  ;;  %v3962_v40 = vadd.f32 %v6225_v28, %v3946_v57  ;;  %v4166_v7 = vpack.c.bf16 %v3943_v12, %v8012_v5 }
0x1c11   :  { %v3925_v6 = vmul.f32 %v7905_v51, %v3905_v38  ;;  %4983 = vst.msk [vmem:[%s8378_s26 + $0x60] sm:$0xff] %vm182_vm1, %v3944_v47  ;;  %v3960_v51 = vadd.f32 %v6222_v8, %v3944_v47  ;;  %v4017_v54 = vadd.f32 %v7891_v53, %v7638_v50 }
0x1c12   :  { %5801 = vmatprep.mubr.msk.bf16.mxu0 %vm182_vm1, %v4027_v34  ;;  %4986 = vst.msk [vmem:[%s8378_s26 + $0x78] sm:$0xff] %vm182_vm1, %v3947_v27  ;;  %v3963_v16 = vadd.f32 %v6224_v21, %v3947_v27  ;;  %v4168_v17 = vpack.c.bf16 %v3947_v27, %v3946_v57 }
0x1c13   :  { %v3945_v62 = vadd.f32 %v7910_v14, %v3925_v6 }
0x1c14   :  { %v4030_v14 = vpack.c.bf16 %v3963_v16, %v3962_v40 }
0x1c15   :  { %5802 = vmatmul.mubr.msk.bf16.gmra.mxu0 %vm182_vm1, %v4028_v13  ;;  %5818 = vmatmul.mubr.msk.bf16.gmra.mxu1 %vm182_vm1, %v4164_v11  ;;  %v3961_v63 = vadd.f32 %v6223_v10, %v3945_v62  ;;  %4984 = vst.msk [vmem:[%s8378_s26 + $0x68] sm:$0xff] %vm182_vm1, %v3945_v62  ;;  %v4167_v59 = vpack.c.bf16 %v3945_v62, %v3944_v47 }
0x1c16   :  { %5821 = vmatprep.mubr.msk.bf16.mxu1 %vm182_vm1, %v4165_v60  ;;  %v8161_v11 = vpack.c.bf16 %v4017_v54, %v4017_v54 }
0x1c17   :  { %v4029_v56 = vpack.c.bf16 %v3961_v63, %v3960_v51 }
0x1c19   :  { %5805 = vmatprep.mubr.msk.bf16.mxu0 %vm182_vm1, %v4029_v56  ;;  %v4020_v56 = vadd.f32 %v7891_v53, %v7642_v24 }
0x1c1b   :  { %v4300_v16 = vpack.c.bf16 %v4020_v56, %v4020_v56 }
0x1c1d   :  { %5806 = vmatmul.mubr.msk.bf16.gmra.mxu0 %vm182_vm1, %v4030_v14  ;;  %5822 = vmatmul.mubr.msk.bf16.gmra.mxu1 %vm182_vm1, %v4166_v7 }
0x1c1e   :  { %5825 = vmatprep.mubr.msk.bf16.mxu1 %vm182_vm1, %v4167_v59  ;;  %5837 = vmatprep.mubr.msk.bf16.mxu0 %vm6229_vm0, %v6228_v0 }
0x1c25   :  { %5826 = vmatmul.mubr.msk.bf16.gmra.mxu1 %vm182_vm1, %v4168_v17 }
0x1c26   :  { %5849 = vmatprep.mubr.msk.bf16.mxu1 %vm6229_vm0, %v6228_v0 }
0x1cc5   :  { %v5795_v22 = vpop.f32.mrf.mxu0 }
0x1cc6   :  { %v4107_v46 = vadd.f32 %v5795_v22, %v7985_v41 }
0x1cc7   :  { %v4098_v35 = vpop.f32.mrf.mxu0 }
0x1cc8   :  { %v4099_v52 = vadd.f32 %v4098_v35, %v7985_v41 }
0x1cc9   :  { %v5796_v18 = vpop.f32.mrf.mxu0 }
0x1cca   :  { %v4110_v25 = vadd.f32 %v5796_v18, %v7985_v41 }
0x1ccb   :  { %v4101_v5 = vpop.f32.mrf.mxu0 }
0x1ccc   :  { %v8134_v9 = vpack.c.bf16 %v4110_v25, %v4107_v46  ;;  %v4102_v55 = vadd.f32 %v4101_v5, %v7985_v41 }
0x1ccd   :  { %v5799_v48 = vpop.f32.mrf.mxu0  ;;  %v5815_v40 = vpop.f32.mrf.mxu1 }
0x1cce   :  { %v4123_v31 = vadd.f32 %v5799_v48, %v7985_v41  ;;  %v4316_v1 = vsel %vm332_vm4, %v8134_v9, 0  ;;  %v8150_v38 = vpack.c.bf16 %v4102_v55, %v4099_v52 }
0x1ccf   :  { %v4114_v29 = vpop.f32.mrf.mxu0  ;;  %v4236_v14 = vpop.f32.mrf.mxu1 }
0x1cd0   :  { %v4115_v36 = vadd.f32 %v4114_v29, %v7985_v41  ;;  %v4313_v34 = vsel %vm332_vm4, %v8150_v38, 0 }
0x1cd1   :  { %v5800_v8 = vpop.f32.mrf.mxu0 }
0x1cd2   :  { %v4126_v10 = vadd.f32 %v5800_v8, %v7985_v41 }
0x1cd3   :  { %v4117_v33 = vpop.f32.mrf.mxu0 }
0x1cd4   :  { %v8120_v58 = vpack.c.bf16 %v4126_v10, %v4123_v31  ;;  %v4118_v21 = vadd.f32 %v4117_v33, %v7985_v41 }
0x1cd5   :  { %v5803_v42 = vpop.f32.mrf.mxu0 }
0x1cd6   :  { %v4322_v30 = vsel %vm332_vm4, %v8120_v58, 0  ;;  %v8127_v12 = vpack.c.bf16 %v4118_v21, %v4115_v36  ;;  %v4139_v6 = vadd.f32 %v5803_v42, %v7985_v41 }
0x1cd7   :  { %v4130_v44 = vpop.f32.mrf.mxu0  ;;  %5830 = vmatpush3.bf16.xpose.msra.mxu0 %v4322_v30 }
0x1cd8   :  { %5831 = vmatprep.subr.bf16.mxu0 %v6228_v0  ;;  %v4319_v45 = vsel %vm332_vm4, %v8127_v12, 0  ;;  %v4131_v50 = vadd.f32 %v4130_v44, %v7985_v41 }
0x1cd9   :  { %v5804_v49 = vpop.f32.mrf.mxu0 }
0x1cda   :  { %v4142_v47 = vadd.f32 %v5804_v49, %v7985_v41 }
0x1cdb   :  { %v4133_v20 = vpop.f32.mrf.mxu0 }
0x1cdc   :  { %v4306_v13 = vpack.c.bf16 %v4142_v47, %v4139_v6  ;;  %v4134_v62 = vadd.f32 %v4133_v20, %v7985_v41 }
0x1cdd   :  { %v5807_v28 = vpop.f32.mrf.mxu0 }
0x1cde   :  { %v4155_v15 = vadd.f32 %v5807_v28, %v7985_v41  ;;  %v4371_v60 = vsel %vm332_vm4, %v4306_v13, 0  ;;  %v4305_v51 = vpack.c.bf16 %v4134_v62, %v4131_v50 }
0x1cdf   :  { %v4146_v26 = vpop.f32.mrf.mxu0  ;;  %5832 = vmatpush3.bf16.xpose.msra.mxu0 %v4319_v45 }
0x1ce0   :  { %5833 = vmatprep.subr.bf16.mxu0 %v6228_v0  ;;  %v4147_v32 = vadd.f32 %v4146_v26, %v7985_v41  ;;  %v4368_v63 = vsel %vm332_vm4, %v4305_v51, 0 }
0x1ce1   :  { %v5808_v4 = vpop.f32.mrf.mxu0 }
0x1ce2   :  { %v4158_v57 = vadd.f32 %v5808_v4, %v7985_v41 }
0x1ce3   :  { %v4149_v23 = vpop.f32.mrf.mxu0 }
0x1ce4   :  { %v8138_v2 = vpack.c.bf16 %v4158_v57, %v4155_v15  ;;  %v4150_v37 = vadd.f32 %v4149_v23, %v7985_v41  ;;  %v5816_v41 = vpop.f32.mrf.mxu1 }
0x1ce6   :  { %v4377_v3 = vsel %vm332_vm4, %v8138_v2, 0  ;;  %v4307_v61 = vpack.c.bf16 %v4150_v37, %v4147_v32  ;;  %v4239_v7 = vpop.f32.mrf.mxu1 }
0x1ce7   :  { %5834 = vmatpush3.bf16.xpose.msra.mxu0 %v4316_v1  ;;  %5842 = vmatpush3.bf16.xpose.msra.mxu1 %v4377_v3 }
0x1ce8   :  { %5835 = vmatprep.subr.bf16.mxu0 %v6228_v0  ;;  %5843 = vmatprep.subr.bf16.mxu1 %v6228_v0  ;;  %v4374_v27 = vsel %vm332_vm4, %v4307_v61, 0  ;;  %v5819_v59 = vpop.f32.mrf.mxu1 }
0x1cea   :  { %v4252_v17 = vpop.f32.mrf.mxu1 }
0x1cec   :  { %v5820_v22 = vpop.f32.mrf.mxu1 }
0x1cee   :  { %v4255_v35 = vpop.f32.mrf.mxu1 }
0x1cef   :  { %5836 = vmatpush3.bf16.xpose.msra.mxu0 %v4313_v34  ;;  %5844 = vmatpush3.bf16.xpose.msra.mxu1 %v4374_v27 }
0x1cf0   :  { %5845 = vmatprep.subr.bf16.mxu1 %v6228_v0  ;;  %5853 = vmatprep.subr.bf16.mxu0 %v6228_v0  ;;  %v8178_v18 = vpop.f32.mrf.mxu1 }
0x1cf2   :  { %v8180_v5 = vpop.f32.mrf.mxu1 }
0x1cf4   :  { %v8182_v24 = vpop.f32.mrf.mxu1 }
0x1cf6   :  { %5838 = vmatmul.mubr.msk.bf16.vlgmr.msra.gmra.mxu0 %vm332_vm4, %v8161_v11  ;;  %v8184_v48 = vpop.f32.mrf.mxu1 }
0x1cf7   :  { %5846 = vmatpush3.bf16.xpose.msra.mxu1 %v4371_v60  ;;  %5861 = vmatprep.mubr.msk.bf16.mxu0 %vm6229_vm0, %v6228_v0 }
0x1cf8   :  { %5847 = vmatprep.subr.bf16.mxu1 %v6228_v0  ;;  %v8186_v31 = vpop.f32.mrf.mxu1 }
0x1cfa   :  { %v8189_v21 = vpop.f32.mrf.mxu1 }
0x1cfc   :  { %v5828_v44 = vpop.f32.mrf.mxu1 }
0x1cfe   :  { %v8191_v36 = vpop.f32.mrf.mxu1 }
0x1cff   :  { %5848 = vmatpush3.bf16.xpose.msra.mxu1 %v4368_v63 }
0x1d00   :  { %5877 = vmatprep.subr.bf16.mxu1 %v6228_v0 }
0x1d06   :  { %5850 = vmatmul.mubr.msk.bf16.vlgmr.msra.gmra.mxu1 %vm332_vm4, %v4300_v16 }
0x1d07   :  { %5879 = vmatprep.mubr.msk.bf16.mxu1 %vm6229_vm0, %v6228_v0 }
0x1db6   :  { %v4358_v29 = vpop.f32.mrf.mxu0 }
0x1db7   :  { %v4419_v8 = vmul.f32 0.35355338, %v4358_v29 }
0x1db8   :  { %v5839_v10 = vpop.f32.mrf.mxu0 }
0x1db9   :  { %v4421_v33 = vsel %vm1308_vm6, %v4419_v8, -inf }
0x1dba   :  { %4422 = vmax.xlane.f32.xlu1 %v4421_v33  ;;  %v4361_v42 = vpop.f32.mrf.mxu0 }
0x1dbc   :  { %v5840_v30 = vpop.f32.mrf.mxu0 }
0x1dc6   :  { %v4413_v49 = vpop.f32.mrf.mxu1 }
0x1dc7   :  { %v4420_v20 = vmul.f32 0.35355338, %v4413_v49 }
0x1dc8   :  { %v5851_v28 = vpop.f32.mrf.mxu1 }
0x1dc9   :  { %v4424_v25 = vsel %vm1308_vm6, %v4420_v20, -inf }
0x1dca   :  { %4425 = vmax.xlane.f32.xlu0 %v4424_v25  ;;  %v4416_v45 = vpop.f32.mrf.mxu1 }
0x1dcb   :  { %4175 = vrot.lane.b32.xlu1 %v7891_v53, %s6230_s1 }
0x1dcc   :  { %v5852_v26 = vpop.f32.mrf.mxu1 }
0x1dcf   :  { %4670 = vrot.lane.b32.xlu1 %v8138_v2, %s6236_s27 }
0x1dd3   :  { %4598 = vrot.lane.b32.xlu1 %v8127_v12, %s6236_s27 }
0x1dd7   :  { %4668 = vrot.lane.b32.xlu1 %v4307_v61, %s6236_s27 }
0x1ddb   :  { %4666 = vrot.lane.b32.xlu1 %v4306_v13, %s6236_s27 }
0x1ddf   :  { %4664 = vrot.lane.b32.xlu1 %v4305_v51, %s6236_s27 }
0x1de3   :  { %4658 = vrot.lane.b32.xlu1 %v4300_v16, %s6236_s27 }
0x1e43   :  { %v4423_v46 = vpop.xlane.xlu1 %4422 }
0x1e44   :  { %v4427_v4 = vsub.f32 %v4419_v8, %v4423_v46 }
0x1e46   :  { %v4429_v15 = vmul.f32 1.442695, %v4427_v4 }
0x1e47   :  { %v4176_v57 = vpop.permute.xlu1 %4175 }
0x1e48   :  { %6176 = vpow2.f32 %v4429_v15  ;;  %v4261_v53 = vadd.f32 %v5819_v59, %v4176_v57  ;;  %v4264_v23 = vadd.f32 %v5820_v22, %v4176_v57  ;;  %v4253_v2 = vadd.f32 %v4252_v17, %v4176_v57 }
0x1e49   :  { %v4256_v37 = vadd.f32 %v4255_v35, %v4176_v57  ;;  %v4245_v1 = vadd.f32 %v5815_v40, %v4176_v57  ;;  %v4248_v3 = vadd.f32 %v5816_v41, %v4176_v57  ;;  %v4237_v32 = vadd.f32 %v4236_v14, %v4176_v57 }
0x1e4a   :  { %v8204_v55 = vpack.c.bf16 %v4264_v23, %v4261_v53  ;;  %v4240_v61 = vadd.f32 %v4239_v7, %v4176_v57  ;;  %v4293_v63 = vadd.f32 %v8186_v31, %v4176_v57  ;;  %v4296_v56 = vadd.f32 %v5828_v44, %v4176_v57 }
0x1e4b   :  { %v8208_v12 = vpack.c.bf16 %v4256_v37, %v4253_v2  ;;  %v8212_v52 = vpack.c.bf16 %v4248_v3, %v4245_v1  ;;  %v4288_v41 = vadd.f32 %v8191_v36, %v4176_v57  ;;  %v4280_v7 = vadd.f32 %v8182_v24, %v4176_v57  ;;  %v4671_v35 = vpop.permute.xlu1 %4670  ;;  %v142_v36 = vld [vmem:[%s8379_s23] sm:$0xf] }
0x1e4c   :  { %5854 = vmatpush3.bf16.msra.mxu0 %v8204_v55  ;;  %v8217_v13 = vpack.c.bf16 %v4240_v61, %v4237_v32  ;;  %v4269_v17 = vadd.f32 %v8180_v5, %v4176_v57  ;;  %v4272_v22 = vadd.f32 %v8184_v48, %v4176_v57  ;;  %v4685_v10 = vsel %vm332_vm4, %v4671_v35, 0 }
0x1e4d   :  { %5855 = vmatprep.subr.bf16.mxu0 %v6228_v0  ;;  %v4544_v49 = vsel %vm362_vm5, %v142_v36, 0 }
0x1e4e   :  { %v8252_v8 = vpack.c.bf16 %v4272_v22, %v4269_v17  ;;  %5878 = vmatpush3.bf16.msra.mxu1 %v4544_v49 }
0x1e4f   :  { %v4599_v31 = vpop.permute.xlu1 %4598  ;;  %5883 = vmatprep.subr.bf16.mxu1 %v6228_v0 }
0x1e50   :  { %5856 = vmatpush3.bf16.msra.mxu0 %v8208_v12  ;;  %v4612_v2 = vsel %vm332_vm4, %v4599_v31, 0 }
0x1e51   :  { %5857 = vmatprep.subr.bf16.mxu0 %v6228_v0 }
0x1e53   :  { %v4426_v47 = vpop.xlane.xlu0 %4425  ;;  %v4669_v5 = vpop.permute.xlu1 %4668 }
0x1e54   :  { %v4428_v34 = vsub.f32 %v4420_v20, %v4426_v47  ;;  %5858 = vmatpush3.bf16.msra.mxu0 %v8212_v52  ;;  %v4682_v48 = vsel %vm332_vm4, %v4669_v5, 0 }
0x1e55   :  { %v6177_v27 = vpop.eup %6176  ;;  %5859 = vmatprep.subr.bf16.mxu0 %v6228_v0 }
0x1e56   :  { %v4431_v54 = vmul.f32 1.442695, %v4428_v34  ;;  %v4433_v6 = vsel %vm1308_vm6, %v6177_v27, 0.0 }
0x1e57   :  { %4434 = vadd.xlane.f32.xlu0 %v4433_v6  ;;  %v4667_v33 = vpop.permute.xlu1 %4666 }
0x1e58   :  { %6178 = vpow2.f32 %v4431_v54  ;;  %5860 = vmatpush3.bf16.msra.mxu0 %v8217_v13  ;;  %v4679_v42 = vsel %vm332_vm4, %v4667_v33, 0 }
0x1e59   :  { %5865 = vmatprep.subr.bf16.mxu0 %v6228_v0 }
0x1e65   :  { %v6179_v62 = vpop.eup %6178 }
0x1e66   :  { %v4436_v60 = vsel %vm1308_vm6, %v6179_v62, 0.0 }
0x1e67   :  { %4437 = vadd.xlane.f32.xlu0 %v4436_v60 }
0x1e7d   :  { %4600 = vrot.lane.b32.xlu0 %v8120_v58, %s6236_s27  ;;  %v8231_v58 = vpack.c.bf16 %v4296_v56, %v4293_v63 }
0x1e81   :  { %4596 = vrot.lane.b32.xlu0 %v8134_v9, %s6236_s27  ;;  %v4285_v9 = vadd.f32 %v8189_v21, %v4176_v57  ;;  %v4665_v21 = vpop.permute.xlu1 %4664 }
0x1e82   :  { %v4676_v30 = vsel %vm332_vm4, %v4665_v21, 0 }
0x1e85   :  { %4594 = vrot.lane.b32.xlu0 %v8150_v38, %s6236_s27  ;;  %v8240_v38 = vpack.c.bf16 %v4288_v41, %v4285_v9  ;;  %v4659_v44 = vpop.permute.xlu1 %4658 }
0x1e89   :  { %4588 = vrot.lane.b32.xlu0 %v8161_v11, %s6236_s27  ;;  %v4277_v11 = vadd.f32 %v8178_v18, %v4176_v57 }
0x1e8b   :  { %v8246_v59 = vpack.c.bf16 %v4280_v7, %v4277_v11 }
0x1ee0   :  { %v4435_v50 = vpop.xlane.xlu0 %4434 }
0x1ee1   :  { %6180 = vrcp.f32 %v4435_v50 }
0x1eee   :  { %v6181_v51 = vpop.eup %6180 }
0x1eef   :  { %v4441_v16 = vmul.f32 %v6181_v51, %v6177_v27 }
0x1ef0   :  { %v4438_v40 = vpop.xlane.xlu0 %4437 }
0x1ef1   :  { %v4443_v14 = vpack.c.bf16 %v4441_v16, %v4441_v16  ;;  %6182 = vrcp.f32 %v4438_v40 }
0x1ef3   :  { %5862 = vmatmul.mubr.msk.bf16.vlgmr.msra.gmra.mxu0 %vm1308_vm6, %v4443_v14 }
0x1ef4   :  { %5866 = vmatpush3.bf16.msra.mxu0 %v8231_v58  ;;  %5873 = vmatprep.mubr.msk.bf16.mxu0 %vm6229_vm0, %v6228_v0  ;;  %v4601_v26 = vpop.permute.xlu0 %4600 }
0x1ef5   :  { %5867 = vmatprep.subr.bf16.mxu0 %v6228_v0  ;;  %v4615_v57 = vsel %vm332_vm4, %v4601_v26, 0 }
0x1ef8   :  { %5868 = vmatpush3.bf16.msra.mxu0 %v8240_v38  ;;  %v4597_v37 = vpop.permute.xlu0 %4596 }
0x1ef9   :  { %5869 = vmatprep.subr.bf16.mxu0 %v6228_v0  ;;  %v4609_v1 = vsel %vm332_vm4, %v4597_v37, 0 }
0x1efc   :  { %5870 = vmatpush3.bf16.msra.mxu0 %v8246_v59  ;;  %v4595_v3 = vpop.permute.xlu0 %4594 }
0x1efd   :  { %5871 = vmatprep.subr.bf16.mxu0 %v6228_v0  ;;  %v4606_v32 = vsel %vm332_vm4, %v4595_v3, 0 }
0x1efe   :  { %v6183_v29 = vpop.eup %6182 }
0x1eff   :  { %v4442_v18 = vmul.f32 %v6183_v29, %v6179_v62 }
0x1f00   :  { %5872 = vmatpush3.bf16.msra.mxu0 %v8252_v8  ;;  %v4589_v34 = vpop.permute.xlu0 %4588 }
0x1f01   :  { %v4444_v24 = vpack.c.bf16 %v4442_v18, %v4442_v18  ;;  %5895 = vmatprep.subr.bf16.mxu0 %v6228_v0 }
0x1f03   :  { %5874 = vmatmul.mubr.msk.bf16.vlgmr.msra.gmra.mxu0 %vm1308_vm6, %v4444_v24 }
0x1f04   :  { %5896 = vmatpush3.bf16.xpose.msra.mxu0 %v4685_v10  ;;  %5903 = vmatprep.mubr.msk.bf16.mxu0 %vm6229_vm0, %v6228_v0 }
0x1f05   :  { %5897 = vmatprep.subr.bf16.mxu0 %v6228_v0 }
0x1f0c   :  { %5898 = vmatpush3.bf16.xpose.msra.mxu0 %v4682_v48 }
0x1f0d   :  { %5899 = vmatprep.subr.bf16.mxu0 %v6228_v0 }
0x1f14   :  { %5900 = vmatpush3.bf16.xpose.msra.mxu0 %v4679_v42 }
0x1f15   :  { %5901 = vmatprep.subr.bf16.mxu0 %v6228_v0 }
0x1f1c   :  { %5902 = vmatpush3.bf16.xpose.msra.mxu0 %v4676_v30 }
0x1f1d   :  { %5919 = vmatprep.subr.bf16.mxu0 %v6228_v0 }
0x1f23   :  { %5904 = vmatmul.mubr.msk.bf16.vlgmr.msra.gmra.mxu0 %vm332_vm4, %v4659_v44 }
0x1f24   :  { %5927 = vmatprep.mubr.msk.bf16.mxu0 %vm6229_vm0, %v6228_v0 }
0x1fb3   :  { %v4490_v20 = vpop.f32.mrf.mxu0 }
0x1fb5   :  { %v5863_v28 = vpop.f32.mrf.mxu0 }
0x1fb7   :  { %v4493_v25 = vpop.f32.mrf.mxu0 }
0x1fb9   :  { %v5864_v45 = vpop.f32.mrf.mxu0 }
0x1fc3   :  { %v4533_v46 = vpop.f32.mrf.mxu0 }
0x1fc4   :  { %v4539_v4 = vpack.c.bf16 %v4533_v46, %v4490_v20 }
0x1fc5   :  { %v5875_v15 = vpop.f32.mrf.mxu0 }
0x1fc6   :  { %5880 = vmatmul.mubr.msk.bf16.vlgmr.msra.gmra.mxu1 %vm332_vm4, %v4539_v4 }
0x1fc7   :  { %5884 = vmatpush3.bf16.xpose.msra.mxu1 %v4615_v57  ;;  %v4536_v53 = vpop.f32.mrf.mxu0  ;;  %5891 = vmatprep.mubr.msk.bf16.mxu1 %vm6229_vm0, %v6228_v0 }
0x1fc8   :  { %5885 = vmatprep.subr.bf16.mxu1 %v6228_v0 }
0x1fc9   :  { %v5876_v23 = vpop.f32.mrf.mxu0 }
0x1fcf   :  { %5886 = vmatpush3.bf16.xpose.msra.mxu1 %v4612_v2 }
0x1fd0   :  { %5887 = vmatprep.subr.bf16.mxu1 %v6228_v0 }
0x1fd7   :  { %5888 = vmatpush3.bf16.xpose.msra.mxu1 %v4609_v1 }
0x1fd8   :  { %5889 = vmatprep.subr.bf16.mxu1 %v6228_v0 }
0x1fdf   :  { %5890 = vmatpush3.bf16.xpose.msra.mxu1 %v4606_v32 }
0x1fe0   :  { %5907 = vmatprep.subr.bf16.mxu1 %v6228_v0 }
0x1fe3   :  { %v4721_v61 = vpop.f32.mrf.mxu0 }
0x1fe4   :  { %v4728_v47 = vmul.f32 0.35355338, %v4721_v61 }
0x1fe5   :  { %v5905_v27 = vpop.f32.mrf.mxu0 }
0x1fe6   :  { %5892 = vmatmul.mubr.msk.bf16.vlgmr.msra.gmra.mxu1 %vm332_vm4, %v4589_v34  ;;  %v4732_v54 = vsel %vm1308_vm6, %v4728_v47, -inf }
0x1fe7   :  { %4733 = vmax.xlane.f32.xlu1 %v4732_v54  ;;  %v4724_v6 = vpop.f32.mrf.mxu0  ;;  %5915 = vmatprep.mubr.msk.bf16.mxu1 %vm6229_vm0, %v6228_v0 }
0x1fe9   :  { %v5906_v62 = vpop.f32.mrf.mxu0 }
0x1ff8   :  { %4763 = vrot.lane.b32.xlu1 %v8204_v55, %s6236_s27 }
0x1ffc   :  { %4761 = vrot.lane.b32.xlu1 %v8208_v12, %s6236_s27 }
0x2000   :  { %4820 = vrot.lane.b32.xlu1 %v8240_v38, %s6236_s27 }
0x2004   :  { %4818 = vrot.lane.b32.xlu1 %v8246_v59, %s6236_s27 }
0x2008   :  { %4816 = vrot.lane.b32.xlu1 %v8252_v8, %s6236_s27 }
0x2070   :  { %v4734_v60 = vpop.xlane.xlu1 %4733 }
0x2071   :  { %v4736_v16 = vsub.f32 %v4728_v47, %v4734_v60 }
0x2073   :  { %v4739_v40 = vmul.f32 1.442695, %v4736_v16 }
0x2074   :  { %v4764_v50 = vpop.permute.xlu1 %4763 }
0x2075   :  { %5908 = vmatpush3.bf16.msra.mxu1 %v4764_v50  ;;  %6184 = vpow2.f32 %v4739_v40 }
0x2076   :  { %5909 = vmatprep.subr.bf16.mxu1 %v6228_v0 }
0x2078   :  { %v4762_v51 = vpop.permute.xlu1 %4761 }
0x2079   :  { %5910 = vmatpush3.bf16.msra.mxu1 %v4762_v51 }
0x207a   :  { %5911 = vmatprep.subr.bf16.mxu1 %v6228_v0 }
0x207c   :  { %v4821_v18 = vpop.permute.xlu1 %4820 }
0x2080   :  { %v4819_v10 = vpop.permute.xlu1 %4818 }
0x2082   :  { %v6185_v11 = vpop.eup %6184 }
0x2083   :  { %v4744_v17 = vsel %vm1308_vm6, %v6185_v11, 0.0 }
0x2084   :  { %v4817_v48 = vpop.permute.xlu1 %4816 }
0x2086   :  { %v8302_v55 = vpop.f32.mrf.mxu1 }
0x2088   :  { %v5881_v12 = vpop.f32.mrf.mxu1 }
0x208a   :  { %v8304_v63 = vpop.f32.mrf.mxu1 }
0x208c   :  { %v5882_v56 = vpop.f32.mrf.mxu1 }
0x20a6   :  { %v4651_v14 = vpop.f32.mrf.mxu1 }
0x20a7   :  { %v4727_v9 = vmul.f32 0.35355338, %v4651_v14 }
0x20a8   :  { %v5893_v41 = vpop.f32.mrf.mxu1 }
0x20a9   :  { %v4729_v38 = vsel %vm1308_vm6, %v4727_v9, -inf }
0x20aa   :  { %4730 = vmax.xlane.f32.xlu0 %v4729_v38  ;;  %v4654_v7 = vpop.f32.mrf.mxu1 }
0x20ab   :  { %v6226_v7 = vld [vmem:[%s8410_s30] sm:$0x1f] }
0x20ac   :  { %v5894_v59 = vpop.f32.mrf.mxu1 }
0x20ae   :  { %4745 = vadd.xlane.f32.xlu0 %v4744_v17 }
0x20c4   :  { %4822 = vrot.lane.b32.xlu0 %v8231_v58, %s6236_s27 }
0x20c8   :  { %4759 = vrot.lane.b32.xlu0 %v8212_v52, %s6236_s27 }
0x2133   :  { %v4731_v22 = vpop.xlane.xlu0 %4730 }
0x2134   :  { %v4735_v35 = vsub.f32 %v4727_v9, %v4731_v22  ;;  %v6227_v22 = vld [vmem:[%s8411_s0] sm:$0x1f] }
0x2136   :  { %v4737_v29 = vmul.f32 1.442695, %v4735_v35 }
0x2137   :  { %v4746_v8 = vpop.xlane.xlu0 %4745 }
0x2138   :  { %6186 = vpow2.f32 %v4737_v29 }
0x2139   :  { %6188 = vrcp.f32 %v4746_v8 }
0x213b   :  { %v4823_v24 = vpop.permute.xlu0 %4822 }
0x213c   :  { %5920 = vmatpush3.bf16.msra.mxu0 %v4823_v24 }
0x213d   :  { %5921 = vmatprep.subr.bf16.mxu0 %v6228_v0 }
0x213f   :  { %v4760_v31 = vpop.permute.xlu0 %4759 }
0x2140   :  { %5912 = vmatpush3.bf16.msra.mxu1 %v4760_v31  ;;  %5922 = vmatpush3.bf16.msra.mxu0 %v4821_v18 }
0x2141   :  { %5923 = vmatprep.subr.bf16.mxu0 %v6228_v0  ;;  %5913 = vmatprep.subr.bf16.mxu1 %v6228_v0 }
0x2144   :  { %5924 = vmatpush3.bf16.msra.mxu0 %v4819_v10 }
0x2145   :  { %v6187_v52 = vpop.eup %6186  ;;  %5925 = vmatprep.subr.bf16.mxu0 %v6228_v0 }
0x2146   :  { %v6189_v58 = vpop.eup %6188  ;;  %v4741_v5 = vsel %vm1308_vm6, %v6187_v52, 0.0 }
0x2147   :  { %v4750_v33 = vmul.f32 %v6189_v58, %v6185_v11  ;;  %4742 = vadd.xlane.f32.xlu0 %v4741_v5  ;;  %v4959_v11 = vsub.s32 4, %v6695_v39 }
0x2148   :  { %5926 = vmatpush3.bf16.msra.mxu0 %v4817_v48 }
0x2149   :  { %v4752_v42 = vpack.c.bf16 %v4750_v33, %v4750_v33  ;;  %v4960_v59 = vrot.slane %v6226_v7, %v4959_v11  ;;  %v4966_v35 = vrot.slane %v6227_v22, %v4959_v11 }
0x214b   :  { %5928 = vmatmul.mubr.msk.bf16.vlgmr.msra.gmra.mxu0 %vm1308_vm6, %v4752_v42 }
0x215d   :  { %4757 = vrot.lane.b32.xlu0 %v8217_v13, %s6236_s27  ;;  %v143_v13 = vld [vmem:[%s8379_s23 + $0x4] sm:$0xf] }
0x215e   :  { %v4876_v26 = vsel %vm362_vm5, %v143_v13, 0 }
0x21d0   :  { %v4743_v21 = vpop.xlane.xlu0 %4742 }
0x21d1   :  { %6190 = vrcp.f32 %v4743_v21 }
0x21d4   :  { %v4758_v30 = vpop.permute.xlu0 %4757 }
0x21d5   :  { %5914 = vmatpush3.bf16.msra.mxu1 %v4758_v30 }
0x21d6   :  { %5931 = vmatprep.subr.bf16.mxu1 %v6228_v0 }
0x21de   :  { %v6191_v44 = vpop.eup %6190 }
0x21df   :  { %v4749_v36 = vmul.f32 %v6191_v44, %v6187_v52 }
0x21e1   :  { %v4751_v49 = vpack.c.bf16 %v4749_v36, %v4749_v36 }
0x21e3   :  { %5916 = vmatmul.mubr.msk.bf16.vlgmr.msra.gmra.mxu1 %vm1308_vm6, %v4751_v49 }
0x21e4   :  { %5933 = vmatprep.mubr.msk.bf16.mxu1 %vm6229_vm0, %v6228_v0  ;;  %5932 = vmatpush3.bf16.msra.mxu1 %v4876_v26  ;;  %v5145_v0 = vld [vmem:[%s8380_s24] ss:$0 sm:$0xff] }
0x220b   :  { %v4865_v20 = vpop.f32.mrf.mxu0 }
0x220d   :  { %v5929_v28 = vpop.f32.mrf.mxu0 }
0x220f   :  { %v4868_v25 = vpop.f32.mrf.mxu0 }
0x2211   :  { %v5930_v45 = vpop.f32.mrf.mxu0 }
0x22a3   :  { %v4806_v46 = vpop.f32.mrf.mxu1 }
0x22a4   :  { %v4871_v4 = vpack.c.bf16 %v4865_v20, %v4806_v46 }
0x22a5   :  { %v5917_v15 = vpop.f32.mrf.mxu1 }
0x22a6   :  { %5934 = vmatmul.mubr.msk.bf16.vlgmr.msra.gmra.mxu1 %vm332_vm4, %v4871_v4 }
0x22a7   :  { %v4809_v57 = vpop.f32.mrf.mxu1 }
0x22a9   :  { %v5918_v53 = vpop.f32.mrf.mxu1 }
0x2366   :  { %v4912_v23 = vpop.f32.mrf.mxu1 }
0x2367   :  { %v4919_v2 = vadd.f32 %v4912_v23, %v8302_v55 }
0x2368   :  { %v5935_v37 = vpop.f32.mrf.mxu1 }
0x2369   :  { %v4927_v1 = vadd.f32 %v5145_v0, %v4919_v2 }
0x236a   :  { %v4915_v3 = vpop.f32.mrf.mxu1 }
0x236b   :  { %v4920_v32 = vadd.f32 %v4915_v3, %v8304_v63  ;;  %v4929_v61 = vadd.f32 %v4927_v1, %v7067_v43 }
0x236c   :  { %v5936_v47 = vpop.f32.mrf.mxu1 }
0x236d   :  { %v4928_v34 = vadd.f32 %v5145_v0, %v4920_v32  ;;  %v4931_v27 = vsel %vm182_vm1, %v4929_v61, 0.0 }
0x236e   :  { %4932 = vadd.xlane.f32.xlu0 %v4931_v27 }
0x236f   :  { %v4930_v54 = vadd.f32 %v4928_v34, %v7069_v19 }
0x2371   :  { %v4934_v6 = vsel %vm182_vm1, %v4930_v54, 0.0 }
0x2372   :  { %4935 = vadd.xlane.f32.xlu1 %v4934_v6 }
0x23f7   :  { %v4933_v62 = vpop.xlane.xlu0 %4932 }
0x23f8   :  { %v4937_v60 = vmul.f32 0.03125, %v4933_v62 }
0x23fa   :  { %v4939_v50 = vsub.f32 %v4929_v61, %v4937_v60 }
0x23fb   :  { %v4936_v51 = vpop.xlane.xlu1 %4935 }
0x23fc   :  { %v4938_v55 = vmul.f32 0.03125, %v4936_v51  ;;  %v4941_v12 = vmul.f32 %v4939_v50, %v4939_v50 }
0x23fe   :  { %v4940_v56 = vsub.f32 %v4930_v54, %v4938_v55  ;;  %v4943_v63 = vsel %vm182_vm1, %v4941_v12, 0.0 }
0x23ff   :  { %4944 = vadd.xlane.f32.xlu0 %v4943_v63 }
0x2400   :  { %v4942_v43 = vmul.f32 %v4940_v56, %v4940_v56 }
0x2402   :  { %v4946_v16 = vsel %vm182_vm1, %v4942_v43, 0.0 }
0x2403   :  { %4947 = vadd.xlane.f32.xlu0 %v4946_v16 }
0x2488   :  { %v4945_v40 = vpop.xlane.xlu0 %4944 }
0x2489   :  { %v4949_v14 = vmul.f32 0.03125, %v4945_v40 }
0x248b   :  { %v4951_v19 = vadd.f32 1e-05, %v4949_v14 }
0x248c   :  { %v4948_v9 = vpop.xlane.xlu0 %4947 }
0x248d   :  { %6192 = vrsqrt.f32 %v4951_v19  ;;  %v4950_v41 = vmul.f32 0.03125, %v4948_v9 }
0x248f   :  { %v4952_v38 = vadd.f32 1e-05, %v4950_v41 }
0x2491   :  { %6194 = vrsqrt.f32 %v4952_v38 }
0x249a   :  { %v6193_v17 = vpop.eup %6192 }
0x249b   :  { %v4955_v29 = vmul.f32 %v6193_v17, %v4939_v50 }
0x249d   :  { %v4961_v8 = vmul.f32 %v4960_v59, %v4955_v29 }
0x249e   :  { %v6195_v18 = vpop.eup %6194 }
0x249f   :  { %v4967_v24 = vadd.f32 %v4966_v35, %v4961_v8  ;;  %v4956_v31 = vmul.f32 %v6195_v18, %v4940_v56 }
0x24a1   :  { %4969 = vst.msk [vmem:[%s8381_s25] sm:$0xff] %vm182_vm1, %v4967_v24  ;;  %v4962_v39 = vmul.f32 %v4960_v59, %v4956_v31 }
0x24a3   :  { %v4968_v10 = vadd.f32 %v4966_v35, %v4962_v39 }
0x24a5   :  { %4970 = vst.msk [vmem:[%s8381_s25 + $0x8] sm:$0xff] %vm182_vm1, %v4968_v10 }

</bundles_post_ra>
